<compile_context>
chip_gen: v6e
topology: v6e:2x2x1
jax: 0.10.0
libtpu: 0.0.40
codegen_flags: <defaults>
</compile_context>

<pallas_src>
import math

import jax
import jax.numpy as jnp
from jax.experimental import pallas as pl
from jax.experimental.pallas import tpu as pltpu


# ---------------------------------------------------------------------------
# Fused RCAB kernel (one batch element per grid step)
# ---------------------------------------------------------------------------
def _rcab_kernel(x_ref, w1_ref, b1_ref, w2_ref, b2_ref,
                 wd1_ref, bd1_ref, wd2_ref, bd2_ref,
                 o_ref, pad_ref, col_ref, res_ref):
    # x_ref: (1, H, W, C) f32          o_ref: (1, H, W*C) f32 (lane-dense)
    # pad_ref: (H+2, W+2, C) bf16      col_ref: (H*W, 9*C) bf16
    # res_ref: (H, W, C) f32
    _, H, W, C = x_ref.shape
    HW = H * W

    # Zero only the 1-pixel halo border (cheap; the interior is fully
    # overwritten before each conv).  Done every step so it stays correct
    # even when the parallel batch axis is sharded across two TensorCores,
    # each of which owns a private, uninitialized scratch.
    pad_ref[pl.ds(0, 1), :, :] = jnp.zeros((1, W + 2, C), pad_ref.dtype)
    pad_ref[pl.ds(H + 1, 1), :, :] = jnp.zeros((1, W + 2, C), pad_ref.dtype)
    pad_ref[pl.ds(1, H), pl.ds(0, 1), :] = jnp.zeros((H, 1, C), pad_ref.dtype)
    pad_ref[pl.ds(1, H), pl.ds(W + 1, 1), :] = jnp.zeros((H, 1, C), pad_ref.dtype)

    x_img = x_ref[0]                                          # (H, W, C) f32

    def conv3x3(w_ref):
        # im2col into VMEM, then ONE deep-K MXU matmul:
        #   (H*W, 9*C) x (9*C, C) with f32 accumulation.
        for k in range(9):
            dy, dx = k // 3, k % 3
            tap = pad_ref[pl.ds(dy, H), pl.ds(dx, W), :]      # (H, W, C) bf16
            col_ref[:, pl.ds(k * C, C)] = tap.reshape(HW, C)
        return jnp.dot(col_ref[...], w_ref[...],
                       preferred_element_type=jnp.float32)    # (H*W, C) f32

    # conv1 (3x3, pad=1) + bias + ReLU
    pad_ref[pl.ds(1, H), pl.ds(1, W), :] = x_img.astype(pad_ref.dtype)
    y = jnp.maximum(conv3x3(w1_ref) + b1_ref[...], 0.0)       # (H*W, C) f32

    # conv2 (3x3, pad=1) + bias
    pad_ref[pl.ds(1, H), pl.ds(1, W), :] = y.reshape(H, W, C).astype(pad_ref.dtype)
    r = conv3x3(w2_ref) + b2_ref[...]                         # (H*W, C) f32

    # CALayer: global avg pool -> 1x1 -> ReLU -> 1x1 -> sigmoid.
    # bf16 matmul operands (single-pass MXU), f32 accumulation; sigmoid/exp
    # ride the EUP slot.
    pooled = jnp.mean(r, axis=0, keepdims=True)               # (1, C) f32
    z = jnp.dot(pooled.astype(jnp.bfloat16), wd1_ref[...],
                preferred_element_type=jnp.float32) + bd1_ref[...]
    z = jnp.maximum(z, 0.0)                                   # (1, C//red)
    s = jnp.dot(z.astype(jnp.bfloat16), wd2_ref[...],
                preferred_element_type=jnp.float32) + bd2_ref[...]
    s = jax.nn.sigmoid(s)                                     # (1, C) f32

    # channel scale + residual add, staged through an f32 scratch so the
    # lane-dense output block is filled with plain ref-to-ref column moves
    # and written back to HBM as one dense (H, W*C) slab.
    res_ref[...] = (r * s).reshape(H, W, C) + x_img
    for w in range(W):
        o_ref[0, :, pl.ds(w * C, C)] = res_ref[:, w, :]


def rcab_forward(x_nhwc, params):
    """x_nhwc: (N, H, W, C) float32.  Returns (N, H, W, C) float32."""
    N, H, W, C = x_nhwc.shape
    w1, b1, w2, b2, wd1, bd1, wd2, bd2 = params
    Cr = wd1.shape[-1]
    K9 = 9 * C

    out_packed = pl.pallas_call(
        _rcab_kernel,
        out_shape=jax.ShapeDtypeStruct((N, H, W * C), jnp.float32),
        grid_spec=pltpu.PrefetchScalarGridSpec(
            num_scalar_prefetch=0,
            grid=(N,),
            in_specs=[
                pl.BlockSpec((1, H, W, C), lambda n: (n, 0, 0, 0)),
                pl.BlockSpec((K9, C), lambda n: (0, 0)),
                pl.BlockSpec((1, C), lambda n: (0, 0)),
                pl.BlockSpec((K9, C), lambda n: (0, 0)),
                pl.BlockSpec((1, C), lambda n: (0, 0)),
                pl.BlockSpec((C, Cr), lambda n: (0, 0)),
                pl.BlockSpec((1, Cr), lambda n: (0, 0)),
                pl.BlockSpec((Cr, C), lambda n: (0, 0)),
                pl.BlockSpec((1, C), lambda n: (0, 0)),
            ],
            out_specs=pl.BlockSpec((1, H, W * C), lambda n: (n, 0, 0)),
            scratch_shapes=[
                pltpu.VMEM((H + 2, W + 2, C), jnp.bfloat16),   # halo buffer
                pltpu.VMEM((H * W, K9), jnp.bfloat16),         # im2col slab
                pltpu.VMEM((H, W, C), jnp.float32),            # epilogue stage
            ],
        ),
        compiler_params=pltpu.CompilerParams(
            # Batch axis is parallel: sharded across both TensorCores on v7x,
            # a plain loop on v5e/v6e.
            dimension_semantics=("parallel",),
        ),
    )(x_nhwc, w1, b1, w2, b2, wd1, bd1, wd2, bd2)

    return out_packed.reshape(N, H, W, C)


# ---------------------------------------------------------------------------
# Deterministic parameter init (He-normal weights, small / zero biases)
# ---------------------------------------------------------------------------
def init_rcab_params(key, n_feat, reduction):
    # TODO(synk): bn=True branch (nn.BatchNorm2d) not implemented; the module
    # default (bn=False) is what is mirrored here.
    cr = n_feat // reduction
    ks = jax.random.split(key, 6)

    def kaiming(k, shape, fan_in):
        return math.sqrt(2.0 / fan_in) * jax.random.normal(k, shape, jnp.float32)

    w1_hwio = kaiming(ks[0], (3, 3, n_feat, n_feat), 9 * n_feat)
    w2_hwio = kaiming(ks[1], (3, 3, n_feat, n_feat), 9 * n_feat)
    b1 = 0.01 * jax.random.normal(ks[2], (1, n_feat), jnp.float32)
    b2 = 0.01 * jax.random.normal(ks[3], (1, n_feat), jnp.float32)
    wd1 = kaiming(ks[4], (n_feat, cr), n_feat)
    wd2 = kaiming(ks[5], (cr, n_feat), cr)
    bd1 = jnp.zeros((1, cr), jnp.float32)
    bd2 = jnp.zeros((1, n_feat), jnp.float32)

    # 3x3 weights packed tap-major as (9*Cin, Cout); matmul inputs are bf16
    # (MXU-native), accumulation stays f32.  1x1 CA weights are bf16 too.
    w1 = w1_hwio.reshape(9 * n_feat, n_feat).astype(jnp.bfloat16)
    w2 = w2_hwio.reshape(9 * n_feat, n_feat).astype(jnp.bfloat16)
    return (w1, b1, w2, b2,
            wd1.astype(jnp.bfloat16), bd1, wd2.astype(jnp.bfloat16), bd2)


# ---------------------------------------------------------------------------
# Pure-JAX reference (same bf16 matmul inputs, f32 accumulation)
# ---------------------------------------------------------------------------
def rcab_reference(x_nhwc, params):
    w1, b1, w2, b2, wd1, bd1, wd2, bd2 = params
    C = x_nhwc.shape[-1]

    def conv3x3(x, wflat, b):
        w = wflat.reshape(3, 3, C, C)                          # HWIO, bf16
        y = jax.lax.conv_general_dilated(
            x.astype(jnp.bfloat16), w, window_strides=(1, 1), padding="SAME",
            dimension_numbers=("NHWC", "HWIO", "NHWC"),
            preferred_element_type=jnp.float32)
        return y + b.reshape(1, 1, 1, C)

    y = jnp.maximum(conv3x3(x_nhwc, w1, b1), 0.0)
    r = conv3x3(y, w2, b2)
    pooled = jnp.mean(r, axis=(1, 2), keepdims=True)           # (N,1,1,C) f32
    z = jnp.einsum("nhwc,cd->nhwd", pooled.astype(jnp.bfloat16), wd1,
                   preferred_element_type=jnp.float32) + bd1.reshape(1, 1, 1, -1)
    z = jnp.maximum(z, 0.0)
    s = jax.nn.sigmoid(
        jnp.einsum("nhwd,dc->nhwc", z.astype(jnp.bfloat16), wd2,
                   preferred_element_type=jnp.float32) + bd2.reshape(1, 1, 1, -1))
    return r * s + x_nhwc


if __name__ == "__main__":
    n_feat, reduction = 64, 16
    N, H, W = 2, 16, 16

    key = jax.random.PRNGKey(0)
    kp, kx = jax.random.split(key)
    params = init_rcab_params(kp, n_feat, reduction)

    # PyTorch-style NCHW input -> NHWC for the kernel (channels on lanes).
    x_nchw = jax.random.normal(kx, (N, n_feat, H, W), jnp.float32)
    x = jnp.transpose(x_nchw, (0, 2, 3, 1))

    out = jax.jit(rcab_forward)(x, params)
    out = jax.block_until_ready(out)

    assert out.shape == (N, H, W, n_feat)
    assert bool(jnp.all(jnp.isfinite(out)))

    ref = rcab_reference(x, params)
    max_err = float(jnp.max(jnp.abs(out - ref)))
    assert bool(jnp.allclose(out, ref, rtol=5e-2, atol=5e-2)), max_err

    print("KERNEL_OK")
</pallas_src>

<mosaic_0001>
module attributes {stable_mosaic.version = 11 : i64} {
  func.func @_rcab_kernel(%arg0: i32, %arg1: memref<1x16x16x64xf32, #tpu.memory_space<vmem>>, %arg2: memref<576x64xbf16, #tpu.memory_space<vmem>>, %arg3: memref<1x64xf32, #tpu.memory_space<vmem>>, %arg4: memref<576x64xbf16, #tpu.memory_space<vmem>>, %arg5: memref<1x64xf32, #tpu.memory_space<vmem>>, %arg6: memref<64x4xbf16, #tpu.memory_space<vmem>>, %arg7: memref<1x4xf32, #tpu.memory_space<vmem>>, %arg8: memref<4x64xbf16, #tpu.memory_space<vmem>>, %arg9: memref<1x64xf32, #tpu.memory_space<vmem>>, %arg10: memref<1x16x1024xf32, #tpu.memory_space<vmem>>, %arg11: memref<18x18x64xbf16, #tpu.memory_space<vmem>>, %arg12: memref<256x576xbf16, #tpu.memory_space<vmem>>, %arg13: memref<16x16x64xf32, #tpu.memory_space<vmem>>) attributes {dimension_semantics = [#tpu.dimension_semantics<parallel>], iteration_bounds = array<i64: 2>, scalar_prefetch = 0 : i64, scratch_operands = 3 : i64, tpu.core_type = #tpu.core_type<tc>, window_params = [{transform_indices = @transform_0, window_bounds = array<i64: 1, 16, 16, 64>}, {pipeline_mode = #tpu.pipeline_mode<synchronous>, transform_indices = @transform_1, window_bounds = array<i64: 576, 64>}, {pipeline_mode = #tpu.pipeline_mode<synchronous>, transform_indices = @transform_2, window_bounds = array<i64: 1, 64>}, {pipeline_mode = #tpu.pipeline_mode<synchronous>, transform_indices = @transform_3, window_bounds = array<i64: 576, 64>}, {pipeline_mode = #tpu.pipeline_mode<synchronous>, transform_indices = @transform_4, window_bounds = array<i64: 1, 64>}, {pipeline_mode = #tpu.pipeline_mode<synchronous>, transform_indices = @transform_5, window_bounds = array<i64: 64, 4>}, {pipeline_mode = #tpu.pipeline_mode<synchronous>, transform_indices = @transform_6, window_bounds = array<i64: 1, 4>}, {pipeline_mode = #tpu.pipeline_mode<synchronous>, transform_indices = @transform_7, window_bounds = array<i64: 4, 64>}, {pipeline_mode = #tpu.pipeline_mode<synchronous>, transform_indices = @transform_8, window_bounds = array<i64: 1, 64>}, {transform_indices = @transform_9, window_bounds = array<i64: 1, 16, 1024>}]} {
    %cst = arith.constant 0.000000e+00 : bf16
    %0 = vector.broadcast %cst : bf16 to vector<1x18x64xbf16>
    %c0 = arith.constant 0 : index
    %c0_0 = arith.constant 0 : index
    %c0_1 = arith.constant 0 : index
    %1 = vector.load %arg11[%c0, %c0_0, %c0_1] : memref<18x18x64xbf16, #tpu.memory_space<vmem>>, vector<1x18x64xbf16>
    tpu.vector_store %arg11[%c0, %c0_0, %c0_1], %0 {strides = array<i32>} : memref<18x18x64xbf16, #tpu.memory_space<vmem>>, vector<1x18x64xbf16>,
    %cst_2 = arith.constant 0.000000e+00 : bf16
    %2 = vector.broadcast %cst_2 : bf16 to vector<1x18x64xbf16>
    %c17 = arith.constant 17 : index
    %c0_3 = arith.constant 0 : index
    %c0_4 = arith.constant 0 : index
    %3 = vector.load %arg11[%c17, %c0_3, %c0_4] : memref<18x18x64xbf16, #tpu.memory_space<vmem>>, vector<1x18x64xbf16>
    tpu.vector_store %arg11[%c17, %c0_3, %c0_4], %2 {strides = array<i32>} : memref<18x18x64xbf16, #tpu.memory_space<vmem>>, vector<1x18x64xbf16>,
    %cst_5 = arith.constant 0.000000e+00 : bf16
    %4 = vector.broadcast %cst_5 : bf16 to vector<16x1x64xbf16>
    %c1 = arith.constant 1 : index
    %c0_6 = arith.constant 0 : index
    %c0_7 = arith.constant 0 : index
    %5 = vector.load %arg11[%c1, %c0_6, %c0_7] : memref<18x18x64xbf16, #tpu.memory_space<vmem>>, vector<16x1x64xbf16>
    tpu.vector_store %arg11[%c1, %c0_6, %c0_7], %4 {strides = array<i32>} : memref<18x18x64xbf16, #tpu.memory_space<vmem>>, vector<16x1x64xbf16>,
    %cst_8 = arith.constant 0.000000e+00 : bf16
    %6 = vector.broadcast %cst_8 : bf16 to vector<16x1x64xbf16>
    %c1_9 = arith.constant 1 : index
    %c17_10 = arith.constant 17 : index
    %c0_11 = arith.constant 0 : index
    %7 = vector.load %arg11[%c1_9, %c17_10, %c0_11] : memref<18x18x64xbf16, #tpu.memory_space<vmem>>, vector<16x1x64xbf16>
    tpu.vector_store %arg11[%c1_9, %c17_10, %c0_11], %6 {strides = array<i32>} : memref<18x18x64xbf16, #tpu.memory_space<vmem>>, vector<16x1x64xbf16>,
    %c0_12 = arith.constant 0 : index
    %c0_13 = arith.constant 0 : index
    %c0_14 = arith.constant 0 : index
    %c0_15 = arith.constant 0 : index
    %8 = vector.load %arg1[%c0_12, %c0_13, %c0_14, %c0_15] : memref<1x16x16x64xf32, #tpu.memory_space<vmem>>, vector<1x16x16x64xf32>
    %9 = vector.shape_cast %8 : vector<1x16x16x64xf32> to vector<16x16x64xf32>
    %10 = arith.truncf %9 : vector<16x16x64xf32> to vector<16x16x64xbf16>
    %c1_16 = arith.constant 1 : index
    %c1_17 = arith.constant 1 : index
    %c0_18 = arith.constant 0 : index
    %11 = vector.load %arg11[%c1_16, %c1_17, %c0_18] : memref<18x18x64xbf16, #tpu.memory_space<vmem>>, vector<16x16x64xbf16>
    tpu.vector_store %arg11[%c1_16, %c1_17, %c0_18], %10 {strides = array<i32>} : memref<18x18x64xbf16, #tpu.memory_space<vmem>>, vector<16x16x64xbf16>,
    %c0_19 = arith.constant 0 : index
    %c0_20 = arith.constant 0 : index
    %c0_21 = arith.constant 0 : index
    %12 = vector.load %arg11[%c0_19, %c0_20, %c0_21] : memref<18x18x64xbf16, #tpu.memory_space<vmem>>, vector<16x16x64xbf16>
    %13 = vector.shape_cast %12 : vector<16x16x64xbf16> to vector<256x64xbf16>
    %c0_22 = arith.constant 0 : index
    %c0_23 = arith.constant 0 : index
    %14 = vector.load %arg12[%c0_22, %c0_23] : memref<256x576xbf16, #tpu.memory_space<vmem>>, vector<256x64xbf16>
    tpu.vector_store %arg12[%c0_22, %c0_23], %13 {strides = array<i32>} : memref<256x576xbf16, #tpu.memory_space<vmem>>, vector<256x64xbf16>,
    %c0_24 = arith.constant 0 : index
    %c1_25 = arith.constant 1 : index
    %c0_26 = arith.constant 0 : index
    %15 = vector.load %arg11[%c0_24, %c1_25, %c0_26] : memref<18x18x64xbf16, #tpu.memory_space<vmem>>, vector<16x16x64xbf16>
    %16 = vector.shape_cast %15 : vector<16x16x64xbf16> to vector<256x64xbf16>
    %c0_27 = arith.constant 0 : index
    %c64 = arith.constant 64 : index
    %17 = vector.load %arg12[%c0_27, %c64] : memref<256x576xbf16, #tpu.memory_space<vmem>>, vector<256x64xbf16>
    tpu.vector_store %arg12[%c0_27, %c64], %16 {strides = array<i32>} : memref<256x576xbf16, #tpu.memory_space<vmem>>, vector<256x64xbf16>,
    %c0_28 = arith.constant 0 : index
    %c2 = arith.constant 2 : index
    %c0_29 = arith.constant 0 : index
    %18 = vector.load %arg11[%c0_28, %c2, %c0_29] : memref<18x18x64xbf16, #tpu.memory_space<vmem>>, vector<16x16x64xbf16>
    %19 = vector.shape_cast %18 : vector<16x16x64xbf16> to vector<256x64xbf16>
    %c0_30 = arith.constant 0 : index
    %c128 = arith.constant 128 : index
    %20 = vector.load %arg12[%c0_30, %c128] : memref<256x576xbf16, #tpu.memory_space<vmem>>, vector<256x64xbf16>
    tpu.vector_store %arg12[%c0_30, %c128], %19 {strides = array<i32>} : memref<256x576xbf16, #tpu.memory_space<vmem>>, vector<256x64xbf16>,
    %c1_31 = arith.constant 1 : index
    %c0_32 = arith.constant 0 : index
    %c0_33 = arith.constant 0 : index
    %21 = vector.load %arg11[%c1_31, %c0_32, %c0_33] : memref<18x18x64xbf16, #tpu.memory_space<vmem>>, vector<16x16x64xbf16>
    %22 = vector.shape_cast %21 : vector<16x16x64xbf16> to vector<256x64xbf16>
    %c0_34 = arith.constant 0 : index
    %c192 = arith.constant 192 : index
    %23 = vector.load %arg12[%c0_34, %c192] : memref<256x576xbf16, #tpu.memory_space<vmem>>, vector<256x64xbf16>
    tpu.vector_store %arg12[%c0_34, %c192], %22 {strides = array<i32>} : memref<256x576xbf16, #tpu.memory_space<vmem>>, vector<256x64xbf16>,
    %c1_35 = arith.constant 1 : index
    %c1_36 = arith.constant 1 : index
    %c0_37 = arith.constant 0 : index
    %24 = vector.load %arg11[%c1_35, %c1_36, %c0_37] : memref<18x18x64xbf16, #tpu.memory_space<vmem>>, vector<16x16x64xbf16>
    %25 = vector.shape_cast %24 : vector<16x16x64xbf16> to vector<256x64xbf16>
    %c0_38 = arith.constant 0 : index
    %c256 = arith.constant 256 : index
    %26 = vector.load %arg12[%c0_38, %c256] : memref<256x576xbf16, #tpu.memory_space<vmem>>, vector<256x64xbf16>
    tpu.vector_store %arg12[%c0_38, %c256], %25 {strides = array<i32>} : memref<256x576xbf16, #tpu.memory_space<vmem>>, vector<256x64xbf16>,
    %c1_39 = arith.constant 1 : index
    %c2_40 = arith.constant 2 : index
    %c0_41 = arith.constant 0 : index
    %27 = vector.load %arg11[%c1_39, %c2_40, %c0_41] : memref<18x18x64xbf16, #tpu.memory_space<vmem>>, vector<16x16x64xbf16>
    %28 = vector.shape_cast %27 : vector<16x16x64xbf16> to vector<256x64xbf16>
    %c0_42 = arith.constant 0 : index
    %c320 = arith.constant 320 : index
    %29 = vector.load %arg12[%c0_42, %c320] : memref<256x576xbf16, #tpu.memory_space<vmem>>, vector<256x64xbf16>
    tpu.vector_store %arg12[%c0_42, %c320], %28 {strides = array<i32>} : memref<256x576xbf16, #tpu.memory_space<vmem>>, vector<256x64xbf16>,
    %c2_43 = arith.constant 2 : index
    %c0_44 = arith.constant 0 : index
    %c0_45 = arith.constant 0 : index
    %30 = vector.load %arg11[%c2_43, %c0_44, %c0_45] : memref<18x18x64xbf16, #tpu.memory_space<vmem>>, vector<16x16x64xbf16>
    %31 = vector.shape_cast %30 : vector<16x16x64xbf16> to vector<256x64xbf16>
    %c0_46 = arith.constant 0 : index
    %c384 = arith.constant 384 : index
    %32 = vector.load %arg12[%c0_46, %c384] : memref<256x576xbf16, #tpu.memory_space<vmem>>, vector<256x64xbf16>
    tpu.vector_store %arg12[%c0_46, %c384], %31 {strides = array<i32>} : memref<256x576xbf16, #tpu.memory_space<vmem>>, vector<256x64xbf16>,
    %c2_47 = arith.constant 2 : index
    %c1_48 = arith.constant 1 : index
    %c0_49 = arith.constant 0 : index
    %33 = vector.load %arg11[%c2_47, %c1_48, %c0_49] : memref<18x18x64xbf16, #tpu.memory_space<vmem>>, vector<16x16x64xbf16>
    %34 = vector.shape_cast %33 : vector<16x16x64xbf16> to vector<256x64xbf16>
    %c0_50 = arith.constant 0 : index
    %c448 = arith.constant 448 : index
    %35 = vector.load %arg12[%c0_50, %c448] : memref<256x576xbf16, #tpu.memory_space<vmem>>, vector<256x64xbf16>
    tpu.vector_store %arg12[%c0_50, %c448], %34 {strides = array<i32>} : memref<256x576xbf16, #tpu.memory_space<vmem>>, vector<256x64xbf16>,
    %c2_51 = arith.constant 2 : index
    %c2_52 = arith.constant 2 : index
    %c0_53 = arith.constant 0 : index
    %36 = vector.load %arg11[%c2_51, %c2_52, %c0_53] : memref<18x18x64xbf16, #tpu.memory_space<vmem>>, vector<16x16x64xbf16>
    %37 = vector.shape_cast %36 : vector<16x16x64xbf16> to vector<256x64xbf16>
    %c0_54 = arith.constant 0 : index
    %c512 = arith.constant 512 : index
    %38 = vector.load %arg12[%c0_54, %c512] : memref<256x576xbf16, #tpu.memory_space<vmem>>, vector<256x64xbf16>
    tpu.vector_store %arg12[%c0_54, %c512], %37 {strides = array<i32>} : memref<256x576xbf16, #tpu.memory_space<vmem>>, vector<256x64xbf16>,
    %c0_55 = arith.constant 0 : index
    %c0_56 = arith.constant 0 : index
    %39 = vector.load %arg12[%c0_55, %c0_56] : memref<256x576xbf16, #tpu.memory_space<vmem>>, vector<256x576xbf16>
    %c0_57 = arith.constant 0 : index
    %c0_58 = arith.constant 0 : index
    %40 = vector.load %arg2[%c0_57, %c0_58] : memref<576x64xbf16, #tpu.memory_space<vmem>>, vector<576x64xbf16>
    %cst_59 = arith.constant dense<0.000000e+00> : vector<256x64xf32>
    %41 = tpu.matmul %39, %40, %cst_59 {dimension_numbers = #tpu.dot_dimension_numbers<[1], [0], [0], [1], [0, 0, 1, 1], [], []>} : vector<256x576xbf16>, vector<576x64xbf16>, vector<256x64xf32> -> vector<256x64xf32>
    %c0_60 = arith.constant 0 : index
    %c0_61 = arith.constant 0 : index
    %42 = vector.load %arg3[%c0_60, %c0_61] : memref<1x64xf32, #tpu.memory_space<vmem>>, vector<1x64xf32>
    %43 = vector.broadcast %42 : vector<1x64xf32> to vector<256x64xf32>
    %44 = arith.addf %41, %43 : vector<256x64xf32>
    %cst_62 = arith.constant 0.000000e+00 : f32
    %45 = vector.broadcast %cst_62 : f32 to vector<256x64xf32>
    %46 = arith.maximumf %44, %45 : vector<256x64xf32>
    %47 = vector.shape_cast %46 : vector<256x64xf32> to vector<16x16x64xf32>
    %48 = arith.truncf %47 : vector<16x16x64xf32> to vector<16x16x64xbf16>
    %c1_63 = arith.constant 1 : index
    %c1_64 = arith.constant 1 : index
    %c0_65 = arith.constant 0 : index
    %49 = vector.load %arg11[%c1_63, %c1_64, %c0_65] : memref<18x18x64xbf16, #tpu.memory_space<vmem>>, vector<16x16x64xbf16>
    tpu.vector_store %arg11[%c1_63, %c1_64, %c0_65], %48 {strides = array<i32>} : memref<18x18x64xbf16, #tpu.memory_space<vmem>>, vector<16x16x64xbf16>,
    %c0_66 = arith.constant 0 : index
    %c0_67 = arith.constant 0 : index
    %c0_68 = arith.constant 0 : index
    %50 = vector.load %arg11[%c0_66, %c0_67, %c0_68] : memref<18x18x64xbf16, #tpu.memory_space<vmem>>, vector<16x16x64xbf16>
    %51 = vector.shape_cast %50 : vector<16x16x64xbf16> to vector<256x64xbf16>
    %c0_69 = arith.constant 0 : index
    %c0_70 = arith.constant 0 : index
    %52 = vector.load %arg12[%c0_69, %c0_70] : memref<256x576xbf16, #tpu.memory_space<vmem>>, vector<256x64xbf16>
    tpu.vector_store %arg12[%c0_69, %c0_70], %51 {strides = array<i32>} : memref<256x576xbf16, #tpu.memory_space<vmem>>, vector<256x64xbf16>,
    %c0_71 = arith.constant 0 : index
    %c1_72 = arith.constant 1 : index
    %c0_73 = arith.constant 0 : index
    %53 = vector.load %arg11[%c0_71, %c1_72, %c0_73] : memref<18x18x64xbf16, #tpu.memory_space<vmem>>, vector<16x16x64xbf16>
    %54 = vector.shape_cast %53 : vector<16x16x64xbf16> to vector<256x64xbf16>
    %c0_74 = arith.constant 0 : index
    %c64_75 = arith.constant 64 : index
    %55 = vector.load %arg12[%c0_74, %c64_75] : memref<256x576xbf16, #tpu.memory_space<vmem>>, vector<256x64xbf16>
    tpu.vector_store %arg12[%c0_74, %c64_75], %54 {strides = array<i32>} : memref<256x576xbf16, #tpu.memory_space<vmem>>, vector<256x64xbf16>,
    %c0_76 = arith.constant 0 : index
    %c2_77 = arith.constant 2 : index
    %c0_78 = arith.constant 0 : index
    %56 = vector.load %arg11[%c0_76, %c2_77, %c0_78] : memref<18x18x64xbf16, #tpu.memory_space<vmem>>, vector<16x16x64xbf16>
    %57 = vector.shape_cast %56 : vector<16x16x64xbf16> to vector<256x64xbf16>
    %c0_79 = arith.constant 0 : index
    %c128_80 = arith.constant 128 : index
    %58 = vector.load %arg12[%c0_79, %c128_80] : memref<256x576xbf16, #tpu.memory_space<vmem>>, vector<256x64xbf16>
    tpu.vector_store %arg12[%c0_79, %c128_80], %57 {strides = array<i32>} : memref<256x576xbf16, #tpu.memory_space<vmem>>, vector<256x64xbf16>,
    %c1_81 = arith.constant 1 : index
    %c0_82 = arith.constant 0 : index
    %c0_83 = arith.constant 0 : index
    %59 = vector.load %arg11[%c1_81, %c0_82, %c0_83] : memref<18x18x64xbf16, #tpu.memory_space<vmem>>, vector<16x16x64xbf16>
    %60 = vector.shape_cast %59 : vector<16x16x64xbf16> to vector<256x64xbf16>
    %c0_84 = arith.constant 0 : index
    %c192_85 = arith.constant 192 : index
    %61 = vector.load %arg12[%c0_84, %c192_85] : memref<256x576xbf16, #tpu.memory_space<vmem>>, vector<256x64xbf16>
    tpu.vector_store %arg12[%c0_84, %c192_85], %60 {strides = array<i32>} : memref<256x576xbf16, #tpu.memory_space<vmem>>, vector<256x64xbf16>,
    %c1_86 = arith.constant 1 : index
    %c1_87 = arith.constant 1 : index
    %c0_88 = arith.constant 0 : index
    %62 = vector.load %arg11[%c1_86, %c1_87, %c0_88] : memref<18x18x64xbf16, #tpu.memory_space<vmem>>, vector<16x16x64xbf16>
    %63 = vector.shape_cast %62 : vector<16x16x64xbf16> to vector<256x64xbf16>
    %c0_89 = arith.constant 0 : index
    %c256_90 = arith.constant 256 : index
    %64 = vector.load %arg12[%c0_89, %c256_90] : memref<256x576xbf16, #tpu.memory_space<vmem>>, vector<256x64xbf16>
    tpu.vector_store %arg12[%c0_89, %c256_90], %63 {strides = array<i32>} : memref<256x576xbf16, #tpu.memory_space<vmem>>, vector<256x64xbf16>,
    %c1_91 = arith.constant 1 : index
    %c2_92 = arith.constant 2 : index
    %c0_93 = arith.constant 0 : index
    %65 = vector.load %arg11[%c1_91, %c2_92, %c0_93] : memref<18x18x64xbf16, #tpu.memory_space<vmem>>, vector<16x16x64xbf16>
    %66 = vector.shape_cast %65 : vector<16x16x64xbf16> to vector<256x64xbf16>
    %c0_94 = arith.constant 0 : index
    %c320_95 = arith.constant 320 : index
    %67 = vector.load %arg12[%c0_94, %c320_95] : memref<256x576xbf16, #tpu.memory_space<vmem>>, vector<256x64xbf16>
    tpu.vector_store %arg12[%c0_94, %c320_95], %66 {strides = array<i32>} : memref<256x576xbf16, #tpu.memory_space<vmem>>, vector<256x64xbf16>,
    %c2_96 = arith.constant 2 : index
    %c0_97 = arith.constant 0 : index
    %c0_98 = arith.constant 0 : index
    %68 = vector.load %arg11[%c2_96, %c0_97, %c0_98] : memref<18x18x64xbf16, #tpu.memory_space<vmem>>, vector<16x16x64xbf16>
    %69 = vector.shape_cast %68 : vector<16x16x64xbf16> to vector<256x64xbf16>
    %c0_99 = arith.constant 0 : index
    %c384_100 = arith.constant 384 : index
    %70 = vector.load %arg12[%c0_99, %c384_100] : memref<256x576xbf16, #tpu.memory_space<vmem>>, vector<256x64xbf16>
    tpu.vector_store %arg12[%c0_99, %c384_100], %69 {strides = array<i32>} : memref<256x576xbf16, #tpu.memory_space<vmem>>, vector<256x64xbf16>,
    %c2_101 = arith.constant 2 : index
    %c1_102 = arith.constant 1 : index
    %c0_103 = arith.constant 0 : index
    %71 = vector.load %arg11[%c2_101, %c1_102, %c0_103] : memref<18x18x64xbf16, #tpu.memory_space<vmem>>, vector<16x16x64xbf16>
    %72 = vector.shape_cast %71 : vector<16x16x64xbf16> to vector<256x64xbf16>
    %c0_104 = arith.constant 0 : index
    %c448_105 = arith.constant 448 : index
    %73 = vector.load %arg12[%c0_104, %c448_105] : memref<256x576xbf16, #tpu.memory_space<vmem>>, vector<256x64xbf16>
    tpu.vector_store %arg12[%c0_104, %c448_105], %72 {strides = array<i32>} : memref<256x576xbf16, #tpu.memory_space<vmem>>, vector<256x64xbf16>,
    %c2_106 = arith.constant 2 : index
    %c2_107 = arith.constant 2 : index
    %c0_108 = arith.constant 0 : index
    %74 = vector.load %arg11[%c2_106, %c2_107, %c0_108] : memref<18x18x64xbf16, #tpu.memory_space<vmem>>, vector<16x16x64xbf16>
    %75 = vector.shape_cast %74 : vector<16x16x64xbf16> to vector<256x64xbf16>
    %c0_109 = arith.constant 0 : index
    %c512_110 = arith.constant 512 : index
    %76 = vector.load %arg12[%c0_109, %c512_110] : memref<256x576xbf16, #tpu.memory_space<vmem>>, vector<256x64xbf16>
    tpu.vector_store %arg12[%c0_109, %c512_110], %75 {strides = array<i32>} : memref<256x576xbf16, #tpu.memory_space<vmem>>, vector<256x64xbf16>,
    %c0_111 = arith.constant 0 : index
    %c0_112 = arith.constant 0 : index
    %77 = vector.load %arg12[%c0_111, %c0_112] : memref<256x576xbf16, #tpu.memory_space<vmem>>, vector<256x576xbf16>
    %c0_113 = arith.constant 0 : index
    %c0_114 = arith.constant 0 : index
    %78 = vector.load %arg4[%c0_113, %c0_114] : memref<576x64xbf16, #tpu.memory_space<vmem>>, vector<576x64xbf16>
    %cst_115 = arith.constant dense<0.000000e+00> : vector<256x64xf32>
    %79 = tpu.matmul %77, %78, %cst_115 {dimension_numbers = #tpu.dot_dimension_numbers<[1], [0], [0], [1], [0, 0, 1, 1], [], []>} : vector<256x576xbf16>, vector<576x64xbf16>, vector<256x64xf32> -> vector<256x64xf32>
    %c0_116 = arith.constant 0 : index
    %c0_117 = arith.constant 0 : index
    %80 = vector.load %arg5[%c0_116, %c0_117] : memref<1x64xf32, #tpu.memory_space<vmem>>, vector<1x64xf32>
    %81 = vector.broadcast %80 : vector<1x64xf32> to vector<256x64xf32>
    %82 = arith.addf %79, %81 : vector<256x64xf32>
    %cst_118 = arith.constant dense<0.000000e+00> : vector<64xf32>
    %83 = vector.multi_reduction <add>, %82, %cst_118 [0] : vector<256x64xf32> to vector<64xf32>
    %84 = vector.shape_cast %83 : vector<64xf32> to vector<1x64xf32>
    %cst_119 = arith.constant 2.560000e+02 : f32
    %85 = vector.broadcast %cst_119 : f32 to vector<1x64xf32>
    %86 = arith.divf %84, %85 : vector<1x64xf32>
    %87 = arith.truncf %86 : vector<1x64xf32> to vector<1x64xbf16>
    %c0_120 = arith.constant 0 : index
    %c0_121 = arith.constant 0 : index
    %88 = vector.load %arg6[%c0_120, %c0_121] : memref<64x4xbf16, #tpu.memory_space<vmem>>, vector<64x4xbf16>
    %cst_122 = arith.constant dense<0.000000e+00> : vector<1x4xf32>
    %89 = tpu.matmul %87, %88, %cst_122 {dimension_numbers = #tpu.dot_dimension_numbers<[1], [0], [0], [1], [0, 0, 1, 1], [], []>} : vector<1x64xbf16>, vector<64x4xbf16>, vector<1x4xf32> -> vector<1x4xf32>
    %c0_123 = arith.constant 0 : index
    %c0_124 = arith.constant 0 : index
    %90 = vector.load %arg7[%c0_123, %c0_124] : memref<1x4xf32, #tpu.memory_space<vmem>>, vector<1x4xf32>
    %91 = arith.addf %89, %90 : vector<1x4xf32>
    %cst_125 = arith.constant 0.000000e+00 : f32
    %92 = vector.broadcast %cst_125 : f32 to vector<1x4xf32>
    %93 = arith.maximumf %91, %92 : vector<1x4xf32>
    %94 = arith.truncf %93 : vector<1x4xf32> to vector<1x4xbf16>
    %c0_126 = arith.constant 0 : index
    %c0_127 = arith.constant 0 : index
    %95 = vector.load %arg8[%c0_126, %c0_127] : memref<4x64xbf16, #tpu.memory_space<vmem>>, vector<4x64xbf16>
    %cst_128 = arith.constant dense<0.000000e+00> : vector<1x64xf32>
    %96 = tpu.matmul %94, %95, %cst_128 {dimension_numbers = #tpu.dot_dimension_numbers<[1], [0], [0], [1], [0, 0, 1, 1], [], []>} : vector<1x4xbf16>, vector<4x64xbf16>, vector<1x64xf32> -> vector<1x64xf32>
    %c0_129 = arith.constant 0 : index
    %c0_130 = arith.constant 0 : index
    %97 = vector.load %arg9[%c0_129, %c0_130] : memref<1x64xf32, #tpu.memory_space<vmem>>, vector<1x64xf32>
    %98 = arith.addf %96, %97 : vector<1x64xf32>
    %99 = arith.negf %98 : vector<1x64xf32>
    %100 = math.exp %99 : vector<1x64xf32>
    %cst_131 = arith.constant 1.000000e+00 : f32
    %101 = vector.broadcast %cst_131 : f32 to vector<1x64xf32>
    %102 = arith.addf %101, %100 : vector<1x64xf32>
    %103 = arith.divf %101, %102 : vector<1x64xf32>
    %104 = vector.broadcast %103 : vector<1x64xf32> to vector<256x64xf32>
    %105 = arith.mulf %82, %104 : vector<256x64xf32>
    %106 = vector.shape_cast %105 : vector<256x64xf32> to vector<16x16x64xf32>
    %107 = arith.addf %106, %9 : vector<16x16x64xf32>
    %c0_132 = arith.constant 0 : index
    %c0_133 = arith.constant 0 : index
    %c0_134 = arith.constant 0 : index
    %108 = vector.load %arg13[%c0_132, %c0_133, %c0_134] : memref<16x16x64xf32, #tpu.memory_space<vmem>>, vector<16x16x64xf32>
    tpu.vector_store %arg13[%c0_132, %c0_133, %c0_134], %107 {strides = array<i32>} : memref<16x16x64xf32, #tpu.memory_space<vmem>>, vector<16x16x64xf32>,
    %c0_135 = arith.constant 0 : index
    %c0_136 = arith.constant 0 : index
    %c0_137 = arith.constant 0 : index
    %109 = vector.load %arg13[%c0_135, %c0_136, %c0_137] : memref<16x16x64xf32, #tpu.memory_space<vmem>>, vector<16x1x64xf32>
    %110 = vector.shape_cast %109 : vector<16x1x64xf32> to vector<16x64xf32>
    %c0_138 = arith.constant 0 : index
    %c0_139 = arith.constant 0 : index
    %c0_140 = arith.constant 0 : index
    %111 = vector.load %arg10[%c0_138, %c0_139, %c0_140] : memref<1x16x1024xf32, #tpu.memory_space<vmem>>, vector<1x16x64xf32>
    %112 = vector.shape_cast %111 : vector<1x16x64xf32> to vector<16x64xf32>
    %113 = vector.shape_cast %110 : vector<16x64xf32> to vector<1x16x64xf32>
    tpu.vector_store %arg10[%c0_138, %c0_139, %c0_140], %113 {strides = array<i32>} : memref<1x16x1024xf32, #tpu.memory_space<vmem>>, vector<1x16x64xf32>,
    %c0_141 = arith.constant 0 : index
    %c1_142 = arith.constant 1 : index
    %c0_143 = arith.constant 0 : index
    %114 = vector.load %arg13[%c0_141, %c1_142, %c0_143] : memref<16x16x64xf32, #tpu.memory_space<vmem>>, vector<16x1x64xf32>
    %115 = vector.shape_cast %114 : vector<16x1x64xf32> to vector<16x64xf32>
    %c0_144 = arith.constant 0 : index
    %c0_145 = arith.constant 0 : index
    %c64_146 = arith.constant 64 : index
    %116 = vector.load %arg10[%c0_144, %c0_145, %c64_146] : memref<1x16x1024xf32, #tpu.memory_space<vmem>>, vector<1x16x64xf32>
    %117 = vector.shape_cast %116 : vector<1x16x64xf32> to vector<16x64xf32>
    %118 = vector.shape_cast %115 : vector<16x64xf32> to vector<1x16x64xf32>
    tpu.vector_store %arg10[%c0_144, %c0_145, %c64_146], %118 {strides = array<i32>} : memref<1x16x1024xf32, #tpu.memory_space<vmem>>, vector<1x16x64xf32>,
    %c0_147 = arith.constant 0 : index
    %c2_148 = arith.constant 2 : index
    %c0_149 = arith.constant 0 : index
    %119 = vector.load %arg13[%c0_147, %c2_148, %c0_149] : memref<16x16x64xf32, #tpu.memory_space<vmem>>, vector<16x1x64xf32>
    %120 = vector.shape_cast %119 : vector<16x1x64xf32> to vector<16x64xf32>
    %c0_150 = arith.constant 0 : index
    %c0_151 = arith.constant 0 : index
    %c128_152 = arith.constant 128 : index
    %121 = vector.load %arg10[%c0_150, %c0_151, %c128_152] : memref<1x16x1024xf32, #tpu.memory_space<vmem>>, vector<1x16x64xf32>
    %122 = vector.shape_cast %121 : vector<1x16x64xf32> to vector<16x64xf32>
    %123 = vector.shape_cast %120 : vector<16x64xf32> to vector<1x16x64xf32>
    tpu.vector_store %arg10[%c0_150, %c0_151, %c128_152], %123 {strides = array<i32>} : memref<1x16x1024xf32, #tpu.memory_space<vmem>>, vector<1x16x64xf32>,
    %c0_153 = arith.constant 0 : index
    %c3 = arith.constant 3 : index
    %c0_154 = arith.constant 0 : index
    %124 = vector.load %arg13[%c0_153, %c3, %c0_154] : memref<16x16x64xf32, #tpu.memory_space<vmem>>, vector<16x1x64xf32>
    %125 = vector.shape_cast %124 : vector<16x1x64xf32> to vector<16x64xf32>
    %c0_155 = arith.constant 0 : index
    %c0_156 = arith.constant 0 : index
    %c192_157 = arith.constant 192 : index
    %126 = vector.load %arg10[%c0_155, %c0_156, %c192_157] : memref<1x16x1024xf32, #tpu.memory_space<vmem>>, vector<1x16x64xf32>
    %127 = vector.shape_cast %126 : vector<1x16x64xf32> to vector<16x64xf32>
    %128 = vector.shape_cast %125 : vector<16x64xf32> to vector<1x16x64xf32>
    tpu.vector_store %arg10[%c0_155, %c0_156, %c192_157], %128 {strides = array<i32>} : memref<1x16x1024xf32, #tpu.memory_space<vmem>>, vector<1x16x64xf32>,
    %c0_158 = arith.constant 0 : index
    %c4 = arith.constant 4 : index
    %c0_159 = arith.constant 0 : index
    %129 = vector.load %arg13[%c0_158, %c4, %c0_159] : memref<16x16x64xf32, #tpu.memory_space<vmem>>, vector<16x1x64xf32>
    %130 = vector.shape_cast %129 : vector<16x1x64xf32> to vector<16x64xf32>
    %c0_160 = arith.constant 0 : index
    %c0_161 = arith.constant 0 : index
    %c256_162 = arith.constant 256 : index
    %131 = vector.load %arg10[%c0_160, %c0_161, %c256_162] : memref<1x16x1024xf32, #tpu.memory_space<vmem>>, vector<1x16x64xf32>
    %132 = vector.shape_cast %131 : vector<1x16x64xf32> to vector<16x64xf32>
    %133 = vector.shape_cast %130 : vector<16x64xf32> to vector<1x16x64xf32>
    tpu.vector_store %arg10[%c0_160, %c0_161, %c256_162], %133 {strides = array<i32>} : memref<1x16x1024xf32, #tpu.memory_space<vmem>>, vector<1x16x64xf32>,
    %c0_163 = arith.constant 0 : index
    %c5 = arith.constant 5 : index
    %c0_164 = arith.constant 0 : index
    %134 = vector.load %arg13[%c0_163, %c5, %c0_164] : memref<16x16x64xf32, #tpu.memory_space<vmem>>, vector<16x1x64xf32>
    %135 = vector.shape_cast %134 : vector<16x1x64xf32> to vector<16x64xf32>
    %c0_165 = arith.constant 0 : index
    %c0_166 = arith.constant 0 : index
    %c320_167 = arith.constant 320 : index
    %136 = vector.load %arg10[%c0_165, %c0_166, %c320_167] : memref<1x16x1024xf32, #tpu.memory_space<vmem>>, vector<1x16x64xf32>
    %137 = vector.shape_cast %136 : vector<1x16x64xf32> to vector<16x64xf32>
    %138 = vector.shape_cast %135 : vector<16x64xf32> to vector<1x16x64xf32>
    tpu.vector_store %arg10[%c0_165, %c0_166, %c320_167], %138 {strides = array<i32>} : memref<1x16x1024xf32, #tpu.memory_space<vmem>>, vector<1x16x64xf32>,
    %c0_168 = arith.constant 0 : index
    %c6 = arith.constant 6 : index
    %c0_169 = arith.constant 0 : index
    %139 = vector.load %arg13[%c0_168, %c6, %c0_169] : memref<16x16x64xf32, #tpu.memory_space<vmem>>, vector<16x1x64xf32>
    %140 = vector.shape_cast %139 : vector<16x1x64xf32> to vector<16x64xf32>
    %c0_170 = arith.constant 0 : index
    %c0_171 = arith.constant 0 : index
    %c384_172 = arith.constant 384 : index
    %141 = vector.load %arg10[%c0_170, %c0_171, %c384_172] : memref<1x16x1024xf32, #tpu.memory_space<vmem>>, vector<1x16x64xf32>
    %142 = vector.shape_cast %141 : vector<1x16x64xf32> to vector<16x64xf32>
    %143 = vector.shape_cast %140 : vector<16x64xf32> to vector<1x16x64xf32>
    tpu.vector_store %arg10[%c0_170, %c0_171, %c384_172], %143 {strides = array<i32>} : memref<1x16x1024xf32, #tpu.memory_space<vmem>>, vector<1x16x64xf32>,
    %c0_173 = arith.constant 0 : index
    %c7 = arith.constant 7 : index
    %c0_174 = arith.constant 0 : index
    %144 = vector.load %arg13[%c0_173, %c7, %c0_174] : memref<16x16x64xf32, #tpu.memory_space<vmem>>, vector<16x1x64xf32>
    %145 = vector.shape_cast %144 : vector<16x1x64xf32> to vector<16x64xf32>
    %c0_175 = arith.constant 0 : index
    %c0_176 = arith.constant 0 : index
    %c448_177 = arith.constant 448 : index
    %146 = vector.load %arg10[%c0_175, %c0_176, %c448_177] : memref<1x16x1024xf32, #tpu.memory_space<vmem>>, vector<1x16x64xf32>
    %147 = vector.shape_cast %146 : vector<1x16x64xf32> to vector<16x64xf32>
    %148 = vector.shape_cast %145 : vector<16x64xf32> to vector<1x16x64xf32>
    tpu.vector_store %arg10[%c0_175, %c0_176, %c448_177], %148 {strides = array<i32>} : memref<1x16x1024xf32, #tpu.memory_space<vmem>>, vector<1x16x64xf32>,
    %c0_178 = arith.constant 0 : index
    %c8 = arith.constant 8 : index
    %c0_179 = arith.constant 0 : index
    %149 = vector.load %arg13[%c0_178, %c8, %c0_179] : memref<16x16x64xf32, #tpu.memory_space<vmem>>, vector<16x1x64xf32>
    %150 = vector.shape_cast %149 : vector<16x1x64xf32> to vector<16x64xf32>
    %c0_180 = arith.constant 0 : index
    %c0_181 = arith.constant 0 : index
    %c512_182 = arith.constant 512 : index
    %151 = vector.load %arg10[%c0_180, %c0_181, %c512_182] : memref<1x16x1024xf32, #tpu.memory_space<vmem>>, vector<1x16x64xf32>
    %152 = vector.shape_cast %151 : vector<1x16x64xf32> to vector<16x64xf32>
    %153 = vector.shape_cast %150 : vector<16x64xf32> to vector<1x16x64xf32>
    tpu.vector_store %arg10[%c0_180, %c0_181, %c512_182], %153 {strides = array<i32>} : memref<1x16x1024xf32, #tpu.memory_space<vmem>>, vector<1x16x64xf32>,
    %c0_183 = arith.constant 0 : index
    %c9 = arith.constant 9 : index
    %c0_184 = arith.constant 0 : index
    %154 = vector.load %arg13[%c0_183, %c9, %c0_184] : memref<16x16x64xf32, #tpu.memory_space<vmem>>, vector<16x1x64xf32>
    %155 = vector.shape_cast %154 : vector<16x1x64xf32> to vector<16x64xf32>
    %c0_185 = arith.constant 0 : index
    %c0_186 = arith.constant 0 : index
    %c576 = arith.constant 576 : index
    %156 = vector.load %arg10[%c0_185, %c0_186, %c576] : memref<1x16x1024xf32, #tpu.memory_space<vmem>>, vector<1x16x64xf32>
    %157 = vector.shape_cast %156 : vector<1x16x64xf32> to vector<16x64xf32>
    %158 = vector.shape_cast %155 : vector<16x64xf32> to vector<1x16x64xf32>
    tpu.vector_store %arg10[%c0_185, %c0_186, %c576], %158 {strides = array<i32>} : memref<1x16x1024xf32, #tpu.memory_space<vmem>>, vector<1x16x64xf32>,
    %c0_187 = arith.constant 0 : index
    %c10 = arith.constant 10 : index
    %c0_188 = arith.constant 0 : index
    %159 = vector.load %arg13[%c0_187, %c10, %c0_188] : memref<16x16x64xf32, #tpu.memory_space<vmem>>, vector<16x1x64xf32>
    %160 = vector.shape_cast %159 : vector<16x1x64xf32> to vector<16x64xf32>
    %c0_189 = arith.constant 0 : index
    %c0_190 = arith.constant 0 : index
    %c640 = arith.constant 640 : index
    %161 = vector.load %arg10[%c0_189, %c0_190, %c640] : memref<1x16x1024xf32, #tpu.memory_space<vmem>>, vector<1x16x64xf32>
    %162 = vector.shape_cast %161 : vector<1x16x64xf32> to vector<16x64xf32>
    %163 = vector.shape_cast %160 : vector<16x64xf32> to vector<1x16x64xf32>
    tpu.vector_store %arg10[%c0_189, %c0_190, %c640], %163 {strides = array<i32>} : memref<1x16x1024xf32, #tpu.memory_space<vmem>>, vector<1x16x64xf32>,
    %c0_191 = arith.constant 0 : index
    %c11 = arith.constant 11 : index
    %c0_192 = arith.constant 0 : index
    %164 = vector.load %arg13[%c0_191, %c11, %c0_192] : memref<16x16x64xf32, #tpu.memory_space<vmem>>, vector<16x1x64xf32>
    %165 = vector.shape_cast %164 : vector<16x1x64xf32> to vector<16x64xf32>
    %c0_193 = arith.constant 0 : index
    %c0_194 = arith.constant 0 : index
    %c704 = arith.constant 704 : index
    %166 = vector.load %arg10[%c0_193, %c0_194, %c704] : memref<1x16x1024xf32, #tpu.memory_space<vmem>>, vector<1x16x64xf32>
    %167 = vector.shape_cast %166 : vector<1x16x64xf32> to vector<16x64xf32>
    %168 = vector.shape_cast %165 : vector<16x64xf32> to vector<1x16x64xf32>
    tpu.vector_store %arg10[%c0_193, %c0_194, %c704], %168 {strides = array<i32>} : memref<1x16x1024xf32, #tpu.memory_space<vmem>>, vector<1x16x64xf32>,
    %c0_195 = arith.constant 0 : index
    %c12 = arith.constant 12 : index
    %c0_196 = arith.constant 0 : index
    %169 = vector.load %arg13[%c0_195, %c12, %c0_196] : memref<16x16x64xf32, #tpu.memory_space<vmem>>, vector<16x1x64xf32>
    %170 = vector.shape_cast %169 : vector<16x1x64xf32> to vector<16x64xf32>
    %c0_197 = arith.constant 0 : index
    %c0_198 = arith.constant 0 : index
    %c768 = arith.constant 768 : index
    %171 = vector.load %arg10[%c0_197, %c0_198, %c768] : memref<1x16x1024xf32, #tpu.memory_space<vmem>>, vector<1x16x64xf32>
    %172 = vector.shape_cast %171 : vector<1x16x64xf32> to vector<16x64xf32>
    %173 = vector.shape_cast %170 : vector<16x64xf32> to vector<1x16x64xf32>
    tpu.vector_store %arg10[%c0_197, %c0_198, %c768], %173 {strides = array<i32>} : memref<1x16x1024xf32, #tpu.memory_space<vmem>>, vector<1x16x64xf32>,
    %c0_199 = arith.constant 0 : index
    %c13 = arith.constant 13 : index
    %c0_200 = arith.constant 0 : index
    %174 = vector.load %arg13[%c0_199, %c13, %c0_200] : memref<16x16x64xf32, #tpu.memory_space<vmem>>, vector<16x1x64xf32>
    %175 = vector.shape_cast %174 : vector<16x1x64xf32> to vector<16x64xf32>
    %c0_201 = arith.constant 0 : index
    %c0_202 = arith.constant 0 : index
    %c832 = arith.constant 832 : index
    %176 = vector.load %arg10[%c0_201, %c0_202, %c832] : memref<1x16x1024xf32, #tpu.memory_space<vmem>>, vector<1x16x64xf32>
    %177 = vector.shape_cast %176 : vector<1x16x64xf32> to vector<16x64xf32>
    %178 = vector.shape_cast %175 : vector<16x64xf32> to vector<1x16x64xf32>
    tpu.vector_store %arg10[%c0_201, %c0_202, %c832], %178 {strides = array<i32>} : memref<1x16x1024xf32, #tpu.memory_space<vmem>>, vector<1x16x64xf32>,
    %c0_203 = arith.constant 0 : index
    %c14 = arith.constant 14 : index
    %c0_204 = arith.constant 0 : index
    %179 = vector.load %arg13[%c0_203, %c14, %c0_204] : memref<16x16x64xf32, #tpu.memory_space<vmem>>, vector<16x1x64xf32>
    %180 = vector.shape_cast %179 : vector<16x1x64xf32> to vector<16x64xf32>
    %c0_205 = arith.constant 0 : index
    %c0_206 = arith.constant 0 : index
    %c896 = arith.constant 896 : index
    %181 = vector.load %arg10[%c0_205, %c0_206, %c896] : memref<1x16x1024xf32, #tpu.memory_space<vmem>>, vector<1x16x64xf32>
    %182 = vector.shape_cast %181 : vector<1x16x64xf32> to vector<16x64xf32>
    %183 = vector.shape_cast %180 : vector<16x64xf32> to vector<1x16x64xf32>
    tpu.vector_store %arg10[%c0_205, %c0_206, %c896], %183 {strides = array<i32>} : memref<1x16x1024xf32, #tpu.memory_space<vmem>>, vector<1x16x64xf32>,
    %c0_207 = arith.constant 0 : index
    %c15 = arith.constant 15 : index
    %c0_208 = arith.constant 0 : index
    %184 = vector.load %arg13[%c0_207, %c15, %c0_208] : memref<16x16x64xf32, #tpu.memory_space<vmem>>, vector<16x1x64xf32>
    %185 = vector.shape_cast %184 : vector<16x1x64xf32> to vector<16x64xf32>
    %c0_209 = arith.constant 0 : index
    %c0_210 = arith.constant 0 : index
    %c960 = arith.constant 960 : index
    %186 = vector.load %arg10[%c0_209, %c0_210, %c960] : memref<1x16x1024xf32, #tpu.memory_space<vmem>>, vector<1x16x64xf32>
    %187 = vector.shape_cast %186 : vector<1x16x64xf32> to vector<16x64xf32>
    %188 = vector.shape_cast %185 : vector<16x64xf32> to vector<1x16x64xf32>
    tpu.vector_store %arg10[%c0_209, %c0_210, %c960], %188 {strides = array<i32>} : memref<1x16x1024xf32, #tpu.memory_space<vmem>>, vector<1x16x64xf32>,
    return
  }
  func.func @transform_0(%arg0: i32) -> (i32, i32, i32, i32) {
    %c0_i32 = arith.constant 0 : i32
    %c0_i32_0 = arith.constant 0 : i32
    %c0_i32_1 = arith.constant 0 : i32
    %c0_i32_2 = arith.constant 0 : i32
    return %arg0, %c0_i32, %c0_i32_0, %c0_i32_1 : i32, i32, i32, i32
  }
  func.func @transform_1(%arg0: i32) -> (i32, i32) {
    %c0_i32 = arith.constant 0 : i32
    %c0_i32_0 = arith.constant 0 : i32
    %c0_i32_1 = arith.constant 0 : i32
    return %c0_i32, %c0_i32_0 : i32, i32
  }
  func.func @transform_2(%arg0: i32) -> (i32, i32) {
    %c0_i32 = arith.constant 0 : i32
    %c0_i32_0 = arith.constant 0 : i32
    %c0_i32_1 = arith.constant 0 : i32
    return %c0_i32, %c0_i32_0 : i32, i32
  }
  func.func @transform_3(%arg0: i32) -> (i32, i32) {
    %c0_i32 = arith.constant 0 : i32
    %c0_i32_0 = arith.constant 0 : i32
    %c0_i32_1 = arith.constant 0 : i32
    return %c0_i32, %c0_i32_0 : i32, i32
  }
  func.func @transform_4(%arg0: i32) -> (i32, i32) {
    %c0_i32 = arith.constant 0 : i32
    %c0_i32_0 = arith.constant 0 : i32
    %c0_i32_1 = arith.constant 0 : i32
    return %c0_i32, %c0_i32_0 : i32, i32
  }
  func.func @transform_5(%arg0: i32) -> (i32, i32) {
    %c0_i32 = arith.constant 0 : i32
    %c0_i32_0 = arith.constant 0 : i32
    %c0_i32_1 = arith.constant 0 : i32
    return %c0_i32, %c0_i32_0 : i32, i32
  }
  func.func @transform_6(%arg0: i32) -> (i32, i32) {
    %c0_i32 = arith.constant 0 : i32
    %c0_i32_0 = arith.constant 0 : i32
    %c0_i32_1 = arith.constant 0 : i32
    return %c0_i32, %c0_i32_0 : i32, i32
  }
  func.func @transform_7(%arg0: i32) -> (i32, i32) {
    %c0_i32 = arith.constant 0 : i32
    %c0_i32_0 = arith.constant 0 : i32
    %c0_i32_1 = arith.constant 0 : i32
    return %c0_i32, %c0_i32_0 : i32, i32
  }
  func.func @transform_8(%arg0: i32) -> (i32, i32) {
    %c0_i32 = arith.constant 0 : i32
    %c0_i32_0 = arith.constant 0 : i32
    %c0_i32_1 = arith.constant 0 : i32
    return %c0_i32, %c0_i32_0 : i32, i32
  }
  func.func @transform_9(%arg0: i32) -> (i32, i32, i32) {
    %c0_i32 = arith.constant 0 : i32
    %c0_i32_0 = arith.constant 0 : i32
    %c0_i32_1 = arith.constant 0 : i32
    return %arg0, %c0_i32, %c0_i32_0 : i32, i32, i32
  }
}

</mosaic_0001>

<bundles_post_ra>
// kernel: rcab_forward.1
= control target key start
LH: loop header
LB: loop body
LE: loop exit
PB: predicated region body
PF: predicated region fallthrough
CT: control target
= control target key end

     0   :  { %s12745_s30 = smov 0   ;;  %s17460_s0 = inlined_call_operand.vmem [shape: f32[2,16,16,64], index: 0, kind: input, shape index: {}]   ;;  %s17461_s1 = inlined_call_operand.vmem [shape: bf16[576,64], index: 1, kind: input, shape index: {}]   ;;  %s17462_s2 = inlined_call_operand.vmem [shape: f32[1,64], index: 2, kind: input, shape index: {}]   ;;  %s17463_s3 = inlined_call_operand.vmem [shape: bf16[576,64], index: 3, kind: input, shape index: {}]   ;;  %s17464_s4 = inlined_call_operand.vmem [shape: f32[1,64], index: 4, kind: input, shape index: {}]   ;;  %s17465_s5 = inlined_call_operand.vmem [shape: bf16[64,4], index: 5, kind: input, shape index: {}]   ;;  %s17466_s6 = inlined_call_operand.vmem [shape: f32[1,4], index: 6, kind: input, shape index: {}]   ;;  %s17467_s7 = inlined_call_operand.vmem [shape: bf16[4,64], index: 7, kind: input, shape index: {}]   ;;  %s17468_s8 = inlined_call_operand.vmem [shape: f32[1,64], index: 8, kind: input, shape index: {}]   ;;  %s17469_s9 = inlined_call_operand.vmem [shape: f32[2,16,1024], index: 9, kind: output, shape index: {}]  }
   0x1 LB: > { %s11279_s10 = sadd.s32 4294967295, %s12689_s30   ;;  %p11283_p0 = scmp.ge.s32.totalorder %s12689_s30, 1  ;;  %s12689_s30 = sphi %s12745_s30, %s19_s30  }
   0x2   : > { %p287_p1 = scmp.lt.s32.totalorder %s12689_s30, 3 }
   0x4   : > { %p288_p2 = pnand %p11283_p0, %p287_p1 }
   0x6   : > { %291 = sbr.rel (%p288_p2) target bundleno = 1938 (0x792), region = 56 }
   0xb   : > { %vm334_vm0 = vcmask 519168   ;;  %v12691_v0 = vmov 0   ;;  %vm337_vm1 = vcmask 516096   ;;  %vm345_vm2 = vsmask.f32 256  ;;  %p323_p3 = scmp.lt.s32.totalorder %s11279_s10, 1 }
   0xc   : > { %335 = vst.msk [vmem:[#allocation2] sm:$0xf] %vm334_vm0, %v12691_v0  ;;  %336 = vst.msk [vmem:[#allocation2 + $0x4] sm:$0xf] %vm334_vm0, %v12691_v0  ;;  %vm395_vm3 = vsmask.f32 7938 }
   0xd   : > { %340 = vst.msk [vmem:[#allocation2 + $0xcc] sm:$0xf] %vm334_vm0, %v12691_v0  ;;  %341 = vst.msk [vmem:[#allocation2 + $0xd0] sm:$0xf] %vm334_vm0, %v12691_v0  ;;  %v347_v2 = vld [vmem:[#allocation2 + $0xc] sm:$0x1] }
   0xe   : > { %338 = vst.msk [vmem:[#allocation2 + $0x8] sm:$0x1] %vm337_vm1, %v12691_v0  ;;  %vm12758_vm4 = vmand %vm337_vm1, %vm345_vm2  ;;  %v350_v3 = vld [vmem:[#allocation2 + $0x18] sm:$0x1]  ;;  %vm1121_vm5 = vsmask.f32 3328 }
   0xf   : > { %342 = vst.msk [vmem:[#allocation2 + $0xd4] sm:$0x1] %vm337_vm1, %v12691_v0  ;;  %vm1122_vm6 = vsmask.f32 7440  ;;  %vm12763_vm7 = vmand %vm337_vm1, %vm395_vm3  ;;  %v348_v5 = vsel %vm12758_vm4, 0, %v347_v2  ;;  %v351_v6 = vsel %vm12758_vm4, 0, %v350_v3 }
  0x10   : > { %v353_v7 = vld [vmem:[#allocation2 + $0x24] sm:$0x1]  ;;  %s17512_s10 = smov (!%p323_p3, %s11279_s10), 1  ;;  %349 = vst [vmem:[#allocation2 + $0xc] sm:$0x1] %v348_v5  ;;  %v12394_v18 = vld [vmem:[%s17461_s1 + $0x78] sm:$0xff]   ;;  %vm12808_vm9 = vmor %vm1121_vm5, %vm1122_vm6 }
  0x11   : > { %352 = vst [vmem:[#allocation2 + $0x18] sm:$0x1] %v351_v6  ;;  %v354_v8 = vsel %vm12758_vm4, 0, %v353_v7  ;;  %v356_v9 = vld [vmem:[#allocation2 + $0x30] sm:$0x1]  ;;  %s11723_s11 = sshll.u32 %s17512_s10, 8  ;;  %11789 = vmatprep.subr.bf16.mxu0 %v12394_v18  ;;  %vm12814_vm10 = vmand %vm334_vm0, %vm395_vm3 }
  0x12   : > { %v397_v10 = vld [vmem:[#allocation2 + $0x14] sm:$0x1]  ;;  %355 = vst [vmem:[#allocation2 + $0x24] sm:$0x1] %v354_v8  ;;  %v357_v11 = vsel %vm12758_vm4, 0, %v356_v9  ;;  %s12790_s16 = scalar_lea.vmem %s17460_s0, %s11723_s11  ;;  %v12395_v22 = vld [vmem:[%s17461_s1 + $0x38] sm:$0xff]  }
  0x13   : > { %v398_v12 = vsel %vm12763_vm7, 0, %v397_v10  ;;  %v400_v13 = vld [vmem:[#allocation2 + $0x20] sm:$0x1]  ;;  %v403_v14 = vld [vmem:[#allocation2 + $0x2c] sm:$0x1]  ;;  %11790 = vmatpush3.bf16.msra.mxu0 %v12395_v22  ;;  %v447_v34 = vld [vmem:[%s12790_s16 + $0x10] sm:$0xff] }
  0x14   : > { %358 = vst [vmem:[#allocation2 + $0x30] sm:$0x1] %v357_v11  ;;  %399 = vst [vmem:[#allocation2 + $0x14] sm:$0x1] %v398_v12  ;;  %v401_v15 = vsel %vm12763_vm7, 0, %v400_v13  ;;  %v404_v16 = vsel %vm12763_vm7, 0, %v403_v14  ;;  %v11727_v45 = vpack.c.bf16 %v447_v34, %v447_v34 }
  0x15   : > { %v406_v17 = vld [vmem:[#allocation2 + $0x38] sm:$0x1]  ;;  %vm573_vm8 = vsmask.f32 4368  ;;  %402 = vst [vmem:[#allocation2 + $0x20] sm:$0x1] %v401_v15 }
  0x16   : > { %405 = vst [vmem:[#allocation2 + $0x2c] sm:$0x1] %v404_v16  ;;  %v407_v19 = vsel %vm12763_vm7, 0, %v406_v17  ;;  %v359_v20 = vld [vmem:[#allocation2 + $0x3c] sm:$0x1]  ;;  %v445_v25 = vld [vmem:[%s12790_s16] sm:$0xff]  ;;  %vm12828_vm11 = vmor %vm345_vm2, %vm573_vm8 }
  0x17   : > { %v409_v21 = vld [vmem:[#allocation2 + $0x44] sm:$0x1]  ;;  %v1073_v23 = vld [vmem:[#allocation2] sm:$0xf]  ;;  %408 = vst [vmem:[#allocation2 + $0x38] sm:$0x1] %v407_v19  ;;  %v11725_v33 = vpack.c.bf16 %v445_v25, %v445_v25 }
  0x18   : > { %v1074_v24 = vld [vmem:[#allocation2 + $0x4] sm:$0xf]  ;;  %v360_v26 = vsel %vm12758_vm4, 0, %v359_v20  ;;  %v1125_v27 = vshrl.u32 %v1073_v23, 16  ;;  %v1128_v28 = vshll.u32 %v1073_v23, 16  ;;  %v446_v35 = vld [vmem:[%s12790_s16 + $0x8] sm:$0xff] }
  0x19   : > { %v1134_v29 = vshll.u32 %v1074_v24, 16  ;;  %v1138_v30 = vshrl.u32 %v1074_v24, 16  ;;  %v1075_v31 = vld [vmem:[#allocation2 + $0x8] sm:$0x1]  ;;  %361 = vst [vmem:[#allocation2 + $0x3c] sm:$0x1] %v360_v26  ;;  %v11726_v49 = vpack.c.bf16 %v446_v35, %v446_v35 }
  0x1a   : > { %v1144_v32 = vshll.u32 %v1075_v31, 16  ;;  %v449_v36 = vld [vmem:[%s12790_s16 + $0x20] sm:$0xff]  ;;  %v410_v37 = vsel %vm12763_vm7, 0, %v409_v21  ;;  %v1127_v38 = vrot.slane %v1125_v27, 4  ;;  %v1130_v39 = vrot.slane %v1128_v28, 5  ;;  %v448_v46 = vld [vmem:[%s12790_s16 + $0x18] sm:$0xff] }
  0x1b   : > { %v1136_v40 = vrot.slane %v1134_v29, 5  ;;  %v1140_v41 = vrot.slane %v1138_v30, 4  ;;  %411 = vst [vmem:[#allocation2 + $0x44] sm:$0x1] %v410_v37  ;;  %v576_v43 = vshrl.u32 %v11725_v33, 16  ;;  %v579_v44 = vshll.u32 %v11725_v33, 16 }
  0x1c   : > { %v1146_v42 = vrot.slane %v1144_v32, 5  ;;  %v1131_v47 = vor.u32 %v1130_v39, %v1127_v38  ;;  %v11729_v50 = vpack.c.bf16 %v449_v36, %v449_v36  ;;  %v593_v53 = vshrl.u32 %v11727_v45, 16  ;;  %v897_v59 = vld [vmem:[#allocation2 + $0xc] sm:$0xf]  ;;  %v904_v6 = vld [vmem:[#allocation2 + $0x18] sm:$0xf] }
  0x1d   : > { %v1141_v48 = vor.u32 %v1140_v41, %v1136_v40  ;;  %v578_v52 = vrot.slane %v576_v43, 7  ;;  %v596_v54 = vshll.u32 %v11727_v45, 16  ;;  %v11728_v55 = vpack.c.bf16 %v448_v46, %v448_v46  ;;  %v450_v9 = vld [vmem:[%s12790_s16 + $0x28] sm:$0xff]  ;;  %s12692_s19 = smov 64   ;;  %v451_v15 = vld [vmem:[%s12790_s16 + $0x30] sm:$0xff]  ;;  %v452_v22 = vld [vmem:[%s12790_s16 + $0x38] sm:$0xff] }
  0x1e   : > { %v1132_v56 = vrot.slane %v1131_v47, 4  ;;  %v584_v60 = vshrl.u32 %v11726_v49, 16  ;;  %v587_v61 = vshll.u32 %v11726_v49, 16  ;;  %v595_v63 = vrot.slane %v593_v53, 7  ;;  %v901_v16 = vld [vmem:[#allocation2 + $0x14] sm:$0x1] }
  0x1f   : > { %v1142_v58 = vrot.slane %v1141_v48, 4  ;;  %v581_v62 = vor.u32 %v579_v44, %v578_v52  ;;  %v582_v0 = vrot.slane %v578_v52, 4  ;;  %v610_v2 = vshrl.u32 %v11729_v50, 16  ;;  %v911_v19 = vld [vmem:[#allocation2 + $0x24] sm:$0xf]  ;;  %v454_v37 = vld [vmem:[%s12790_s16 + $0x48] sm:$0xff] }
  0x20   : > { %v1137_v3 = vsel %vm12808_vm9, %v1132_v56, %v1136_v40  ;;  %v586_v7 = vrot.slane %v584_v60, 7  ;;  %v613_v8 = vshll.u32 %v11729_v50, 16  ;;  %v598_v11 = vor.u32 %v596_v54, %v595_v63  ;;  %v453_v31 = vld [vmem:[%s12790_s16 + $0x40] sm:$0xff]  ;;  %v918_v49 = vld [vmem:[#allocation2 + $0x30] sm:$0xf]  ;;  %v456_v54 = vld [vmem:[%s12790_s16 + $0x58] sm:$0xff] }
  0x21   : > { %v1147_v5 = vsel %vm12808_vm9, %v1142_v58, %v1146_v42  ;;  %1508 = vrot.lane.b32.xlu0 %v1137_v3, %s12692_s19  ;;  %v898_v10 = vsel %vm12814_vm10, %v581_v62, %v897_v59  ;;  %v12832_v13 = vrot.slane %v610_v2, 7  ;;  %v599_v14 = vrot.slane %v595_v63, 4  ;;  %v908_v36 = vld [vmem:[#allocation2 + $0x20] sm:$0x1]  ;;  %v455_v42 = vld [vmem:[%s12790_s16 + $0x50] sm:$0xff] }
  0x22   : > { %899 = vst [vmem:[#allocation2 + $0xc] sm:$0xf] %v898_v10  ;;  %v589_v17 = vor.u32 %v587_v61, %v586_v7  ;;  %v591_v18 = vrot.slane %v586_v7, 4  ;;  %v601_v20 = vshrl.u32 %v11728_v55, 16  ;;  %v604_v21 = vshll.u32 %v11728_v55, 16 }
  0x23   : > { %v905_v23 = vsel %vm12814_vm10, %v598_v11, %v904_v6  ;;  %v615_v24 = vor.u32 %v613_v8, %v12832_v13  ;;  %v11730_v25 = vpack.c.bf16 %v450_v9, %v450_v9  ;;  %v616_v26 = vrot.slane %v12832_v13, 4  ;;  %v915_v52 = vld [vmem:[#allocation2 + $0x2c] sm:$0x1]  ;;  %v922_v3 = vld [vmem:[#allocation2 + $0x38] sm:$0x1]  ;;  %v457_v11 = vld [vmem:[%s12790_s16 + $0x60] sm:$0xff] }
  0x24   : > { %906 = vst [vmem:[#allocation2 + $0x18] sm:$0xf] %v905_v23  ;;  %v590_v27 = vsel %vm12828_vm11, %v582_v0, %v589_v17  ;;  %v603_v28 = vrot.slane %v601_v20, 7  ;;  %v11731_v29 = vpack.c.bf16 %v451_v15, %v451_v15  ;;  %v902_v30 = vsel %vm12758_vm4, %v591_v18, %v901_v16  ;;  %v458_v13 = vld [vmem:[%s12790_s16 + $0x68] sm:$0xff] }
  0x25   : > { %1510 = vrot.lane.b32.xlu0 %v1147_v5, %s12692_s19  ;;  %900 = vst.msk [vmem:[#allocation2 + $0x10] sm:$0xf] %vm334_vm0, %v590_v27  ;;  %v912_v32 = vsel %vm12814_vm10, %v615_v24, %v911_v19  ;;  %v618_v33 = vshrl.u32 %v11730_v25, 16  ;;  %v621_v34 = vshll.u32 %v11730_v25, 16  ;;  %903 = vst [vmem:[#allocation2 + $0x14] sm:$0x1] %v902_v30  ;;  %v11732_v35 = vpack.c.bf16 %v452_v22, %v452_v22 }
  0x26   : > { %913 = vst [vmem:[#allocation2 + $0x24] sm:$0xf] %v912_v32  ;;  %v606_v38 = vor.u32 %v604_v21, %v603_v28  ;;  %v608_v39 = vrot.slane %v603_v28, 4  ;;  %v627_v40 = vshrl.u32 %v11731_v29, 16  ;;  %v630_v41 = vshll.u32 %v11731_v29, 16 }
  0x27   : > { %v620_v43 = vrot.slane %v618_v33, 7  ;;  %v635_v44 = vshrl.u32 %v11732_v35, 16  ;;  %v638_v45 = vshll.u32 %v11732_v35, 16  ;;  %v12851_v46 = vpack.c.bf16 %v453_v31, %v453_v31  ;;  %v459_v35 = vld [vmem:[%s12790_s16 + $0x70] sm:$0xff] }
  0x28   : > { %v607_v47 = vsel %vm12828_vm11, %v599_v14, %v606_v38  ;;  %v629_v48 = vrot.slane %v627_v40, 7  ;;  %v909_v50 = vsel %vm12758_vm4, %v608_v39, %v908_v36  ;;  %v12857_v53 = vpack.c.bf16 %v454_v37, %v454_v37 }
  0x29   : > { %v1912_v55 = vld [vmem:[#allocation2 + $0xc] sm:$0xf]  ;;  %907 = vst.msk [vmem:[#allocation2 + $0x1c] sm:$0xf] %vm334_vm0, %v607_v47  ;;  %v623_v58 = vor.u32 %v621_v34, %v620_v43  ;;  %v625_v59 = vrot.slane %v620_v43, 4  ;;  %v637_v60 = vrot.slane %v635_v44, 7  ;;  %v12861_v61 = vpack.c.bf16 %v455_v42, %v455_v42 }
  0x2a   : > { %v1076_v56 = vld [vmem:[#allocation2 + $0xc] sm:$0xf]  ;;  %910 = vst [vmem:[#allocation2 + $0x20] sm:$0x1] %v909_v50  ;;  %1976 = vrot.lane.b32.xlu1 %v1912_v55, %s12692_s19  ;;  %v632_v0 = vor.u32 %v630_v41, %v629_v48  ;;  %v633_v2 = vrot.slane %v629_v48, 4  ;;  %v12874_v19 = vpack.c.bf16 %v456_v54, %v456_v54  ;;  %v12884_v40 = vpack.c.bf16 %v457_v11, %v457_v11  ;;  %v460_v54 = vld [vmem:[%s12790_s16 + $0x78] sm:$0xff] }
  0x2b   : > { %v1149_v62 = vshrl.u32 %v1076_v56, 16  ;;  %v1152_v63 = vshll.u32 %v1076_v56, 16  ;;  %v1914_v5 = vld [vmem:[#allocation2 + $0x18] sm:$0xf]  ;;  %v624_v6 = vsel %vm12828_vm11, %v616_v26, %v623_v58  ;;  %v640_v8 = vor.u32 %v638_v45, %v637_v60 }
  0x2c   : > { %v1079_v7 = vld [vmem:[#allocation2 + $0x18] sm:$0xf]  ;;  %v642_v9 = vrot.slane %v637_v60, 4  ;;  %v916_v10 = vsel %vm12758_vm4, %v625_v59, %v915_v52  ;;  %1980 = vrot.lane.b32.xlu0 %v1914_v5, %s12692_s19  ;;  %v1913_v14 = vld [vmem:[#allocation2 + $0x10] sm:$0xf]  ;;  %v919_v18 = vsel %vm12814_vm10, %v632_v0, %v918_v49  ;;  %v12886_v41 = vpack.c.bf16 %v458_v13, %v458_v13 }
  0x2d   : > { %v1077_v15 = vld [vmem:[#allocation2 + $0x10] sm:$0xf]  ;;  %v1151_v16 = vrot.slane %v1149_v62, 4  ;;  %v1154_v17 = vrot.slane %v1152_v63, 5  ;;  %914 = vst.msk [vmem:[#allocation2 + $0x28] sm:$0xf] %vm334_vm0, %v624_v6  ;;  %v641_v24 = vsel %vm12828_vm11, %v633_v2, %v640_v8  ;;  %v12892_v62 = vpack.c.bf16 %v459_v35, %v459_v35 }
  0x2e   : > { %917 = vst [vmem:[#allocation2 + $0x2c] sm:$0x1] %v916_v10  ;;  %v1916_v20 = vld [vmem:[#allocation2 + $0x24] sm:$0xf]  ;;  %v1158_v21 = vshll.u32 %v1077_v15, 16  ;;  %v1162_v23 = vshrl.u32 %v1077_v15, 16  ;;  %v923_v25 = vsel %vm12758_vm4, %v642_v9, %v922_v3  ;;  %1978 = vrot.lane.b32.xlu1 %v1913_v14, %s12692_s19  ;;  %v12897_v10 = vpack.c.bf16 %v460_v54, %v460_v54 }
  0x2f   : > { %920 = vst [vmem:[#allocation2 + $0x30] sm:$0xf] %v919_v18  ;;  %v1078_v22 = vld [vmem:[#allocation2 + $0x14] sm:$0x1]  ;;  %v1155_v26 = vor.u32 %v1154_v17, %v1151_v16  ;;  %v1173_v28 = vshrl.u32 %v1079_v7, 16  ;;  %v1176_v29 = vshll.u32 %v1079_v7, 16 }
  0x30   : > { %v1168_v27 = vshll.u32 %v1078_v22, 16  ;;  %921 = vst.msk [vmem:[#allocation2 + $0x34] sm:$0xf] %vm334_vm0, %v641_v24  ;;  %v1082_v30 = vld [vmem:[#allocation2 + $0x24] sm:$0xf]  ;;  %v1160_v31 = vrot.slane %v1158_v21, 5  ;;  %1984 = vrot.lane.b32.xlu0 %v1916_v20, %s12692_s19 }
  0x31   : > { %924 = vst [vmem:[#allocation2 + $0x38] sm:$0x1] %v923_v25  ;;  %v1164_v32 = vrot.slane %v1162_v23, 4  ;;  %v1197_v33 = vshrl.u32 %v1082_v30, 16  ;;  %v1200_v34 = vshll.u32 %v1082_v30, 16  ;;  %v1156_v37 = vrot.slane %v1155_v26, 4 }
  0x32   : > { %v1915_v36 = vld [vmem:[#allocation2 + $0x1c] sm:$0xf]  ;;  %v1170_v38 = vrot.slane %v1168_v27, 5  ;;  %v1175_v43 = vrot.slane %v1173_v28, 4  ;;  %v1178_v44 = vrot.slane %v1176_v29, 5  ;;  %v12396_v23 = vld [vmem:[%s17461_s1 + $0x70] sm:$0xff]  }
  0x33   : > { %v1080_v39 = vld [vmem:[#allocation2 + $0x1c] sm:$0xf]  ;;  %v1165_v42 = vor.u32 %v1164_v32, %v1160_v31  ;;  %v1081_v47 = vld [vmem:[#allocation2 + $0x20] sm:$0x1]  ;;  %1982 = vrot.lane.b32.xlu1 %v1915_v36, %s12692_s19  ;;  %v1161_v48 = vsel %vm12808_vm9, %v1156_v37, %v1160_v31  ;;  %v1199_v49 = vrot.slane %v1197_v33, 4  ;;  %v1202_v50 = vrot.slane %v1200_v34, 5  ;;  %11791 = vmatprep.subr.bf16.mxu0 %v12396_v23 }
  0x34   : > { %v1182_v45 = vshll.u32 %v1080_v39, 16  ;;  %v1186_v52 = vshrl.u32 %v1080_v39, 16  ;;  %v1917_v55 = vld [vmem:[#allocation2 + $0x28] sm:$0xf]  ;;  %v1179_v58 = vor.u32 %v1178_v44, %v1175_v43  ;;  %1512 = vrot.lane.b32.xlu0 %v1161_v48, %s12692_s19  ;;  %v1192_v3 = vshll.u32 %v1081_v47, 16  ;;  %v12397_v29 = vld [vmem:[%s17461_s1 + $0x30] sm:$0xff]  }
  0x35   : > { %v1166_v56 = vrot.slane %v1165_v42, 4  ;;  %v1083_v60 = vld [vmem:[#allocation2 + $0x28] sm:$0xf]  ;;  %v1203_v63 = vor.u32 %v1202_v50, %v1199_v49  ;;  %v1084_v8 = vld [vmem:[#allocation2 + $0x2c] sm:$0x1]  ;;  %11792 = vmatpush3.bf16.msra.mxu0 %v12397_v29  ;;  %v647_v47 = vshll.u32 %v12851_v46, 16 }
  0x36   : > { %v1184_v59 = vrot.slane %v1182_v45, 5  ;;  %v1206_v0 = vshll.u32 %v1083_v60, 16  ;;  %v1188_v2 = vrot.slane %v1186_v52, 4  ;;  %v1918_v5 = vld [vmem:[#allocation2 + $0x30] sm:$0xf]  ;;  %v1180_v7 = vrot.slane %v1179_v58, 4 }
  0x37   : > { %v1171_v6 = vsel %vm12808_vm9, %v1166_v56, %v1170_v38  ;;  %v1210_v9 = vshrl.u32 %v1083_v60, 16  ;;  %1986 = vrot.lane.b32.xlu1 %v1917_v55, %s12692_s19  ;;  %v1204_v11 = vrot.slane %v1203_v63, 4  ;;  %v12900_v15 = vrot.slane %v1192_v3, 5  ;;  %v1085_v16 = vld [vmem:[#allocation2 + $0x30] sm:$0xf]  ;;  %v12398_v39 = vld [vmem:[%s17461_s1 + $0x68] sm:$0xff]  }
  0x38   : > { %v1208_v13 = vrot.slane %v1206_v0, 5  ;;  %v1189_v14 = vor.u32 %v1188_v2, %v1184_v59  ;;  %v1185_v17 = vsel %vm12808_vm9, %v1180_v7, %v1184_v59  ;;  %v1216_v20 = vshll.u32 %v1084_v8, 16  ;;  %v1086_v21 = vld [vmem:[#allocation2 + $0x34] sm:$0xf]  ;;  %1988 = vrot.lane.b32.xlu0 %v1918_v5, %s12692_s19  ;;  %v1087_v28 = vld [vmem:[#allocation2 + $0x38] sm:$0x1]  ;;  %11793 = vmatprep.subr.bf16.mxu0 %v12398_v39 }
  0x39   : > { %v1212_v18 = vrot.slane %v1210_v9, 4  ;;  %v1221_v22 = vshrl.u32 %v1085_v16, 16  ;;  %v1224_v26 = vshll.u32 %v1085_v16, 16  ;;  %v1230_v27 = vshll.u32 %v1086_v21, 16  ;;  %v362_v38 = vld [vmem:[#allocation2 + $0x48] sm:$0x1] }
  0x3a   : > { %v1209_v24 = vsel %vm12808_vm9, %v1204_v11, %v1208_v13  ;;  %v1190_v25 = vrot.slane %v1189_v14, 4  ;;  %v12913_v31 = vrot.slane %v1216_v20, 5  ;;  %v1234_v33 = vshrl.u32 %v1086_v21, 16  ;;  %v1919_v42 = vld [vmem:[#allocation2 + $0x34] sm:$0xf]  ;;  %v12399_v55 = vld [vmem:[%s17461_s1 + $0x28] sm:$0xff]  }
  0x3b   : > { %v1213_v30 = vor.u32 %v1212_v18, %v1208_v13  ;;  %v1223_v32 = vrot.slane %v1221_v22, 4  ;;  %1514 = vrot.lane.b32.xlu1 %v1171_v6, %s12692_s19  ;;  %v1226_v35 = vrot.slane %v1224_v26, 5  ;;  %v1232_v36 = vrot.slane %v1230_v27, 5  ;;  %v925_v50 = vld [vmem:[#allocation2 + $0x3c] sm:$0xf]  ;;  %11794 = vmatpush3.bf16.msra.mxu0 %v12399_v55  ;;  %v12400_v27 = vld [vmem:[%s17461_s1 + $0x60] sm:$0xff]  }
  0x3c   : > { %v1195_v34 = vsel %vm12808_vm9, %v1190_v25, %v12900_v15  ;;  %v1240_v37 = vshll.u32 %v1087_v28, 16  ;;  %v1236_v44 = vrot.slane %v1234_v33, 4  ;;  %v644_v45 = vshrl.u32 %v12851_v46, 16  ;;  %1516 = vrot.lane.b32.xlu0 %v1185_v17, %s12692_s19  ;;  %v929_v59 = vld [vmem:[#allocation2 + $0x44] sm:$0x1]  ;;  %11795 = vmatprep.subr.bf16.mxu0 %v12400_v27 }
  0x3d   : > { %v12922_v43 = vrot.slane %v1213_v30, 4  ;;  %v1227_v48 = vor.u32 %v1226_v35, %v1223_v32  ;;  %v652_v52 = vshrl.u32 %v12857_v53, 16  ;;  %v655_v54 = vshll.u32 %v12857_v53, 16  ;;  %v412_v3 = vld [vmem:[#allocation2 + $0x50] sm:$0x1] }
  0x3e   : > { %v12927_v49 = vrot.slane %v1240_v37, 5  ;;  %v1237_v56 = vor.u32 %v1236_v44, %v1232_v36  ;;  %v646_v58 = vrot.slane %v644_v45, 7  ;;  %v363_v60 = vsel %vm12758_vm4, 0, %v362_v38  ;;  %v365_v5 = vld [vmem:[#allocation2 + $0x54] sm:$0x1]  ;;  %v461_v45 = vld [vmem:[%s12790_s16 + $0x80] sm:$0xff] }
  0x3f   : > { %v1219_v46 = vsel %vm12808_vm9, %v12922_v43, %v12913_v31  ;;  %1990 = vrot.lane.b32.xlu1 %v1919_v42, %s12692_s19  ;;  %v1228_v63 = vrot.slane %v1227_v48, 4  ;;  %v654_v53 = vrot.slane %v652_v52, 7  ;;  %364 = vst [vmem:[#allocation2 + $0x48] sm:$0x1] %v363_v60  ;;  %v661_v0 = vshrl.u32 %v12861_v61, 16  ;;  %v12401_v31 = vld [vmem:[%s17461_s1 + $0x20] sm:$0xff]  }
  0x40   : > { %v664_v2 = vshll.u32 %v12861_v61, 16  ;;  %v12943_v6 = vrot.slane %v1237_v56, 4  ;;  %v649_v7 = vor.u32 %v647_v47, %v646_v58  ;;  %v650_v8 = vrot.slane %v646_v58, 4  ;;  %1520 = vrot.lane.b32.xlu0 %v1209_v24, %s12692_s19  ;;  %v415_v16 = vld [vmem:[#allocation2 + $0x5c] sm:$0x1]  ;;  %11796 = vmatpush3.bf16.msra.mxu0 %v12401_v31 }
  0x41   : > { %v669_v9 = vshrl.u32 %v12874_v19, 16  ;;  %v1233_v11 = vsel %vm12808_vm9, %v1228_v63, %v1232_v36  ;;  %v657_v13 = vor.u32 %v655_v54, %v654_v53  ;;  %v659_v14 = vrot.slane %v654_v53, 4  ;;  %v368_v21 = vld [vmem:[#allocation2 + $0x60] sm:$0x1]  ;;  %v418_v26 = vld [vmem:[#allocation2 + $0x68] sm:$0x1] }
  0x42   : > { %v663_v15 = vrot.slane %v661_v0, 7  ;;  %v1243_v61 = vsel %vm12808_vm9, %v12943_v6, %v12927_v49  ;;  %v926_v17 = vsel %vm12814_vm10, %v649_v7, %v925_v50  ;;  %v672_v20 = vshll.u32 %v12874_v19, 16  ;;  %v12402_v47 = vld [vmem:[%s17461_s1 + $0x58] sm:$0xff]   ;;  %v1009_v54 = vld [vmem:[#allocation2] sm:$0xf]  ;;  %v462_v53 = vld [vmem:[%s12790_s16 + $0x88] sm:$0xff] }
  0x43   : > { %v12955_v18 = vrot.slane %v669_v9, 7  ;;  %1518 = vrot.lane.b32.xlu1 %v1195_v34, %s12692_s19  ;;  %927 = vst [vmem:[#allocation2 + $0x3c] sm:$0xf] %v926_v17  ;;  %v658_v22 = vsel %vm12828_vm11, %v650_v8, %v657_v13  ;;  %v930_v23 = vsel %vm12758_vm4, %v659_v14, %v929_v59  ;;  %v413_v29 = vsel %vm12763_vm7, 0, %v412_v3  ;;  %1041 = vst.msk [vmem:[#allocation3] sm:$0xf] %vm334_vm0, %v1009_v54 }
  0x44   : > { %v666_v24 = vor.u32 %v664_v2, %v663_v15  ;;  %v667_v25 = vrot.slane %v663_v15, 4  ;;  %928 = vst.msk [vmem:[#allocation2 + $0x40] sm:$0xf] %vm334_vm0, %v658_v22  ;;  %931 = vst [vmem:[#allocation2 + $0x44] sm:$0x1] %v930_v23  ;;  %v366_v30 = vsel %vm12758_vm4, 0, %v365_v5  ;;  %1524 = vrot.lane.b32.xlu0 %v1233_v11, %s12692_s19  ;;  %11797 = vmatprep.subr.bf16.mxu0 %v12402_v47 }
  0x45   : > { %v674_v19 = vor.u32 %v672_v20, %v12955_v18  ;;  %v676_v28 = vrot.slane %v12955_v18, 4  ;;  %414 = vst [vmem:[#allocation2 + $0x50] sm:$0x1] %v413_v29  ;;  %367 = vst [vmem:[#allocation2 + $0x54] sm:$0x1] %v366_v30  ;;  %v678_v32 = vshrl.u32 %v12884_v40, 16  ;;  %v13012_v14 = vpack.c.bf16 %v461_v45, %v461_v45 }
  0x46   : > { %v681_v33 = vshll.u32 %v12884_v40, 16  ;;  %v686_v34 = vshrl.u32 %v12886_v41, 16  ;;  %v689_v35 = vshll.u32 %v12886_v41, 16  ;;  %v932_v36 = vld [vmem:[#allocation2 + $0x48] sm:$0xf]  ;;  %v416_v38 = vsel %vm12763_vm7, 0, %v415_v16 }
  0x47   : > { %v675_v37 = vsel %vm12828_vm11, %v667_v25, %v674_v19  ;;  %v369_v39 = vsel %vm12758_vm4, 0, %v368_v21  ;;  %v695_v42 = vshrl.u32 %v12892_v62, 16  ;;  %1522 = vrot.lane.b32.xlu1 %v1219_v46, %s12692_s19  ;;  %v933_v40 = vsel %vm12814_vm10, %v666_v24, %v932_v36  ;;  %417 = vst [vmem:[#allocation2 + $0x5c] sm:$0x1] %v416_v38  ;;  %v12403_v21 = vld [vmem:[%s17461_s1 + $0x18] sm:$0xff]   ;;  %v463_v36 = vld [vmem:[%s12790_s16 + $0x90] sm:$0xff] }
  0x48   : > { %935 = vst.msk [vmem:[#allocation2 + $0x4c] sm:$0xf] %vm334_vm0, %v675_v37  ;;  %v680_v41 = vrot.slane %v678_v32, 7  ;;  %v12992_v43 = vrot.slane %v686_v34, 7  ;;  %370 = vst [vmem:[#allocation2 + $0x60] sm:$0x1] %v369_v39  ;;  %v13027_v30 = vpack.c.bf16 %v462_v53, %v462_v53  ;;  %11798 = vmatpush3.bf16.msra.mxu0 %v12403_v21 }
  0x49   : > { %v698_v44 = vshll.u32 %v12892_v62, 16  ;;  %934 = vst [vmem:[#allocation2 + $0x48] sm:$0xf] %v933_v40  ;;  %v697_v48 = vrot.slane %v695_v42, 7  ;;  %v703_v49 = vshrl.u32 %v12897_v10, 16  ;;  %v706_v50 = vshll.u32 %v12897_v10, 16 }
  0x4a   : > { %v419_v52 = vsel %vm12763_vm7, 0, %v418_v26  ;;  %v684_v55 = vrot.slane %v680_v41, 4  ;;  %v691_v46 = vor.u32 %v689_v35, %v12992_v43  ;;  %v693_v62 = vrot.slane %v12992_v43, 4  ;;  %v1920_v56 = vld [vmem:[#allocation2 + $0x3c] sm:$0xf] }
  0x4b   : > { %420 = vst [vmem:[#allocation2 + $0x68] sm:$0x1] %v419_v52  ;;  %v1088_v58 = vld [vmem:[#allocation2 + $0x3c] sm:$0xf]  ;;  %v683_v59 = vor.u32 %v681_v33, %v680_v41  ;;  %v701_v60 = vrot.slane %v697_v48, 4  ;;  %v705_v63 = vrot.slane %v703_v49, 7  ;;  %1526 = vrot.lane.b32.xlu1 %v1243_v61, %s12692_s19  ;;  %1992 = vrot.lane.b32.xlu0 %v1920_v56, %s12692_s19  ;;  %v700_v6 = vor.u32 %v698_v44, %v697_v48 }
  0x4c   : > { %v1921_v10 = vld [vmem:[#allocation2 + $0x40] sm:$0xf]  ;;  %v1245_v2 = vshrl.u32 %v1088_v58, 16  ;;  %v1248_v3 = vshll.u32 %v1088_v58, 16  ;;  %v692_v5 = vsel %vm12828_vm11, %v684_v55, %v691_v46  ;;  %v1090_v8 = vld [vmem:[#allocation2 + $0x44] sm:$0x1] }
  0x4d   : > { %v1089_v0 = vld [vmem:[#allocation2 + $0x40] sm:$0xf]  ;;  %v936_v11 = vld [vmem:[#allocation2 + $0x50] sm:$0x1]  ;;  %942 = vst.msk [vmem:[#allocation2 + $0x58] sm:$0xf] %vm334_vm0, %v692_v5  ;;  %v708_v13 = vor.u32 %v706_v50, %v705_v63 }
  0x4e   : > { %v1254_v7 = vshll.u32 %v1089_v0, 16  ;;  %v1258_v9 = vshrl.u32 %v1089_v0, 16  ;;  %v1247_v15 = vrot.slane %v1245_v2, 4  ;;  %v1250_v16 = vrot.slane %v1248_v3, 5  ;;  %v939_v20 = vld [vmem:[#allocation2 + $0x54] sm:$0xf] }
  0x4f   : > { %v1264_v61 = vshll.u32 %v1090_v8, 16  ;;  %v937_v17 = vsel %vm12758_vm4, %v676_v28, %v936_v11  ;;  %v1092_v24 = vld [vmem:[#allocation2 + $0x4c] sm:$0xf]  ;;  %v940_v25 = vsel %vm12814_vm10, %v683_v59, %v939_v20  ;;  %v709_v26 = vsel %vm12828_vm11, %v701_v60, %v708_v13  ;;  %1994 = vrot.lane.b32.xlu1 %v1921_v10, %s12692_s19  ;;  %v943_v35 = vld [vmem:[#allocation2 + $0x5c] sm:$0x1]  ;;  %v12404_v41 = vld [vmem:[%s17461_s1 + $0x50] sm:$0xff]  }
  0x50   : > { %v1256_v22 = vrot.slane %v1254_v7, 5  ;;  %v1260_v23 = vrot.slane %v1258_v9, 4  ;;  %938 = vst [vmem:[#allocation2 + $0x50] sm:$0x1] %v937_v17  ;;  %v1251_v18 = vor.u32 %v1250_v16, %v1247_v15  ;;  %v1091_v19 = vld [vmem:[#allocation2 + $0x48] sm:$0xf]  ;;  %v944_v39 = vsel %vm12758_vm4, %v693_v62, %v943_v35  ;;  %11799 = vmatprep.subr.bf16.mxu0 %v12404_v41 }
  0x51   : > { %v1266_v27 = vrot.slane %v1264_v61, 5  ;;  %v1278_v28 = vshll.u32 %v1092_v24, 16  ;;  %941 = vst [vmem:[#allocation2 + $0x54] sm:$0xf] %v940_v25  ;;  %949 = vst.msk [vmem:[#allocation2 + $0x64] sm:$0xf] %vm334_vm0, %v709_v26  ;;  %v13055_v2 = vpack.c.bf16 %v463_v36, %v463_v36 }
  0x52   : > { %v371_v29 = vld [vmem:[#allocation2 + $0x6c] sm:$0x1]  ;;  %v1261_v31 = vor.u32 %v1260_v23, %v1256_v22  ;;  %v1269_v32 = vshrl.u32 %v1091_v19, 16  ;;  %v1272_v33 = vshll.u32 %v1091_v19, 16  ;;  %v1282_v34 = vshrl.u32 %v1092_v24, 16  ;;  %v12405_v46 = vld [vmem:[%s17461_s1 + $0x10] sm:$0xff]  }
  0x53   : > { %v1252_v37 = vrot.slane %v1251_v18, 4  ;;  %v13030_v38 = vrot.slane %v1278_v28, 5  ;;  %v946_v42 = vld [vmem:[#allocation2 + $0x60] sm:$0xf]  ;;  %v710_v40 = vrot.slane %v705_v63, 4  ;;  %v372_v55 = vsel %vm12758_vm4, 0, %v371_v29  ;;  %11800 = vmatpush3.bf16.msra.mxu0 %v12405_v46 }
  0x54   : > { %v1262_v43 = vrot.slane %v1261_v31, 4  ;;  %v1271_v44 = vrot.slane %v1269_v32, 4  ;;  %v1274_v45 = vrot.slane %v1272_v33, 5  ;;  %v1284_v47 = vrot.slane %v1282_v34, 4  ;;  %945 = vst [vmem:[#allocation2 + $0x5c] sm:$0x1] %v944_v39 }
  0x55   : > { %v950_v48 = vld [vmem:[#allocation2 + $0x68] sm:$0x1]  ;;  %v1257_v49 = vsel %vm12808_vm9, %v1252_v37, %v1256_v22  ;;  %v1095_v50 = vld [vmem:[#allocation2 + $0x58] sm:$0xf]  ;;  %v947_v52 = vsel %vm12814_vm10, %v700_v6, %v946_v42  ;;  %373 = vst [vmem:[#allocation2 + $0x6c] sm:$0x1] %v372_v55 }
  0x56   : > { %v951_v54 = vsel %vm12758_vm4, %v710_v40, %v950_v48  ;;  %1528 = vrot.lane.b32.xlu0 %v1257_v49, %s12692_s19  ;;  %v1267_v62 = vsel %vm12808_vm9, %v1262_v43, %v1266_v27  ;;  %v1275_v56 = vor.u32 %v1274_v45, %v1271_v44  ;;  %v1285_v58 = vor.u32 %v1284_v47, %v13030_v38  ;;  %v464_v60 = vld [vmem:[%s12790_s16 + $0x98] sm:$0xff]  ;;  %v1922_v63 = vld [vmem:[#allocation2 + $0x48] sm:$0xf]  ;;  %v1923_v3 = vld [vmem:[#allocation2 + $0x4c] sm:$0xf] }
  0x57   : > { %v1302_v59 = vshll.u32 %v1095_v50, 16  ;;  %948 = vst [vmem:[#allocation2 + $0x60] sm:$0xf] %v947_v52  ;;  %952 = vst [vmem:[#allocation2 + $0x68] sm:$0x1] %v951_v54  ;;  %1530 = vrot.lane.b32.xlu1 %v1267_v62, %s12692_s19  ;;  %v1306_v10 = vshrl.u32 %v1095_v50, 16  ;;  %v13065_v23 = vpack.c.bf16 %v464_v60, %v464_v60 }
  0x58   : > { %v1093_v53 = vld [vmem:[#allocation2 + $0x50] sm:$0x1]  ;;  %v712_v0 = vshrl.u32 %v13012_v14, 16  ;;  %v1276_v5 = vrot.slane %v1275_v56, 4  ;;  %v1286_v6 = vrot.slane %v1285_v58, 4  ;;  %v465_v9 = vld [vmem:[%s12790_s16 + $0xa0] sm:$0xff] }
  0x59   : > { %v1288_v7 = vshll.u32 %v1093_v53, 16  ;;  %v13057_v8 = vrot.slane %v1302_v59, 5  ;;  %v1094_v11 = vld [vmem:[#allocation2 + $0x54] sm:$0xf]  ;;  %v1308_v13 = vrot.slane %v1306_v10, 4  ;;  %v715_v16 = vshll.u32 %v13012_v14, 16 }
  0x5a   : > { %v13060_v15 = vrot.slane %v712_v0, 7  ;;  %v720_v61 = vshrl.u32 %v13027_v30, 16  ;;  %1996 = vrot.lane.b32.xlu0 %v1922_v63, %s12692_s19  ;;  %v1293_v20 = vshrl.u32 %v1094_v11, 16  ;;  %v1296_v21 = vshll.u32 %v1094_v11, 16  ;;  %v1098_v22 = vld [vmem:[#allocation2 + $0x64] sm:$0xf] }
  0x5b   : > { %v1290_v17 = vrot.slane %v1288_v7, 5  ;;  %v12406_v24 = vld [vmem:[%s17461_s1 + $0x48] sm:$0xff]   ;;  %1998 = vrot.lane.b32.xlu1 %v1923_v3, %s12692_s19  ;;  %v1281_v14 = vsel %vm12808_vm9, %v1276_v5, %v13030_v38  ;;  %v1096_v25 = vld [vmem:[#allocation2 + $0x5c] sm:$0x1]  ;;  %v1309_v26 = vor.u32 %v1308_v13, %v13057_v8  ;;  %v1326_v18 = vshll.u32 %v1098_v22, 16  ;;  %v467_v34 = vld [vmem:[%s12790_s16 + $0xb0] sm:$0xff] }
  0x5c   : > { %v1330_v27 = vshrl.u32 %v1098_v22, 16  ;;  %v1010_v19 = vld [vmem:[#allocation2 + $0x4] sm:$0xf]  ;;  %v1295_v29 = vrot.slane %v1293_v20, 4  ;;  %v1298_v31 = vrot.slane %v1296_v21, 5  ;;  %v1312_v32 = vshll.u32 %v1096_v25, 16  ;;  %11801 = vmatprep.subr.bf16.mxu0 %v12406_v24 }
  0x5d   : > { %v1291_v28 = vsel %vm12808_vm9, %v1286_v6, %v1290_v17  ;;  %v466_v33 = vld [vmem:[%s12790_s16 + $0xa8] sm:$0xff]  ;;  %1042 = vst.msk [vmem:[#allocation3 + $0x14] sm:$0xf] %vm334_vm0, %v1010_v19  ;;  %v1924_v36 = vld [vmem:[#allocation2 + $0x54] sm:$0xf]  ;;  %v13083_v37 = vrot.slane %v1309_v26, 4  ;;  %v717_v42 = vor.u32 %v715_v16, %v13060_v15  ;;  %v13088_v41 = vpack.c.bf16 %v465_v9, %v465_v9 }
  0x5e   : > { %v12407_v35 = vld [vmem:[%s17461_s1 + $0x8] sm:$0xff]   ;;  %v1097_v38 = vld [vmem:[#allocation2 + $0x60] sm:$0xf]  ;;  %v13085_v39 = vrot.slane %v1326_v18, 5  ;;  %v421_v40 = vld [vmem:[#allocation2 + $0x74] sm:$0x1]  ;;  %1532 = vrot.lane.b32.xlu0 %v1281_v14, %s12692_s19  ;;  %v1299_v43 = vor.u32 %v1298_v31, %v1295_v29  ;;  %v13094_v46 = vpack.c.bf16 %v466_v33, %v466_v33  ;;  %v13096_v60 = vpack.c.bf16 %v467_v34, %v467_v34 }
  0x5f   : > { %v1314_v44 = vrot.slane %v1312_v32, 5  ;;  %v1317_v45 = vshrl.u32 %v1097_v38, 16  ;;  %v1320_v47 = vshll.u32 %v1097_v38, 16  ;;  %v1099_v48 = vld [vmem:[#allocation2 + $0x68] sm:$0x1]  ;;  %11802 = vmatpush3.bf16.msra.mxu0 %v12407_v35  ;;  %1534 = vrot.lane.b32.xlu1 %v1291_v28, %s12692_s19  ;;  %v1332_v50 = vrot.slane %v1330_v27, 4 }
  0x60   : > { %v374_v49 = vld [vmem:[#allocation2 + $0x78] sm:$0x1]  ;;  %v1336_v52 = vshll.u32 %v1099_v48, 16  ;;  %v953_v54 = vld [vmem:[#allocation2 + $0x6c] sm:$0xf]  ;;  %v13092_v55 = vrot.slane %v720_v61, 7 }
  0x61   : > { %v1925_v62 = vld [vmem:[#allocation2 + $0x58] sm:$0xf]  ;;  %v1300_v56 = vrot.slane %v1299_v43, 4  ;;  %v1319_v58 = vrot.slane %v1317_v45, 4  ;;  %v1322_v59 = vrot.slane %v1320_v47, 5  ;;  %v12408_v63 = vld [vmem:[%s17461_s1 + $0x40] sm:$0xff]   ;;  %v1333_v53 = vor.u32 %v1332_v50, %v13085_v39 }
  0x62   : > { %v954_v10 = vsel %vm12814_vm10, %v717_v42, %v953_v54  ;;  %v718_v0 = vrot.slane %v13060_v15, 4  ;;  %v723_v3 = vshll.u32 %v13027_v30, 16  ;;  %2000 = vrot.lane.b32.xlu0 %v1924_v36, %s12692_s19  ;;  %v1315_v5 = vsel %vm12808_vm9, %v13083_v37, %v1314_v44  ;;  %v424_v11 = vld [vmem:[#allocation2 + $0x80] sm:$0x1]  ;;  %v468_v13 = vld [vmem:[%s12790_s16 + $0xb8] sm:$0xff]  ;;  %11803 = vmatprep.subr.bf16.mxu0 %v12408_v63 }
  0x63   : > { %v1323_v6 = vor.u32 %v1322_v59, %v1319_v58  ;;  %v13110_v7 = vrot.slane %v1336_v52, 5  ;;  %955 = vst [vmem:[#allocation2 + $0x6c] sm:$0xf] %v954_v10  ;;  %v422_v9 = vsel %vm12763_vm7, 0, %v421_v40  ;;  %2002 = vrot.lane.b32.xlu1 %v1925_v62, %s12692_s19  ;;  %v1305_v30 = vsel %vm12808_vm9, %v1300_v56, %v13057_v8  ;;  %v377_v17 = vld [vmem:[#allocation2 + $0x84] sm:$0x1] }
  0x64   : > { %v725_v15 = vor.u32 %v723_v3, %v13092_v55  ;;  %423 = vst [vmem:[#allocation2 + $0x74] sm:$0x1] %v422_v9  ;;  %v375_v16 = vsel %vm12758_vm4, 0, %v374_v49  ;;  %v729_v61 = vshrl.u32 %v13055_v2, 16  ;;  %v12409_v20 = vld [vmem:[%s17461_s1] sm:$0xff]   ;;  %v13126_v21 = vrot.slane %v1333_v53, 4 }
  0x65   : > { %376 = vst [vmem:[#allocation2 + $0x78] sm:$0x1] %v375_v16  ;;  %v732_v22 = vshll.u32 %v13055_v2, 16  ;;  %v737_v8 = vshrl.u32 %v13065_v23, 16  ;;  %v740_v24 = vshll.u32 %v13065_v23, 16  ;;  %v425_v18 = vsel %vm12763_vm7, 0, %v424_v11  ;;  %11804 = vmatpush3.bf16.msra.mxu0 %v12409_v20 }
  0x66   : > { %v427_v14 = vld [vmem:[#allocation2 + $0x8c] sm:$0x1]  ;;  %v726_v25 = vsel %vm12828_vm11, %v718_v0, %v725_v15  ;;  %v731_v26 = vrot.slane %v729_v61, 7  ;;  %v13135_v27 = vpack.c.bf16 %v468_v13, %v468_v13  ;;  %1536 = vrot.lane.b32.xlu0 %v1305_v30, %s12692_s19  ;;  %v1324_v19 = vrot.slane %v1323_v6, 4  ;;  %426 = vst [vmem:[#allocation2 + $0x80] sm:$0x1] %v425_v18 }
  0x67   : > { %956 = vst.msk [vmem:[#allocation2 + $0x70] sm:$0xf] %vm334_vm0, %v726_v25  ;;  %v739_v2 = vrot.slane %v737_v8, 7  ;;  %v378_v23 = vsel %vm12758_vm4, 0, %v377_v17  ;;  %v746_v28 = vshrl.u32 %v13088_v41, 16  ;;  %v12412_v29 = vld [vmem:[%s17461_s1 + $0x118] sm:$0xff]   ;;  %1538 = vrot.lane.b32.xlu1 %v1315_v5, %s12692_s19  ;;  %v1339_v44 = vsel %vm12808_vm9, %v13126_v21, %v13110_v7 }
  0x68   : > { %v1926_v31 = vld [vmem:[#allocation2 + $0x60] sm:$0xf]  ;;  %v727_v32 = vrot.slane %v13092_v55, 4  ;;  %v735_v33 = vrot.slane %v731_v26, 4  ;;  %379 = vst [vmem:[#allocation2 + $0x84] sm:$0x1] %v378_v23  ;;  %v734_v38 = vor.u32 %v732_v22, %v731_v26  ;;  %12284 = vmatprep.subr.bf16.mxu0 %v12412_v29  ;;  %v1329_v49 = vsel %vm12808_vm9, %v1324_v19, %v13085_v39 }
  0x69   : > { %v749_v34 = vshll.u32 %v13088_v41, 16  ;;  %v754_v35 = vshrl.u32 %v13094_v46, 16  ;;  %v380_v36 = vld [vmem:[#allocation2 + $0x90] sm:$0x1]  ;;  %v1927_v37 = vld [vmem:[#allocation2 + $0x64] sm:$0xf]  ;;  %v742_v42 = vor.u32 %v740_v24, %v739_v2 }
  0x6a   : > { %v748_v40 = vrot.slane %v746_v28, 7  ;;  %v757_v43 = vshll.u32 %v13094_v46, 16  ;;  %v1100_v45 = vld [vmem:[#allocation2 + $0x6c] sm:$0xf]  ;;  %v744_v47 = vrot.slane %v739_v2, 4  ;;  %v428_v41 = vsel %vm12763_vm7, 0, %v427_v14  ;;  %2004 = vrot.lane.b32.xlu0 %v1926_v31, %s12692_s19 }
  0x6b   : > { %v756_v48 = vrot.slane %v754_v35, 7  ;;  %v1341_v50 = vshrl.u32 %v1100_v45, 16  ;;  %v1344_v52 = vshll.u32 %v1100_v45, 16  ;;  %v957_v54 = vld [vmem:[#allocation2 + $0x74] sm:$0x1]  ;;  %v743_v55 = vsel %vm12828_vm11, %v735_v33, %v742_v42  ;;  %2006 = vrot.lane.b32.xlu1 %v1927_v37, %s12692_s19  ;;  %v469_v5 = vld [vmem:[%s12790_s16 + $0xc0] sm:$0xff] }
  0x6c   : > { %429 = vst [vmem:[#allocation2 + $0x8c] sm:$0x1] %v428_v41  ;;  %v958_v46 = vsel %vm12758_vm4, %v727_v32, %v957_v54  ;;  %v960_v62 = vld [vmem:[#allocation2 + $0x78] sm:$0xf]  ;;  %963 = vst.msk [vmem:[#allocation2 + $0x7c] sm:$0xf] %vm334_vm0, %v743_v55  ;;  %v751_v56 = vor.u32 %v749_v34, %v748_v40  ;;  %v13182_v8 = vpack.c.bf16 %v469_v5, %v469_v5 }
  0x6d   : > { %v752_v58 = vrot.slane %v748_v40, 4  ;;  %v759_v59 = vor.u32 %v757_v43, %v756_v48  ;;  %v1343_v39 = vrot.slane %v1341_v50, 4  ;;  %v1346_v63 = vrot.slane %v1344_v52, 5  ;;  %959 = vst [vmem:[#allocation2 + $0x74] sm:$0x1] %v958_v46 }
  0x6e   : > { %v961_v53 = vsel %vm12814_vm10, %v734_v38, %v960_v62  ;;  %v381_v10 = vsel %vm12758_vm4, 0, %v380_v36  ;;  %v430_v0 = vld [vmem:[#allocation2 + $0x98] sm:$0x1]  ;;  %v383_v3 = vld [vmem:[#allocation2 + $0x9c] sm:$0x1]  ;;  %v761_v11 = vrot.slane %v756_v48, 4  ;;  %1540 = vrot.lane.b32.xlu0 %v1329_v49, %s12692_s19 }
  0x6f   : > { %v1101_v6 = vld [vmem:[#allocation2 + $0x70] sm:$0xf]  ;;  %962 = vst [vmem:[#allocation2 + $0x78] sm:$0xf] %v961_v53  ;;  %v964_v7 = vld [vmem:[#allocation2 + $0x80] sm:$0x1]  ;;  %v760_v9 = vsel %vm12828_vm11, %v752_v58, %v759_v59  ;;  %v1347_v13 = vor.u32 %v1346_v63, %v1343_v39  ;;  %1542 = vrot.lane.b32.xlu1 %v1339_v44, %s12692_s19 }
  0x70   : > { %382 = vst [vmem:[#allocation2 + $0x90] sm:$0x1] %v381_v10  ;;  %v1350_v30 = vshll.u32 %v1101_v6, 16  ;;  %v1354_v15 = vshrl.u32 %v1101_v6, 16  ;;  %v965_v16 = vsel %vm12758_vm4, %v744_v47, %v964_v7  ;;  %v967_v61 = vld [vmem:[#allocation2 + $0x84] sm:$0xf] }
  0x71   : > { %970 = vst.msk [vmem:[#allocation2 + $0x88] sm:$0xf] %vm334_vm0, %v760_v9  ;;  %v1928_v17 = vld [vmem:[#allocation2 + $0x6c] sm:$0xf]  ;;  %966 = vst [vmem:[#allocation2 + $0x80] sm:$0x1] %v965_v16  ;;  %v968_v20 = vsel %vm12814_vm10, %v751_v56, %v967_v61 }
  0x72   : > { %v763_v21 = vshrl.u32 %v13096_v60, 16  ;;  %v771_v22 = vshrl.u32 %v13135_v27, 16  ;;  %v1929_v24 = vld [vmem:[#allocation2 + $0x70] sm:$0xf]  ;;  %v1348_v14 = vrot.slane %v1347_v13, 4  ;;  %v1352_v25 = vrot.slane %v1350_v30, 5  ;;  %2008 = vrot.lane.b32.xlu0 %v1928_v17, %s12692_s19 }
  0x73   : > { %v1356_v26 = vrot.slane %v1354_v15, 4  ;;  %969 = vst [vmem:[#allocation2 + $0x84] sm:$0xf] %v968_v20  ;;  %v774_v18 = vshll.u32 %v13135_v27, 16  ;;  %v971_v19 = vld [vmem:[#allocation2 + $0x8c] sm:$0x1]  ;;  %2010 = vrot.lane.b32.xlu1 %v1929_v24, %s12692_s19 }
  0x74   : > { %v765_v2 = vrot.slane %v763_v21, 7  ;;  %v13185_v23 = vrot.slane %v771_v22, 7  ;;  %v431_v28 = vsel %vm12763_vm7, 0, %v430_v0  ;;  %v384_v29 = vsel %vm12758_vm4, 0, %v383_v3  ;;  %v1104_v32 = vld [vmem:[#allocation2 + $0x7c] sm:$0xf] }
  0x75   : > { %v1357_v31 = vor.u32 %v1356_v26, %v1352_v25  ;;  %v972_v33 = vsel %vm12758_vm4, %v761_v11, %v971_v19  ;;  %v766_v34 = vshll.u32 %v13096_v60, 16  ;;  %432 = vst [vmem:[#allocation2 + $0x98] sm:$0x1] %v431_v28  ;;  %385 = vst [vmem:[#allocation2 + $0x9c] sm:$0x1] %v384_v29  ;;  %v1353_v27 = vsel %vm12808_vm9, %v1348_v14, %v1352_v25  ;;  %v470_v49 = vld [vmem:[%s12790_s16 + $0xc8] sm:$0xff] }
  0x76   : > { %v1102_v35 = vld [vmem:[#allocation2 + $0x74] sm:$0x1]  ;;  %v1374_v36 = vshll.u32 %v1104_v32, 16  ;;  %v1378_v37 = vshrl.u32 %v1104_v32, 16  ;;  %973 = vst [vmem:[#allocation2 + $0x8c] sm:$0x1] %v972_v33  ;;  %v776_v44 = vor.u32 %v774_v18, %v13185_v23  ;;  %1544 = vrot.lane.b32.xlu0 %v1353_v27, %s12692_s19  ;;  %v11750_v9 = vpack.c.bf16 %v470_v49, %v470_v49 }
  0x77   : > { %v769_v38 = vrot.slane %v765_v2, 4  ;;  %v1358_v42 = vrot.slane %v1357_v31, 4  ;;  %v1360_v40 = vshll.u32 %v1102_v35, 16  ;;  %v1103_v43 = vld [vmem:[#allocation2 + $0x78] sm:$0xf]  ;;  %v780_v60 = vshrl.u32 %v13182_v8, 16 }
  0x78   : > { %v1365_v45 = vshrl.u32 %v1103_v43, 16  ;;  %v1368_v47 = vshll.u32 %v1103_v43, 16  ;;  %v1376_v48 = vrot.slane %v1374_v36, 5  ;;  %v1380_v41 = vrot.slane %v1378_v37, 4  ;;  %v1105_v52 = vld [vmem:[#allocation2 + $0x80] sm:$0x1] }
  0x79   : > { %v1362_v50 = vrot.slane %v1360_v40, 5  ;;  %v1107_v54 = vld [vmem:[#allocation2 + $0x88] sm:$0xf]  ;;  %v768_v55 = vor.u32 %v766_v34, %v765_v2  ;;  %v777_v46 = vsel %vm12828_vm11, %v769_v38, %v776_v44  ;;  %v778_v62 = vrot.slane %v13185_v23, 4  ;;  %v1930_v56 = vld [vmem:[#allocation2 + $0x78] sm:$0xf] }
  0x7a   : > { %v1367_v58 = vrot.slane %v1365_v45, 4  ;;  %v1370_v59 = vrot.slane %v1368_v47, 5  ;;  %v1381_v39 = vor.u32 %v1380_v41, %v1376_v48  ;;  %v1384_v63 = vshll.u32 %v1105_v52, 16  ;;  %977 = vst.msk [vmem:[#allocation2 + $0x94] sm:$0xf] %vm334_vm0, %v777_v46  ;;  %v471_v53 = vld [vmem:[%s12790_s16 + $0xd0] sm:$0xff]  ;;  %2012 = vrot.lane.b32.xlu0 %v1930_v56, %s12692_s19 }
  0x7b   : > { %v1363_v10 = vsel %vm12808_vm9, %v1358_v42, %v1362_v50  ;;  %v1931_v0 = vld [vmem:[#allocation2 + $0x7c] sm:$0xf]  ;;  %v1106_v3 = vld [vmem:[#allocation2 + $0x84] sm:$0xf]  ;;  %v1398_v5 = vshll.u32 %v1107_v54, 16  ;;  %v1402_v6 = vshrl.u32 %v1107_v54, 16  ;;  %v13216_v18 = vpack.c.bf16 %v471_v53, %v471_v53 }
  0x7c   : > { %v974_v7 = vld [vmem:[#allocation2 + $0x90] sm:$0xf]  ;;  %1546 = vrot.lane.b32.xlu1 %v1363_v10, %s12692_s19  ;;  %v1371_v11 = vor.u32 %v1370_v59, %v1367_v58  ;;  %v1382_v13 = vrot.slane %v1381_v39, 4  ;;  %v1386_v30 = vrot.slane %v1384_v63, 5  ;;  %v1389_v15 = vshrl.u32 %v1106_v3, 16  ;;  %v472_v61 = vld [vmem:[%s12790_s16 + $0xd8] sm:$0xff] }
  0x7d   : > { %v978_v16 = vld [vmem:[#allocation2 + $0x98] sm:$0x1]  ;;  %v1392_v17 = vshll.u32 %v1106_v3, 16  ;;  %v13212_v20 = vrot.slane %v1398_v5, 5  ;;  %v1108_v21 = vld [vmem:[#allocation2 + $0x8c] sm:$0x1]  ;;  %v975_v24 = vsel %vm12814_vm10, %v768_v55, %v974_v7  ;;  %v13221_v31 = vpack.c.bf16 %v472_v61, %v472_v61 }
  0x7e   : > { %v1404_v22 = vrot.slane %v1402_v6, 4  ;;  %v1372_v14 = vrot.slane %v1371_v11, 4  ;;  %v1391_v25 = vrot.slane %v1389_v15, 4  ;;  %v1408_v26 = vshll.u32 %v1108_v21, 16  ;;  %976 = vst [vmem:[#allocation2 + $0x90] sm:$0xf] %v975_v24 }
  0x7f   : > { %v473_v19 = vld [vmem:[%s12790_s16 + $0xe0] sm:$0xff]  ;;  %v1394_v2 = vrot.slane %v1392_v17, 5  ;;  %v979_v23 = vsel %vm12758_vm4, %v778_v62, %v978_v16  ;;  %v782_v28 = vrot.slane %v780_v60, 7  ;;  %v783_v27 = vshll.u32 %v13182_v8, 16  ;;  %v386_v36 = vld [vmem:[#allocation2 + $0xa8] sm:$0x1] }
  0x80   : > { %v433_v29 = vld [vmem:[#allocation2 + $0xa4] sm:$0x1]  ;;  %2014 = vrot.lane.b32.xlu1 %v1931_v0, %s12692_s19  ;;  %v1377_v32 = vsel %vm12808_vm9, %v1372_v14, %v1376_v48  ;;  %v1405_v34 = vor.u32 %v1404_v22, %v13212_v20  ;;  %980 = vst [vmem:[#allocation2 + $0x98] sm:$0x1] %v979_v23  ;;  %v788_v35 = vshrl.u32 %v11750_v9, 16  ;;  %v1387_v37 = vsel %vm12808_vm9, %v1382_v13, %v1386_v30 }
  0x81   : > { %v1932_v33 = vld [vmem:[#allocation2 + $0x84] sm:$0xf]  ;;  %1548 = vrot.lane.b32.xlu0 %v1377_v32, %s12692_s19  ;;  %v1395_v38 = vor.u32 %v1394_v2, %v1391_v25  ;;  %v13231_v42 = vrot.slane %v1408_v26, 5  ;;  %v1110_v40 = vld [vmem:[#allocation2 + $0x94] sm:$0xf]  ;;  %v13233_v44 = vpack.c.bf16 %v473_v19, %v473_v19  ;;  %v785_v47 = vor.u32 %v783_v27, %v782_v28 }
  0x82   : > { %v981_v43 = vld [vmem:[#allocation2 + $0x9c] sm:$0xf]  ;;  %v1422_v60 = vshll.u32 %v1110_v40, 16  ;;  %v1426_v45 = vshrl.u32 %v1110_v40, 16  ;;  %v790_v48 = vrot.slane %v788_v35, 7  ;;  %v786_v8 = vrot.slane %v782_v28, 4 }
  0x83   : > { %v1396_v41 = vrot.slane %v1395_v38, 4  ;;  %v791_v49 = vshll.u32 %v11750_v9, 16  ;;  %v434_v50 = vsel %vm12763_vm7, 0, %v433_v29  ;;  %v1406_v52 = vrot.slane %v1405_v34, 4  ;;  %v436_v62 = vld [vmem:[#allocation2 + $0xb0] sm:$0x1] }
  0x84   : > { %1550 = vrot.lane.b32.xlu1 %v1387_v37, %s12692_s19  ;;  %v13238_v54 = vrot.slane %v1422_v60, 5  ;;  %v1428_v55 = vrot.slane %v1426_v45, 4  ;;  %v982_v46 = vsel %vm12814_vm10, %v785_v47, %v981_v43  ;;  %435 = vst [vmem:[#allocation2 + $0xa4] sm:$0x1] %v434_v50  ;;  %v1933_v56 = vld [vmem:[#allocation2 + $0x88] sm:$0xf] }
  0x85   : > { %2016 = vrot.lane.b32.xlu0 %v1932_v33, %s12692_s19  ;;  %v1401_v58 = vsel %vm12808_vm9, %v1396_v41, %v13212_v20  ;;  %v1109_v59 = vld [vmem:[#allocation2 + $0x90] sm:$0xf]  ;;  %983 = vst [vmem:[#allocation2 + $0x9c] sm:$0xf] %v982_v46  ;;  %v793_v39 = vor.u32 %v791_v49, %v790_v48  ;;  %v387_v63 = vsel %vm12758_vm4, 0, %v386_v36  ;;  %v797_v53 = vshrl.u32 %v13216_v18, 16 }
  0x86   : > { %v389_v10 = vld [vmem:[#allocation2 + $0xb4] sm:$0x1]  ;;  %v1413_v0 = vshrl.u32 %v1109_v59, 16  ;;  %v1416_v3 = vshll.u32 %v1109_v59, 16  ;;  %v1429_v5 = vor.u32 %v1428_v55, %v13238_v54  ;;  %388 = vst [vmem:[#allocation2 + $0xa8] sm:$0x1] %v387_v63  ;;  %v1411_v20 = vsel %vm12808_vm9, %v1406_v52, %v13231_v42 }
  0x87   : > { %v800_v6 = vshll.u32 %v13216_v18, 16  ;;  %v1111_v7 = vld [vmem:[#allocation2 + $0x98] sm:$0x1]  ;;  %v794_v9 = vsel %vm12828_vm11, %v786_v8, %v793_v39  ;;  %v799_v11 = vrot.slane %v797_v53, 7  ;;  %v805_v13 = vshrl.u32 %v13221_v31, 16  ;;  %v474_v45 = vld [vmem:[%s12790_s16 + $0xe8] sm:$0xff] }
  0x88   : > { %v808_v30 = vshll.u32 %v13221_v31, 16  ;;  %2018 = vrot.lane.b32.xlu1 %v1933_v56, %s12692_s19  ;;  %v1415_v15 = vrot.slane %v1413_v0, 4  ;;  %v1418_v16 = vrot.slane %v1416_v3, 5  ;;  %v1432_v61 = vshll.u32 %v1111_v7, 16  ;;  %984 = vst.msk [vmem:[#allocation2 + $0xa0] sm:$0xf] %vm334_vm0, %v794_v9 }
  0x89   : > { %v795_v17 = vrot.slane %v790_v48, 4  ;;  %1552 = vrot.lane.b32.xlu0 %v1401_v58, %s12692_s19  ;;  %v803_v21 = vrot.slane %v799_v11, 4  ;;  %v807_v22 = vrot.slane %v805_v13, 7  ;;  %v437_v24 = vsel %vm12763_vm7, 0, %v436_v62  ;;  %v1934_v14 = vld [vmem:[#allocation2 + $0x90] sm:$0xf] }
  0x8a   : > { %v1419_v25 = vor.u32 %v1418_v16, %v1415_v15  ;;  %v802_v26 = vor.u32 %v800_v6, %v799_v11  ;;  %438 = vst [vmem:[#allocation2 + $0xb0] sm:$0x1] %v437_v24  ;;  %v390_v18 = vsel %vm12758_vm4, 0, %v389_v10  ;;  %v814_v19 = vshrl.u32 %v13233_v44, 16  ;;  %v1637_v2 = vld [vmem:[#allocation2] sm:$0xe] }
  0x8b   : > { %v1935_v23 = vld [vmem:[#allocation2 + $0x94] sm:$0xf]  ;;  %v1430_v28 = vrot.slane %v1429_v5, 4  ;;  %v1434_v29 = vrot.slane %v1432_v61, 5  ;;  %v985_v31 = vld [vmem:[#allocation2 + $0xa4] sm:$0x1]  ;;  %v810_v32 = vor.u32 %v808_v30, %v807_v22  ;;  %v11754_v59 = vpack.c.bf16 %v474_v45, %v474_v45 }
  0x8c   : > { %391 = vst [vmem:[#allocation2 + $0xb4] sm:$0x1] %v390_v18  ;;  %v817_v33 = vshll.u32 %v13233_v44, 16  ;;  %v13267_v34 = vld [vmem:[#allocation2 + $0x4] sm:$0xf]  ;;  %1554 = vrot.lane.b32.xlu1 %v1411_v20, %s12692_s19  ;;  %v1420_v27 = vrot.slane %v1419_v25, 4  ;;  %v986_v36 = vsel %vm12758_vm4, %v795_v17, %v985_v31 }
  0x8d   : > { %v1112_v35 = vld [vmem:[#allocation2 + $0x9c] sm:$0xf]  ;;  %v13272_v37 = vrot.slane %v814_v19, 7  ;;  %vm1733_vm12 = vcmask 1042432   ;;  %v1640_v38 = vld [vmem:[#allocation2 + $0xc] sm:$0xe]  ;;  %2020 = vrot.lane.b32.xlu0 %v1934_v14, %s12692_s19  ;;  %v811_v60 = vsel %vm12828_vm11, %v803_v21, %v810_v32  ;;  %v1435_v39 = vsel %vm12808_vm9, %v1430_v28, %v1434_v29 }
  0x8e   : > { %v13274_v42 = vld [vmem:[#allocation2 + $0x10] sm:$0xf]  ;;  %v1437_v40 = vshrl.u32 %v1112_v35, 16  ;;  %v1440_v43 = vshll.u32 %v1112_v35, 16  ;;  %987 = vst [vmem:[#allocation2 + $0xa4] sm:$0x1] %v986_v36  ;;  %v1425_v47 = vsel %vm12808_vm9, %v1420_v27, %v13238_v54 }
  0x8f   : > { %v988_v44 = vld [vmem:[#allocation2 + $0xa8] sm:$0xf]  ;;  %vm1734_vm13 = vcmask 1046532   ;;  %v812_v41 = vrot.slane %v807_v22, 4  ;;  %991 = vst.msk [vmem:[#allocation2 + $0xac] sm:$0xf] %vm334_vm0, %v811_v60  ;;  %v819_v46 = vor.u32 %v817_v33, %v13272_v37 }
  0x90   : > { %v989_v48 = vsel %vm12814_vm10, %v802_v26, %v988_v44  ;;  %v11320_v8 = vrot.slane %v1637_v2, 9  ;;  %v1011_v49 = vld [vmem:[#allocation2 + $0xc] sm:$0xf]  ;;  %v1113_v50 = vld [vmem:[#allocation2 + $0xa0] sm:$0xf]  ;;  %v1439_v52 = vrot.slane %v1437_v40, 4  ;;  %vm13288_vm14 = vmor %vm1733_vm12, %vm1734_vm13  ;;  %2022 = vrot.lane.b32.xlu1 %v1935_v23, %s12692_s19 }
  0x91   : > { %v1442_v55 = vrot.slane %v1440_v43, 5  ;;  %990 = vst [vmem:[#allocation2 + $0xa8] sm:$0xf] %v989_v48  ;;  %1043 = vst.msk [vmem:[#allocation3 + $0x28] sm:$0xf] %vm334_vm0, %v1011_v49  ;;  %v1446_v54 = vshll.u32 %v1113_v50, 16  ;;  %1556 = vrot.lane.b32.xlu0 %v1425_v47, %s12692_s19 }
  0x92   : > { %v1450_v56 = vshrl.u32 %v1113_v50, 16  ;;  %v1738_v58 = vrot.slane %v13267_v34, 5  ;;  %v992_v53 = vld [vmem:[#allocation2 + $0xb0] sm:$0x1]  ;;  %v11321_v10 = vrot.slane %v1640_v38, 9  ;;  %v1745_v0 = vrot.slane %v13274_v42, 5 }
  0x93   : > { %v1443_v63 = vor.u32 %v1442_v55, %v1439_v52  ;;  %v1936_v3 = vld [vmem:[#allocation2 + $0x9c] sm:$0xf]  ;;  %v1448_v5 = vrot.slane %v1446_v54, 5  ;;  %v993_v7 = vsel %vm12758_vm4, %v812_v41, %v992_v53  ;;  %v995_v9 = vld [vmem:[#allocation2 + $0xb4] sm:$0xf]  ;;  %vm1604_vm15 = vcmask 1043968   ;;  %v1509_v60 = vpop.permute.xlu0 %1508 }
  0x94   : > { %v1452_v6 = vrot.slane %v1450_v56, 4  ;;  %v1739_v11 = vsel %vm13288_vm14, %v11320_v8, %v1738_v58  ;;  %994 = vst [vmem:[#allocation2 + $0xb0] sm:$0x1] %v993_v7  ;;  %v996_v30 = vsel %vm12814_vm10, %v819_v46, %v995_v9  ;;  %v1746_v15 = vsel %vm13288_vm14, %v11321_v10, %v1745_v0  ;;  %1558 = vrot.lane.b32.xlu1 %v1435_v39, %s12692_s19  ;;  %v1639_v20 = vld [vmem:[#allocation2 + $0x8] sm:$0x1]  ;;  %v475_v25 = vld [vmem:[%s12790_s16 + $0xf0] sm:$0xff] }
  0x95   : > { %v1444_v13 = vrot.slane %v1443_v63, 4  ;;  %1880 = vst.msk [vmem:[#allocation3 + $0x4] sm:$0xf] %vm334_vm0, %v1739_v11  ;;  %v1114_v16 = vld [vmem:[#allocation2 + $0xa4] sm:$0x1]  ;;  %v822_v17 = vshrl.u32 %v11754_v59, 16  ;;  %2024 = vrot.lane.b32.xlu0 %v1936_v3, %s12692_s19  ;;  %v13336_v46 = vpack.c.bf16 %v475_v25, %v475_v25 }
  0x96   : > { %v1453_v61 = vor.u32 %v1452_v6, %v1448_v5  ;;  %997 = vst [vmem:[#allocation2 + $0xb4] sm:$0xf] %v996_v30  ;;  %1882 = vst.msk [vmem:[#allocation3 + $0x2c] sm:$0xf] %vm334_vm0, %v1746_v15  ;;  %v1937_v21 = vld [vmem:[#allocation2 + $0xa0] sm:$0xf] }
  0x97   : > { %v1456_v22 = vshll.u32 %v1114_v16, 16  ;;  %v1116_v24 = vld [vmem:[#allocation2 + $0xac] sm:$0xf]  ;;  %v825_v14 = vshll.u32 %v11754_v59, 16  ;;  %v1449_v26 = vsel %vm12808_vm9, %v1444_v13, %v1448_v5  ;;  %v13316_v23 = vld [vmem:[#allocation2] sm:$0xe]  ;;  %v1511_v13 = vpop.permute.xlu0 %1510 }
  0x98   : > { %v1454_v18 = vrot.slane %v1453_v61, 4  ;;  %v1115_v19 = vld [vmem:[#allocation2 + $0xa8] sm:$0xf]  ;;  %v1470_v2 = vshll.u32 %v1116_v24, 16  ;;  %v1740_v28 = vrot.slane %v1738_v58, 4  ;;  %v476_v29 = vld [vmem:[%s12790_s16 + $0xf8] sm:$0xff]  ;;  %2026 = vrot.lane.b32.xlu1 %v1937_v21, %s12692_s19 }
  0x99   : > { %v1458_v31 = vrot.slane %v1456_v22, 5  ;;  %v1461_v32 = vshrl.u32 %v1115_v19, 16  ;;  %v1464_v33 = vshll.u32 %v1115_v19, 16  ;;  %v1474_v34 = vshrl.u32 %v1116_v24, 16  ;;  %v13319_v27 = vld [vmem:[#allocation2 + $0x1c] sm:$0xf]  ;;  %1560 = vrot.lane.b32.xlu0 %v1449_v26, %s12692_s19 }
  0x9a   : > { %v13322_v35 = vrot.slane %v1470_v2, 5  ;;  %v820_v36 = vrot.slane %v13272_v37, 4  ;;  %v13325_v38 = vrot.slane %v822_v17, 7  ;;  %v1741_v40 = vrot.slane %v1639_v20, 5  ;;  %v1643_v43 = vld [vmem:[#allocation2 + $0x18] sm:$0xe] }
  0x9b   : > { %v1459_v44 = vsel %vm12808_vm9, %v1454_v18, %v1458_v31  ;;  %v1463_v45 = vrot.slane %v1461_v32, 4  ;;  %v1466_v47 = vrot.slane %v1464_v33, 5  ;;  %v1476_v48 = vrot.slane %v1474_v34, 4  ;;  %v439_v41 = vld [vmem:[#allocation2 + $0xbc] sm:$0x1] }
  0x9c   : > { %v1938_v8 = vld [vmem:[#allocation2 + $0xa8] sm:$0xf]  ;;  %1605 = vst.msk [vmem:[#allocation3] sm:$0xf] %vm1604_vm15, %v1509_v60  ;;  %v1117_v49 = vld [vmem:[#allocation2 + $0xb0] sm:$0x1]  ;;  %v827_v37 = vor.u32 %v825_v14, %v13325_v38  ;;  %v1742_v52 = vsel %vm13288_vm14, %v1740_v28, %v1741_v40  ;;  %v13338_v54 = vpack.c.bf16 %v476_v29, %v476_v29  ;;  %1562 = vrot.lane.b32.xlu1 %v1459_v44, %s12692_s19 }
  0x9d   : > { %v13331_v50 = vld [vmem:[#allocation2 + $0x4] sm:$0xf]  ;;  %v392_v55 = vld [vmem:[#allocation2 + $0xc0] sm:$0x1]  ;;  %v1467_v56 = vor.u32 %v1466_v47, %v1463_v45  ;;  %v1477_v58 = vor.u32 %v1476_v48, %v13322_v35  ;;  %v1480_v59 = vshll.u32 %v1117_v49, 16  ;;  %v11533_v39 = vrot.slane %v13316_v23, 9  ;;  %2028 = vrot.lane.b32.xlu0 %v1938_v8, %s12692_s19 }
  0x9e   : > { %v1118_v63 = vld [vmem:[#allocation2 + $0xb4] sm:$0xf]  ;;  %1881 = vst.msk [vmem:[#allocation3 + $0x18] sm:$0xf] %vm334_vm0, %v1742_v52  ;;  %v828_v10 = vsel %vm12828_vm11, %v820_v36, %v827_v37  ;;  %v1752_v6 = vrot.slane %v13319_v27, 5  ;;  %v11322_v16 = vrot.slane %v1643_v43, 9  ;;  %v1977_v43 = vpop.permute.xlu1 %1976  ;;  %v1981_v52 = vpop.permute.xlu0 %1980 }
  0x9f   : > { %v1642_v53 = vld [vmem:[#allocation2 + $0x14] sm:$0x1]  ;;  %v1485_v3 = vshrl.u32 %v1118_v63, 16  ;;  %v1488_v5 = vshll.u32 %v1118_v63, 16  ;;  %v1012_v7 = vld [vmem:[#allocation2 + $0x10] sm:$0xf] }
  0xa0   : > { %v1939_v9 = vld [vmem:[#allocation2 + $0xac] sm:$0xf]  ;;  %v1468_v11 = vrot.slane %v1467_v56, 4  ;;  %v1478_v30 = vrot.slane %v1477_v58, 4  ;;  %v1482_v15 = vrot.slane %v1480_v59, 5  ;;  %v440_v21 = vsel %vm12763_vm7, 0, %v439_v41 }
  0xa1   : > { %998 = vst.msk [vmem:[#allocation2 + $0xb8] sm:$0xf] %vm334_vm0, %v828_v10  ;;  %1044 = vst.msk [vmem:[#allocation3 + $0x3c] sm:$0xf] %vm334_vm0, %v1012_v7  ;;  %v1487_v61 = vrot.slane %v1485_v3, 4  ;;  %v1490_v17 = vrot.slane %v1488_v5, 5  ;;  %v1753_v25 = vsel %vm13288_vm14, %v11322_v16, %v1752_v6  ;;  %2030 = vrot.lane.b32.xlu1 %v1939_v9, %s12692_s19 }
  0xa2   : > { %1606 = vst.msk [vmem:[#allocation3 + $0x14] sm:$0xf] %vm1604_vm15, %v1511_v13  ;;  %v13351_v20 = vld [vmem:[#allocation2 + $0x8] sm:$0x1]  ;;  %v393_v22 = vsel %vm12758_vm4, 0, %v392_v55  ;;  %v1473_v24 = vsel %vm12808_vm9, %v1468_v11, %v13322_v35  ;;  %v6438_v14 = vrot.slane %v13331_v50, 5  ;;  %v1483_v27 = vsel %vm12808_vm9, %v1478_v30, %v1482_v15  ;;  %v1979_v11 = vpop.permute.xlu1 %1978 }
  0xa3   : > { %441 = vst [vmem:[#allocation2 + $0xbc] sm:$0x1] %v440_v21  ;;  %394 = vst [vmem:[#allocation2 + $0xc0] sm:$0x1] %v393_v22  ;;  %v831_v26 = vshrl.u32 %v13336_v46, 16  ;;  %v12437_v19 = vld [vmem:[%s17461_s1 + $0xf8] sm:$0xff]   ;;  %v1491_v2 = vor.u32 %v1490_v17, %v1487_v61  ;;  %1564 = vrot.lane.b32.xlu0 %v1473_v24, %s12692_s19 }
  0xa4   : > { %v1013_v18 = vld [vmem:[#allocation2 + $0x18] sm:$0xf]  ;;  %1884 = vst.msk [vmem:[#allocation3 + $0x54] sm:$0xf] %vm334_vm0, %v1753_v25  ;;  %v834_v28 = vshll.u32 %v13336_v46, 16  ;;  %v1747_v29 = vrot.slane %v1745_v0, 4  ;;  %11901 = vmatprep.subr.bf16.mxu1 %v12437_v19  ;;  %v6439_v9 = vsel %vm13288_vm14, %v11533_v39, %v6438_v14 }
  0xa5   : > { %v1748_v31 = vrot.slane %v1642_v53, 5  ;;  %v13372_v32 = vld [vmem:[#allocation2 + $0x10] sm:$0xf]  ;;  %v1645_v33 = vld [vmem:[#allocation2 + $0x20] sm:$0x1]  ;;  %v12438_v34 = vld [vmem:[%s17461_s1 + $0xb8] sm:$0xff]   ;;  %1566 = vrot.lane.b32.xlu1 %v1483_v27, %s12692_s19 }
  0xa6   : > { %1045 = vst.msk [vmem:[#allocation3 + $0x50] sm:$0xf] %vm334_vm0, %v1013_v18  ;;  %v13381_v35 = vrot.slane %v831_v26, 7  ;;  %v839_v42 = vshrl.u32 %v13338_v54, 16  ;;  %v842_v0 = vshll.u32 %v13338_v54, 16  ;;  %v829_v44 = vrot.slane %v13325_v38, 4  ;;  %11902 = vmatpush3.bf16.msra.mxu1 %v12438_v34  ;;  %v1985_v26 = vpop.permute.xlu0 %1984 }
  0xa7   : > { %v3001_v36 = vld [vmem:[#allocation2 + $0x18] sm:$0xf]  ;;  %v1940_v40 = vld [vmem:[#allocation2 + $0xb4] sm:$0xf]  ;;  %v13386_v60 = vrot.slane %v6438_v14, 4  ;;  %v1749_v45 = vsel %vm13288_vm14, %v1747_v29, %v1748_v31  ;;  %v1754_v47 = vrot.slane %v1752_v6, 4 }
  0xa8   : > { %v12439_v48 = vld [vmem:[%s17461_s1 + $0xf0] sm:$0xff]   ;;  %2072 = vst.msk [vmem:[#allocation3 + $0x4] sm:$0xf] %vm1604_vm15, %v1977_v43  ;;  %v6441_v41 = vrot.slane %v13351_v20, 5  ;;  %v836_v8 = vor.u32 %v834_v28, %v13381_v35  ;;  %v13397_v38 = vrot.slane %v839_v42, 7  ;;  %v1755_v49 = vrot.slane %v1645_v33, 5  ;;  %2032 = vrot.lane.b32.xlu0 %v1940_v40, %s12692_s19 }
  0xa9   : > { %1883 = vst.msk [vmem:[#allocation3 + $0x40] sm:$0xf] %vm334_vm0, %v1749_v45  ;;  %v13399_v50 = vld [vmem:[#allocation2 + $0x1c] sm:$0xf]  ;;  %v12440_v37 = vld [vmem:[%s17461_s1 + $0xb0] sm:$0xff]   ;;  %v1492_v54 = vrot.slane %v1491_v2, 4  ;;  %11903 = vmatprep.subr.bf16.mxu1 %v12439_v48 }
  0xaa   : > { %v1941_v55 = vld [vmem:[#allocation2 + $0xb8] sm:$0xf]  ;;  %v837_v56 = vrot.slane %v13381_v35, 4  ;;  %v13406_v58 = vld [vmem:[#allocation2 + $0x24] sm:$0xe]  ;;  %v844_v10 = vor.u32 %v842_v0, %v13397_v38  ;;  %v2698_v3 = vrot.slane %v13372_v32, 5  ;;  %v1756_v16 = vsel %vm13288_vm14, %v1754_v47, %v1755_v49  ;;  %11904 = vmatpush3.bf16.msra.mxu1 %v12440_v37 }
  0xab   : > { %v1119_v46 = vld [vmem:[#allocation2 + $0xb8] sm:$0xf]  ;;  %v13408_v59 = vld [vmem:[#allocation2 + $0x28] sm:$0xf]  ;;  %2074 = vst.msk [vmem:[#allocation3 + $0x2c] sm:$0xf] %vm1604_vm15, %v1981_v52  ;;  %2034 = vrot.lane.b32.xlu1 %v1941_v55, %s12692_s19  ;;  %v6442_v43 = vsel %vm13288_vm14, %v13386_v60, %v6441_v41  ;;  %v1513_v52 = vpop.permute.xlu0 %1512 }
  0xac   : > { %v1494_v63 = vshll.u32 %v1119_v46, 16  ;;  %v1498_v53 = vshrl.u32 %v1119_v46, 16  ;;  %v13414_v5 = vld [vmem:[#allocation2 + $0x20] sm:$0x1]  ;;  %v1015_v6 = vld [vmem:[#allocation2 + $0x24] sm:$0xf]  ;;  %v845_v18 = vsel %vm12828_vm11, %v837_v56, %v844_v10 }
  0xad   : > { %v12443_v7 = vld [vmem:[%s17461_s1 + $0xe8] sm:$0xff]   ;;  %v999_v13 = vld [vmem:[#allocation2 + $0xbc] sm:$0x1]  ;;  %v1002_v30 = vld [vmem:[#allocation2 + $0xc0] sm:$0xf]  ;;  %v3050_v61 = vshrl.u32 %v3001_v36, 16 }
  0xae   : > { %v13423_v15 = vld [vmem:[#allocation2 + $0xc] sm:$0xe]  ;;  %v3053_v17 = vshll.u32 %v3001_v36, 16  ;;  %1047 = vst.msk [vmem:[#allocation3 + $0x78] sm:$0xf] %vm334_vm0, %v1015_v6  ;;  %v1496_v21 = vrot.slane %v1494_v63, 5  ;;  %v1000_v23 = vsel %vm12758_vm4, %v829_v44, %v999_v13  ;;  %v1003_v22 = vsel %vm12814_vm10, %v836_v8, %v1002_v30  ;;  %11905 = vmatprep.subr.bf16.mxu1 %v12443_v7  ;;  %v1983_v44 = vpop.permute.xlu1 %1982 }
  0xaf   : > { %2073 = vst.msk [vmem:[#allocation3 + $0x18] sm:$0xf] %vm1604_vm15, %v1979_v11  ;;  %v1500_v39 = vrot.slane %v1498_v53, 4  ;;  %v13434_v24 = vld [vmem:[#allocation2 + $0x14] sm:$0x1]  ;;  %v3052_v19 = vrot.slane %v3050_v61, 4 }
  0xb0   : > { %1885 = vst.msk [vmem:[#allocation3 + $0x68] sm:$0xf] %vm334_vm0, %v1756_v16  ;;  %v13436_v14 = vld [vmem:[#allocation2 + $0x1c] sm:$0xf]  ;;  %1001 = vst [vmem:[#allocation2 + $0xbc] sm:$0x1] %v1000_v23  ;;  %v1497_v34 = vsel %vm12808_vm9, %v1492_v54, %v1496_v21 }
  0xb1   : > { %v1014_v25 = vld [vmem:[#allocation2 + $0x1c] sm:$0xf]  ;;  %1004 = vst [vmem:[#allocation2 + $0xc0] sm:$0xf] %v1003_v22  ;;  %v3055_v2 = vrot.slane %v3053_v17, 5  ;;  %v3059_v28 = vshll.u32 %v13399_v50, 16  ;;  %v1501_v27 = vor.u32 %v1500_v39, %v1496_v21  ;;  %1568 = vrot.lane.b32.xlu0 %v1497_v34, %s12692_s19 }
  0xb2   : > { %v13442_v29 = vld [vmem:[#allocation2 + $0x18] sm:$0xe]  ;;  %v1648_v31 = vld [vmem:[#allocation2 + $0x2c] sm:$0x1]  ;;  %1046 = vst.msk [vmem:[#allocation3 + $0x64] sm:$0xf] %vm334_vm0, %v1014_v25 }
  0xb3   : > { %v12444_v33 = vld [vmem:[%s17461_s1 + $0xa8] sm:$0xff]   ;;  %2076 = vst.msk [vmem:[#allocation3 + $0x54] sm:$0xf] %vm1604_vm15, %v1985_v26  ;;  %v11323_v35 = vrot.slane %v13406_v58, 9  ;;  %v1759_v42 = vrot.slane %v13408_v59, 5  ;;  %v13454_v40 = vld [vmem:[#allocation3] sm:$0xff]  ;;  %v3056_v45 = vor.u32 %v3055_v2, %v3052_v19 }
  0xb4   : > { %1005 = vst.msk [vmem:[#allocation2 + $0xc4] sm:$0xf] %vm334_vm0, %v845_v18  ;;  %v3004_v0 = vld [vmem:[#allocation2 + $0x24] sm:$0xf]  ;;  %v1016_v36 = vld [vmem:[#allocation2 + $0x28] sm:$0xf]  ;;  %11906 = vmatpush3.bf16.msra.mxu1 %v12444_v33  ;;  %v1989_v18 = vpop.permute.xlu0 %1988 }
  0xb5   : > { %v3063_v47 = vshrl.u32 %v13399_v50, 16  ;;  %v3069_v48 = vshll.u32 %v13414_v5, 16  ;;  %1048 = vst.msk [vmem:[#allocation3 + $0x8c] sm:$0xf] %vm334_vm0, %v1016_v36  ;;  %v1017_v8 = vld [vmem:[#allocation2 + $0x30] sm:$0xf]  ;;  %v1760_v41 = vsel %vm13288_vm14, %v11323_v35, %v1759_v42 }
  0xb6   : > { %6580 = vst.msk [vmem:[#allocation3 + $0x4] sm:$0xf] %vm334_vm0, %v6439_v9  ;;  %v11336_v20 = vrot.slane %v13423_v15, 9  ;;  %v13470_v49 = vrot.slane %v2698_v3, 4  ;;  %v13472_v60 = vrot.slane %v3059_v28, 5  ;;  %v12445_v37 = vld [vmem:[%s17461_s1 + $0xe0] sm:$0xff]   ;;  %v1987_v9 = vpop.permute.xlu1 %1986 }
  0xb7   : > { %2075 = vst.msk [vmem:[#allocation3 + $0x40] sm:$0xf] %vm1604_vm15, %v1983_v44  ;;  %v13476_v50 = vld [vmem:[#allocation2 + $0x20] sm:$0x1]  ;;  %v2701_v55 = vrot.slane %v13434_v24, 5  ;;  %v3065_v46 = vrot.slane %v3063_v47, 4  ;;  %11907 = vmatprep.subr.bf16.mxu1 %v12445_v37 }
  0xb8   : > { %1049 = vst.msk [vmem:[#allocation3 + $0xa0] sm:$0xf] %vm334_vm0, %v1017_v8  ;;  %1886 = vst.msk [vmem:[#allocation3 + $0x7c] sm:$0xf] %vm334_vm0, %v1760_v41  ;;  %v2705_v54 = vrot.slane %v13436_v14, 5  ;;  %v1761_v56 = vrot.slane %v1759_v42, 4  ;;  %v2699_v33 = vsel %vm13288_vm14, %v11336_v20, %v2698_v3 }
  0xb9   : > { %v13485_v58 = vld [vmem:[#allocation2 + $0x28] sm:$0xf]  ;;  %v13487_v59 = vrot.slane %v1501_v27, 4  ;;  %1607 = vst.msk [vmem:[#allocation3 + $0x28] sm:$0xf] %vm1604_vm15, %v1513_v52  ;;  %v13490_v63 = vrot.slane %v3056_v45, 4  ;;  %v3066_v39 = vor.u32 %v3065_v46, %v13472_v60  ;;  %v2702_v14 = vsel %vm13288_vm14, %v13470_v49, %v2701_v55 }
  0xba   : > { %v11337_v53 = vrot.slane %v13442_v29, 9  ;;  %v1762_v10 = vrot.slane %v1648_v31, 5  ;;  %v13493_v5 = vld [vmem:[#allocation2 + $0x2c] sm:$0x1]  ;;  %v12446_v6 = vld [vmem:[%s17461_s1 + $0xa0] sm:$0xff]   ;;  %v13498_v11 = vrot.slane %v3069_v48, 5  ;;  %v1515_v36 = vpop.permute.xlu1 %1514 }
  0xbb   : > { %v3836_v7 = vld [vmem:[#allocation3 + $0x14] sm:$0xff]  ;;  %v13502_v13 = vrot.slane %v2705_v54, 4  ;;  %v3074_v30 = vshrl.u32 %v3004_v0, 16  ;;  %v3077_v15 = vshll.u32 %v3004_v0, 16  ;;  %v1120_v61 = vld [vmem:[#allocation2 + $0xbc] sm:$0x1]  ;;  %11908 = vmatpush3.bf16.msra.mxu1 %v12446_v6  ;;  %v3062_v3 = vsel %vm12808_vm9, %v13490_v63, %v13472_v60  ;;  %v1517_v60 = vpop.permute.xlu0 %1516 }
  0xbc   : > { %v13507_v16 = vld [vmem:[%s17461_s1 + $0x110] sm:$0xff]   ;;  %6581 = vst.msk [vmem:[#allocation3 + $0x18] sm:$0xf] %vm334_vm0, %v6442_v43  ;;  %v1942_v17 = vld [vmem:[#allocation2 + $0xc0] sm:$0xf]  ;;  %v11370_v21 = vcombine.high %v13454_v40, %v3836_v7  ;;  %v11369_v23 = vcombine.low %v13454_v40, %v3836_v7  ;;  %v1763_v22 = vsel %vm13288_vm14, %v1761_v56, %v1762_v10  ;;  %v1504_v26 = vshll.u32 %v1120_v61, 16 }
  0xbd   : > { %2077 = vst.msk [vmem:[#allocation3 + $0x68] sm:$0xf] %vm1604_vm15, %v1987_v9  ;;  %v13516_v25 = vld [vmem:[#allocation2 + $0x24] sm:$0xe]  ;;  %2036 = vrot.lane.b32.xlu0 %v1942_v17, %s12692_s19  ;;  %v2708_v19 = vrot.slane %v13476_v50, 5  ;;  %v3076_v2 = vrot.slane %v3074_v30, 4 }
  0xbe   : > { %1887 = vst.msk [vmem:[#allocation3 + $0x90] sm:$0xf] %vm334_vm0, %v1763_v22  ;;  %v3079_v28 = vrot.slane %v3077_v15, 5  ;;  %v13521_v31 = vld [vmem:[#allocation2 + $0x28] sm:$0xf]  ;;  %4705 = vmatprep.mubr.bf16.mxu0 %v11370_v21  ;;  %v3083_v34 = vshll.u32 %v13485_v58, 16  ;;  %v1991_v7 = vpop.permute.xlu1 %1990 }
  0xbf   : > { %2078 = vst.msk [vmem:[#allocation3 + $0x7c] sm:$0xf] %vm1604_vm15, %v1989_v18  ;;  %v3087_v27 = vshrl.u32 %v13485_v58, 16  ;;  %v13530_v35 = vld [vmem:[#allocation2 + $0x2c] sm:$0x1]  ;;  %v1506_v0 = vrot.slane %v1504_v26, 5  ;;  %4706 = vmatmul.mubr.bf16.vlgmr.msra.gmra.mxu0 %v11369_v23  ;;  %v1521_v18 = vpop.permute.xlu0 %1520 }
  0xc0   : > { %v1018_v42 = vld [vmem:[#allocation2 + $0x34] sm:$0xf]  ;;  %v3093_v40 = vshll.u32 %v13493_v5, 16  ;;  %v3007_v43 = vld [vmem:[#allocation2 + $0x30] sm:$0xf]  ;;  %v13541_v44 = vrot.slane %v3066_v39, 4  ;;  %v3080_v37 = vor.u32 %v3079_v28, %v3076_v2 }
  0xc1   : > { %v13533_v32 = vld [vmem:[#allocation2 + $0x34] sm:$0xf]  ;;  %1050 = vst.msk [vmem:[#allocation3 + $0xb4] sm:$0xf] %vm334_vm0, %v1018_v42  ;;  %v11338_v45 = vrot.slane %v13516_v25, 9  ;;  %v12649_v47 = vld [vmem:[%s17461_s1 + $0x118] sm:$0xff]   ;;  %v1507_v20 = vsel %vm12808_vm9, %v13487_v59, %v1506_v0  ;;  %2808 = vrot.lane.b32.xlu0 %v2699_v33, %s12692_s19 }
  0xc2   : > { %1608 = vst.msk [vmem:[#allocation3 + $0x3c] sm:$0xf] %vm1604_vm15, %v1515_v36  ;;  %12285 = vmatpush3.bf16.msra.mxu0 %v12649_v47  ;;  %v1649_v48 = vld [vmem:[#allocation2 + $0x30] sm:$0xe]  ;;  %v1650_v8 = vld [vmem:[#allocation2 + $0x34] sm:$0xf]  ;;  %1570 = vrot.lane.b32.xlu1 %v1507_v20, %s12692_s19  ;;  %v1519_v29 = vpop.permute.xlu1 %1518  ;;  %v3072_v49 = vsel %vm12808_vm9, %v13541_v44, %v13498_v11 }
  0xc3   : > { %v1943_v41 = vld [vmem:[#allocation2 + $0xc4] sm:$0xf]  ;;  %v13551_v52 = vrot.slane %v3083_v34, 5  ;;  %v2712_v46 = vrot.slane %v13521_v31, 5  ;;  %12286 = vmatprep.subr.bf16.mxu0 %v13507_v16  ;;  %v12430_v56 = vld [vmem:[%s17461_s1 + $0x108] sm:$0xff]   ;;  %v12450_v58 = vld [vmem:[%s17461_s1 + $0xd8] sm:$0xff]  }
  0xc4   : > { %1609 = vst.msk [vmem:[#allocation3 + $0x50] sm:$0xf] %vm1604_vm15, %v1517_v60  ;;  %v13563_v59 = vrot.slane %v3087_v27, 4  ;;  %v3098_v63 = vshrl.u32 %v3007_v43, 16  ;;  %v3101_v10 = vshll.u32 %v3007_v43, 16  ;;  %v3107_v5 = vshll.u32 %v13533_v32, 16  ;;  %11909 = vmatprep.subr.bf16.mxu1 %v12450_v58 }
  0xc5   : > { %v12451_v6 = vld [vmem:[%s17461_s1 + $0x98] sm:$0xff]   ;;  %v13569_v9 = vrot.slane %v3093_v40, 5  ;;  %v2715_v30 = vrot.slane %v13530_v35, 5  ;;  %v11324_v15 = vrot.slane %v1649_v48, 9  ;;  %v1766_v61 = vrot.slane %v1650_v8, 5  ;;  %3433 = vrot.lane.b32.xlu0 %v3062_v3, %s12692_s19  ;;  %v3839_v2 = vld [vmem:[#allocation3 + $0x28] sm:$0xff] }
  0xc6   : > { %v1019_v17 = vld [vmem:[#allocation2 + $0x3c] sm:$0xf]  ;;  %2079 = vst.msk [vmem:[#allocation3 + $0x90] sm:$0xf] %vm1604_vm15, %v1991_v7  ;;  %v13573_v21 = vrot.slane %v3098_v63, 4  ;;  %v13575_v23 = vrot.slane %v3101_v10, 5  ;;  %12287 = vmatpush3.bf16.msra.mxu0 %v13507_v16  ;;  %11910 = vmatpush3.bf16.msra.mxu1 %v12451_v6  ;;  %v2706_v27 = vsel %vm13288_vm14, %v11337_v53, %v2705_v54  ;;  %v3090_v42 = vor.u32 %v13563_v59, %v13551_v52 }
  0xc7   : > { %v13577_v39 = vld [vmem:[#allocation2 + $0x38] sm:$0x1]  ;;  %1051 = vst.msk [vmem:[#allocation3 + $0xc8] sm:$0xf] %vm334_vm0, %v1019_v17  ;;  %v13582_v26 = vrot.slane %v3080_v37, 4  ;;  %v13586_v28 = vrot.slane %v2712_v46, 4  ;;  %v1767_v33 = vsel %vm13288_vm14, %v11324_v15, %v1766_v61  ;;  %12288 = vmatprep.subr.bf16.mxu0 %v12430_v56  ;;  %2038 = vrot.lane.b32.xlu1 %v1943_v41, %s12692_s19  ;;  %v1525_v37 = vpop.permute.xlu0 %1524  ;;  %v2713_v15 = vsel %vm13288_vm14, %v11338_v45, %v2712_v46 }
  0xc8   : > { %v1651_v22 = vld [vmem:[#allocation2 + $0x38] sm:$0x1]  ;;  %v3111_v34 = vshrl.u32 %v13533_v32, 16  ;;  %v12447_v16 = vld [vmem:[%s17461_s1 + $0x100] sm:$0xff]   ;;  %1611 = vst.msk [vmem:[#allocation3 + $0x78] sm:$0xf] %vm1604_vm15, %v1521_v18  ;;  %v3104_v20 = vor.u32 %v13575_v23, %v13573_v21 }
  0xc9   : > { %v13604_v0 = vrot.slane %v3107_v5, 5  ;;  %1888 = vst.msk [vmem:[#allocation3 + $0xa4] sm:$0xf] %vm334_vm0, %v1767_v33  ;;  %v13607_v36 = vld [vmem:[#allocation2 + $0x30] sm:$0xe]  ;;  %v1768_v40 = vrot.slane %v1766_v61, 4  ;;  %2812 = vrot.lane.b32.xlu0 %v2706_v27, %s12692_s19  ;;  %v3086_v55 = vsel %vm12808_vm9, %v13582_v26, %v13551_v52  ;;  %v1523_v61 = vpop.permute.xlu1 %1522 }
  0xca   : > { %v3010_v43 = vld [vmem:[#allocation2 + $0x3c] sm:$0xf]  ;;  %v1020_v32 = vld [vmem:[#allocation2 + $0x40] sm:$0xf]  ;;  %v3842_v54 = vld [vmem:[#allocation3 + $0x3c] sm:$0xff]  ;;  %v3113_v3 = vrot.slane %v3111_v34, 4  ;;  %12289 = vmatpush3.bf16.msra.mxu0 %v12430_v56 }
  0xcb   : > { %v12410_v53 = vld [vmem:[#allocation3 + $0x2c] ss:$20 sps:$4 sm:$0xff]   ;;  %v3117_v47 = vshll.u32 %v13577_v39, 16  ;;  %v1769_v48 = vrot.slane %v1651_v22, 5  ;;  %1052 = vst.msk [vmem:[#allocation3 + $0xdc] sm:$0xf] %vm334_vm0, %v1020_v32  ;;  %v11374_v8 = vcombine.low %v3839_v2, %v3842_v54  ;;  %2810 = vrot.lane.b32.xlu1 %v2702_v14, %s12692_s19  ;;  %12290 = vmatprep.subr.bf16.mxu0 %v12447_v16  ;;  %v2709_v14 = vsel %vm13288_vm14, %v13502_v13, %v2708_v19  ;;  %v1993_v54 = vpop.permute.xlu0 %1992 }
  0xcc   : > { %1610 = vst.msk [vmem:[#allocation3 + $0x64] sm:$0xf] %vm1604_vm15, %v1519_v29  ;;  %v13619_v24 = vld [vmem:[#allocation2 + $0x40] sm:$0xf]  ;;  %v1652_v41 = vld [vmem:[#allocation2 + $0x3c] sm:$0xe]  ;;  %4713 = vmatprep.mubr.bf16.mxu0 %v12410_v53  ;;  %v3114_v52 = vor.u32 %v3113_v3, %v13604_v0 }
  0xcd   : > { %v1653_v60 = vld [vmem:[#allocation2 + $0x40] sm:$0xf]  ;;  %v13630_v58 = vld [vmem:[#allocation2 + $0x34] sm:$0xf]  ;;  %v1770_v59 = vsel %vm13288_vm14, %v1768_v40, %v1769_v48  ;;  %v13634_v56 = vld [vmem:[#allocation2 + $0x38] sm:$0x1]  ;;  %4714 = vmatmul.mubr.bf16.gmra.mxu0 %v11374_v8  ;;  %3437 = vrot.lane.b32.xlu0 %v3086_v55, %s12692_s19  ;;  %v1527_v29 = vpop.permute.xlu1 %1526 }
  0xce   : > { %v3122_v63 = vshrl.u32 %v3010_v43, 16  ;;  %v12452_v11 = vld [vmem:[%s17461_s1 + $0xd0] sm:$0xff]   ;;  %v13640_v44 = vrot.slane %v3090_v42, 4  ;;  %1613 = vst.msk [vmem:[#allocation3 + $0xa0] sm:$0xf] %vm1604_vm15, %v1525_v37  ;;  %v3125_v10 = vshll.u32 %v3010_v43, 16  ;;  %12291 = vmatpush3.bf16.msra.mxu0 %v12447_v16 }
  0xcf   : > { %1889 = vst.msk [vmem:[#allocation3 + $0xb8] sm:$0xf] %vm334_vm0, %v1770_v59  ;;  %v11325_v5 = vrot.slane %v1652_v41, 9  ;;  %v1654_v6 = vld [vmem:[#allocation2 + $0x44] sm:$0x1]  ;;  %v12453_v7 = vld [vmem:[%s17461_s1 + $0x90] sm:$0xff]   ;;  %11911 = vmatprep.subr.bf16.mxu1 %v12452_v11  ;;  %3435 = vrot.lane.b32.xlu1 %v3072_v49, %s12692_s19 }
  0xd0   : > { %v11339_v17 = vrot.slane %v13607_v36, 9  ;;  %v3131_v21 = vshll.u32 %v13619_v24, 16  ;;  %v1773_v23 = vrot.slane %v1653_v60, 5  ;;  %v1021_v39 = vld [vmem:[#allocation2 + $0x48] sm:$0xf]  ;;  %v13660_v31 = vrot.slane %v3104_v20, 4  ;;  %11912 = vmatpush3.bf16.msra.mxu1 %v12453_v7 }
  0xd1   : > { %v12456_v22 = vld [vmem:[%s17461_s1 + $0xc8] sm:$0xff]   ;;  %1612 = vst.msk [vmem:[#allocation3 + $0x8c] sm:$0xf] %vm1604_vm15, %v1523_v61  ;;  %v13662_v25 = vrot.slane %v3117_v47, 5  ;;  %v2719_v45 = vrot.slane %v13630_v58, 5  ;;  %v13665_v46 = vrot.slane %v3122_v63, 4  ;;  %2816 = vrot.lane.b32.xlu0 %v2713_v15, %s12692_s19 }
  0xd2   : > { %v3012_v26 = vld [vmem:[#allocation2 + $0x44] sm:$0x1]  ;;  %1053 = vst.msk [vmem:[#allocation3 + $0xf0] sm:$0xf] %vm334_vm0, %v1021_v39  ;;  %v3127_v18 = vrot.slane %v3125_v10, 5  ;;  %v1774_v2 = vsel %vm13288_vm14, %v11325_v5, %v1773_v23  ;;  %v1775_v33 = vrot.slane %v1773_v23, 4  ;;  %11913 = vmatprep.subr.bf16.mxu1 %v12456_v22  ;;  %v3110_v58 = vsel %vm12808_vm9, %v13660_v31, %v13604_v0 }
  0xd3   : > { %v1776_v34 = vrot.slane %v1654_v6, 5  ;;  %v12457_v27 = vld [vmem:[%s17461_s1 + $0x88] sm:$0xff]   ;;  %v13675_v42 = vrot.slane %v3114_v52, 4  ;;  %v13677_v16 = vrot.slane %v2719_v45, 4  ;;  %v2722_v43 = vrot.slane %v13634_v56, 5  ;;  %v3848_v53 = vld [vmem:[#allocation3 + $0x64] sm:$0xff]  ;;  %2814 = vrot.lane.b32.xlu1 %v2709_v14, %s12692_s19  ;;  %v1995_v6 = vpop.permute.xlu1 %1994 }
  0xd4   : > { %v3845_v40 = vld [vmem:[#allocation3 + $0x50] sm:$0xff]  ;;  %1890 = vst.msk [vmem:[#allocation3 + $0xcc] sm:$0xf] %vm334_vm0, %v1774_v2  ;;  %v3135_v32 = vshrl.u32 %v13619_v24, 16  ;;  %v13687_v47 = vrot.slane %v3131_v21, 5  ;;  %v3141_v48 = vshll.u32 %v3012_v26, 16  ;;  %11914 = vmatpush3.bf16.msra.mxu1 %v12457_v27  ;;  %v3128_v41 = vor.u32 %v3127_v18, %v13665_v46 }
  0xd5   : > { %v12413_v3 = vld [vmem:[#allocation3 + $0x54] ss:$20 sps:$4 sm:$0xff]   ;;  %v1777_v8 = vsel %vm13288_vm14, %v1775_v33, %v1776_v34  ;;  %1614 = vst.msk [vmem:[#allocation3 + $0xb4] sm:$0xf] %vm1604_vm15, %v1527_v29  ;;  %2080 = vst.msk [vmem:[#allocation3 + $0xa4] sm:$0xf] %vm1604_vm15, %v1993_v54  ;;  %v11379_v50 = vcombine.low %v3845_v40, %v3848_v53  ;;  %v3096_v10 = vsel %vm12808_vm9, %v13640_v44, %v13569_v9  ;;  %3441 = vrot.lane.b32.xlu0 %v3110_v58, %s12692_s19 }
  0xd6   : > { %v12458_v20 = vld [vmem:[%s17461_s1 + $0xc0] sm:$0xff]   ;;  %1891 = vst.msk [vmem:[#allocation3 + $0xe0] sm:$0xf] %vm334_vm0, %v1777_v8  ;;  %v1022_v19 = vld [vmem:[#allocation2 + $0x4c] sm:$0xf]  ;;  %4721 = vmatprep.mubr.bf16.mxu0 %v12413_v3  ;;  %v3137_v59 = vrot.slane %v3135_v32, 4  ;;  %v2716_v5 = vsel %vm13288_vm14, %v13586_v28, %v2715_v30  ;;  %v2720_v21 = vsel %vm13288_vm14, %v11339_v17, %v2719_v45  ;;  %v1529_v32 = vpop.permute.xlu0 %1528 }
  0xd7   : > { %v13697_v13 = vld [vmem:[#allocation2 + $0x40] sm:$0xf]  ;;  %v1655_v24 = vld [vmem:[#allocation2 + $0x48] sm:$0xe]  ;;  %1054 = vst.msk [vmem:[#allocation3 + $0x104] sm:$0xf] %vm334_vm0, %v1022_v19  ;;  %4722 = vmatmul.mubr.bf16.gmra.mxu0 %v11379_v50  ;;  %11915 = vmatprep.subr.bf16.mxu1 %v12458_v20  ;;  %v1531_v8 = vpop.permute.xlu1 %1530 }
  0xd8   : > { %v1656_v60 = vld [vmem:[#allocation2 + $0x4c] sm:$0xf]  ;;  %v11326_v49 = vrot.slane %v1655_v24, 9  ;;  %v12459_v37 = vld [vmem:[%s17461_s1 + $0x80] sm:$0xff]   ;;  %v3013_v52 = vld [vmem:[#allocation2 + $0x48] sm:$0xf]  ;;  %3439 = vrot.lane.b32.xlu1 %v3096_v10, %s12692_s19  ;;  %v3138_v45 = vor.u32 %v3137_v59, %v13687_v47 }
  0xd9   : > { %v3014_v55 = vld [vmem:[#allocation2 + $0x4c] sm:$0xf]  ;;  %v13710_v63 = vld [vmem:[#allocation2 + $0x44] sm:$0x1]  ;;  %v1780_v11 = vrot.slane %v1656_v60, 5  ;;  %v2726_v0 = vrot.slane %v13697_v13, 5  ;;  %11916 = vmatpush3.bf16.msra.mxu1 %v12459_v37  ;;  %2820 = vrot.lane.b32.xlu0 %v2720_v21, %s12692_s19  ;;  %v3120_v37 = vsel %vm12808_vm9, %v13675_v42, %v13662_v25 }
  0xda   : > { %v12415_v7 = vld [vmem:[#allocation3 + $0x7c] ss:$20 sps:$4 sm:$0xff]   ;;  %v13722_v15 = vld [vmem:[#allocation2 + $0x3c] sm:$0xe]  ;;  %v3155_v61 = vshll.u32 %v3014_v55, 16  ;;  %v13729_v35 = vrot.slane %v3141_v48, 5  ;;  %v1997_v10 = vpop.permute.xlu0 %1996 }
  0xdb   : > { %2081 = vst.msk [vmem:[#allocation3 + $0xb8] sm:$0xf] %vm1604_vm15, %v1995_v6  ;;  %v1781_v9 = vsel %vm13288_vm14, %v11326_v49, %v1780_v11  ;;  %v3146_v30 = vshrl.u32 %v3013_v52, 16  ;;  %v1657_v28 = vld [vmem:[#allocation2 + $0x50] sm:$0x1]  ;;  %v3129_v23 = vrot.slane %v3128_v41, 4  ;;  %4729 = vmatprep.mubr.bf16.mxu0 %v12415_v7  ;;  %v1999_v21 = vpop.permute.xlu1 %1998 }
  0xdc   : > { %v1023_v44 = vld [vmem:[#allocation2 + $0x54] sm:$0xf]  ;;  %v3854_v39 = vld [vmem:[#allocation3 + $0x8c] sm:$0xff]  ;;  %v2729_v36 = vrot.slane %v13710_v63, 5  ;;  %1892 = vst.msk [vmem:[#allocation3 + $0xf4] sm:$0xf] %vm334_vm0, %v1781_v9  ;;  %2818 = vrot.lane.b32.xlu1 %v2716_v5, %s12692_s19 }
  0xdd   : > { %v3159_v17 = vshrl.u32 %v3014_v55, 16  ;;  %v3149_v22 = vshll.u32 %v3013_v52, 16  ;;  %1055 = vst.msk [vmem:[#allocation3 + $0x118] sm:$0xf] %vm334_vm0, %v1023_v44  ;;  %v3851_v31 = vld [vmem:[#allocation3 + $0x78] sm:$0xff]  ;;  %v3148_v46 = vrot.slane %v3146_v30, 4  ;;  %v3134_v48 = vsel %vm12808_vm9, %v3129_v23, %v13687_v47 }
  0xde   : > { %v1782_v26 = vrot.slane %v1780_v11, 4  ;;  %v1783_v18 = vrot.slane %v1657_v28, 5  ;;  %v13741_v2 = vrot.slane %v2726_v0, 4  ;;  %v11340_v33 = vrot.slane %v13722_v15, 9  ;;  %v3015_v34 = vld [vmem:[#allocation2 + $0x50] sm:$0x1]  ;;  %3445 = vrot.lane.b32.xlu0 %v3134_v48, %s12692_s19 }
  0xdf   : > { %v13744_v27 = vrot.slane %v3155_v61, 5  ;;  %v3151_v40 = vrot.slane %v3149_v22, 5  ;;  %v11384_v14 = vcombine.low %v3851_v31, %v3854_v39  ;;  %v13748_v54 = vld [vmem:[#allocation2 + $0x4c] sm:$0xf]  ;;  %v1024_v53 = vld [vmem:[#allocation2 + $0x58] sm:$0xf]  ;;  %v2723_v39 = vsel %vm13288_vm14, %v13677_v16, %v2722_v43  ;;  %v1535_v16 = vpop.permute.xlu1 %1534 }
  0xe0   : > { %v1784_v29 = vsel %vm13288_vm14, %v1782_v26, %v1783_v18  ;;  %v1658_v3 = vld [vmem:[#allocation2 + $0x54] sm:$0xe]  ;;  %1615 = vst.msk [vmem:[#allocation3 + $0xc8] sm:$0xf] %vm1604_vm15, %v1529_v32  ;;  %v13755_v20 = vrot.slane %v3159_v17, 4  ;;  %v13761_v41 = vrot.slane %v3138_v45, 4  ;;  %v2727_v25 = vsel %vm13288_vm14, %v11340_v33, %v2726_v0  ;;  %3443 = vrot.lane.b32.xlu1 %v3120_v37, %s12692_s19  ;;  %v1533_v26 = vpop.permute.xlu0 %1532 }
  0xe1   : > { %1893 = vst.msk [vmem:[#allocation3 + $0x108] sm:$0xf] %vm334_vm0, %v1784_v29  ;;  %1056 = vst.msk [vmem:[#allocation3 + $0x12c] sm:$0xf] %vm334_vm0, %v1024_v53  ;;  %v1659_v50 = vld [vmem:[#allocation2 + $0x58] sm:$0xf]  ;;  %4730 = vmatmul.mubr.bf16.gmra.mxu0 %v11384_v14  ;;  %v3152_v49 = vor.u32 %v3151_v40, %v3148_v46 }
  0xe2   : > { %v11327_v19 = vrot.slane %v1658_v3, 9  ;;  %v3017_v24 = vld [vmem:[#allocation2 + $0x58] sm:$0xf]  ;;  %1616 = vst.msk [vmem:[#allocation3 + $0xdc] sm:$0xf] %vm1604_vm15, %v1531_v8  ;;  %v3165_v60 = vshll.u32 %v3015_v34, 16  ;;  %v3162_v9 = vor.u32 %v13755_v20, %v13744_v27  ;;  %2824 = vrot.lane.b32.xlu0 %v2727_v25, %s12692_s19 }
  0xe3   : > { %v1787_v47 = vrot.slane %v1659_v50, 5  ;;  %v3016_v55 = vld [vmem:[#allocation2 + $0x54] sm:$0xf]  ;;  %v12417_v58 = vld [vmem:[#allocation3 + $0xa4] ss:$20 sps:$4 sm:$0xff]   ;;  %v2733_v11 = vrot.slane %v13748_v54, 5 }
  0xe4   : > { %v13767_v59 = vld [vmem:[#allocation2 + $0x50] sm:$0x1]  ;;  %v3179_v52 = vshll.u32 %v3017_v24, 16  ;;  %v3183_v6 = vshrl.u32 %v3017_v24, 16  ;;  %v3170_v7 = vshrl.u32 %v3016_v55, 16  ;;  %4737 = vmatprep.mubr.bf16.mxu0 %v12417_v58  ;;  %v3173_v28 = vshll.u32 %v3016_v55, 16  ;;  %2822 = vrot.lane.b32.xlu1 %v2723_v39, %s12692_s19  ;;  %v2001_v37 = vpop.permute.xlu0 %2000 }
  0xe5   : > { %v1788_v5 = vsel %vm13288_vm14, %v11327_v19, %v1787_v47  ;;  %v1660_v15 = vld [vmem:[#allocation2 + $0x5c] sm:$0x1]  ;;  %v1025_v61 = vld [vmem:[#allocation2 + $0x60] sm:$0xf]  ;;  %2082 = vst.msk [vmem:[#allocation3 + $0xcc] sm:$0xf] %vm1604_vm15, %v1997_v10  ;;  %v3144_v19 = vsel %vm12808_vm9, %v13761_v41, %v13729_v35  ;;  %v2730_v35 = vsel %vm13288_vm14, %v13741_v2, %v2729_v36  ;;  %v2003_v41 = vpop.permute.xlu1 %2002 }
  0xe6   : > { %v3860_v42 = vld [vmem:[#allocation3 + $0xb4] sm:$0xff]  ;;  %v13780_v30 = vld [vmem:[#allocation2 + $0x48] sm:$0xe]  ;;  %1894 = vst.msk [vmem:[#allocation3 + $0x11c] sm:$0xf] %vm334_vm0, %v1788_v5  ;;  %v3153_v13 = vrot.slane %v3152_v49, 4 }
  0xe7   : > { %1057 = vst.msk [vmem:[#allocation3 + $0x140] sm:$0xf] %vm334_vm0, %v1025_v61  ;;  %v3172_v44 = vrot.slane %v3170_v7, 4  ;;  %v1789_v23 = vrot.slane %v1787_v47, 4  ;;  %v1790_v0 = vrot.slane %v1660_v15, 5  ;;  %v3857_v17 = vld [vmem:[#allocation3 + $0xa0] sm:$0xff] }
  0xe8   : > { %2083 = vst.msk [vmem:[#allocation3 + $0xe0] sm:$0xf] %vm1604_vm15, %v1999_v21  ;;  %v13791_v22 = vrot.slane %v3165_v60, 5  ;;  %v2736_v31 = vrot.slane %v13767_v59, 5  ;;  %v13794_v45 = vld [vmem:[#allocation2 + $0x5c] sm:$0x1]  ;;  %v11389_v18 = vcombine.low %v3857_v17, %v3860_v42  ;;  %v3158_v8 = vsel %vm12808_vm9, %v3153_v13, %v13744_v27  ;;  %3447 = vrot.lane.b32.xlu1 %v3144_v19, %s12692_s19 }
  0xe9   : > { %v3175_v46 = vrot.slane %v3173_v28, 5  ;;  %v13796_v33 = vrot.slane %v3179_v52, 5  ;;  %v3185_v34 = vrot.slane %v3183_v6, 4  ;;  %v1791_v56 = vsel %vm13288_vm14, %v1789_v23, %v1790_v0  ;;  %v13800_v40 = vld [vmem:[#allocation2 + $0x58] sm:$0xf]  ;;  %3449 = vrot.lane.b32.xlu0 %v3158_v8, %s12692_s19  ;;  %v1537_v23 = vpop.permute.xlu0 %1536  ;;  %v1539_v17 = vpop.permute.xlu1 %1538 }
  0xea   : > { %v1026_v32 = vld [vmem:[#allocation2 + $0x64] sm:$0xf]  ;;  %1617 = vst.msk [vmem:[#allocation3 + $0xf0] sm:$0xf] %vm1604_vm15, %v1533_v26  ;;  %v13806_v43 = vrot.slane %v2733_v11, 4  ;;  %v11341_v14 = vrot.slane %v13780_v30, 9  ;;  %4738 = vmatmul.mubr.bf16.gmra.mxu0 %v11389_v18 }
  0xeb   : > { %v3176_v29 = vor.u32 %v3175_v46, %v3172_v44  ;;  %1895 = vst.msk [vmem:[#allocation3 + $0x130] sm:$0xf] %vm334_vm0, %v1791_v56  ;;  %1058 = vst.msk [vmem:[#allocation3 + $0x154] sm:$0xf] %vm334_vm0, %v1026_v32  ;;  %v1661_v53 = vld [vmem:[#allocation2 + $0x60] sm:$0xe]  ;;  %v3186_v58 = vor.u32 %v3185_v34, %v13796_v33 }
  0xec   : > { %v1662_v3 = vld [vmem:[#allocation2 + $0x64] sm:$0xf]  ;;  %1618 = vst.msk [vmem:[#allocation3 + $0x104] sm:$0xf] %vm1604_vm15, %v1535_v16  ;;  %v13813_v48 = vrot.slane %v3162_v9, 4  ;;  %v11328_v20 = vrot.slane %v1661_v53, 9  ;;  %v2734_v63 = vsel %vm13288_vm14, %v11341_v14, %v2733_v11  ;;  %2826 = vrot.lane.b32.xlu1 %v2730_v35, %s12692_s19 }
  0xed   : > { %v1794_v50 = vrot.slane %v1662_v3, 5  ;;  %v3189_v24 = vshll.u32 %v13794_v45, 16  ;;  %v13823_v60 = vld [vmem:[#allocation2 + $0x5c] sm:$0x1]  ;;  %v2740_v49 = vrot.slane %v13800_v40, 5  ;;  %v3177_v15 = vrot.slane %v3176_v29, 4  ;;  %2828 = vrot.lane.b32.xlu0 %v2734_v63, %s12692_s19  ;;  %v2005_v19 = vpop.permute.xlu0 %2004 }
  0xee   : > { %v3020_v47 = vld [vmem:[#allocation2 + $0x64] sm:$0xf]  ;;  %v3019_v55 = vld [vmem:[#allocation2 + $0x60] sm:$0xf]  ;;  %v13827_v27 = vld [vmem:[#allocation2 + $0x54] sm:$0xe]  ;;  %v3168_v53 = vsel %vm12808_vm9, %v13813_v48, %v13791_v22  ;;  %v2007_v22 = vpop.permute.xlu1 %2006 }
  0xef   : > { %v1795_v52 = vsel %vm13288_vm14, %v11328_v20, %v1794_v50  ;;  %v3021_v10 = vld [vmem:[#allocation2 + $0x68] sm:$0x1]  ;;  %2084 = vst.msk [vmem:[#allocation3 + $0xf4] sm:$0xf] %vm1604_vm15, %v2001_v37  ;;  %v3866_v6 = vld [vmem:[#allocation3 + $0xdc] sm:$0xff]  ;;  %v3194_v61 = vshrl.u32 %v3019_v55, 16  ;;  %v3182_v45 = vsel %vm12808_vm9, %v3177_v15, %v13796_v33 }
  0xf0   : > { %v1663_v5 = vld [vmem:[#allocation2 + $0x68] sm:$0x1]  ;;  %v12419_v7 = vld [vmem:[#allocation3 + $0xcc] ss:$20 sps:$4 sm:$0xff]   ;;  %1896 = vst.msk [vmem:[#allocation3 + $0x144] sm:$0xf] %vm334_vm0, %v1795_v52  ;;  %3451 = vrot.lane.b32.xlu1 %v3168_v53, %s12692_s19 }
  0xf1   : > { %v3197_v21 = vshll.u32 %v3019_v55, 16  ;;  %2085 = vst.msk [vmem:[#allocation3 + $0x108] sm:$0xf] %vm1604_vm15, %v2003_v41  ;;  %v3203_v36 = vshll.u32 %v3020_v47, 16  ;;  %v3207_v2 = vshrl.u32 %v3020_v47, 16  ;;  %v1796_v25 = vrot.slane %v1794_v50, 4  ;;  %4745 = vmatprep.mubr.bf16.mxu0 %v12419_v7  ;;  %3453 = vrot.lane.b32.xlu0 %v3182_v45, %s12692_s19 }
  0xf2   : > { %v1027_v42 = vld [vmem:[#allocation2 + $0x6c] sm:$0xf]  ;;  %v3863_v9 = vld [vmem:[#allocation3 + $0xc8] sm:$0xff]  ;;  %v3213_v30 = vshll.u32 %v3021_v10, 16  ;;  %v3196_v28 = vrot.slane %v3194_v61, 4  ;;  %v1797_v44 = vrot.slane %v1663_v5, 5 }
  0xf3   : > { %v3199_v13 = vrot.slane %v3197_v21, 5  ;;  %1059 = vst.msk [vmem:[#allocation3 + $0x168] sm:$0xf] %vm334_vm0, %v1027_v42  ;;  %v13846_v0 = vrot.slane %v3186_v58, 4  ;;  %v13848_v39 = vrot.slane %v3189_v24, 5  ;;  %v11394_v54 = vcombine.low %v3863_v9, %v3866_v6 }
  0xf4   : > { %v2743_v11 = vrot.slane %v13823_v60, 5  ;;  %1619 = vst.msk [vmem:[#allocation3 + $0x118] sm:$0xf] %vm1604_vm15, %v1537_v23  ;;  %v13858_v46 = vrot.slane %v2740_v49, 4  ;;  %v11342_v26 = vrot.slane %v13827_v27, 9  ;;  %v1798_v18 = vsel %vm13288_vm14, %v1796_v25, %v1797_v44 }
  0xf5   : > { %v1028_v34 = vld [vmem:[#allocation2 + $0x70] sm:$0xf]  ;;  %v1664_v56 = vld [vmem:[#allocation2 + $0x6c] sm:$0xe]  ;;  %1620 = vst.msk [vmem:[#allocation3 + $0x12c] sm:$0xf] %vm1604_vm15, %v1539_v17  ;;  %4746 = vmatmul.mubr.bf16.gmra.mxu0 %v11394_v54  ;;  %v3200_v33 = vor.u32 %v3199_v13, %v3196_v28  ;;  %v2737_v27 = vsel %vm13288_vm14, %v13806_v43, %v2736_v31  ;;  %v3192_v28 = vsel %vm12808_vm9, %v13846_v0, %v13848_v39  ;;  %v1543_v13 = vpop.permute.xlu1 %1542 }
  0xf6   : > { %v13865_v32 = vrot.slane %v3203_v36, 5  ;;  %v3209_v16 = vrot.slane %v3207_v2, 4  ;;  %1897 = vst.msk [vmem:[#allocation3 + $0x158] sm:$0xf] %vm334_vm0, %v1798_v18  ;;  %1060 = vst.msk [vmem:[#allocation3 + $0x17c] sm:$0xf] %vm334_vm0, %v1028_v34  ;;  %v2741_v48 = vsel %vm13288_vm14, %v11342_v26, %v2740_v49  ;;  %v1541_v36 = vpop.permute.xlu0 %1540  ;;  %2830 = vrot.lane.b32.xlu1 %v2737_v27, %s12692_s19 }
  0xf7   : > { %v1665_v14 = vld [vmem:[#allocation2 + $0x70] sm:$0xf]  ;;  %v11329_v29 = vrot.slane %v1664_v56, 9  ;;  %v13873_v3 = vrot.slane %v3213_v30, 5  ;;  %v13875_v8 = vld [vmem:[#allocation2 + $0x64] sm:$0xf]  ;;  %2832 = vrot.lane.b32.xlu0 %v2741_v48, %s12692_s19 }
  0xf8   : > { %v1801_v20 = vrot.slane %v1665_v14, 5  ;;  %v3023_v50 = vld [vmem:[#allocation2 + $0x70] sm:$0xf]  ;;  %v13877_v24 = vld [vmem:[#allocation2 + $0x68] sm:$0x1]  ;;  %v3872_v52 = vld [vmem:[#allocation3 + $0x104] sm:$0xff]  ;;  %v3210_v43 = vor.u32 %v3209_v16, %v13865_v32 }
  0xf9   : > { %v3024_v47 = vld [vmem:[#allocation2 + $0x74] sm:$0x1]  ;;  %v3227_v55 = vshll.u32 %v3023_v50, 16  ;;  %v3231_v37 = vshrl.u32 %v3023_v50, 16  ;;  %v3022_v58 = vld [vmem:[#allocation2 + $0x6c] sm:$0xf] }
  0xfa   : > { %2086 = vst.msk [vmem:[#allocation3 + $0x11c] sm:$0xf] %vm1604_vm15, %v2005_v19  ;;  %v12422_v10 = vld [vmem:[#allocation3 + $0xf4] ss:$20 sps:$4 sm:$0xff]   ;;  %v1802_v59 = vsel %vm13288_vm14, %v11329_v29, %v1801_v20  ;;  %v3218_v35 = vshrl.u32 %v3022_v58, 16  ;;  %v3201_v41 = vrot.slane %v3200_v33, 4  ;;  %3455 = vrot.lane.b32.xlu1 %v3192_v28, %s12692_s19 }
  0xfb   : > { %v13890_v5 = vld [vmem:[#allocation2 + $0x60] sm:$0xe]  ;;  %2087 = vst.msk [vmem:[#allocation3 + $0x130] sm:$0xf] %vm1604_vm15, %v2007_v22  ;;  %v3869_v31 = vld [vmem:[#allocation3 + $0xf0] sm:$0xff]  ;;  %v2747_v40 = vrot.slane %v13875_v8, 5  ;;  %4753 = vmatprep.mubr.bf16.mxu0 %v12422_v10  ;;  %v2009_v8 = vpop.permute.xlu0 %2008  ;;  %v2744_v10 = vsel %vm13288_vm14, %v13858_v46, %v2743_v11 }
  0xfc   : > { %1898 = vst.msk [vmem:[#allocation3 + $0x16c] sm:$0xf] %vm334_vm0, %v1802_v59  ;;  %v3221_v49 = vshll.u32 %v3022_v58, 16  ;;  %v1666_v6 = vld [vmem:[#allocation2 + $0x74] sm:$0x1]  ;;  %v3237_v7 = vshll.u32 %v3024_v47, 16  ;;  %v11399_v2 = vcombine.low %v3869_v31, %v3872_v52  ;;  %v3206_v39 = vsel %vm12808_vm9, %v3201_v41, %v13865_v32 }
  0xfd   : > { %v3220_v15 = vrot.slane %v3218_v35, 4  ;;  %v1803_v61 = vrot.slane %v1801_v20, 4  ;;  %v1804_v21 = vrot.slane %v1666_v6, 5  ;;  %v1029_v63 = vld [vmem:[#allocation2 + $0x78] sm:$0xf]  ;;  %v13899_v25 = vrot.slane %v3227_v55, 5  ;;  %3457 = vrot.lane.b32.xlu0 %v3206_v39, %s12692_s19  ;;  %v2011_v55 = vpop.permute.xlu1 %2010 }
  0xfe   : > { %v3233_v42 = vrot.slane %v3231_v37, 4  ;;  %v3223_v9 = vrot.slane %v3221_v49, 5  ;;  %1061 = vst.msk [vmem:[#allocation3 + $0x190] sm:$0xf] %vm334_vm0, %v1029_v63  ;;  %v13902_v30 = vld [vmem:[#allocation2 + $0x70] sm:$0xf]  ;;  %4754 = vmatmul.mubr.bf16.gmra.mxu0 %v11399_v2  ;;  %2834 = vrot.lane.b32.xlu1 %v2744_v10, %s12692_s19 }
  0xff   : > { %1621 = vst.msk [vmem:[#allocation3 + $0x140] sm:$0xf] %vm1604_vm15, %v1541_v36  ;;  %v2750_v44 = vrot.slane %v13877_v24, 5  ;;  %v11343_v23 = vrot.slane %v13890_v5, 9  ;;  %v1805_v54 = vsel %vm13288_vm14, %v1803_v61, %v1804_v21  ;;  %v13914_v17 = vld [vmem:[#allocation2 + $0x74] sm:$0x1] }
 0x100   : > { %v1030_v45 = vld [vmem:[#allocation2 + $0x7c] sm:$0xf]  ;;  %1622 = vst.msk [vmem:[#allocation3 + $0x154] sm:$0xf] %vm1604_vm15, %v1543_v13  ;;  %v13918_v0 = vrot.slane %v3210_v43, 4  ;;  %v13923_v26 = vrot.slane %v2747_v40, 4  ;;  %v3224_v18 = vor.u32 %v3223_v9, %v3220_v15  ;;  %v3234_v32 = vor.u32 %v3233_v42, %v13899_v25  ;;  %v1545_v15 = vpop.permute.xlu0 %1544 }
 0x101   : > { %1899 = vst.msk [vmem:[#allocation3 + $0x180] sm:$0xf] %vm334_vm0, %v1805_v54  ;;  %1062 = vst.msk [vmem:[#allocation3 + $0x1a4] sm:$0xf] %vm334_vm0, %v1030_v45  ;;  %v1667_v34 = vld [vmem:[#allocation2 + $0x78] sm:$0xe]  ;;  %v2748_v5 = vsel %vm13288_vm14, %v11343_v23, %v2747_v40 }
 0x102   : > { %v1668_v56 = vld [vmem:[#allocation2 + $0x7c] sm:$0xf]  ;;  %v13927_v16 = vrot.slane %v3237_v7, 5  ;;  %v2754_v33 = vrot.slane %v13902_v30, 5  ;;  %v11330_v14 = vrot.slane %v1667_v34, 9  ;;  %v2757_v20 = vrot.slane %v13914_v17, 5  ;;  %2836 = vrot.lane.b32.xlu0 %v2748_v5, %s12692_s19 }
 0x103   : > { %v1808_v29 = vrot.slane %v1668_v56, 5  ;;  %v3026_v53 = vld [vmem:[#allocation2 + $0x7c] sm:$0xf]  ;;  %v13932_v50 = vld [vmem:[#allocation2 + $0x6c] sm:$0xe]  ;;  %v3875_v37 = vld [vmem:[#allocation3 + $0x118] sm:$0xff]  ;;  %v3216_v28 = vsel %vm12808_vm9, %v13918_v0, %v13873_v3  ;;  %v2751_v5 = vsel %vm13288_vm14, %v13923_v26, %v2750_v44 }
 0x104   : > { %v3027_v19 = vld [vmem:[#allocation2 + $0x80] sm:$0x1]  ;;  %v3251_v47 = vshll.u32 %v3026_v53, 16  ;;  %2088 = vst.msk [vmem:[#allocation3 + $0x144] sm:$0xf] %vm1604_vm15, %v2009_v8  ;;  %v3878_v58 = vld [vmem:[#allocation3 + $0x12c] sm:$0xff]  ;;  %3459 = vrot.lane.b32.xlu1 %v3216_v28, %s12692_s19 }
 0x105   : > { %v12424_v27 = vld [vmem:[#allocation3 + $0x11c] ss:$20 sps:$4 sm:$0xff]   ;;  %v3225_v22 = vrot.slane %v3224_v18, 4  ;;  %v1809_v48 = vsel %vm13288_vm14, %v11330_v14, %v1808_v29  ;;  %v3255_v52 = vshrl.u32 %v3026_v53, 16  ;;  %2089 = vst.msk [vmem:[#allocation3 + $0x158] sm:$0xf] %vm1604_vm15, %v2011_v55  ;;  %v11404_v46 = vcombine.low %v3875_v37, %v3878_v58  ;;  %v1547_v18 = vpop.permute.xlu1 %1546  ;;  %v2013_v14 = vpop.permute.xlu0 %2012 }
 0x106   : > { %1900 = vst.msk [vmem:[#allocation3 + $0x194] sm:$0xf] %vm334_vm0, %v1809_v48  ;;  %v13948_v59 = vrot.slane %v3251_v47, 5  ;;  %v3025_v35 = vld [vmem:[#allocation2 + $0x78] sm:$0xf]  ;;  %v1810_v43 = vrot.slane %v1808_v29, 4  ;;  %4761 = vmatprep.mubr.bf16.mxu0 %v12424_v27 }
 0x107   : > { %v1669_v31 = vld [vmem:[#allocation2 + $0x80] sm:$0x1]  ;;  %v3257_v41 = vrot.slane %v3255_v52, 4  ;;  %v3261_v49 = vshll.u32 %v3027_v19, 16  ;;  %v3242_v60 = vshrl.u32 %v3025_v35, 16  ;;  %v3245_v6 = vshll.u32 %v3025_v35, 16  ;;  %4762 = vmatmul.mubr.bf16.gmra.mxu0 %v11404_v46 }
 0x108   : > { %v1031_v7 = vld [vmem:[#allocation2 + $0x84] sm:$0xf]  ;;  %v13950_v11 = vrot.slane %v3234_v32, 4  ;;  %v11344_v61 = vrot.slane %v13932_v50, 9  ;;  %v1811_v40 = vrot.slane %v1669_v31, 5  ;;  %v13960_v63 = vrot.slane %v2754_v33, 4  ;;  %2838 = vrot.lane.b32.xlu1 %v2751_v5, %s12692_s19 }
 0x109   : > { %1063 = vst.msk [vmem:[#allocation3 + $0x1b8] sm:$0xf] %vm334_vm0, %v1031_v7  ;;  %v13954_v21 = vld [vmem:[#allocation2 + $0x7c] sm:$0xf]  ;;  %v3258_v36 = vor.u32 %v3257_v41, %v13948_v59  ;;  %v3244_v2 = vrot.slane %v3242_v60, 4  ;;  %v3247_v42 = vrot.slane %v3245_v6, 5  ;;  %v3230_v13 = vsel %vm12808_vm9, %v3225_v22, %v13899_v25  ;;  %v2015_v35 = vpop.permute.xlu1 %2014 }
 0x10a   : > { %1623 = vst.msk [vmem:[#allocation3 + $0x168] sm:$0xf] %vm1604_vm15, %v1545_v15  ;;  %v13963_v9 = vld [vmem:[#allocation2 + $0x80] sm:$0x1]  ;;  %v1812_v23 = vsel %vm13288_vm14, %v1810_v43, %v1811_v40  ;;  %v13975_v54 = vld [vmem:[#allocation2 + $0x78] sm:$0xe]  ;;  %3461 = vrot.lane.b32.xlu0 %v3230_v13, %s12692_s19  ;;  %v2755_v58 = vsel %vm13288_vm14, %v11344_v61, %v2754_v33 }
 0x10b   : > { %v1032_v45 = vld [vmem:[#allocation2 + $0x88] sm:$0xf]  ;;  %v1670_v39 = vld [vmem:[#allocation2 + $0x84] sm:$0xe]  ;;  %v13977_v34 = vrot.slane %v3261_v49, 5  ;;  %v3248_v56 = vor.u32 %v3247_v42, %v3244_v2  ;;  %v2761_v3 = vrot.slane %v13954_v21, 5  ;;  %v1549_v49 = vpop.permute.xlu0 %1548  ;;  %v3240_v42 = vsel %vm12808_vm9, %v13950_v11, %v13927_v16 }
 0x10c   : > { %1901 = vst.msk [vmem:[#allocation3 + $0x1a8] sm:$0xf] %vm334_vm0, %v1812_v23  ;;  %1064 = vst.msk [vmem:[#allocation3 + $0x1cc] sm:$0xf] %vm334_vm0, %v1032_v45  ;;  %v1671_v0 = vld [vmem:[#allocation2 + $0x88] sm:$0xf]  ;;  %3463 = vrot.lane.b32.xlu1 %v3240_v42, %s12692_s19 }
 0x10d   : > { %v11331_v25 = vrot.slane %v1670_v39, 9  ;;  %1624 = vst.msk [vmem:[#allocation3 + $0x17c] sm:$0xf] %vm1604_vm15, %v1547_v18  ;;  %v2764_v29 = vrot.slane %v13963_v9, 5  ;;  %v1815_v53 = vrot.slane %v1671_v0, 5  ;;  %v3884_v50 = vld [vmem:[#allocation3 + $0x154] sm:$0xff]  ;;  %v1551_v28 = vpop.permute.xlu1 %1550 }
 0x10e   : > { %v3029_v8 = vld [vmem:[#allocation2 + $0x88] sm:$0xf]  ;;  %v3030_v32 = vld [vmem:[#allocation2 + $0x8c] sm:$0x1]  ;;  %2090 = vst.msk [vmem:[#allocation3 + $0x16c] sm:$0xf] %vm1604_vm15, %v2013_v14  ;;  %2840 = vrot.lane.b32.xlu0 %v2755_v58, %s12692_s19 }
 0x10f   : > { %v12426_v19 = vld [vmem:[#allocation3 + $0x144] ss:$20 sps:$4 sm:$0xff]   ;;  %v13986_v47 = vrot.slane %v3258_v36, 4  ;;  %v3249_v55 = vrot.slane %v3248_v56, 4  ;;  %v11345_v37 = vrot.slane %v13975_v54, 9  ;;  %v1816_v27 = vsel %vm13288_vm14, %v11331_v25, %v1815_v53  ;;  %v2017_v39 = vpop.permute.xlu0 %2016 }
 0x110   : > { %v3275_v22 = vshll.u32 %v3029_v8, 16  ;;  %v3279_v48 = vshrl.u32 %v3029_v8, 16  ;;  %v3028_v52 = vld [vmem:[#allocation2 + $0x84] sm:$0xf]  ;;  %v1672_v10 = vld [vmem:[#allocation2 + $0x8c] sm:$0x1]  ;;  %4769 = vmatprep.mubr.bf16.mxu0 %v12426_v19 }
 0x111   : > { %v3881_v31 = vld [vmem:[#allocation3 + $0x140] sm:$0xff]  ;;  %1902 = vst.msk [vmem:[#allocation3 + $0x1bc] sm:$0xf] %vm334_vm0, %v1816_v27  ;;  %v3285_v30 = vshll.u32 %v3030_v32, 16  ;;  %v3266_v33 = vshrl.u32 %v3028_v52, 16  ;;  %v3269_v43 = vshll.u32 %v3028_v52, 16  ;;  %v3254_v46 = vsel %vm12808_vm9, %v3249_v55, %v13948_v59 }
 0x112   : > { %v1033_v41 = vld [vmem:[#allocation2 + $0x90] sm:$0xf]  ;;  %2091 = vst.msk [vmem:[#allocation3 + $0x180] sm:$0xf] %vm1604_vm15, %v2015_v35  ;;  %v11409_v60 = vcombine.low %v3881_v31, %v3884_v50  ;;  %v14005_v24 = vrot.slane %v2761_v3, 4  ;;  %v1817_v6 = vrot.slane %v1815_v53, 4  ;;  %3465 = vrot.lane.b32.xlu0 %v3254_v46, %s12692_s19  ;;  %v2762_v8 = vsel %vm13288_vm14, %v11345_v37, %v2761_v3 }
 0x113   : > { %v1818_v7 = vrot.slane %v1672_v10, 5  ;;  %1065 = vst.msk [vmem:[#allocation3 + $0x1e0] sm:$0xf] %vm334_vm0, %v1033_v41  ;;  %v3268_v44 = vrot.slane %v3266_v33, 4  ;;  %v3271_v26 = vrot.slane %v3269_v43, 5  ;;  %v14016_v61 = vrot.slane %v3275_v22, 5  ;;  %v2019_v22 = vpop.permute.xlu1 %2018  ;;  %v1553_v5 = vpop.permute.xlu0 %1552 }
 0x114   : > { %1625 = vst.msk [vmem:[#allocation3 + $0x190] sm:$0xf] %vm1604_vm15, %v1549_v49  ;;  %v14010_v15 = vld [vmem:[#allocation2 + $0x88] sm:$0xf]  ;;  %4770 = vmatmul.mubr.bf16.gmra.mxu0 %v11409_v60  ;;  %v3281_v40 = vrot.slane %v3279_v48, 4  ;;  %v14026_v13 = vrot.slane %v3285_v30, 5  ;;  %v2758_v27 = vsel %vm13288_vm14, %v13960_v63, %v2757_v20 }
 0x115   : > { %v1819_v36 = vsel %vm13288_vm14, %v1817_v6, %v1818_v7  ;;  %v14020_v2 = vld [vmem:[#allocation2 + $0x8c] sm:$0x1]  ;;  %v3272_v23 = vor.u32 %v3271_v26, %v3268_v44  ;;  %v2768_v59 = vrot.slane %v14010_v15, 5  ;;  %v1034_v54 = vld [vmem:[#allocation2 + $0x94] sm:$0xf]  ;;  %v3887_v48 = vld [vmem:[#allocation3 + $0x168] sm:$0xff]  ;;  %2842 = vrot.lane.b32.xlu1 %v2758_v27, %s12692_s19  ;;  %v3264_v26 = vsel %vm12808_vm9, %v13986_v47, %v13977_v34 }
 0x116   : > { %1903 = vst.msk [vmem:[#allocation3 + $0x1d0] sm:$0xf] %vm334_vm0, %v1819_v36  ;;  %v1673_v45 = vld [vmem:[#allocation2 + $0x90] sm:$0xe]  ;;  %v2771_v18 = vrot.slane %v14020_v2, 5  ;;  %v3282_v32 = vor.u32 %v3281_v40, %v14016_v61  ;;  %2844 = vrot.lane.b32.xlu0 %v2762_v8, %s12692_s19  ;;  %vm4624_vm1 = vcmask 523264  }
 0x117   : > { %1626 = vst.msk [vmem:[#allocation3 + $0x1a4] sm:$0xf] %vm1604_vm15, %v1551_v28  ;;  %v14032_v56 = vld [vmem:[#allocation2 + $0x84] sm:$0xe]  ;;  %v1674_v16 = vld [vmem:[#allocation2 + $0x94] sm:$0xf]  ;;  %v1555_v46 = vpop.permute.xlu1 %1554  ;;  %v2021_v28 = vpop.permute.xlu0 %2020 }
 0x118   : > { %1066 = vst.msk [vmem:[#allocation3 + $0x1f4] sm:$0xf] %vm334_vm0, %v1034_v54  ;;  %v11332_v11 = vrot.slane %v1673_v45, 9  ;;  %v3273_v0 = vrot.slane %v3272_v23, 4  ;;  %v1822_v25 = vrot.slane %v1674_v16, 5  ;;  %v11346_v21 = vrot.slane %v14032_v56, 9 }
 0x119   : > { %2092 = vst.msk [vmem:[#allocation3 + $0x194] sm:$0xf] %vm1604_vm15, %v2017_v39  ;;  %v3032_v14 = vld [vmem:[#allocation2 + $0x94] sm:$0xf]  ;;  %v3033_v53 = vld [vmem:[#allocation2 + $0x98] sm:$0x1]  ;;  %3467 = vrot.lane.b32.xlu1 %v3264_v26, %s12692_s19 }
 0x11a   : > { %v3299_v50 = vshll.u32 %v3032_v14, 16  ;;  %v3303_v19 = vshrl.u32 %v3032_v14, 16  ;;  %v3031_v55 = vld [vmem:[#allocation2 + $0x90] sm:$0xf]  ;;  %v1675_v58 = vld [vmem:[#allocation2 + $0x98] sm:$0x1]  ;;  %v1823_v3 = vsel %vm13288_vm14, %v11332_v11, %v1822_v25  ;;  %v3278_v60 = vsel %vm12808_vm9, %v3273_v0, %v14016_v61 }
 0x11b   : > { %v3890_v52 = vld [vmem:[#allocation3 + $0x17c] sm:$0xff]  ;;  %v3290_v37 = vshrl.u32 %v3031_v55, 16  ;;  %2093 = vst.msk [vmem:[#allocation3 + $0x1a8] sm:$0xf] %vm1604_vm15, %v2019_v22  ;;  %v3309_v31 = vshll.u32 %v3033_v53, 16  ;;  %v3293_v20 = vshll.u32 %v3031_v55, 16  ;;  %3469 = vrot.lane.b32.xlu0 %v3278_v60, %s12692_s19  ;;  %v2769_v14 = vsel %vm13288_vm14, %v11346_v21, %v2768_v59 }
 0x11c   : > { %v12428_v10 = vld [vmem:[#allocation3 + $0x16c] ss:$20 sps:$4 sm:$0xff]   ;;  %v11414_v35 = vcombine.low %v3887_v48, %v3890_v52  ;;  %1904 = vst.msk [vmem:[#allocation3 + $0x1e4] sm:$0xf] %vm334_vm0, %v1823_v3  ;;  %v14053_v17 = vrot.slane %v3299_v50, 5  ;;  %v3305_v30 = vrot.slane %v3303_v19, 4  ;;  %v2023_v19 = vpop.permute.xlu1 %2022 }
 0x11d   : > { %v1035_v63 = vld [vmem:[#allocation2 + $0x9c] sm:$0xf]  ;;  %1627 = vst.msk [vmem:[#allocation3 + $0x1b8] sm:$0xf] %vm1604_vm15, %v1553_v5  ;;  %4777 = vmatprep.mubr.bf16.mxu0 %v12428_v10  ;;  %v3292_v33 = vrot.slane %v3290_v37, 4  ;;  %v1824_v43 = vrot.slane %v1822_v25, 4  ;;  %v2765_v25 = vsel %vm13288_vm14, %v14005_v24, %v2764_v29  ;;  %v1557_v29 = vpop.permute.xlu0 %1556 }
 0x11e   : > { %v1825_v41 = vrot.slane %v1675_v58, 5  ;;  %1067 = vst.msk [vmem:[#allocation3 + $0x208] sm:$0xf] %vm334_vm0, %v1035_v63  ;;  %v14059_v49 = vrot.slane %v3282_v32, 4  ;;  %4778 = vmatmul.mubr.bf16.gmra.mxu0 %v11414_v35  ;;  %v14066_v6 = vrot.slane %v2768_v59, 4  ;;  %v3295_v7 = vrot.slane %v3293_v20, 5  ;;  %2846 = vrot.lane.b32.xlu1 %v2765_v25, %s12692_s19 }
 0x11f   : > { %v14068_v44 = vld [vmem:[#allocation2 + $0x94] sm:$0xf]  ;;  %v14076_v36 = vld [vmem:[#allocation2 + $0x98] sm:$0x1]  ;;  %v1036_v61 = vld [vmem:[#allocation2 + $0xa0] sm:$0xf]  ;;  %v3306_v39 = vor.u32 %v3305_v30, %v14053_v17  ;;  %2848 = vrot.lane.b32.xlu0 %v2769_v14, %s12692_s19 }
 0x120   : > { %v1826_v40 = vsel %vm13288_vm14, %v1824_v43, %v1825_v41  ;;  %v1676_v42 = vld [vmem:[#allocation2 + $0x9c] sm:$0xe]  ;;  %1628 = vst.msk [vmem:[#allocation3 + $0x1cc] sm:$0xf] %vm1604_vm15, %v1555_v46  ;;  %v14079_v23 = vrot.slane %v3309_v31, 5  ;;  %v3296_v54 = vor.u32 %v3295_v7, %v3292_v33  ;;  %v2775_v56 = vrot.slane %v14068_v44, 5  ;;  %v1559_v43 = vpop.permute.xlu1 %1558 }
 0x121   : > { %1905 = vst.msk [vmem:[#allocation3 + $0x1f8] sm:$0xf] %vm334_vm0, %v1826_v40  ;;  %v14082_v45 = vld [vmem:[#allocation2 + $0x90] sm:$0xe]  ;;  %1068 = vst.msk [vmem:[#allocation3 + $0x21c] sm:$0xf] %vm334_vm0, %v1036_v61  ;;  %v3288_v33 = vsel %vm12808_vm9, %v14059_v49, %v14026_v13  ;;  %v2025_v7 = vpop.permute.xlu0 %2024 }
 0x122   : > { %v1677_v34 = vld [vmem:[#allocation2 + $0xa0] sm:$0xf]  ;;  %v11333_v47 = vrot.slane %v1676_v42, 9  ;;  %2094 = vst.msk [vmem:[#allocation3 + $0x1bc] sm:$0xf] %vm1604_vm15, %v2021_v28  ;;  %v3893_v53 = vld [vmem:[#allocation3 + $0x190] sm:$0xff]  ;;  %3471 = vrot.lane.b32.xlu1 %v3288_v33, %s12692_s19 }
 0x123   : > { %v1829_v16 = vrot.slane %v1677_v34, 5  ;;  %v3035_v11 = vld [vmem:[#allocation2 + $0xa0] sm:$0xf]  ;;  %v14089_v0 = vld [vmem:[#allocation2 + $0xa4] sm:$0x1]  ;;  %v3297_v8 = vrot.slane %v3296_v54, 4  ;;  %v2772_v34 = vsel %vm13288_vm14, %v14066_v6, %v2771_v18 }
 0x124   : > { %v3034_v32 = vld [vmem:[#allocation2 + $0x9c] sm:$0xf]  ;;  %v1678_v50 = vld [vmem:[#allocation2 + $0xa4] sm:$0x1]  ;;  %v12431_v58 = vld [vmem:[#allocation3 + $0x194] ss:$20 sps:$4 sm:$0xff]  }
 0x125   : > { %v3896_v55 = vld [vmem:[#allocation3 + $0x1a4] sm:$0xff]  ;;  %v1830_v27 = vsel %vm13288_vm14, %v11333_v47, %v1829_v16  ;;  %v3323_v9 = vshll.u32 %v3035_v11, 16  ;;  %v3327_v22 = vshrl.u32 %v3035_v11, 16  ;;  %v3314_v48 = vshrl.u32 %v3034_v32, 16  ;;  %2095 = vst.msk [vmem:[#allocation3 + $0x1d0] sm:$0xf] %vm1604_vm15, %v2023_v19  ;;  %4785 = vmatprep.mubr.bf16.mxu0 %v12431_v58  ;;  %v2027_v47 = vpop.permute.xlu1 %2026 }
 0x126   : > { %v11419_v24 = vcombine.low %v3893_v53, %v3896_v55  ;;  %v2778_v15 = vrot.slane %v14076_v36, 5  ;;  %v11347_v59 = vrot.slane %v14082_v45, 9  ;;  %1906 = vst.msk [vmem:[#allocation3 + $0x20c] sm:$0xf] %vm334_vm0, %v1830_v27  ;;  %v3317_v52 = vshll.u32 %v3034_v32, 16  ;;  %2850 = vrot.lane.b32.xlu1 %v2772_v34, %s12692_s19 }
 0x127   : > { %v1037_v10 = vld [vmem:[#allocation2 + $0xa8] sm:$0xf]  ;;  %1629 = vst.msk [vmem:[#allocation3 + $0x1e0] sm:$0xf] %vm1604_vm15, %v1557_v29  ;;  %v14109_v21 = vrot.slane %v3306_v39, 4  ;;  %v14111_v3 = vrot.slane %v2775_v56, 4  ;;  %v3302_v35 = vsel %vm12808_vm9, %v3297_v8, %v14053_v17 }
 0x128   : > { %v3316_v37 = vrot.slane %v3314_v48, 4  ;;  %v1831_v5 = vrot.slane %v1829_v16, 4  ;;  %1069 = vst.msk [vmem:[#allocation3 + $0x230] sm:$0xf] %vm334_vm0, %v1037_v10  ;;  %4786 = vmatmul.mubr.bf16.gmra.mxu0 %v11419_v24  ;;  %v3333_v31 = vshll.u32 %v14089_v0, 16  ;;  %v3319_v20 = vrot.slane %v3317_v52, 5  ;;  %3473 = vrot.lane.b32.xlu0 %v3302_v35, %s12692_s19 }
 0x129   : > { %v1832_v63 = vrot.slane %v1678_v50, 5  ;;  %v14119_v30 = vld [vmem:[#allocation2 + $0xa0] sm:$0xf]  ;;  %v14125_v41 = vrot.slane %v3323_v9, 5  ;;  %v3329_v60 = vrot.slane %v3327_v22, 4  ;;  %v3899_v13 = vld [vmem:[#allocation3 + $0x1b8] sm:$0xff]  ;;  %v2776_v42 = vsel %vm13288_vm14, %v11347_v59, %v2775_v56  ;;  %v1561_v56 = vpop.permute.xlu0 %1560  ;;  %v1563_v24 = vpop.permute.xlu1 %1562 }
 0x12a   : > { %1630 = vst.msk [vmem:[#allocation3 + $0x1f4] sm:$0xf] %vm1604_vm15, %v1559_v43  ;;  %v3320_v17 = vor.u32 %v3319_v20, %v3316_v37  ;;  %v14130_v26 = vld [vmem:[#allocation2 + $0x9c] sm:$0xe]  ;;  %v1038_v46 = vld [vmem:[#allocation2 + $0xac] sm:$0xf]  ;;  %v3312_v29 = vsel %vm12808_vm9, %v14109_v21, %v14079_v23 }
 0x12b   : > { %v1833_v44 = vsel %vm13288_vm14, %v1831_v5, %v1832_v63  ;;  %v1679_v40 = vld [vmem:[#allocation2 + $0xa8] sm:$0xe]  ;;  %2096 = vst.msk [vmem:[#allocation3 + $0x1e4] sm:$0xf] %vm1604_vm15, %v2025_v7  ;;  %v1680_v49 = vld [vmem:[#allocation2 + $0xac] sm:$0xf]  ;;  %v3330_v18 = vor.u32 %v3329_v60, %v14125_v41  ;;  %3475 = vrot.lane.b32.xlu1 %v3312_v29, %s12692_s19  ;;  %v2779_v60 = vsel %vm13288_vm14, %v14111_v3, %v2778_v15 }
 0x12c   : > { %1907 = vst.msk [vmem:[#allocation3 + $0x220] sm:$0xf] %vm334_vm0, %v1833_v44  ;;  %1070 = vst.msk [vmem:[#allocation3 + $0x244] sm:$0xf] %vm334_vm0, %v1038_v46  ;;  %v11334_v61 = vrot.slane %v1679_v40, 9  ;;  %v3321_v28 = vrot.slane %v3320_v17, 4  ;;  %2852 = vrot.lane.b32.xlu0 %v2776_v42, %s12692_s19 }
 0x12d   : > { %v1836_v54 = vrot.slane %v1680_v49, 5  ;;  %v3038_v45 = vld [vmem:[#allocation2 + $0xac] sm:$0xf]  ;;  %v3902_v39 = vld [vmem:[#allocation3 + $0x1cc] sm:$0xff]  ;;  %v2782_v25 = vrot.slane %v14119_v30, 5  ;;  %v11348_v6 = vrot.slane %v14130_v26, 9  ;;  %v2029_v37 = vpop.permute.xlu0 %2028  ;;  %v2031_v7 = vpop.permute.xlu1 %2030 }
 0x12e   : > { %v12433_v16 = vld [vmem:[#allocation3 + $0x1bc] ss:$20 sps:$4 sm:$0xff]   ;;  %v14144_v11 = vld [vmem:[#allocation2 + $0xa4] sm:$0x1]  ;;  %v3039_v14 = vld [vmem:[#allocation2 + $0xb0] sm:$0x1]  ;;  %v11424_v53 = vcombine.low %v3899_v13, %v3902_v39  ;;  %v3326_v58 = vsel %vm12808_vm9, %v3321_v28, %v14125_v41 }
 0x12f   : > { %2097 = vst.msk [vmem:[#allocation3 + $0x1f8] sm:$0xf] %vm1604_vm15, %v2027_v47  ;;  %v1837_v8 = vsel %vm13288_vm14, %v11334_v61, %v1836_v54  ;;  %v3347_v2 = vshll.u32 %v3038_v45, 16  ;;  %v3351_v32 = vshrl.u32 %v3038_v45, 16  ;;  %v3037_v50 = vld [vmem:[#allocation2 + $0xa8] sm:$0xf]  ;;  %4793 = vmatprep.mubr.bf16.mxu0 %v12433_v16  ;;  %v2783_v0 = vsel %vm13288_vm14, %v11348_v6, %v2782_v25  ;;  %2854 = vrot.lane.b32.xlu1 %v2779_v60, %s12692_s19 }
 0x130   : > { %1631 = vst.msk [vmem:[#allocation3 + $0x208] sm:$0xf] %vm1604_vm15, %v1561_v56  ;;  %v3338_v19 = vshrl.u32 %v3037_v50, 16  ;;  %v3341_v55 = vshll.u32 %v3037_v50, 16  ;;  %4794 = vmatmul.mubr.bf16.gmra.mxu0 %v11424_v53  ;;  %v3357_v27 = vshll.u32 %v3039_v14, 16  ;;  %v1838_v22 = vrot.slane %v1836_v54, 4  ;;  %3477 = vrot.lane.b32.xlu0 %v3326_v58, %s12692_s19 }
 0x131   : > { %1908 = vst.msk [vmem:[#allocation3 + $0x234] sm:$0xf] %vm334_vm0, %v1837_v8  ;;  %v1681_v9 = vld [vmem:[#allocation2 + $0xb0] sm:$0x1]  ;;  %v1039_v48 = vld [vmem:[#allocation2 + $0xb4] sm:$0xf]  ;;  %v1565_v40 = vpop.permute.xlu0 %1564  ;;  %v1567_v39 = vpop.permute.xlu1 %1566 }
 0x132   : > { %v3340_v59 = vrot.slane %v3338_v19, 4  ;;  %v3343_v52 = vrot.slane %v3341_v55, 5  ;;  %v1839_v10 = vrot.slane %v1681_v9, 5  ;;  %1071 = vst.msk [vmem:[#allocation3 + $0x258] sm:$0xf] %vm334_vm0, %v1039_v48  ;;  %v3335_v5 = vrot.slane %v3333_v31, 5 }
 0x133   : > { %1632 = vst.msk [vmem:[#allocation3 + $0x21c] sm:$0xf] %vm1604_vm15, %v1563_v24  ;;  %v2785_v35 = vrot.slane %v14144_v11, 5  ;;  %v3349_v20 = vrot.slane %v3347_v2, 5  ;;  %v3353_v63 = vrot.slane %v3351_v32, 4  ;;  %v3331_v30 = vrot.slane %v3330_v18, 4 }
 0x134   : > { %2098 = vst.msk [vmem:[#allocation3 + $0x20c] sm:$0xf] %vm1604_vm15, %v2029_v37  ;;  %v2784_v23 = vrot.slane %v2782_v25, 4  ;;  %v3344_v21 = vor.u32 %v3343_v52, %v3340_v59  ;;  %v1840_v33 = vsel %vm13288_vm14, %v1838_v22, %v1839_v10  ;;  %v3905_v31 = vld [vmem:[#allocation3 + $0x1e0] sm:$0xff]  ;;  %v14175_v43 = vrot.slane %v3357_v27, 5  ;;  %2856 = vrot.lane.b32.xlu0 %v2783_v0, %s12692_s19 }
 0x135   : > { %1909 = vst.msk [vmem:[#allocation3 + $0x248] sm:$0xf] %vm334_vm0, %v1840_v33  ;;  %v2639_v41 = vld [vmem:[#allocation2 + $0xa8] sm:$0xe]  ;;  %v14183_v46 = vld [vmem:[#allocation2 + $0xac] sm:$0xf]  ;;  %v3354_v13 = vor.u32 %v3353_v63, %v3349_v20  ;;  %v3336_v47 = vsel %vm12808_vm9, %v3331_v30, %v3335_v5  ;;  %v2033_v53 = vpop.permute.xlu0 %2032  ;;  %v2035_v59 = vpop.permute.xlu1 %2034 }
 0x136   : > { %v3908_v17 = vld [vmem:[#allocation3 + $0x1f4] sm:$0xff]  ;;  %v3345_v26 = vrot.slane %v3344_v21, 4  ;;  %2099 = vst.msk [vmem:[#allocation3 + $0x220] sm:$0xf] %vm1604_vm15, %v2031_v7  ;;  %v1040_v61 = vld [vmem:[#allocation2 + $0xb8] sm:$0xf]  ;;  %3479 = vrot.lane.b32.xlu1 %v3336_v47, %s12692_s19  ;;  %v2786_v24 = vsel %vm13288_vm14, %v2784_v23, %v2785_v35 }
 0x137   : > { %v12435_v44 = vld [vmem:[#allocation3 + $0x1e4] ss:$20 sps:$4 sm:$0xff]   ;;  %v11429_v49 = vcombine.low %v3905_v31, %v3908_v17  ;;  %v1682_v42 = vld [vmem:[#allocation2 + $0xb4] sm:$0xe]  ;;  %1633 = vst.msk [vmem:[#allocation3 + $0x230] sm:$0xf] %vm1604_vm15, %v1565_v40 }
 0x138   : > { %4801 = vmatprep.mubr.bf16.mxu0 %v12435_v44  ;;  %v11349_v36 = vrot.slane %v2639_v41, 9  ;;  %1072 = vst.msk [vmem:[#allocation3 + $0x26c] sm:$0xf] %vm334_vm0, %v1040_v61  ;;  %v1683_v15 = vld [vmem:[#allocation2 + $0xb8] sm:$0xf]  ;;  %v11335_v3 = vrot.slane %v1682_v42, 9  ;;  %v3350_v28 = vsel %vm12808_vm9, %v3345_v26, %v3349_v20 }
 0x139   : > { %4802 = vmatmul.mubr.bf16.gmra.mxu0 %v11429_v49  ;;  %v2789_v54 = vrot.slane %v14183_v46, 5  ;;  %v1843_v45 = vrot.slane %v1683_v15, 5  ;;  %v3041_v34 = vld [vmem:[#allocation2 + $0xb8] sm:$0xf]  ;;  %v3042_v16 = vld [vmem:[#allocation2 + $0xbc] sm:$0x1]  ;;  %3481 = vrot.lane.b32.xlu0 %v3350_v28, %s12692_s19  ;;  %v1569_v0 = vpop.permute.xlu0 %1568 }
 0x13a   : > { %v3371_v25 = vshll.u32 %v3041_v34, 16  ;;  %v3375_v14 = vshrl.u32 %v3041_v34, 16  ;;  %v3040_v56 = vld [vmem:[#allocation2 + $0xb4] sm:$0xf]  ;;  %1634 = vst.msk [vmem:[#allocation3 + $0x244] sm:$0xf] %vm1604_vm15, %v1567_v39  ;;  %2858 = vrot.lane.b32.xlu1 %v2786_v24, %s12692_s19 }
 0x13b   : > { %v3355_v8 = vrot.slane %v3354_v13, 4  ;;  %v14196_v2 = vld [vmem:[#allocation2 + $0xb0] sm:$0x1]  ;;  %v1844_v32 = vsel %vm13288_vm14, %v11335_v3, %v1843_v45  ;;  %v3362_v50 = vshrl.u32 %v3040_v56, 16  ;;  %v3365_v18 = vshll.u32 %v3040_v56, 16  ;;  %v3911_v20 = vld [vmem:[#allocation3 + $0x208] sm:$0xff] }
 0x13c   : > { %2100 = vst.msk [vmem:[#allocation3 + $0x234] sm:$0xf] %vm1604_vm15, %v2033_v53  ;;  %v2790_v6 = vsel %vm13288_vm14, %v11349_v36, %v2789_v54  ;;  %v3373_v19 = vrot.slane %v3371_v25, 5  ;;  %v3381_v55 = vshll.u32 %v3042_v16, 16  ;;  %v1684_v58 = vld [vmem:[#allocation2 + $0xbc] sm:$0x1] }
 0x13d   : > { %1910 = vst.msk [vmem:[#allocation3 + $0x25c] sm:$0xf] %vm334_vm0, %v1844_v32  ;;  %v3377_v27 = vrot.slane %v3375_v14, 4  ;;  %v3364_v9 = vrot.slane %v3362_v50, 4  ;;  %v3367_v22 = vrot.slane %v3365_v18, 5  ;;  %v1845_v48 = vrot.slane %v1843_v45, 4  ;;  %2860 = vrot.lane.b32.xlu0 %v2790_v6, %s12692_s19  ;;  %v2037_v25 = vpop.permute.xlu0 %2036 }
 0x13e   : > { %v2104_v29 = vld [vmem:[#allocation2 + $0xc] sm:$0xf]  ;;  %v3914_v52 = vld [vmem:[#allocation3 + $0x21c] sm:$0xff]  ;;  %v1846_v37 = vrot.slane %v1684_v58, 5  ;;  %v2105_v5 = vld [vmem:[#allocation2 + $0x10] sm:$0xf]  ;;  %v3360_v44 = vsel %vm12808_vm9, %v3355_v8, %v14175_v43 }
 0x13f   : > { %v12441_v10 = vld [vmem:[#allocation3 + $0x20c] ss:$20 sps:$4 sm:$0xff]   ;;  %2101 = vst.msk [vmem:[#allocation3 + $0x248] sm:$0xf] %vm1604_vm15, %v2035_v59  ;;  %v3368_v63 = vor.u32 %v3367_v22, %v3364_v9  ;;  %v2153_v30 = vshrl.u32 %v2104_v29, 16  ;;  %v2156_v21 = vshll.u32 %v2104_v29, 16  ;;  %v11434_v35 = vcombine.low %v3911_v20, %v3914_v52  ;;  %3483 = vrot.lane.b32.xlu1 %v3360_v44, %s12692_s19  ;;  %v1571_v20 = vpop.permute.xlu1 %1570 }
 0x140   : > { %v2162_v33 = vshll.u32 %v2105_v5, 16  ;;  %v2792_v31 = vrot.slane %v14196_v2, 5  ;;  %4809 = vmatprep.mubr.bf16.mxu0 %v12441_v10  ;;  %v1847_v11 = vsel %vm13288_vm14, %v1845_v48, %v1846_v37  ;;  %v2166_v23 = vshrl.u32 %v2105_v5, 16  ;;  %1635 = vst.msk [vmem:[#allocation3 + $0x258] sm:$0xf] %vm1604_vm15, %v1569_v0 }
 0x141   : > { %v3378_v41 = vor.u32 %v3377_v27, %v3373_v19  ;;  %v3369_v60 = vrot.slane %v3368_v63, 4  ;;  %1911 = vst.msk [vmem:[#allocation3 + $0x270] sm:$0xf] %vm334_vm0, %v1847_v11  ;;  %v2155_v7 = vrot.slane %v2153_v30, 4  ;;  %v2158_v17 = vrot.slane %v2156_v21, 5  ;;  %4810 = vmatmul.mubr.bf16.gmra.mxu0 %v11434_v35  ;;  %v2809_v52 = vpop.permute.xlu0 %2808 }
 0x142   : > { %v2791_v26 = vrot.slane %v2789_v54, 4  ;;  %v2164_v46 = vrot.slane %v2162_v33, 5  ;;  %v2643_v40 = vld [vmem:[#allocation2 + $0xb8] sm:$0xf]  ;;  %v2642_v13 = vld [vmem:[#allocation2 + $0xb4] sm:$0xe] }
 0x143   : > { %v3383_v49 = vrot.slane %v3381_v55, 5  ;;  %v3374_v61 = vsel %vm12808_vm9, %v3369_v60, %v3373_v19  ;;  %v2159_v42 = vor.u32 %v2158_v17, %v2155_v7  ;;  %v2644_v36 = vld [vmem:[#allocation2 + $0xbc] sm:$0x1]  ;;  %v2796_v15 = vrot.slane %v2643_v40, 5  ;;  %v2106_v28 = vld [vmem:[#allocation2 + $0x14] sm:$0x1]  ;;  %v2039_v40 = vpop.permute.xlu1 %2038 }
 0x144   : > { %3485 = vrot.lane.b32.xlu0 %v3374_v61, %s12692_s19  ;;  %v11350_v3 = vrot.slane %v2642_v13, 9  ;;  %v2168_v45 = vrot.slane %v2166_v23, 4  ;;  %v3379_v43 = vrot.slane %v3378_v41, 4  ;;  %v3917_v34 = vld [vmem:[#allocation3 + $0x230] sm:$0xff]  ;;  %v2172_v47 = vshll.u32 %v2106_v28, 16 }
 0x145   : > { %v2160_v54 = vrot.slane %v2159_v42, 4  ;;  %v2937_v39 = vld [vmem:[#allocation2 + $0x18] sm:$0xf]  ;;  %v2793_v16 = vsel %vm13288_vm14, %v2791_v26, %v2792_v31  ;;  %v2799_v14 = vrot.slane %v2644_v36, 5  ;;  %2102 = vst.msk [vmem:[#allocation3 + $0x25c] sm:$0xf] %vm1604_vm15, %v2037_v25  ;;  %v3434_v7 = vpop.permute.xlu0 %3433 }
 0x146   : > { %v2797_v56 = vsel %vm13288_vm14, %v11350_v3, %v2796_v15  ;;  %v3920_v53 = vld [vmem:[#allocation3 + $0x244] sm:$0xff]  ;;  %v2169_v2 = vor.u32 %v2168_v45, %v2164_v46  ;;  %2969 = vst.msk [vmem:[#allocation3 + $0xc] sm:$0xf] %vm334_vm0, %v2937_v39  ;;  %v2798_v50 = vrot.slane %v2796_v15, 4  ;;  %v2174_v18 = vrot.slane %v2172_v47, 5  ;;  %2862 = vrot.lane.b32.xlu1 %v2793_v16, %s12692_s19 }
 0x147   : > { %v12448_v8 = vld [vmem:[#allocation3 + $0x234] ss:$20 sps:$4 sm:$0xff]   ;;  %v2165_v32 = vsel %vm12808_vm9, %v2160_v54, %v2164_v46  ;;  %v442_v6 = vld [vmem:[#allocation2 + $0xc8] sm:$0x1]  ;;  %v3044_v58 = vld [vmem:[#allocation2 + $0xc4] sm:$0xf]  ;;  %v11439_v9 = vcombine.low %v3917_v34, %v3920_v53  ;;  %v3384_v59 = vsel %vm12808_vm9, %v3379_v43, %v3383_v49 }
 0x148   : > { %2568 = vst.msk [vmem:[#allocation3 + $0x8] sm:$0xf] %vm334_vm0, %v2165_v32  ;;  %2864 = vrot.lane.b32.xlu0 %v2797_v56, %s12692_s19  ;;  %4817 = vmatprep.mubr.bf16.mxu0 %v12448_v8  ;;  %v2170_v19 = vrot.slane %v2169_v2, 4  ;;  %v443_v55 = vsel %vm12763_vm7, 0, %v442_v6  ;;  %v3043_v27 = vld [vmem:[#allocation2 + $0xc0] sm:$0xf] }
 0x149   : > { %444 = vst [vmem:[#allocation2 + $0xc8] sm:$0x1] %v443_v55  ;;  %v3395_v22 = vshll.u32 %v3044_v58, 16  ;;  %v3399_v48 = vshrl.u32 %v3044_v58, 16  ;;  %v3386_v29 = vshrl.u32 %v3043_v27, 16  ;;  %v3389_v24 = vshll.u32 %v3043_v27, 16  ;;  %4818 = vmatmul.mubr.bf16.gmra.mxu0 %v11439_v9  ;;  %v2813_v39 = vpop.permute.xlu0 %2812 }
 0x14a   : > { %v2175_v10 = vsel %vm12808_vm9, %v2170_v19, %v2174_v18  ;;  %v2938_v37 = vld [vmem:[#allocation2 + $0x1c] sm:$0xf]  ;;  %v2107_v4 = vld [vmem:[#allocation2 + $0x18] sm:$0xf]  ;;  %v846_v5 = vrot.slane %v13397_v38, 4  ;;  %3487 = vrot.lane.b32.xlu1 %v3384_v59, %s12692_s19  ;;  %v2800_v38 = vsel %vm13288_vm14, %v2798_v50, %v2799_v14  ;;  %v2811_v14 = vpop.permute.xlu1 %2810  ;;  %vm10010_vm2 = vcmask 1041408  }
 0x14b   : > { %2904 = vst.msk [vmem:[#allocation3 + $0x8] sm:$0xf] %vm1604_vm15, %v2809_v52  ;;  %v3397_v63 = vrot.slane %v3395_v22, 5  ;;  %v3388_v30 = vrot.slane %v3386_v29, 4  ;;  %v3391_v21 = vrot.slane %v3389_v24, 5  ;;  %v2177_v0 = vshrl.u32 %v2107_v4, 16 }
 0x14c   : > { %2569 = vst.msk [vmem:[#allocation3 + $0x1c] sm:$0xf] %vm334_vm0, %v2175_v10  ;;  %2970 = vst.msk [vmem:[#allocation3 + $0x20] sm:$0xf] %vm334_vm0, %v2938_v37  ;;  %v2108_v33 = vld [vmem:[#allocation2 + $0x1c] sm:$0xf] }
 0x14d   : > { %1636 = vst.msk [vmem:[#allocation3 + $0x26c] sm:$0xf] %vm1604_vm15, %v1571_v20  ;;  %v2180_v31 = vshll.u32 %v2107_v4, 16  ;;  %v2186_v11 = vshll.u32 %v2108_v33, 16  ;;  %v2190_v35 = vshrl.u32 %v2108_v33, 16  ;;  %v3392_v23 = vor.u32 %v3391_v21, %v3388_v30  ;;  %v3923_v55 = vld [vmem:[#allocation3 + $0x258] sm:$0xff]  ;;  %v3438_v59 = vpop.permute.xlu0 %3437 }
 0x14e   : > { %v2646_v41 = vld [vmem:[#allocation2 + $0xc4] sm:$0xf]  ;;  %v2645_v60 = vld [vmem:[#allocation2 + $0xc0] sm:$0xe]  ;;  %v3401_v17 = vrot.slane %v3399_v48, 4  ;;  %v2179_v44 = vrot.slane %v2177_v0, 4  ;;  %2866 = vrot.lane.b32.xlu1 %v2800_v38, %s12692_s19  ;;  %v3436_v37 = vpop.permute.xlu1 %3435 }
 0x14f   : > { %v2182_v26 = vrot.slane %v2180_v31, 5  ;;  %v2188_v46 = vrot.slane %v2186_v11, 5  ;;  %3529 = vst.msk [vmem:[#allocation3 + $0xc] sm:$0xf] %vm1604_vm15, %v3434_v7  ;;  %v3393_v13 = vrot.slane %v3392_v23, 4  ;;  %v11351_v49 = vrot.slane %v2645_v60, 9 }
 0x150   : > { %v2192_v61 = vrot.slane %v2190_v35, 4  ;;  %2103 = vst.msk [vmem:[#allocation3 + $0x270] sm:$0xf] %vm1604_vm15, %v2039_v40  ;;  %v1006_v42 = vld [vmem:[#allocation2 + $0xc8] sm:$0x1]  ;;  %v2803_v15 = vrot.slane %v2646_v41, 5  ;;  %v3402_v34 = vor.u32 %v3401_v17, %v3397_v63 }
 0x151   : > { %v2183_v36 = vor.u32 %v2182_v26, %v2179_v44  ;;  %v1007_v3 = vsel %vm12758_vm4, %v846_v5, %v1006_v42  ;;  %v3398_v28 = vsel %vm12808_vm9, %v3393_v13, %v3397_v63  ;;  %v2109_v45 = vld [vmem:[#allocation2 + $0x20] sm:$0x1]  ;;  %v2939_v54 = vld [vmem:[#allocation2 + $0x24] sm:$0xf]  ;;  %v3047_v25 = vld [vmem:[#allocation2 + $0xd0] sm:$0xf] }
 0x152   : > { %v2193_v43 = vor.u32 %v2192_v61, %v2188_v46  ;;  %1008 = vst [vmem:[#allocation2 + $0xc8] sm:$0x1] %v1007_v3  ;;  %3489 = vrot.lane.b32.xlu0 %v3398_v28, %s12692_s19  ;;  %v2196_v16 = vshll.u32 %v2109_v45, 16  ;;  %2971 = vst.msk [vmem:[#allocation3 + $0x34] sm:$0xf] %vm334_vm0, %v2939_v54  ;;  %v2804_v56 = vsel %vm13288_vm14, %v11351_v49, %v2803_v15  ;;  %v3419_v2 = vshll.u32 %v3047_v25, 16  ;;  %v2815_v40 = vpop.permute.xlu1 %2814 }
 0x153   : > { %v2184_v47 = vrot.slane %v2183_v36, 4  ;;  %v3048_v8 = vld [vmem:[#allocation2 + $0xd4] sm:$0x1]  ;;  %v3423_v32 = vshrl.u32 %v3047_v25, 16  ;;  %2905 = vst.msk [vmem:[#allocation3 + $0x1c] sm:$0xf] %vm1604_vm15, %v2811_v14 }
 0x154   : > { %v2194_v53 = vrot.slane %v2193_v43, 4  ;;  %v2198_v18 = vrot.slane %v2196_v16, 5  ;;  %v3429_v6 = vshll.u32 %v3048_v8, 16  ;;  %v3046_v19 = vld [vmem:[#allocation2 + $0xcc] sm:$0xf]  ;;  %v3421_v58 = vrot.slane %v3419_v2, 5 }
 0x155   : > { %v2189_v50 = vsel %vm12808_vm9, %v2184_v47, %v2188_v46  ;;  %v3425_v27 = vrot.slane %v3423_v32, 4  ;;  %v3410_v9 = vshrl.u32 %v3046_v19, 16  ;;  %v3413_v22 = vshll.u32 %v3046_v19, 16  ;;  %v2940_v52 = vld [vmem:[#allocation2 + $0x28] sm:$0xf]  ;;  %v2817_v46 = vpop.permute.xlu0 %2816 }
 0x156   : > { %2570 = vst.msk [vmem:[#allocation3 + $0x30] sm:$0xf] %vm334_vm0, %v2189_v50  ;;  %v3403_v48 = vrot.slane %v3402_v34, 4  ;;  %v2805_v29 = vrot.slane %v2803_v15, 4  ;;  %2868 = vrot.lane.b32.xlu0 %v2804_v56, %s12692_s19  ;;  %v2199_v24 = vsel %vm12808_vm9, %v2194_v53, %v2198_v18  ;;  %v2110_v10 = vld [vmem:[#allocation2 + $0x24] sm:$0xf]  ;;  %v3440_v50 = vpop.permute.xlu1 %3439 }
 0x157   : > { %2906 = vst.msk [vmem:[#allocation3 + $0x30] sm:$0xf] %vm1604_vm15, %v2813_v39  ;;  %v3926_v4 = vld [vmem:[#allocation3 + $0x26c] sm:$0xff]  ;;  %3531 = vst.msk [vmem:[#allocation3 + $0x34] sm:$0xf] %vm1604_vm15, %v3438_v59  ;;  %v3426_v20 = vor.u32 %v3425_v27, %v3421_v58  ;;  %v3412_v63 = vrot.slane %v3410_v9, 4 }
 0x158   : > { %v12454_v5 = vld [vmem:[#allocation3 + $0x25c] ss:$20 sps:$4 sm:$0xff]   ;;  %2571 = vst.msk [vmem:[#allocation3 + $0x44] sm:$0xf] %vm334_vm0, %v2199_v24  ;;  %v3415_v30 = vrot.slane %v3413_v22, 5  ;;  %v2201_v21 = vshrl.u32 %v2110_v10, 16  ;;  %v11444_v11 = vcombine.low %v3923_v55, %v3926_v4 }
 0x159   : > { %2972 = vst.msk [vmem:[#allocation3 + $0x48] sm:$0xf] %vm334_vm0, %v2940_v52  ;;  %v14273_v33 = vrot.slane %v3429_v6, 5  ;;  %v2111_v0 = vld [vmem:[#allocation2 + $0x28] sm:$0xf]  ;;  %v2204_v31 = vshll.u32 %v2110_v10, 16  ;;  %4825 = vmatprep.mubr.bf16.mxu0 %v12454_v5  ;;  %v3442_v56 = vpop.permute.xlu0 %3441 }
 0x15a   : > { %3530 = vst.msk [vmem:[#allocation3 + $0x20] sm:$0xf] %vm1604_vm15, %v3436_v37  ;;  %v3045_v35 = vld [vmem:[#allocation2 + $0xc8] sm:$0x1]  ;;  %v14275_v23 = vrot.slane %v3426_v20, 4  ;;  %v3416_v41 = vor.u32 %v3415_v30, %v3412_v63  ;;  %v2203_v60 = vrot.slane %v2201_v21, 4  ;;  %4826 = vmatmul.mubr.bf16.gmra.mxu0 %v11444_v11 }
 0x15b   : > { %v2647_v38 = vld [vmem:[#allocation2 + $0xc8] sm:$0x1]  ;;  %v3405_v7 = vshll.u32 %v3045_v35, 16  ;;  %v2206_v44 = vrot.slane %v2204_v31, 5  ;;  %v2210_v26 = vshll.u32 %v2111_v0, 16  ;;  %v2214_v61 = vshrl.u32 %v2111_v0, 16  ;;  %v2819_v35 = vpop.permute.xlu1 %2818 }
 0x15c   : > { %v2806_v17 = vrot.slane %v2647_v38, 5  ;;  %v3417_v13 = vrot.slane %v3416_v41, 4  ;;  %v2112_v49 = vld [vmem:[#allocation2 + $0x2c] sm:$0x1]  ;;  %v2941_v42 = vld [vmem:[#allocation2 + $0x30] sm:$0xf]  ;;  %v3432_v5 = vsel %vm12808_vm9, %v14275_v23, %v14273_v33 }
 0x15d   : > { %v3407_v36 = vrot.slane %v3405_v7, 5  ;;  %2907 = vst.msk [vmem:[#allocation3 + $0x44] sm:$0xf] %vm1604_vm15, %v2815_v40  ;;  %v2207_v15 = vor.u32 %v2206_v44, %v2203_v60  ;;  %v2212_v3 = vrot.slane %v2210_v26, 5  ;;  %v3561_v28 = vld [vmem:[#allocation2 + $0x18] sm:$0xe]  ;;  %v14303_v63 = vpop.permute.xlu0 %2820 }
 0x15e   : > { %2973 = vst.msk [vmem:[#allocation3 + $0x5c] sm:$0xf] %vm334_vm0, %v2941_v42  ;;  %v3562_v45 = vld [vmem:[#allocation2 + $0x1c] sm:$0xf]  ;;  %v3422_v43 = vsel %vm12808_vm9, %v3417_v13, %v3421_v58  ;;  %v2216_v54 = vrot.slane %v2214_v61, 4  ;;  %v2220_v34 = vshll.u32 %v2112_v49, 16  ;;  %v2807_v32 = vsel %vm13288_vm14, %v2805_v29, %v2806_v17 }
 0x15f   : > { %v3563_v47 = vld [vmem:[#allocation2 + $0x20] sm:$0x1]  ;;  %v11352_v39 = vrot.slane %v3561_v28, 9  ;;  %v3408_v16 = vsel %vm12808_vm9, %v3403_v48, %v3407_v36  ;;  %3493 = vrot.lane.b32.xlu0 %v3422_v43, %s12692_s19  ;;  %v2208_v25 = vrot.slane %v2207_v15, 4  ;;  %v3659_v53 = vrot.slane %v3562_v45, 5  ;;  %v3840_v42 = vld [vmem:[#allocation3 + $0x30] sm:$0xff]  ;;  %v3444_v43 = vpop.permute.xlu1 %3443 }
 0x160   : > { %v3834_v14 = vld [vmem:[#allocation3 + $0x8] sm:$0xff]  ;;  %v3662_v8 = vrot.slane %v3563_v47, 5  ;;  %v2942_v2 = vld [vmem:[#allocation2 + $0x34] sm:$0xf]  ;;  %3491 = vrot.lane.b32.xlu1 %v3408_v16, %s12692_s19  ;;  %v2217_v19 = vor.u32 %v2216_v54, %v2212_v3  ;;  %v2222_v55 = vrot.slane %v2220_v34, 5  ;;  %vm10006_vm3 = vcmask 31744  }
 0x161   : > { %v3837_v18 = vld [vmem:[#allocation3 + $0x1c] sm:$0xff]  ;;  %3533 = vst.msk [vmem:[#allocation3 + $0x5c] sm:$0xf] %vm1604_vm15, %v3442_v56  ;;  %v2113_v58 = vld [vmem:[#allocation2 + $0x30] sm:$0xf]  ;;  %v2213_v27 = vsel %vm12808_vm9, %v2208_v25, %v2212_v3  ;;  %v3660_v22 = vsel %vm13288_vm14, %v11352_v39, %v3659_v53  ;;  %v3661_v48 = vrot.slane %v3659_v53, 4  ;;  %v3446_v15 = vpop.permute.xlu0 %3445 }
 0x162   : > { %v12460_v6 = vld [vmem:[#allocation3 + $0xc] ss:$20 sps:$4 sm:$0xff]   ;;  %2974 = vst.msk [vmem:[#allocation3 + $0x70] sm:$0xf] %vm334_vm0, %v2942_v2  ;;  %v11371_v9 = vcombine.low %v3834_v14, %v3837_v18  ;;  %v2114_v29 = vld [vmem:[#allocation2 + $0x34] sm:$0xf] }
 0x163   : > { %3532 = vst.msk [vmem:[#allocation3 + $0x48] sm:$0xf] %vm1604_vm15, %v3440_v50  ;;  %v3564_v24 = vld [vmem:[#allocation2 + $0x24] sm:$0xe]  ;;  %4866 = vmatprep.mubr.bf16.mxu1 %v12460_v6  ;;  %v2218_v59 = vrot.slane %v2217_v19, 4  ;;  %v2225_v52 = vshrl.u32 %v2113_v58, 16  ;;  %v3663_v20 = vsel %vm13288_vm14, %v3661_v48, %v3662_v8 }
 0x164   : > { %2572 = vst.msk [vmem:[#allocation3 + $0x58] sm:$0xf] %vm334_vm0, %v2213_v27  ;;  %3801 = vst.msk [vmem:[#allocation3 + $0x10] sm:$0xf] %vm334_vm0, %v3660_v22  ;;  %v2228_v10 = vshll.u32 %v2113_v58, 16  ;;  %v2234_v37 = vshll.u32 %v2114_v29, 16  ;;  %4867 = vmatmul.mubr.bf16.vlgmr.msra.gmra.mxu1 %v11371_v9  ;;  %2870 = vrot.lane.b32.xlu1 %v2807_v32, %s12692_s19  ;;  %v2823_v22 = vpop.permute.xlu1 %2822 }
 0x165   : > { %v3565_v4 = vld [vmem:[#allocation2 + $0x28] sm:$0xf]  ;;  %2908 = vst.msk [vmem:[#allocation3 + $0x58] sm:$0xf] %vm1604_vm15, %v2817_v46  ;;  %v3566_v30 = vld [vmem:[#allocation2 + $0x2c] sm:$0x1]  ;;  %v2223_v11 = vsel %vm12808_vm9, %v2218_v59, %v2222_v55  ;;  %v2825_v27 = vpop.permute.xlu0 %2824 }
 0x166   : > { %v11353_v21 = vrot.slane %v3564_v24, 9  ;;  %v3666_v0 = vrot.slane %v3565_v4, 5  ;;  %v2115_v31 = vld [vmem:[#allocation2 + $0x38] sm:$0x1]  ;;  %3802 = vst.msk [vmem:[#allocation3 + $0x24] sm:$0xf] %vm334_vm0, %v3663_v20 }
 0x167   : > { %v2227_v33 = vrot.slane %v2225_v52, 4  ;;  %v2230_v38 = vrot.slane %v2228_v10, 5  ;;  %v2236_v23 = vrot.slane %v2234_v37, 5  ;;  %v2943_v41 = vld [vmem:[#allocation2 + $0x3c] sm:$0xf]  ;;  %v3669_v17 = vrot.slane %v3566_v30, 5 }
 0x168   : > { %2573 = vst.msk [vmem:[#allocation3 + $0x6c] sm:$0xf] %vm334_vm0, %v2223_v11  ;;  %v3667_v60 = vsel %vm13288_vm14, %v11353_v21, %v3666_v0  ;;  %v3668_v7 = vrot.slane %v3666_v0, 4  ;;  %v2238_v44 = vshrl.u32 %v2114_v29, 16  ;;  %2975 = vst.msk [vmem:[#allocation3 + $0x84] sm:$0xf] %vm334_vm0, %v2943_v41  ;;  %3495 = vrot.lane.b32.xlu1 %v3432_v5, %s12692_s19 }
 0x169   : > { %v2944_v26 = vld [vmem:[#allocation2 + $0x40] sm:$0xf]  ;;  %2909 = vst.msk [vmem:[#allocation3 + $0x6c] sm:$0xf] %vm1604_vm15, %v2819_v35  ;;  %v2231_v46 = vor.u32 %v2230_v38, %v2227_v33  ;;  %v2244_v40 = vshll.u32 %v2115_v31, 16  ;;  %v3450_v35 = vpop.permute.xlu0 %3449  ;;  %v3448_v38 = vpop.permute.xlu1 %3447  ;;  %vm10196_vm5 = vcmask 1042434  }
 0x16a   : > { %3803 = vst.msk [vmem:[#allocation3 + $0x38] sm:$0xf] %vm334_vm0, %v3667_v60  ;;  %2976 = vst.msk [vmem:[#allocation3 + $0x98] sm:$0xf] %vm334_vm0, %v2944_v26  ;;  %v2117_v13 = vld [vmem:[#allocation2 + $0x40] sm:$0xf]  ;;  %v3670_v61 = vsel %vm13288_vm14, %v3668_v7, %v3669_v17 }
 0x16b   : > { %v2118_v49 = vld [vmem:[#allocation2 + $0x44] sm:$0x1]  ;;  %v2240_v36 = vrot.slane %v2238_v44, 4  ;;  %v2258_v3 = vshll.u32 %v2117_v13, 16  ;;  %v2262_v28 = vshrl.u32 %v2117_v13, 16  ;;  %v2232_v54 = vrot.slane %v2231_v46, 4 }
 0x16c   : > { %v2116_v45 = vld [vmem:[#allocation2 + $0x3c] sm:$0xf]  ;;  %3804 = vst.msk [vmem:[#allocation3 + $0x4c] sm:$0xf] %vm334_vm0, %v3670_v61  ;;  %v12464_v47 = vld [vmem:[#allocation3 + $0x34] ss:$20 sps:$4 sm:$0xff]  }
 0x16d   : > { %v3843_v34 = vld [vmem:[#allocation3 + $0x44] sm:$0xff]  ;;  %v2246_v39 = vrot.slane %v2244_v40, 5  ;;  %3535 = vst.msk [vmem:[#allocation3 + $0x84] sm:$0xf] %vm1604_vm15, %v3446_v15  ;;  %v2268_v16 = vshll.u32 %v2118_v49, 16  ;;  %v2241_v25 = vor.u32 %v2240_v36, %v2236_v23  ;;  %v14322_v56 = vrot.slane %v2258_v3, 5  ;;  %4874 = vmatprep.mubr.bf16.mxu1 %v12464_v47  ;;  %v2827_v47 = vpop.permute.xlu1 %2826 }
 0x16e   : > { %3534 = vst.msk [vmem:[#allocation3 + $0x70] sm:$0xf] %vm1604_vm15, %v3444_v43  ;;  %v11376_v14 = vcombine.low %v3840_v42, %v3843_v34  ;;  %v2264_v53 = vrot.slane %v2262_v28, 4  ;;  %v3567_v8 = vld [vmem:[#allocation2 + $0x30] sm:$0xe]  ;;  %v2237_v2 = vsel %vm12808_vm9, %v2232_v54, %v2236_v23  ;;  %v2249_v50 = vshrl.u32 %v2116_v45, 16  ;;  %v14355_v54 = vpop.permute.xlu0 %2828 }
 0x16f   : > { %v2270_v32 = vrot.slane %v2268_v16, 5  ;;  %v2252_v18 = vshll.u32 %v2116_v45, 16  ;;  %v3568_v6 = vld [vmem:[#allocation2 + $0x34] sm:$0xf]  ;;  %v12462_v19 = vld [vmem:[#allocation3 + $0x10] ss:$20 sps:$4 sm:$0xff]  }
 0x170   : > { %2574 = vst.msk [vmem:[#allocation3 + $0x80] sm:$0xf] %vm334_vm0, %v2237_v2  ;;  %v2242_v55 = vrot.slane %v2241_v25, 4  ;;  %4875 = vmatmul.mubr.bf16.gmra.mxu1 %v11376_v14  ;;  %v2265_v58 = vor.u32 %v2264_v53, %v14322_v56  ;;  %v11354_v9 = vrot.slane %v3567_v8, 9  ;;  %v2251_v48 = vrot.slane %v2249_v50, 4  ;;  %12292 = vmatprep.mubr.msk.bf16.mxu0 %vm4624_vm1, %v12462_v19  ;;  %v3846_v5 = vld [vmem:[#allocation3 + $0x58] sm:$0xff] }
 0x171   : > { %2910 = vst.msk [vmem:[#allocation3 + $0x80] sm:$0xf] %vm1604_vm15, %v14303_v63  ;;  %v2254_v29 = vrot.slane %v2252_v18, 5  ;;  %v3569_v24 = vld [vmem:[#allocation2 + $0x38] sm:$0x1]  ;;  %v3673_v59 = vrot.slane %v3568_v6, 5 }
 0x172   : > { %v2247_v52 = vsel %vm12808_vm9, %v2242_v55, %v2246_v39  ;;  %v2266_v10 = vrot.slane %v2265_v58, 4  ;;  %v3676_v37 = vrot.slane %v3569_v24, 5  ;;  %v2946_v4 = vld [vmem:[#allocation2 + $0x4c] sm:$0xf]  ;;  %v2945_v21 = vld [vmem:[#allocation2 + $0x48] sm:$0xf]  ;;  %v3454_v58 = vpop.permute.xlu0 %3453 }
 0x173   : > { %2575 = vst.msk [vmem:[#allocation3 + $0x94] sm:$0xf] %vm334_vm0, %v2247_v52  ;;  %v2255_v20 = vor.u32 %v2254_v29, %v2251_v48  ;;  %v3674_v63 = vsel %vm13288_vm14, %v11354_v9, %v3673_v59  ;;  %v3675_v30 = vrot.slane %v3673_v59, 4  ;;  %2978 = vst.msk [vmem:[#allocation3 + $0xc0] sm:$0xf] %vm334_vm0, %v2946_v4  ;;  %v3452_v29 = vpop.permute.xlu1 %3451  ;;  %vm10199_vm6 = vcmask 1043459  }
 0x174   : > { %v3570_v0 = vld [vmem:[#allocation2 + $0x3c] sm:$0xe]  ;;  %v12463_v31 = vld [vmem:[#allocation3 + $0x38] ss:$20 sps:$4 sm:$0xff]   ;;  %2911 = vst.msk [vmem:[#allocation3 + $0x94] sm:$0xf] %vm1604_vm15, %v2823_v22  ;;  %v2271_v11 = vsel %vm12808_vm9, %v2266_v10, %v2270_v32 }
 0x175   : > { %3805 = vst.msk [vmem:[#allocation3 + $0x60] sm:$0xf] %vm334_vm0, %v3674_v63  ;;  %2977 = vst.msk [vmem:[#allocation3 + $0xac] sm:$0xf] %vm334_vm0, %v2945_v21  ;;  %v3571_v33 = vld [vmem:[#allocation2 + $0x40] sm:$0xf]  ;;  %v3677_v7 = vsel %vm13288_vm14, %v3675_v30, %v3676_v37  ;;  %12293 = vmatmul.mubr.msk.bf16.vlgmr.msra.gmra.mxu0 %vm4624_vm1, %v12463_v31 }
 0x176   : > { %v3849_v23 = vld [vmem:[#allocation3 + $0x6c] sm:$0xff]  ;;  %2577 = vst.msk [vmem:[#allocation3 + $0xbc] sm:$0xf] %vm334_vm0, %v2271_v11  ;;  %v2256_v60 = vrot.slane %v2255_v20, 4  ;;  %3806 = vst.msk [vmem:[#allocation3 + $0x74] sm:$0xf] %vm334_vm0, %v3677_v7 }
 0x177   : > { %v12466_v41 = vld [vmem:[#allocation3 + $0x5c] ss:$20 sps:$4 sm:$0xff]   ;;  %3537 = vst.msk [vmem:[#allocation3 + $0xac] sm:$0xf] %vm1604_vm15, %v3450_v35  ;;  %v3572_v17 = vld [vmem:[#allocation2 + $0x44] sm:$0x1]  ;;  %v11381_v44 = vcombine.low %v3846_v5, %v3849_v23  ;;  %v14374_v35 = vpop.permute.xlu0 %2832  ;;  %v2831_v23 = vpop.permute.xlu1 %2830 }
 0x178   : > { %3536 = vst.msk [vmem:[#allocation3 + $0x98] sm:$0xf] %vm1604_vm15, %v3448_v38  ;;  %v11355_v26 = vrot.slane %v3570_v0, 9  ;;  %v3680_v46 = vrot.slane %v3571_v33, 5  ;;  %v3683_v40 = vrot.slane %v3572_v17, 5  ;;  %4882 = vmatprep.mubr.bf16.mxu1 %v12466_v41  ;;  %v2261_v49 = vsel %vm12808_vm9, %v2256_v60, %v14322_v56  ;;  %v3852_v55 = vld [vmem:[#allocation3 + $0x80] sm:$0xff] }
 0x179   : > { %v2120_v13 = vld [vmem:[#allocation2 + $0x4c] sm:$0xf]  ;;  %v2121_v61 = vld [vmem:[#allocation2 + $0x50] sm:$0x1]  ;;  %v2119_v15 = vld [vmem:[#allocation2 + $0x48] sm:$0xf]  ;;  %4883 = vmatmul.mubr.bf16.gmra.mxu1 %v11381_v44 }
 0x17a   : > { %v2282_v42 = vshll.u32 %v2120_v13, 16  ;;  %v2286_v36 = vshrl.u32 %v2120_v13, 16  ;;  %2576 = vst.msk [vmem:[#allocation3 + $0xa8] sm:$0xf] %vm334_vm0, %v2261_v49  ;;  %v3681_v3 = vsel %vm13288_vm14, %v11355_v26, %v3680_v46  ;;  %v3682_v28 = vrot.slane %v3680_v46, 4 }
 0x17b   : > { %v2292_v45 = vshll.u32 %v2121_v61, 16  ;;  %v2273_v43 = vshrl.u32 %v2119_v15, 16  ;;  %v2948_v34 = vld [vmem:[#allocation2 + $0x58] sm:$0xf]  ;;  %2912 = vst.msk [vmem:[#allocation3 + $0xa8] sm:$0xf] %vm1604_vm15, %v2825_v27 }
 0x17c   : > { %3807 = vst.msk [vmem:[#allocation3 + $0x88] sm:$0xf] %vm334_vm0, %v3681_v3  ;;  %v2284_v39 = vrot.slane %v2282_v42, 5  ;;  %v2288_v16 = vrot.slane %v2286_v36, 4  ;;  %v2276_v25 = vshll.u32 %v2119_v15, 16  ;;  %v3684_v56 = vsel %vm13288_vm14, %v3682_v28, %v3683_v40  ;;  %v3458_v28 = vpop.permute.xlu0 %3457 }
 0x17d   : > { %2980 = vst.msk [vmem:[#allocation3 + $0xe8] sm:$0xf] %vm334_vm0, %v2948_v34  ;;  %v2947_v14 = vld [vmem:[#allocation2 + $0x54] sm:$0xf]  ;;  %v2294_v53 = vrot.slane %v2292_v45, 5  ;;  %v2275_v8 = vrot.slane %v2273_v43, 4  ;;  %v3456_v34 = vpop.permute.xlu1 %3455 }
 0x17e   : > { %2913 = vst.msk [vmem:[#allocation3 + $0xbc] sm:$0xf] %vm1604_vm15, %v2827_v47  ;;  %v2123_v2 = vld [vmem:[#allocation2 + $0x58] sm:$0xf]  ;;  %v2124_v32 = vld [vmem:[#allocation2 + $0x5c] sm:$0x1]  ;;  %v2289_v50 = vor.u32 %v2288_v16, %v2284_v39 }
 0x17f   : > { %2979 = vst.msk [vmem:[#allocation3 + $0xd4] sm:$0xf] %vm334_vm0, %v2947_v14  ;;  %3808 = vst.msk [vmem:[#allocation3 + $0x9c] sm:$0xf] %vm334_vm0, %v3684_v56  ;;  %v2278_v18 = vrot.slane %v2276_v25, 5  ;;  %v2306_v6 = vshll.u32 %v2123_v2, 16 }
 0x180   : > { %v2310_v19 = vshrl.u32 %v2123_v2, 16  ;;  %v2316_v27 = vshll.u32 %v2124_v32, 16  ;;  %v2122_v9 = vld [vmem:[#allocation2 + $0x54] sm:$0xf]  ;;  %v3573_v22 = vld [vmem:[#allocation2 + $0x48] sm:$0xe] }
 0x181   : > { %v12468_v48 = vld [vmem:[#allocation3 + $0x60] ss:$20 sps:$4 sm:$0xff]   ;;  %v2290_v59 = vrot.slane %v2289_v50, 4  ;;  %v2279_v52 = vor.u32 %v2278_v18, %v2275_v8  ;;  %3539 = vst.msk [vmem:[#allocation3 + $0xd4] sm:$0xf] %vm1604_vm15, %v3454_v58  ;;  %v14367_v4 = vrot.slane %v2306_v6, 5 }
 0x182   : > { %v3855_v24 = vld [vmem:[#allocation3 + $0x94] sm:$0xff]  ;;  %3538 = vst.msk [vmem:[#allocation3 + $0xc0] sm:$0xf] %vm1604_vm15, %v3452_v29  ;;  %v2312_v5 = vrot.slane %v2310_v19, 4  ;;  %12296 = vmatprep.mubr.msk.bf16.mxu0 %vm4624_vm1, %v12468_v48  ;;  %v2297_v30 = vshrl.u32 %v2122_v9, 16  ;;  %v2300_v21 = vshll.u32 %v2122_v9, 16  ;;  %v2837_v29 = vpop.permute.xlu0 %2836 }
 0x183   : > { %v12470_v10 = vld [vmem:[#allocation3 + $0x84] ss:$20 sps:$4 sm:$0xff]   ;;  %v11386_v37 = vcombine.low %v3852_v55, %v3855_v24  ;;  %v2295_v20 = vsel %vm12808_vm9, %v2290_v59, %v2294_v53  ;;  %v2280_v63 = vrot.slane %v2279_v52, 4  ;;  %v3574_v0 = vld [vmem:[#allocation2 + $0x4c] sm:$0xf]  ;;  %v2318_v11 = vrot.slane %v2316_v27, 5  ;;  %v2835_v59 = vpop.permute.xlu1 %2834 }
 0x184   : > { %4890 = vmatprep.mubr.bf16.mxu1 %v12470_v10  ;;  %2579 = vst.msk [vmem:[#allocation3 + $0xe4] sm:$0xf] %vm334_vm0, %v2295_v20  ;;  %v2313_v31 = vor.u32 %v2312_v5, %v14367_v4  ;;  %v3575_v33 = vld [vmem:[#allocation2 + $0x50] sm:$0x1]  ;;  %v11356_v38 = vrot.slane %v3573_v22, 9  ;;  %v2299_v60 = vrot.slane %v2297_v30, 4 }
 0x185   : > { %4891 = vmatmul.mubr.bf16.gmra.mxu1 %v11386_v37  ;;  %v2285_v41 = vsel %vm12808_vm9, %v2280_v63, %v2284_v39  ;;  %v2302_v7 = vrot.slane %v2300_v21, 5  ;;  %v3687_v17 = vrot.slane %v3574_v0, 5  ;;  %v2950_v44 = vld [vmem:[#allocation2 + $0x64] sm:$0xf]  ;;  %2915 = vst.msk [vmem:[#allocation3 + $0xe4] sm:$0xf] %vm1604_vm15, %v2831_v23 }
 0x186   : > { %v12469_v26 = vld [vmem:[#allocation3 + $0x88] ss:$20 sps:$4 sm:$0xff]   ;;  %2578 = vst.msk [vmem:[#allocation3 + $0xd0] sm:$0xf] %vm334_vm0, %v2285_v41  ;;  %v2314_v46 = vrot.slane %v2313_v31, 4  ;;  %v3690_v40 = vrot.slane %v3575_v33, 5  ;;  %v3462_v23 = vpop.permute.xlu0 %3461 }
 0x187   : > { %2982 = vst.msk [vmem:[#allocation3 + $0x110] sm:$0xf] %vm334_vm0, %v2950_v44  ;;  %v3858_v13 = vld [vmem:[#allocation3 + $0xa8] sm:$0xff]  ;;  %v2303_v49 = vor.u32 %v2302_v7, %v2299_v60  ;;  %v3688_v61 = vsel %vm13288_vm14, %v11356_v38, %v3687_v17  ;;  %v3689_v42 = vrot.slane %v3687_v17, 4  ;;  %v3576_v15 = vld [vmem:[#allocation2 + $0x54] sm:$0xe]  ;;  %12297 = vmatmul.mubr.msk.bf16.gmra.mxu0 %vm4624_vm1, %v12469_v26  ;;  %v3460_v44 = vpop.permute.xlu1 %3459 }
 0x188   : > { %2914 = vst.msk [vmem:[#allocation3 + $0xd0] sm:$0xf] %vm1604_vm15, %v14355_v54  ;;  %v2949_v36 = vld [vmem:[#allocation2 + $0x60] sm:$0xf]  ;;  %v2319_v3 = vsel %vm12808_vm9, %v2314_v46, %v2318_v11  ;;  %v3577_v45 = vld [vmem:[#allocation2 + $0x58] sm:$0xf] }
 0x189   : > { %3809 = vst.msk [vmem:[#allocation3 + $0xb0] sm:$0xf] %vm334_vm0, %v3688_v61  ;;  %2981 = vst.msk [vmem:[#allocation3 + $0xfc] sm:$0xf] %vm334_vm0, %v2949_v36  ;;  %v3578_v43 = vld [vmem:[#allocation2 + $0x5c] sm:$0x1]  ;;  %v3691_v25 = vsel %vm13288_vm14, %v3689_v42, %v3690_v40 }
 0x18a   : > { %v11357_v54 = vrot.slane %v3576_v15, 9  ;;  %v3861_v47 = vld [vmem:[#allocation3 + $0xbc] sm:$0xff]  ;;  %2581 = vst.msk [vmem:[#allocation3 + $0x10c] sm:$0xf] %vm334_vm0, %v2319_v3  ;;  %v2304_v16 = vrot.slane %v2303_v49, 4  ;;  %v3694_v14 = vrot.slane %v3577_v45, 5 }
 0x18b   : > { %v12472_v39 = vld [vmem:[#allocation3 + $0xac] ss:$20 sps:$4 sm:$0xff]   ;;  %3541 = vst.msk [vmem:[#allocation3 + $0xfc] sm:$0xf] %vm1604_vm15, %v3458_v28  ;;  %v3697_v56 = vrot.slane %v3578_v43, 5  ;;  %v11391_v53 = vcombine.low %v3858_v13, %v3861_v47  ;;  %vm10202_vm7 = vcmask 1044484  }
 0x18c   : > { %3540 = vst.msk [vmem:[#allocation3 + $0xe8] sm:$0xf] %vm1604_vm15, %v3456_v34  ;;  %v2126_v8 = vld [vmem:[#allocation2 + $0x64] sm:$0xf]  ;;  %v2127_v2 = vld [vmem:[#allocation2 + $0x68] sm:$0x1]  ;;  %4898 = vmatprep.mubr.bf16.mxu1 %v12472_v39  ;;  %v2309_v50 = vsel %vm12808_vm9, %v2304_v16, %v14367_v4  ;;  %v3695_v18 = vsel %vm13288_vm14, %v11357_v54, %v3694_v14  ;;  %v14421_v34 = vpop.permute.xlu0 %2840 }
 0x18d   : > { %3810 = vst.msk [vmem:[#allocation3 + $0xc4] sm:$0xf] %vm334_vm0, %v3691_v25  ;;  %v2125_v32 = vld [vmem:[#allocation2 + $0x60] sm:$0xf]  ;;  %v3696_v6 = vrot.slane %v3694_v14, 4  ;;  %v2330_v19 = vshll.u32 %v2126_v8, 16  ;;  %4899 = vmatmul.mubr.bf16.gmra.mxu1 %v11391_v53  ;;  %v2839_v25 = vpop.permute.xlu1 %2838 }
 0x18e   : > { %v2952_v55 = vld [vmem:[#allocation2 + $0x70] sm:$0xf]  ;;  %v2951_v58 = vld [vmem:[#allocation2 + $0x6c] sm:$0xf]  ;;  %2580 = vst.msk [vmem:[#allocation3 + $0xf8] sm:$0xf] %vm334_vm0, %v2309_v50 }
 0x18f   : > { %3811 = vst.msk [vmem:[#allocation3 + $0xd8] sm:$0xf] %vm334_vm0, %v3695_v18  ;;  %v2334_v27 = vshrl.u32 %v2126_v8, 16  ;;  %v2340_v9 = vshll.u32 %v2127_v2, 16  ;;  %v2321_v22 = vshrl.u32 %v2125_v32, 16  ;;  %v2324_v48 = vshll.u32 %v2125_v32, 16 }
 0x190   : > { %2984 = vst.msk [vmem:[#allocation3 + $0x138] sm:$0xf] %vm334_vm0, %v2952_v55  ;;  %2983 = vst.msk [vmem:[#allocation3 + $0x124] sm:$0xf] %vm334_vm0, %v2951_v58  ;;  %v2129_v24 = vld [vmem:[#allocation2 + $0x70] sm:$0xf]  ;;  %v3698_v52 = vsel %vm13288_vm14, %v3696_v6, %v3697_v56 }
 0x191   : > { %2916 = vst.msk [vmem:[#allocation3 + $0xf8] sm:$0xf] %vm1604_vm15, %v14374_v35  ;;  %v2332_v10 = vrot.slane %v2330_v19, 5  ;;  %v2130_v37 = vld [vmem:[#allocation2 + $0x74] sm:$0x1]  ;;  %v2354_v4 = vshll.u32 %v2129_v24, 16 }
 0x192   : > { %v2358_v5 = vshrl.u32 %v2129_v24, 16  ;;  %2917 = vst.msk [vmem:[#allocation3 + $0x10c] sm:$0xf] %vm1604_vm15, %v2835_v59  ;;  %v3864_v20 = vld [vmem:[#allocation3 + $0xd0] sm:$0xff]  ;;  %v2336_v63 = vrot.slane %v2334_v27, 4  ;;  %v2323_v30 = vrot.slane %v2321_v22, 4  ;;  %v3464_v59 = vpop.permute.xlu1 %3463 }
 0x193   : > { %3812 = vst.msk [vmem:[#allocation3 + $0xec] sm:$0xf] %vm334_vm0, %v3698_v52  ;;  %v2326_v21 = vrot.slane %v2324_v48, 5  ;;  %v2342_v0 = vrot.slane %v2340_v9, 5  ;;  %v14411_v31 = vrot.slane %v2354_v4, 5  ;;  %v2364_v35 = vshll.u32 %v2130_v37, 16  ;;  %v3466_v9 = vpop.permute.xlu0 %3465 }
 0x194   : > { %v2360_v11 = vrot.slane %v2358_v5, 4  ;;  %v2337_v33 = vor.u32 %v2336_v63, %v2332_v10  ;;  %v2128_v41 = vld [vmem:[#allocation2 + $0x6c] sm:$0xf]  ;;  %v3579_v60 = vld [vmem:[#allocation2 + $0x60] sm:$0xe]  ;;  %vm10205_vm8 = vcmask 1045509  }
 0x195   : > { %v2327_v38 = vor.u32 %v2326_v21, %v2323_v30  ;;  %v3580_v7 = vld [vmem:[#allocation2 + $0x64] sm:$0xf]  ;;  %v12474_v17 = vld [vmem:[#allocation3 + $0xb0] ss:$20 sps:$4 sm:$0xff]   ;;  %3543 = vst.msk [vmem:[#allocation3 + $0x124] sm:$0xf] %vm1604_vm15, %v3462_v23 }
 0x196   : > { %v3867_v26 = vld [vmem:[#allocation3 + $0xe4] sm:$0xff]  ;;  %v2361_v46 = vor.u32 %v2360_v11, %v14411_v31  ;;  %v2366_v40 = vrot.slane %v2364_v35, 5  ;;  %3542 = vst.msk [vmem:[#allocation3 + $0x110] sm:$0xf] %vm1604_vm15, %v3460_v44  ;;  %v2338_v49 = vrot.slane %v2337_v33, 4  ;;  %v2345_v36 = vshrl.u32 %v2128_v41, 16  ;;  %12300 = vmatprep.mubr.msk.bf16.mxu0 %vm4624_vm1, %v12474_v17 }
 0x197   : > { %v12476_v13 = vld [vmem:[#allocation3 + $0xd4] ss:$20 sps:$4 sm:$0xff]   ;;  %v11396_v61 = vcombine.low %v3864_v20, %v3867_v26  ;;  %v2328_v42 = vrot.slane %v2327_v38, 4  ;;  %v2348_v3 = vshll.u32 %v2128_v41, 16  ;;  %v3581_v28 = vld [vmem:[#allocation2 + $0x68] sm:$0x1]  ;;  %v14453_v26 = vpop.permute.xlu0 %2844 }
 0x198   : > { %v2362_v15 = vrot.slane %v2361_v46, 4  ;;  %4906 = vmatprep.mubr.bf16.mxu1 %v12476_v13  ;;  %v2343_v45 = vsel %vm12808_vm9, %v2338_v49, %v2342_v0  ;;  %v2347_v54 = vrot.slane %v2345_v36, 4  ;;  %v11358_v47 = vrot.slane %v3579_v60, 9  ;;  %v2954_v39 = vld [vmem:[#allocation2 + $0x7c] sm:$0xf]  ;;  %v3870_v8 = vld [vmem:[#allocation3 + $0xf8] sm:$0xff] }
 0x199   : > { %v2333_v43 = vsel %vm12808_vm9, %v2328_v42, %v2332_v10  ;;  %2583 = vst.msk [vmem:[#allocation3 + $0x134] sm:$0xf] %vm334_vm0, %v2343_v45  ;;  %4907 = vmatmul.mubr.bf16.gmra.mxu1 %v11396_v61  ;;  %v2350_v56 = vrot.slane %v2348_v3, 5  ;;  %v3701_v53 = vrot.slane %v3580_v7, 5  ;;  %2986 = vst.msk [vmem:[#allocation3 + $0x160] sm:$0xf] %vm334_vm0, %v2954_v39 }
 0x19a   : > { %v12475_v16 = vld [vmem:[#allocation3 + $0xd8] ss:$20 sps:$4 sm:$0xff]   ;;  %2582 = vst.msk [vmem:[#allocation3 + $0x120] sm:$0xf] %vm334_vm0, %v2333_v43  ;;  %v2367_v14 = vsel %vm12808_vm9, %v2362_v15, %v2366_v40  ;;  %v3704_v2 = vrot.slane %v3581_v28, 5  ;;  %v2843_v40 = vpop.permute.xlu1 %2842 }
 0x19b   : > { %2919 = vst.msk [vmem:[#allocation3 + $0x134] sm:$0xf] %vm1604_vm15, %v2839_v25  ;;  %2918 = vst.msk [vmem:[#allocation3 + $0x120] sm:$0xf] %vm1604_vm15, %v2837_v29  ;;  %v2953_v32 = vld [vmem:[#allocation2 + $0x78] sm:$0xf]  ;;  %12301 = vmatmul.mubr.msk.bf16.gmra.mxu0 %vm4624_vm1, %v12475_v16  ;;  %v2351_v18 = vor.u32 %v2350_v56, %v2347_v54  ;;  %v3702_v6 = vsel %vm13288_vm14, %v11358_v47, %v3701_v53  ;;  %v11805_v25 = vpop.f32.mrf.mxu0 }
 0x19c   : > { %2585 = vst.msk [vmem:[#allocation3 + $0x15c] sm:$0xf] %vm334_vm0, %v2367_v14  ;;  %v3582_v50 = vld [vmem:[#allocation2 + $0x6c] sm:$0xe]  ;;  %v3703_v19 = vrot.slane %v3701_v53, 4 }
 0x19d   : > { %2985 = vst.msk [vmem:[#allocation3 + $0x14c] sm:$0xf] %vm334_vm0, %v2953_v32  ;;  %v3583_v55 = vld [vmem:[#allocation2 + $0x70] sm:$0xf]  ;;  %v3584_v58 = vld [vmem:[#allocation2 + $0x74] sm:$0x1] }
 0x19e   : > { %v11359_v27 = vrot.slane %v3582_v50, 9  ;;  %3813 = vst.msk [vmem:[#allocation3 + $0x100] sm:$0xf] %vm334_vm0, %v3702_v6  ;;  %v3708_v22 = vrot.slane %v3583_v55, 5  ;;  %v3711_v48 = vrot.slane %v3584_v58, 5  ;;  %v3873_v52 = vld [vmem:[#allocation3 + $0x10c] sm:$0xff]  ;;  %v3705_v4 = vsel %vm13288_vm14, %v3703_v19, %v3704_v2  ;;  %v3468_v2 = vpop.permute.xlu1 %3467 }
 0x19f   : > { %v2132_v29 = vld [vmem:[#allocation2 + $0x7c] sm:$0xf]  ;;  %v2133_v24 = vld [vmem:[#allocation2 + $0x80] sm:$0x1]  ;;  %v12478_v10 = vld [vmem:[#allocation3 + $0xfc] ss:$20 sps:$4 sm:$0xff]   ;;  %v11401_v63 = vcombine.low %v3870_v8, %v3873_v52 }
 0x1a0   : > { %v2352_v37 = vrot.slane %v2351_v18, 4  ;;  %3545 = vst.msk [vmem:[#allocation3 + $0x14c] sm:$0xf] %vm1604_vm15, %v3466_v9  ;;  %v2378_v5 = vshll.u32 %v2132_v29, 16  ;;  %v2382_v20 = vshrl.u32 %v2132_v29, 16  ;;  %v3709_v30 = vsel %vm13288_vm14, %v11359_v27, %v3708_v22  ;;  %4914 = vmatprep.mubr.bf16.mxu1 %v12478_v10  ;;  %v11806_v9 = vpop.f32.mrf.mxu0 }
 0x1a1   : > { %3544 = vst.msk [vmem:[#allocation3 + $0x138] sm:$0xf] %vm1604_vm15, %v3464_v59  ;;  %v3710_v21 = vrot.slane %v3708_v22, 4  ;;  %v2388_v0 = vshll.u32 %v2133_v24, 16  ;;  %v2131_v11 = vld [vmem:[#allocation2 + $0x78] sm:$0xf]  ;;  %4915 = vmatmul.mubr.bf16.gmra.mxu1 %v11401_v63 }
 0x1a2   : > { %3814 = vst.msk [vmem:[#allocation3 + $0x114] sm:$0xf] %vm334_vm0, %v3705_v4  ;;  %v2956_v35 = vld [vmem:[#allocation2 + $0x88] sm:$0xf]  ;;  %v2357_v33 = vsel %vm12808_vm9, %v2352_v37, %v14411_v31  ;;  %3815 = vst.msk [vmem:[#allocation3 + $0x128] sm:$0xf] %vm334_vm0, %v3709_v30 }
 0x1a3   : > { %v14447_v38 = vrot.slane %v2378_v5, 5  ;;  %v2384_v23 = vrot.slane %v2382_v20, 4  ;;  %v2369_v41 = vshrl.u32 %v2131_v11, 16  ;;  %2988 = vst.msk [vmem:[#allocation3 + $0x188] sm:$0xf] %vm334_vm0, %v2956_v35  ;;  %v3712_v7 = vsel %vm13288_vm14, %v3710_v21, %v3711_v48  ;;  %v3876_v43 = vld [vmem:[#allocation3 + $0x120] sm:$0xff]  ;;  %v2847_v5 = vpop.permute.xlu1 %2846  ;;  %v14475_v21 = vpop.f32.mrf.mxu0 }
 0x1a4   : > { %v2955_v60 = vld [vmem:[#allocation2 + $0x84] sm:$0xf]  ;;  %2584 = vst.msk [vmem:[#allocation3 + $0x148] sm:$0xf] %vm334_vm0, %v2357_v33  ;;  %v2390_v17 = vrot.slane %v2388_v0, 5  ;;  %v2372_v44 = vshll.u32 %v2131_v11, 16  ;;  %v14467_v48 = vadd.f32 %v11806_v9, %v11805_v25 }
 0x1a5   : > { %2987 = vst.msk [vmem:[#allocation3 + $0x174] sm:$0xf] %vm334_vm0, %v2955_v60  ;;  %v2135_v31 = vld [vmem:[#allocation2 + $0x88] sm:$0xf]  ;;  %v2136_v46 = vld [vmem:[#allocation2 + $0x8c] sm:$0x1]  ;;  %v2385_v13 = vor.u32 %v2384_v23, %v14447_v38 }
 0x1a6   : > { %2920 = vst.msk [vmem:[#allocation3 + $0x148] sm:$0xf] %vm1604_vm15, %v14421_v34  ;;  %v2371_v49 = vrot.slane %v2369_v41, 4  ;;  %v2402_v61 = vshll.u32 %v2135_v31, 16  ;;  %v2406_v42 = vshrl.u32 %v2135_v31, 16  ;;  %v2374_v15 = vrot.slane %v2372_v44, 5  ;;  %v3470_v34 = vpop.permute.xlu0 %3469 }
 0x1a7   : > { %3816 = vst.msk [vmem:[#allocation3 + $0x13c] sm:$0xf] %vm334_vm0, %v3712_v7  ;;  %v2134_v36 = vld [vmem:[#allocation2 + $0x84] sm:$0xf]  ;;  %v2412_v3 = vshll.u32 %v2136_v46, 16  ;;  %v2386_v54 = vrot.slane %v2385_v13, 4 }
 0x1a8   : > { %2921 = vst.msk [vmem:[#allocation3 + $0x15c] sm:$0xf] %vm1604_vm15, %v2843_v40  ;;  %v2393_v28 = vshrl.u32 %v2134_v36, 16  ;;  %v2396_v45 = vshll.u32 %v2134_v36, 16  ;;  %v2404_v47 = vrot.slane %v2402_v61, 5  ;;  %v2408_v39 = vrot.slane %v2406_v42, 4  ;;  %v3472_v61 = vpop.permute.xlu1 %3471 }
 0x1a9   : > { %v2375_v16 = vor.u32 %v2374_v15, %v2371_v49  ;;  %v3585_v53 = vld [vmem:[#allocation2 + $0x78] sm:$0xe]  ;;  %v3879_v32 = vld [vmem:[#allocation3 + $0x134] sm:$0xff]  ;;  %v2391_v50 = vsel %vm12808_vm9, %v2386_v54, %v2390_v17  ;;  %3547 = vst.msk [vmem:[#allocation3 + $0x174] sm:$0xf] %vm1604_vm15, %v3470_v34  ;;  %v2414_v6 = vrot.slane %v2412_v3, 5 }
 0x1aa   : > { %v2395_v14 = vrot.slane %v2393_v28, 4  ;;  %v2398_v56 = vrot.slane %v2396_v45, 5  ;;  %v12480_v8 = vld [vmem:[#allocation3 + $0x100] ss:$20 sps:$4 sm:$0xff]   ;;  %v2409_v18 = vor.u32 %v2408_v39, %v2404_v47  ;;  %3546 = vst.msk [vmem:[#allocation3 + $0x160] sm:$0xf] %vm1604_vm15, %v3468_v2  ;;  %v11406_v55 = vcombine.low %v3876_v43, %v3879_v32  ;;  %v2849_v4 = vpop.permute.xlu0 %2848  ;;  %v14496_v45 = vpop.f32.mrf.mxu0 }
 0x1ab   : > { %v12482_v19 = vld [vmem:[#allocation3 + $0x124] ss:$20 sps:$4 sm:$0xff]   ;;  %2587 = vst.msk [vmem:[#allocation3 + $0x184] sm:$0xf] %vm334_vm0, %v2391_v50  ;;  %v2376_v58 = vrot.slane %v2375_v16, 4  ;;  %12304 = vmatprep.mubr.msk.bf16.mxu0 %vm4624_vm1, %v12480_v8  ;;  %v11360_v59 = vrot.slane %v3585_v53, 9 }
 0x1ac   : > { %v2399_v27 = vor.u32 %v2398_v56, %v2395_v14  ;;  %v2410_v22 = vrot.slane %v2409_v18, 4  ;;  %v3586_v29 = vld [vmem:[#allocation2 + $0x7c] sm:$0xf]  ;;  %v3587_v24 = vld [vmem:[#allocation2 + $0x80] sm:$0x1]  ;;  %4922 = vmatprep.mubr.bf16.mxu1 %v12482_v19  ;;  %v11811_v2 = vpop.f32.mrf.mxu0 }
 0x1ad   : > { %v2381_v10 = vsel %vm12808_vm9, %v2376_v58, %v14447_v38  ;;  %4923 = vmatmul.mubr.bf16.gmra.mxu1 %v11406_v55  ;;  %v3715_v63 = vrot.slane %v3586_v29, 5  ;;  %v3718_v30 = vrot.slane %v3587_v24, 5  ;;  %v2958_v0 = vld [vmem:[#allocation2 + $0x94] sm:$0xf]  ;;  %v2957_v11 = vld [vmem:[#allocation2 + $0x90] sm:$0xf]  ;;  %v2851_v55 = vpop.permute.xlu1 %2850 }
 0x1ae   : > { %v12481_v52 = vld [vmem:[#allocation3 + $0x128] ss:$20 sps:$4 sm:$0xff]   ;;  %v2400_v37 = vrot.slane %v2399_v27, 4  ;;  %2586 = vst.msk [vmem:[#allocation3 + $0x170] sm:$0xf] %vm334_vm0, %v2381_v10  ;;  %v2415_v20 = vsel %vm12808_vm9, %v2410_v22, %v2414_v6  ;;  %v3474_v31 = vpop.permute.xlu0 %3473  ;;  %v11812_v9 = vpop.f32.mrf.mxu0 }
 0x1af   : > { %12305 = vmatmul.mubr.msk.bf16.gmra.mxu0 %vm4624_vm1, %v12481_v52  ;;  %2923 = vst.msk [vmem:[#allocation3 + $0x184] sm:$0xf] %vm1604_vm15, %v2847_v5  ;;  %2922 = vst.msk [vmem:[#allocation3 + $0x170] sm:$0xf] %vm1604_vm15, %v14453_v26  ;;  %v3588_v33 = vld [vmem:[#allocation2 + $0x84] sm:$0xe]  ;;  %v3716_v60 = vsel %vm13288_vm14, %v11360_v59, %v3715_v63  ;;  %v14512_v59 = vadd.f32 %v11812_v9, %v11811_v2 }
 0x1b0   : > { %2589 = vst.msk [vmem:[#allocation3 + $0x1ac] sm:$0xf] %vm334_vm0, %v2415_v20  ;;  %v2405_v35 = vsel %vm12808_vm9, %v2400_v37, %v2404_v47  ;;  %2990 = vst.msk [vmem:[#allocation3 + $0x1b0] sm:$0xf] %vm334_vm0, %v2958_v0  ;;  %v3589_v38 = vld [vmem:[#allocation2 + $0x88] sm:$0xf] }
 0x1b1   : > { %2989 = vst.msk [vmem:[#allocation3 + $0x19c] sm:$0xf] %vm334_vm0, %v2957_v11  ;;  %v3590_v23 = vld [vmem:[#allocation2 + $0x8c] sm:$0x1]  ;;  %v3882_v41 = vld [vmem:[#allocation3 + $0x148] sm:$0xff]  ;;  %v3717_v7 = vrot.slane %v3715_v63, 4 }
 0x1b2   : > { %2588 = vst.msk [vmem:[#allocation3 + $0x198] sm:$0xf] %vm334_vm0, %v2405_v35  ;;  %v11361_v17 = vrot.slane %v3588_v33, 9  ;;  %v3722_v44 = vrot.slane %v3589_v38, 5  ;;  %v2138_v26 = vld [vmem:[#allocation2 + $0x94] sm:$0xf]  ;;  %v14508_v50 = vpop.permute.xlu0 %2852 }
 0x1b3   : > { %2924 = vst.msk [vmem:[#allocation3 + $0x198] sm:$0xf] %vm1604_vm15, %v2849_v4  ;;  %v3725_v46 = vrot.slane %v3590_v23, 5  ;;  %v2139_v40 = vld [vmem:[#allocation2 + $0x98] sm:$0x1]  ;;  %v2426_v13 = vshll.u32 %v2138_v26, 16  ;;  %v3719_v15 = vsel %vm13288_vm14, %v3717_v7, %v3718_v30  ;;  %v14516_v30 = vpop.f32.mrf.mxu0 }
 0x1b4   : > { %3817 = vst.msk [vmem:[#allocation3 + $0x150] sm:$0xf] %vm334_vm0, %v3716_v60  ;;  %v2430_v49 = vshrl.u32 %v2138_v26, 16  ;;  %v3885_v42 = vld [vmem:[#allocation3 + $0x15c] sm:$0xff]  ;;  %v3723_v3 = vsel %vm13288_vm14, %v11361_v17, %v3722_v44  ;;  %v3724_v28 = vrot.slane %v3722_v44, 4  ;;  %v2436_v43 = vshll.u32 %v2139_v40, 16  ;;  %v3476_v60 = vpop.permute.xlu1 %3475 }
 0x1b5   : > { %v12484_v36 = vld [vmem:[#allocation3 + $0x14c] ss:$20 sps:$4 sm:$0xff]   ;;  %3549 = vst.msk [vmem:[#allocation3 + $0x19c] sm:$0xf] %vm1604_vm15, %v3474_v31  ;;  %3548 = vst.msk [vmem:[#allocation3 + $0x188] sm:$0xf] %vm1604_vm15, %v3472_v61  ;;  %v11411_v54 = vcombine.low %v3882_v41, %v3885_v42  ;;  %v14523_v17 = vpop.f32.mrf.mxu0 }
 0x1b6   : > { %3818 = vst.msk [vmem:[#allocation3 + $0x164] sm:$0xf] %vm334_vm0, %v3719_v15  ;;  %3819 = vst.msk [vmem:[#allocation3 + $0x178] sm:$0xf] %vm334_vm0, %v3723_v3  ;;  %v14501_v47 = vrot.slane %v2426_v13, 5  ;;  %v2432_v39 = vrot.slane %v2430_v49, 4  ;;  %4930 = vmatprep.mubr.bf16.mxu1 %v12484_v36  ;;  %v3726_v25 = vsel %vm13288_vm14, %v3724_v28, %v3725_v46  ;;  %v3478_v35 = vpop.permute.xlu0 %3477 }
 0x1b7   : > { %v2137_v16 = vld [vmem:[#allocation2 + $0x90] sm:$0xf]  ;;  %v2960_v34 = vld [vmem:[#allocation2 + $0xa0] sm:$0xf]  ;;  %v2438_v14 = vrot.slane %v2436_v43, 5  ;;  %4931 = vmatmul.mubr.bf16.gmra.mxu1 %v11411_v54  ;;  %v3888_v0 = vld [vmem:[#allocation3 + $0x170] sm:$0xff]  ;;  %v11817_v36 = vpop.f32.mrf.mxu0 }
 0x1b8   : > { %v2417_v56 = vshrl.u32 %v2137_v16, 16  ;;  %v2420_v53 = vshll.u32 %v2137_v16, 16  ;;  %2992 = vst.msk [vmem:[#allocation3 + $0x1d8] sm:$0xf] %vm334_vm0, %v2960_v34  ;;  %v2959_v8 = vld [vmem:[#allocation2 + $0x9c] sm:$0xf]  ;;  %v2433_v32 = vor.u32 %v2432_v39, %v14501_v47  ;;  %v2855_v16 = vpop.permute.xlu1 %2854 }
 0x1b9   : > { %3820 = vst.msk [vmem:[#allocation3 + $0x18c] sm:$0xf] %vm334_vm0, %v3726_v25  ;;  %2991 = vst.msk [vmem:[#allocation3 + $0x1c4] sm:$0xf] %vm334_vm0, %v2959_v8  ;;  %v2141_v18 = vld [vmem:[#allocation2 + $0xa0] sm:$0xf]  ;;  %v11818_v8 = vpop.f32.mrf.mxu0 }
 0x1ba   : > { %v2142_v6 = vld [vmem:[#allocation2 + $0xa4] sm:$0x1]  ;;  %v2140_v19 = vld [vmem:[#allocation2 + $0x9c] sm:$0xf]  ;;  %v2419_v58 = vrot.slane %v2417_v56, 4  ;;  %v2422_v27 = vrot.slane %v2420_v53, 5  ;;  %v2857_v28 = vpop.permute.xlu0 %2856 }
 0x1bb   : > { %v2450_v22 = vshll.u32 %v2141_v18, 16  ;;  %v2454_v29 = vshrl.u32 %v2141_v18, 16  ;;  %2925 = vst.msk [vmem:[#allocation3 + $0x1ac] sm:$0xf] %vm1604_vm15, %v2851_v55  ;;  %v2434_v24 = vrot.slane %v2433_v32, 4  ;;  %v2460_v52 = vshll.u32 %v2142_v6, 16 }
 0x1bc   : > { %v2441_v10 = vshrl.u32 %v2140_v19, 16  ;;  %v3591_v37 = vld [vmem:[#allocation2 + $0x90] sm:$0xe]  ;;  %v2423_v4 = vor.u32 %v2422_v27, %v2419_v58  ;;  %v2444_v63 = vshll.u32 %v2140_v19, 16  ;;  %v3592_v23 = vld [vmem:[#allocation2 + $0x94] sm:$0xf]  ;;  %v14543_v19 = vadd.f32 %v11818_v8, %v11817_v36 }
 0x1bd   : > { %v14514_v5 = vrot.slane %v2450_v22, 5  ;;  %v2456_v20 = vrot.slane %v2454_v29, 4  ;;  %v2439_v11 = vsel %vm12808_vm9, %v2434_v24, %v2438_v14  ;;  %v2462_v33 = vrot.slane %v2460_v52, 5  ;;  %v12486_v41 = vld [vmem:[#allocation3 + $0x150] ss:$20 sps:$4 sm:$0xff]   ;;  %v3894_v55 = vld [vmem:[#allocation3 + $0x198] sm:$0xff]  ;;  %v14547_v29 = vpop.f32.mrf.mxu0 }
 0x1be   : > { %v2443_v38 = vrot.slane %v2441_v10, 4  ;;  %2591 = vst.msk [vmem:[#allocation3 + $0x1d4] sm:$0xf] %vm334_vm0, %v2439_v11  ;;  %v3891_v44 = vld [vmem:[#allocation3 + $0x184] sm:$0xff]  ;;  %v2424_v31 = vrot.slane %v2423_v4, 4  ;;  %v2446_v46 = vrot.slane %v2444_v63, 5  ;;  %12308 = vmatprep.mubr.msk.bf16.mxu0 %vm4624_vm1, %v12486_v41  ;;  %v3482_v24 = vpop.permute.xlu0 %3481 }
 0x1bf   : > { %3551 = vst.msk [vmem:[#allocation3 + $0x1c4] sm:$0xf] %vm1604_vm15, %v3478_v35  ;;  %v2457_v7 = vor.u32 %v2456_v20, %v14514_v5  ;;  %3550 = vst.msk [vmem:[#allocation3 + $0x1b0] sm:$0xf] %vm1604_vm15, %v3476_v60  ;;  %v12488_v26 = vld [vmem:[#allocation3 + $0x174] ss:$20 sps:$4 sm:$0xff]   ;;  %v11416_v49 = vcombine.low %v3888_v0, %v3891_v44  ;;  %v3480_v20 = vpop.permute.xlu1 %3479 }
 0x1c0   : > { %v11362_v40 = vrot.slane %v3591_v37, 9  ;;  %v12487_v13 = vld [vmem:[#allocation3 + $0x178] ss:$20 sps:$4 sm:$0xff]   ;;  %v3729_v42 = vrot.slane %v3592_v23, 5  ;;  %4938 = vmatprep.mubr.bf16.mxu1 %v12488_v26  ;;  %v2429_v15 = vsel %vm12808_vm9, %v2424_v31, %v14501_v47  ;;  %v2447_v3 = vor.u32 %v2446_v46, %v2443_v38  ;;  %v3593_v43 = vld [vmem:[#allocation2 + $0x98] sm:$0x1] }
 0x1c1   : > { %v2458_v61 = vrot.slane %v2457_v7, 4  ;;  %v2962_v54 = vld [vmem:[#allocation2 + $0xac] sm:$0xf]  ;;  %v2961_v39 = vld [vmem:[#allocation2 + $0xa8] sm:$0xf]  ;;  %12309 = vmatmul.mubr.msk.bf16.gmra.mxu0 %vm4624_vm1, %v12487_v13  ;;  %4939 = vmatmul.mubr.bf16.gmra.mxu1 %v11416_v49  ;;  %v3732_v56 = vrot.slane %v3593_v43, 5 }
 0x1c2   : > { %2590 = vst.msk [vmem:[#allocation3 + $0x1c0] sm:$0xf] %vm334_vm0, %v2429_v15  ;;  %v3730_v25 = vsel %vm13288_vm14, %v11362_v40, %v3729_v42  ;;  %v3731_v14 = vrot.slane %v3729_v42, 4  ;;  %2994 = vst.msk [vmem:[#allocation3 + $0x200] sm:$0xf] %vm334_vm0, %v2962_v54  ;;  %v2448_v2 = vrot.slane %v2447_v3, 4 }
 0x1c3   : > { %v2463_v34 = vsel %vm12808_vm9, %v2458_v61, %v2462_v33  ;;  %2993 = vst.msk [vmem:[#allocation3 + $0x1ec] sm:$0xf] %vm334_vm0, %v2961_v39  ;;  %v3594_v47 = vld [vmem:[#allocation2 + $0x9c] sm:$0xe]  ;;  %v3595_v53 = vld [vmem:[#allocation2 + $0xa0] sm:$0xf]  ;;  %v14558_v33 = vpop.f32.mrf.mxu0  ;;  %v2861_v61 = vpop.permute.xlu0 %2860 }
 0x1c4   : > { %2927 = vst.msk [vmem:[#allocation3 + $0x1d4] sm:$0xf] %vm1604_vm15, %v2855_v16  ;;  %2926 = vst.msk [vmem:[#allocation3 + $0x1c0] sm:$0xf] %vm1604_vm15, %v14508_v50  ;;  %v3596_v32 = vld [vmem:[#allocation2 + $0xa4] sm:$0x1]  ;;  %v3733_v58 = vsel %vm13288_vm14, %v3731_v14, %v3732_v56  ;;  %v2453_v50 = vsel %vm12808_vm9, %v2448_v2, %v14514_v5  ;;  %v2859_v3 = vpop.permute.xlu1 %2858 }
 0x1c5   : > { %2593 = vst.msk [vmem:[#allocation3 + $0x1fc] sm:$0xf] %vm334_vm0, %v2463_v34  ;;  %3821 = vst.msk [vmem:[#allocation3 + $0x1a0] sm:$0xf] %vm334_vm0, %v3730_v25  ;;  %v11363_v18 = vrot.slane %v3594_v47, 9  ;;  %v3736_v6 = vrot.slane %v3595_v53, 5  ;;  %v11823_v46 = vpop.f32.mrf.mxu0 }
 0x1c6   : > { %v3739_v27 = vrot.slane %v3596_v32, 5  ;;  %v2144_v9 = vld [vmem:[#allocation2 + $0xac] sm:$0xf]  ;;  %v2145_v22 = vld [vmem:[#allocation2 + $0xb0] sm:$0x1]  ;;  %v3897_v63 = vld [vmem:[#allocation3 + $0x1ac] sm:$0xff] }
 0x1c7   : > { %3822 = vst.msk [vmem:[#allocation3 + $0x1b4] sm:$0xf] %vm334_vm0, %v3733_v58  ;;  %v3737_v52 = vsel %vm13288_vm14, %v11363_v18, %v3736_v6  ;;  %v3738_v10 = vrot.slane %v3736_v6, 4  ;;  %v2143_v37 = vld [vmem:[#allocation2 + $0xa8] sm:$0xf]  ;;  %v2474_v11 = vshll.u32 %v2144_v9, 16  ;;  %v11421_v38 = vcombine.low %v3894_v55, %v3897_v63  ;;  %v11824_v54 = vpop.f32.mrf.mxu0  ;;  %v3486_v55 = vpop.permute.xlu0 %3485 }
 0x1c8   : > { %v2964_v4 = vld [vmem:[#allocation2 + $0xb8] sm:$0xf]  ;;  %v12490_v0 = vld [vmem:[#allocation3 + $0x19c] ss:$20 sps:$4 sm:$0xff]   ;;  %2592 = vst.msk [vmem:[#allocation3 + $0x1e8] sm:$0xf] %vm334_vm0, %v2453_v50  ;;  %v14568_v25 = vadd.f32 %v11824_v54, %v11823_v46 }
 0x1c9   : > { %3553 = vst.msk [vmem:[#allocation3 + $0x1ec] sm:$0xf] %vm1604_vm15, %v3482_v24  ;;  %v2478_v5 = vshrl.u32 %v2144_v9, 16  ;;  %v2484_v35 = vshll.u32 %v2145_v22, 16  ;;  %3552 = vst.msk [vmem:[#allocation3 + $0x1d8] sm:$0xf] %vm1604_vm15, %v3480_v20  ;;  %v3740_v23 = vsel %vm13288_vm14, %v3738_v10, %v3739_v27  ;;  %4946 = vmatprep.mubr.bf16.mxu1 %v12490_v0  ;;  %v14572_v18 = vpop.f32.mrf.mxu0  ;;  %v3484_v22 = vpop.permute.xlu1 %3483 }
 0x1ca   : > { %3823 = vst.msk [vmem:[#allocation3 + $0x1c8] sm:$0xf] %vm334_vm0, %v3737_v52  ;;  %2996 = vst.msk [vmem:[#allocation3 + $0x228] sm:$0xf] %vm334_vm0, %v2964_v4  ;;  %v2465_v41 = vshrl.u32 %v2143_v37, 16  ;;  %v2468_v60 = vshll.u32 %v2143_v37, 16  ;;  %4947 = vmatmul.mubr.bf16.gmra.mxu1 %v11421_v38 }
 0x1cb   : > { %2928 = vst.msk [vmem:[#allocation3 + $0x1e8] sm:$0xf] %vm1604_vm15, %v2857_v28  ;;  %v2963_v7 = vld [vmem:[#allocation2 + $0xb4] sm:$0xf]  ;;  %v2147_v44 = vld [vmem:[#allocation2 + $0xb8] sm:$0xf]  ;;  %v14579_v4 = vpop.f32.mrf.mxu0 }
 0x1cc   : > { %3824 = vst.msk [vmem:[#allocation3 + $0x1dc] sm:$0xf] %vm334_vm0, %v3740_v23  ;;  %v2476_v26 = vrot.slane %v2474_v11, 5  ;;  %v2480_v31 = vrot.slane %v2478_v5, 4  ;;  %2995 = vst.msk [vmem:[#allocation3 + $0x214] sm:$0xf] %vm334_vm0, %v2963_v7 }
 0x1cd   : > { %v2148_v40 = vld [vmem:[#allocation2 + $0xbc] sm:$0x1]  ;;  %v2467_v13 = vrot.slane %v2465_v41, 4  ;;  %v2470_v49 = vrot.slane %v2468_v60, 5  ;;  %v2498_v42 = vshll.u32 %v2147_v44, 16  ;;  %v2502_v36 = vshrl.u32 %v2147_v44, 16  ;;  %v11829_v60 = vpop.f32.mrf.mxu0  ;;  %v2863_v46 = vpop.permute.xlu1 %2862 }
 0x1ce   : > { %v2146_v15 = vld [vmem:[#allocation2 + $0xb4] sm:$0xf]  ;;  %v2481_v28 = vor.u32 %v2480_v31, %v2476_v26  ;;  %v2486_v43 = vrot.slane %v2484_v35, 5  ;;  %v2508_v39 = vshll.u32 %v2148_v40, 16  ;;  %2929 = vst.msk [vmem:[#allocation3 + $0x1fc] sm:$0xf] %vm1604_vm15, %v2859_v3 }
 0x1cf   : > { %v2489_v16 = vshrl.u32 %v2146_v15, 16  ;;  %v2471_v34 = vor.u32 %v2470_v49, %v2467_v13  ;;  %v14570_v14 = vrot.slane %v2498_v42, 5  ;;  %v2504_v56 = vrot.slane %v2502_v36, 4  ;;  %v3597_v47 = vld [vmem:[#allocation2 + $0xa8] sm:$0xe]  ;;  %v3900_v2 = vld [vmem:[#allocation3 + $0x1c0] sm:$0xff]  ;;  %v11830_v36 = vpop.f32.mrf.mxu0 }
 0x1d0   : > { %v3598_v53 = vld [vmem:[#allocation2 + $0xac] sm:$0xf]  ;;  %v2482_v32 = vrot.slane %v2481_v28, 4  ;;  %v2510_v27 = vrot.slane %v2508_v39, 5  ;;  %v3599_v9 = vld [vmem:[#allocation2 + $0xb0] sm:$0x1] }
 0x1d1   : > { %v12492_v8 = vld [vmem:[#allocation3 + $0x1a0] ss:$20 sps:$4 sm:$0xff]   ;;  %v2472_v6 = vrot.slane %v2471_v34, 4  ;;  %v2505_v58 = vor.u32 %v2504_v56, %v14570_v14  ;;  %v12494_v24 = vld [vmem:[#allocation3 + $0x1c4] ss:$20 sps:$4 sm:$0xff]   ;;  %v2491_v10 = vrot.slane %v2489_v16, 4 }
 0x1d2   : > { %12312 = vmatprep.mubr.msk.bf16.mxu0 %vm4624_vm1, %v12492_v8  ;;  %v3903_v50 = vld [vmem:[#allocation3 + $0x1d4] sm:$0xff]  ;;  %v2487_v52 = vsel %vm12808_vm9, %v2482_v32, %v2486_v43  ;;  %3555 = vst.msk [vmem:[#allocation3 + $0x214] sm:$0xf] %vm1604_vm15, %v3486_v55  ;;  %v2492_v37 = vshll.u32 %v2146_v15, 16  ;;  %v11364_v20 = vrot.slane %v3597_v47, 9  ;;  %4954 = vmatprep.mubr.bf16.mxu1 %v12494_v24  ;;  %v3743_v38 = vrot.slane %v3598_v53, 5  ;;  %v2865_v32 = vpop.permute.xlu0 %2864 }
 0x1d3   : > { %3554 = vst.msk [vmem:[#allocation3 + $0x200] sm:$0xf] %vm1604_vm15, %v3484_v22  ;;  %v12493_v63 = vld [vmem:[#allocation3 + $0x1c8] ss:$20 sps:$4 sm:$0xff]   ;;  %v11426_v0 = vcombine.low %v3900_v2, %v3903_v50  ;;  %v2477_v11 = vsel %vm12808_vm9, %v2472_v6, %v2476_v26  ;;  %v2506_v5 = vrot.slane %v2505_v58, 4  ;;  %v3746_v23 = vrot.slane %v3599_v9, 5  ;;  %v14601_v2 = vpop.f32.mrf.mxu0  ;;  %v3488_v9 = vpop.permute.xlu1 %3487 }
 0x1d4   : > { %2595 = vst.msk [vmem:[#allocation3 + $0x224] sm:$0xf] %vm334_vm0, %v2487_v52  ;;  %2594 = vst.msk [vmem:[#allocation3 + $0x210] sm:$0xf] %vm334_vm0, %v2477_v11  ;;  %v2494_v35 = vrot.slane %v2492_v37, 5  ;;  %12313 = vmatmul.mubr.msk.bf16.gmra.mxu0 %vm4624_vm1, %v12493_v63  ;;  %v3744_v13 = vsel %vm13288_vm14, %v11364_v20, %v3743_v38  ;;  %v3745_v49 = vrot.slane %v3743_v38, 4  ;;  %v14597_v43 = vadd.f32 %v11830_v36, %v11829_v60 }
 0x1d5   : > { %v2966_v41 = vld [vmem:[#allocation2 + $0xc4] sm:$0xf]  ;;  %2930 = vst.msk [vmem:[#allocation3 + $0x210] sm:$0xf] %vm1604_vm15, %v2861_v61  ;;  %v2511_v7 = vsel %vm12808_vm9, %v2506_v5, %v2510_v27  ;;  %v2965_v44 = vld [vmem:[#allocation2 + $0xc0] sm:$0xf]  ;;  %4955 = vmatmul.mubr.bf16.gmra.mxu1 %v11426_v0  ;;  %v14612_v37 = vpop.f32.mrf.mxu0 }
 0x1d6   : > { %2998 = vst.msk [vmem:[#allocation3 + $0x250] sm:$0xf] %vm334_vm0, %v2966_v41  ;;  %v3600_v26 = vld [vmem:[#allocation2 + $0xb4] sm:$0xe]  ;;  %v3601_v31 = vld [vmem:[#allocation2 + $0xb8] sm:$0xf]  ;;  %v2495_v40 = vor.u32 %v2494_v35, %v2491_v10  ;;  %v3747_v56 = vsel %vm13288_vm14, %v3745_v49, %v3746_v23 }
 0x1d7   : > { %2597 = vst.msk [vmem:[#allocation3 + $0x24c] sm:$0xf] %vm334_vm0, %v2511_v7  ;;  %2997 = vst.msk [vmem:[#allocation3 + $0x23c] sm:$0xf] %vm334_vm0, %v2965_v44  ;;  %v3602_v61 = vld [vmem:[#allocation2 + $0xbc] sm:$0x1]  ;;  %v11835_v38 = vpop.f32.mrf.mxu0 }
 0x1d8   : > { %v11365_v42 = vrot.slane %v3600_v26, 9  ;;  %v2150_v15 = vld [vmem:[#allocation2 + $0xc4] sm:$0xf]  ;;  %2931 = vst.msk [vmem:[#allocation3 + $0x224] sm:$0xf] %vm1604_vm15, %v2863_v46  ;;  %v3750_v3 = vrot.slane %v3601_v31, 5  ;;  %v2867_v31 = vpop.permute.xlu1 %2866 }
 0x1d9   : > { %3825 = vst.msk [vmem:[#allocation3 + $0x1f0] sm:$0xf] %vm334_vm0, %v3744_v13  ;;  %v3753_v28 = vrot.slane %v3602_v61, 5  ;;  %v2151_v54 = vld [vmem:[#allocation2 + $0xc8] sm:$0x1]  ;;  %v2522_v39 = vshll.u32 %v2150_v15, 16  ;;  %v3490_v61 = vpop.permute.xlu0 %3489 }
 0x1da   : > { %v3906_v16 = vld [vmem:[#allocation3 + $0x1e8] sm:$0xff]  ;;  %v2496_v34 = vrot.slane %v2495_v40, 4  ;;  %v2526_v47 = vshrl.u32 %v2150_v15, 16  ;;  %v2532_v53 = vshll.u32 %v2151_v54, 16  ;;  %3826 = vst.msk [vmem:[#allocation3 + $0x204] sm:$0xf] %vm334_vm0, %v3747_v56  ;;  %v3751_v6 = vsel %vm13288_vm14, %v11365_v42, %v3750_v3  ;;  %v11836_v40 = vpop.f32.mrf.mxu0 }
 0x1db   : > { %v2149_v8 = vld [vmem:[#allocation2 + $0xc0] sm:$0xf]  ;;  %v3752_v55 = vrot.slane %v3750_v3, 4  ;;  %v14606_v58 = vrot.slane %v2522_v39, 5  ;;  %v2968_v27 = vld [vmem:[#allocation2 + $0xd0] sm:$0xf]  ;;  %v14624_v15 = vadd.f32 %v11836_v40, %v11835_v38 }
 0x1dc   : > { %v3909_v22 = vld [vmem:[#allocation3 + $0x1fc] sm:$0xff]  ;;  %v2501_v24 = vsel %vm12808_vm9, %v2496_v34, %v14570_v14  ;;  %3827 = vst.msk [vmem:[#allocation3 + $0x218] sm:$0xf] %vm334_vm0, %v3751_v6  ;;  %v2528_v52 = vrot.slane %v2526_v47, 4  ;;  %v2513_v10 = vshrl.u32 %v2149_v8, 16  ;;  %v2516_v0 = vshll.u32 %v2149_v8, 16  ;;  %v14631_v56 = vpop.f32.mrf.mxu0 }
 0x1dd   : > { %v12496_v50 = vld [vmem:[#allocation3 + $0x1ec] ss:$20 sps:$4 sm:$0xff]   ;;  %3000 = vst.msk [vmem:[#allocation3 + $0x278] sm:$0xf] %vm334_vm0, %v2968_v27  ;;  %v11431_v20 = vcombine.low %v3906_v16, %v3909_v22  ;;  %2596 = vst.msk [vmem:[#allocation3 + $0x238] sm:$0xf] %vm334_vm0, %v2501_v24  ;;  %v3754_v63 = vsel %vm13288_vm14, %v3752_v55, %v3753_v28 }
 0x1de   : > { %3556 = vst.msk [vmem:[#allocation3 + $0x228] sm:$0xf] %vm1604_vm15, %v3488_v9  ;;  %v2967_v11 = vld [vmem:[#allocation2 + $0xcc] sm:$0xf]  ;;  %4962 = vmatprep.mubr.bf16.mxu1 %v12496_v50  ;;  %2932 = vst.msk [vmem:[#allocation3 + $0x238] sm:$0xf] %vm1604_vm15, %v2865_v32  ;;  %v2529_v14 = vor.u32 %v2528_v52, %v14606_v58  ;;  %v14638_v22 = vpop.f32.mrf.mxu0 }
 0x1df   : > { %3828 = vst.msk [vmem:[#allocation3 + $0x22c] sm:$0xf] %vm334_vm0, %v3754_v63  ;;  %v2534_v5 = vrot.slane %v2532_v53, 5  ;;  %v2515_v35 = vrot.slane %v2513_v10, 4  ;;  %2999 = vst.msk [vmem:[#allocation3 + $0x264] sm:$0xf] %vm334_vm0, %v2967_v11  ;;  %4963 = vmatmul.mubr.bf16.gmra.mxu1 %v11431_v20  ;;  %v2869_v11 = vpop.permute.xlu0 %2868 }
 0x1e0   : > { %v3603_v23 = vld [vmem:[#allocation2 + $0xc0] sm:$0xe]  ;;  %v3604_v41 = vld [vmem:[#allocation2 + $0xc4] sm:$0xf]  ;;  %v2518_v60 = vrot.slane %v2516_v0, 5  ;;  %v2530_v46 = vrot.slane %v2529_v14, 4  ;;  %v11841_v14 = vpop.f32.mrf.mxu0 }
 0x1e1   : > { %v3605_v7 = vld [vmem:[#allocation2 + $0xc8] sm:$0x1]  ;;  %v11366_v44 = vrot.slane %v3603_v23, 9  ;;  %v3757_v26 = vrot.slane %v3604_v41, 5  ;;  %v3606_v49 = vld [vmem:[#allocation2 + $0xcc] sm:$0xe] }
 0x1e2   : > { %v3760_v13 = vrot.slane %v3605_v7, 5  ;;  %2933 = vst.msk [vmem:[#allocation3 + $0x24c] sm:$0xf] %vm1604_vm15, %v2867_v31  ;;  %v3912_v42 = vld [vmem:[#allocation3 + $0x210] sm:$0xff]  ;;  %v2519_v36 = vor.u32 %v2518_v60, %v2515_v35  ;;  %v3607_v54 = vld [vmem:[#allocation2 + $0xd0] sm:$0xf]  ;;  %v2535_v34 = vsel %vm12808_vm9, %v2530_v46, %v2534_v5  ;;  %v11842_v41 = vpop.f32.mrf.mxu0 }
 0x1e3   : > { %v3758_v3 = vsel %vm13288_vm14, %v11366_v44, %v3757_v26  ;;  %v3759_v28 = vrot.slane %v3757_v26, 4  ;;  %v3608_v39 = vld [vmem:[#allocation2 + $0xd4] sm:$0x1]  ;;  %v12498_v16 = vld [vmem:[#allocation3 + $0x1f0] ss:$20 sps:$4 sm:$0xff]   ;;  %v11367_v47 = vrot.slane %v3606_v49, 9  ;;  %v14653_v7 = vadd.f32 %v11842_v41, %v11841_v14 }
 0x1e4   : > { %3557 = vst.msk [vmem:[#allocation3 + $0x23c] sm:$0xf] %vm1604_vm15, %v3490_v61  ;;  %v3764_v53 = vrot.slane %v3607_v54, 5  ;;  %v2520_v8 = vrot.slane %v2519_v36, 4  ;;  %v3767_v6 = vrot.slane %v3608_v39, 5  ;;  %12316 = vmatprep.mubr.msk.bf16.mxu0 %vm4624_vm1, %v12498_v16  ;;  %v14655_v31 = vpop.f32.mrf.mxu0 }
 0x1e5   : > { %3829 = vst.msk [vmem:[#allocation3 + $0x240] sm:$0xf] %vm334_vm0, %v3758_v3  ;;  %2599 = vst.msk [vmem:[#allocation3 + $0x274] sm:$0xf] %vm334_vm0, %v2535_v34  ;;  %v3761_v32 = vsel %vm13288_vm14, %v3759_v28, %v3760_v13  ;;  %v8305_v55 = vld [vmem:[#allocation2 + $0xcc] sm:$0xe]  ;;  %v3494_v34 = vpop.permute.xlu0 %3493 }
 0x1e6   : > { %v3915_v27 = vld [vmem:[#allocation3 + $0x224] sm:$0xff]  ;;  %3830 = vst.msk [vmem:[#allocation3 + $0x254] sm:$0xf] %vm334_vm0, %v3761_v32  ;;  %v3765_v50 = vsel %vm13288_vm14, %v11367_v47, %v3764_v53  ;;  %v3766_v24 = vrot.slane %v3764_v53, 4  ;;  %v8306_v52 = vld [vmem:[#allocation2 + $0xd0] sm:$0xf]  ;;  %v2525_v63 = vsel %vm12808_vm9, %v2520_v8, %v14606_v58  ;;  %v14661_v3 = vpop.f32.mrf.mxu0  ;;  %v3492_v53 = vpop.permute.xlu1 %3491 }
 0x1e7   : > { %v12500_v9 = vld [vmem:[#allocation3 + $0x214] ss:$20 sps:$4 sm:$0xff]   ;;  %v12499_v10 = vld [vmem:[#allocation3 + $0x218] ss:$20 sps:$4 sm:$0xff]   ;;  %v11436_v20 = vcombine.low %v3912_v42, %v3915_v27  ;;  %3831 = vst.msk [vmem:[#allocation3 + $0x268] sm:$0xf] %vm334_vm0, %v3765_v50 }
 0x1e8   : > { %v8307_v0 = vld [vmem:[#allocation2 + $0xd4] sm:$0x1]  ;;  %4970 = vmatprep.mubr.bf16.mxu1 %v12500_v9  ;;  %2598 = vst.msk [vmem:[#allocation3 + $0x260] sm:$0xf] %vm334_vm0, %v2525_v63  ;;  %v3768_v5 = vsel %vm13288_vm14, %v3766_v24, %v3767_v6  ;;  %v8463_v35 = vrot.slane %v8306_v52, 5  ;;  %12317 = vmatmul.mubr.msk.bf16.gmra.mxu0 %vm4624_vm1, %v12499_v10  ;;  %v11580_v38 = vrot.slane %v8305_v55, 9  ;;  %v11847_v32 = vpop.f32.mrf.mxu0 }
 0x1e9   : > { %2934 = vst.msk [vmem:[#allocation3 + $0x260] sm:$0xf] %vm1604_vm15, %v2869_v11  ;;  %v8466_v58 = vrot.slane %v8307_v0, 5  ;;  %4971 = vmatmul.mubr.bf16.gmra.mxu1 %v11436_v20  ;;  %v5780_v60 = vld [vmem:[#allocation2] sm:$0xf] }
 0x1ea   : > { %3832 = vst.msk [vmem:[#allocation3 + $0x27c] sm:$0xf] %vm334_vm0, %v3768_v5  ;;  %v8465_v23 = vrot.slane %v8463_v35, 4  ;;  %v5781_v44 = vld [vmem:[#allocation2 + $0x4] sm:$0xf]  ;;  %v5829_v26 = vshrl.u32 %v5780_v60, 16  ;;  %v8464_v42 = vsel %vm13288_vm14, %v11580_v38, %v8463_v35  ;;  %v11848_v9 = vpop.f32.mrf.mxu0  ;;  %v2871_v10 = vpop.permute.xlu1 %2870 }
 0x1eb   : > { %v5832_v46 = vshll.u32 %v5780_v60, 16  ;;  %v5838_v40 = vshll.u32 %v5781_v44, 16  ;;  %v5842_v13 = vshrl.u32 %v5781_v44, 16  ;;  %v5782_v49 = vld [vmem:[#allocation2 + $0x8] sm:$0x1]  ;;  %v14669_v52 = vadd.f32 %v11848_v9, %v11847_v32 }
 0x1ec   : > { %v8467_v36 = vsel %vm13288_vm14, %v8465_v23, %v8466_v58  ;;  %v5831_v28 = vrot.slane %v5829_v26, 4  ;;  %v5848_v47 = vshll.u32 %v5782_v49, 16  ;;  %3559 = vst.msk [vmem:[#allocation3 + $0x264] sm:$0xf] %vm1604_vm15, %v3494_v34  ;;  %3558 = vst.msk [vmem:[#allocation3 + $0x250] sm:$0xf] %vm1604_vm15, %v3492_v53  ;;  %v14671_v20 = vpop.f32.mrf.mxu0 }
 0x1ed   : > { %v12505_v61 = vld [vmem:[#allocation3 + $0x240] ss:$20 sps:$4 sm:$0xff]   ;;  %v5834_v54 = vrot.slane %v5832_v46, 5  ;;  %v5840_v39 = vrot.slane %v5838_v40, 5  ;;  %v5844_v16 = vrot.slane %v5842_v13, 4 }
 0x1ee   : > { %12320 = vmatprep.mubr.msk.bf16.mxu0 %vm4624_vm1, %v12505_v61  ;;  %v5850_v27 = vrot.slane %v5848_v47, 5  ;;  %2935 = vst.msk [vmem:[#allocation3 + $0x274] sm:$0xf] %vm1604_vm15, %v2871_v10  ;;  %v7666_v11 = vld [vmem:[#allocation2 + $0xcc] sm:$0xf]  ;;  %v14680_v14 = vpop.f32.mrf.mxu0  ;;  %v3496_v35 = vpop.permute.xlu1 %3495 }
 0x1ef   : > { %v5835_v6 = vor.u32 %v5834_v54, %v5831_v28  ;;  %v5845_v55 = vor.u32 %v5844_v16, %v5840_v39  ;;  %v12504_v58 = vld [vmem:[#allocation3 + $0x238] ss:$20 sps:$4 sm:$0xff]   ;;  %3560 = vst.msk [vmem:[#allocation3 + $0x278] sm:$0xf] %vm1604_vm15, %v3496_v35 }
 0x1f0   : > { %v11853_v23 = vpop.f32.mrf.mxu0  ;;  %v7667_v44 = vld [vmem:[#allocation2 + $0xd0] sm:$0xf] }
 0x1f1   : > { %v12506_v8 = vld [vmem:[#allocation3 + $0x268] ss:$20 sps:$4 sm:$0xff]   ;;  %v5836_v50 = vrot.slane %v5835_v6, 4  ;;  %v5846_v24 = vrot.slane %v5845_v55, 4 }
 0x1f2   : > { %8530 = vst.msk [vmem:[#allocation3 + $0x268] sm:$0xf] %vm334_vm0, %v8464_v42  ;;  %8531 = vst.msk [vmem:[#allocation3 + $0x27c] sm:$0xf] %vm334_vm0, %v8467_v36  ;;  %12321 = vmatmul.mubr.msk.bf16.gmra.mxu0 %vm4624_vm1, %v12506_v8  ;;  %v11854_v41 = vpop.f32.mrf.mxu0 }
 0x1f3   : > { %v5841_v63 = vsel %vm12808_vm9, %v5836_v50, %v5840_v39  ;;  %v5851_v0 = vsel %vm12808_vm9, %v5846_v24, %v5850_v27  ;;  %v3924_v5 = vld [vmem:[#allocation3 + $0x260] sm:$0xff]  ;;  %v12502_v38 = vld [vmem:[#allocation3 + $0x23c] ss:$20 sps:$4 sm:$0xff]   ;;  %v14684_v60 = vadd.f32 %v11854_v41, %v11853_v23 }
 0x1f4   : > { %6212 = vrot.lane.b32.xlu0 %v5841_v63, %s12692_s19  ;;  %6214 = vrot.lane.b32.xlu1 %v5851_v0, %s12692_s19  ;;  %7698 = vst.msk [vmem:[#allocation3 + $0x264] sm:$0xf] %vm334_vm0, %v7666_v11  ;;  %v14686_v26 = vpop.f32.mrf.mxu0 }
 0x1f5   : > { %4978 = vmatprep.mubr.bf16.mxu1 %v12502_v38 }
 0x1f6   : > { %4979 = vmatmul.mubr.bf16.gmra.mxu1 %v12504_v58  ;;  %v14688_v46 = vpop.f32.mrf.mxu0  ;;  %v3927_v40 = vld [vmem:[#allocation3 + $0x274] sm:$0xff] }
 0x1f7   : > { %7699 = vst.msk [vmem:[#allocation3 + $0x278] sm:$0xf] %vm334_vm0, %v7667_v44  ;;  %v11447_v49 = vcombine.high %v3924_v5, %v3927_v40  ;;  %v11446_v61 = vcombine.low %v3924_v5, %v3927_v40 }
 0x1f8   : > { %v11859_v13 = vpop.f32.mrf.mxu0 }
 0x1f9   : > { %4986 = vmatprep.mubr.bf16.mxu1 %v11447_v49 }
 0x1fa   : > { %v11860_v42 = vpop.f32.mrf.mxu0 }
 0x1fb   : > { %v14691_v36 = vadd.f32 %v11860_v42, %v11859_v13 }
 0x1fc   : > { %v14693_v28 = vpop.f32.mrf.mxu0 }
 0x1fe   : > { %4987 = vmatmul.mubr.bf16.gmra.mxu1 %v11446_v61  ;;  %v14695_v54 = vpop.f32.mrf.mxu0 }
 0x200   : > { %v11865_v39 = vpop.f32.mrf.mxu0 }
 0x202   : > { %v11866_v16 = vpop.f32.mrf.mxu0 }
 0x203   : > { %v14697_v34 = vadd.f32 %v11866_v16, %v11865_v39 }
 0x204   : > { %v14699_v47 = vpop.f32.mrf.mxu0 }
 0x206   : > { %v14701_v53 = vpop.f32.mrf.mxu0 }
 0x208   : > { %v11871_v8 = vpop.f32.mrf.mxu0 }
 0x20a   : > { %v11872_v32 = vpop.f32.mrf.mxu0 }
 0x20b   : > { %v14703_v6 = vadd.f32 %v11872_v32, %v11871_v8  ;;  %v12507_v8 = vld [vmem:[%s17463_s3 + $0x78] sm:$0xff]  }
 0x20c   : > { %v14705_v55 = vpop.f32.mrf.mxu0  ;;  %12033 = vmatprep.subr.bf16.mxu1 %v12507_v8 }
 0x20e   : > { %v14707_v27 = vpop.f32.mrf.mxu0 }
 0x210   : > { %v11877_v9 = vpop.f32.mrf.mxu0 }
 0x212   : > { %v11878_v50 = vpop.f32.mrf.mxu0 }
 0x213   : > { %v14709_v24 = vadd.f32 %v11878_v50, %v11877_v9 }
 0x214   : > { %v14711_v10 = vpop.f32.mrf.mxu0 }
 0x216   : > { %v14713_v63 = vpop.f32.mrf.mxu0 }
 0x218   : > { %v11883_v0 = vpop.f32.mrf.mxu0 }
 0x21a   : > { %v11884_v11 = vpop.f32.mrf.mxu0 }
 0x21b   : > { %v14715_v5 = vadd.f32 %v11884_v11, %v11883_v0 }
 0x21c   : > { %v11886_v35 = vpop.f32.mrf.mxu0 }
 0x21e   : > { %v11887_v38 = vpop.f32.mrf.mxu0 }
 0x21f   : > { %v14717_v58 = vadd.f32 %v11887_v38, %v11886_v35  ;;  %v12508_v35 = vld [vmem:[%s17463_s3 + $0x38] sm:$0xff]  }
 0x220   : > { %v11889_v23 = vpop.f32.mrf.mxu0  ;;  %12034 = vmatpush3.bf16.msra.mxu1 %v12508_v35 }
 0x222   : > { %v11890_v41 = vpop.f32.mrf.mxu0 }
 0x223   : > { %v14719_v44 = vadd.f32 %v11890_v41, %v11889_v23  ;;  %v14736_v23 = vld [vmem:[%s17462_s2] ss:$0 sm:$0xff]  ;;  %v11810_v41 = vadd.f32 %v14496_v45, %v14475_v21 }
 0x224   : > { %v11892_v40 = vpop.f32.mrf.mxu0  ;;  %v11917_v50 = vpop.f32.mrf.mxu1  ;;  %v4716_v35 = vadd.f32 %v14512_v59, %v14736_v23  ;;  %v14763_v59 = vadd.f32 %v14568_v25, %v14736_v23 }
 0x225   : > { %v4711_v21 = vadd.f32 %v11810_v41, %v14736_v23 }
 0x226   : > { %v11893_v13 = vpop.f32.mrf.mxu0  ;;  %v11918_v0 = vpop.f32.mrf.mxu1 }
 0x227   : > { %v14721_v49 = vadd.f32 %v11893_v13, %v11892_v40  ;;  %v11816_v40 = vadd.f32 %v14523_v17, %v14516_v30  ;;  %v14754_v30 = vadd.f32 %v14543_v19, %v14736_v23  ;;  %v11834_v17 = vadd.f32 %v14612_v37, %v14601_v2 }
 0x228   : > { %v11895_v61 = vpop.f32.mrf.mxu0  ;;  %v11920_v11 = vpop.f32.mrf.mxu1  ;;  %v11840_v19 = vadd.f32 %v14638_v22, %v14631_v56  ;;  %v11846_v2 = vadd.f32 %v14661_v3, %v14655_v31  ;;  %v14783_v56 = vadd.f32 %v14624_v15, %v14736_v23  ;;  %v11858_v22 = vadd.f32 %v14688_v46, %v14686_v26 }
 0x229   : > { %v4719_v45 = vadd.f32 %v11816_v40, %v14736_v23  ;;  %v14779_v41 = vadd.f32 %v11834_v17, %v14736_v23  ;;  %v11864_v31 = vadd.f32 %v14695_v54, %v14693_v28  ;;  %v14797_v15 = vadd.f32 %v14653_v7, %v14736_v23 }
 0x22a   : > { %v11896_v42 = vpop.f32.mrf.mxu0  ;;  %v11921_v38 = vpop.f32.mrf.mxu1  ;;  %v14800_v26 = vadd.f32 %v11846_v2, %v14736_v23  ;;  %v14804_v46 = vadd.f32 %v14669_v52, %v14736_v23  ;;  %v14811_v7 = vadd.f32 %v14684_v60, %v14736_v23  ;;  %v14818_v52 = vadd.f32 %v14691_v36, %v14736_v23 }
 0x22b   : > { %v14723_v39 = vadd.f32 %v11896_v42, %v11895_v61  ;;  %v11822_v61 = vadd.f32 %v14558_v33, %v14547_v29  ;;  %v11919_v42 = vadd.f32 %v11918_v0, %v11917_v50  ;;  %v14827_v60 = vadd.f32 %v14697_v34, %v14736_v23 }
 0x22c   : > { %v11898_v16 = vpop.f32.mrf.mxu0  ;;  %v11876_v2 = vadd.f32 %v14707_v27, %v14705_v55  ;;  %v11882_v34 = vadd.f32 %v14713_v63, %v14711_v10  ;;  %v12510_v55 = vld [vmem:[%s17463_s3 + $0x30] sm:$0xff]  }
 0x22d   : > { %v14759_v33 = vadd.f32 %v11822_v61, %v14736_v23  ;;  %v12509_v61 = vld [vmem:[%s17463_s3 + $0x70] sm:$0xff]  }
 0x22e   : > { %v11899_v32 = vpop.f32.mrf.mxu0  ;;  %12035 = vmatprep.subr.bf16.mxu1 %v12509_v61  ;;  %v5604_v61 = vld [vmem:[#allocation2 + $0xc] sm:$0xf] }
 0x22f   : > { %v14728_v9 = vadd.f32 %v11899_v32, %v11898_v16  ;;  %v11828_v16 = vadd.f32 %v14579_v4, %v14572_v18  ;;  %v4708_v32 = vadd.f32 %v14467_v48, %v14736_v23  ;;  %v11922_v48 = vadd.f32 %v11921_v38, %v11920_v11  ;;  %12036 = vmatpush3.bf16.msra.mxu1 %v12510_v55 }
 0x230   : > { %v11923_v13 = vpop.f32.mrf.mxu1  ;;  %v14774_v11 = vadd.f32 %v14597_v43, %v14736_v23 }
 0x231   : > { %17482 = vst [vmem:[#allocation5_spill] sm:$0xff] %v14728_v9  ;;  %v4869_v18 = vadd.f32 %v11919_v42, %v4708_v32  ;;  %v14766_v50 = vadd.f32 %v11828_v16, %v14736_v23  ;;  %v14793_v42 = vadd.f32 %v11840_v19, %v14736_v23 }
 0x232   : > { %v11924_v8 = vpop.f32.mrf.mxu1 }
 0x233   : > { %v11925_v9 = vadd.f32 %v11924_v8, %v11923_v13 }
 0x234   : > { %v11926_v29 = vpop.f32.mrf.mxu1 }
 0x235   : > { %v4877_v4 = vadd.f32 %v11925_v9, %v4716_v35  ;;  %v12294_v37 = vpop.f32.mrf.mxu0  ;;  %v11852_v9 = vadd.f32 %v14680_v14, %v14671_v20  ;;  %v4872_v20 = vadd.f32 %v11922_v48, %v4711_v21  ;;  %v14814_v21 = vadd.f32 %v11858_v22, %v14736_v23 }
 0x236   : > { %v11927_v0 = vpop.f32.mrf.mxu1  ;;  %v14823_v48 = vadd.f32 %v11864_v31, %v14736_v23  ;;  %v14836_v22 = vadd.f32 %v14703_v6, %v14736_v23  ;;  %v5611_v31 = vld [vmem:[#allocation2 + $0x18] sm:$0xf]  ;;  %v14848_v6 = vadd.f32 %v14709_v24, %v14736_v23 }
 0x237   : > { %v5038_v25 = vadd.f32 %v12294_v37, %v4877_v4  ;;  %v11928_v38 = vadd.f32 %v11927_v0, %v11926_v29  ;;  %v5029_v43 = vpop.f32.mrf.mxu0  ;;  %v14807_v16 = vadd.f32 %v11852_v9, %v14736_v23 }
 0x238   : > { %v5030_v40 = vadd.f32 %v5029_v43, %v4869_v18 }
 0x239   : > { %v11929_v3 = vpop.f32.mrf.mxu1  ;;  %v5158_v13 = vmax.f32 %v5038_v25, 0.0  ;;  %v4880_v14 = vadd.f32 %v11928_v38, %v4719_v45  ;;  %v12295_v28 = vpop.f32.mrf.mxu0  ;;  %v11870_v45 = vadd.f32 %v14701_v53, %v14699_v47 }
 0x23a   : > { %v5156_v8 = vmax.f32 %v5030_v40, 0.0 }
 0x23b   : > { %v11930_v54 = vpop.f32.mrf.mxu1  ;;  %v11759_v32 = vpack.c.bf16 %v5158_v13, %v5158_v13  ;;  %v5041_v35 = vadd.f32 %v12295_v28, %v4880_v14  ;;  %v5032_v17 = vpop.f32.mrf.mxu0  ;;  %v14832_v38 = vadd.f32 %v11870_v45, %v14736_v23  ;;  %v14844_v14 = vadd.f32 %v11876_v2, %v14736_v23 }
 0x23c   : > { %v11757_v18 = vpack.c.bf16 %v5156_v8, %v5156_v8  ;;  %v5033_v19 = vadd.f32 %v5032_v17, %v4872_v20  ;;  %v11931_v37 = vadd.f32 %v11930_v54, %v11929_v3  ;;  %v14854_v45 = vadd.f32 %v11882_v34, %v14736_v23 }
 0x23d   : > { %v11932_v29 = vpop.f32.mrf.mxu1  ;;  %v5302_v4 = vshrl.u32 %v11759_v32, 16  ;;  %v5159_v36 = vmax.f32 %v5041_v35, 0.0  ;;  %v5305_v53 = vshll.u32 %v11759_v32, 16 }
 0x23e   : > { %v5285_v9 = vshrl.u32 %v11757_v18, 16  ;;  %v5157_v25 = vmax.f32 %v5033_v19, 0.0  ;;  %v5288_v3 = vshll.u32 %v11757_v18, 16  ;;  %v4885_v32 = vadd.f32 %v11931_v37, %v14754_v30 }
 0x23f   : > { %v11933_v0 = vpop.f32.mrf.mxu1  ;;  %v5304_v47 = vrot.slane %v5302_v4, 7  ;;  %v11760_v43 = vpack.c.bf16 %v5159_v36, %v5159_v36 }
 0x240   : > { %v5287_v27 = vrot.slane %v5285_v9, 7  ;;  %v11758_v13 = vpack.c.bf16 %v5157_v25, %v5157_v25  ;;  %v11934_v63 = vadd.f32 %v11933_v0, %v11932_v29  ;;  %v5615_v0 = vld [vmem:[#allocation2 + $0x20] sm:$0x1] }
 0x241   : > { %v5307_v40 = vor.u32 %v5305_v53, %v5304_v47  ;;  %v5310_v10 = vshrl.u32 %v11760_v43, 16  ;;  %v5313_v18 = vshll.u32 %v11760_v43, 16  ;;  %v5308_v19 = vrot.slane %v5304_v47, 4  ;;  %v5608_v53 = vld [vmem:[#allocation2 + $0x14] sm:$0x1] }
 0x242   : > { %v5290_v28 = vor.u32 %v5288_v3, %v5287_v27  ;;  %v5293_v8 = vshrl.u32 %v11758_v13, 16  ;;  %v5296_v36 = vshll.u32 %v11758_v13, 16  ;;  %v5291_v43 = vrot.slane %v5287_v27, 4 }
 0x243   : > { %v5612_v54 = vsel %vm12814_vm10, %v5307_v40, %v5611_v31  ;;  %v5312_v17 = vrot.slane %v5310_v10, 7  ;;  %v4888_v31 = vadd.f32 %v11934_v63, %v14759_v33 }
 0x244   : > { %5613 = vst [vmem:[#allocation2 + $0x18] sm:$0xf] %v5612_v54  ;;  %v5605_v29 = vsel %vm12814_vm10, %v5290_v28, %v5604_v61  ;;  %v5295_v2 = vrot.slane %v5293_v8, 7  ;;  %v14866_v54 = vadd.f32 %v14715_v5, %v14736_v23  ;;  %v14875_v8 = vadd.f32 %v14717_v58, %v14736_v23 }
 0x245   : > { %v11935_v20 = vpop.f32.mrf.mxu1  ;;  %5606 = vst [vmem:[#allocation2 + $0xc] sm:$0xf] %v5605_v29  ;;  %v5315_v30 = vor.u32 %v5313_v18, %v5312_v17  ;;  %v5317_v37 = vrot.slane %v5312_v17, 4  ;;  %v14885_v18 = vadd.f32 %v14721_v49, %v14736_v23 }
 0x246   : > { %v5298_v55 = vor.u32 %v5296_v36, %v5295_v2  ;;  %v5300_v3 = vrot.slane %v5295_v2, 4 }
 0x247   : > { %v11936_v35 = vpop.f32.mrf.mxu1  ;;  %v12298_v24 = vpop.f32.mrf.mxu0  ;;  %v5316_v47 = vsel %vm12828_vm11, %v5308_v19, %v5315_v30  ;;  %v5616_v13 = vsel %vm12758_vm4, %v5317_v37, %v5615_v0  ;;  %v5618_v37 = vld [vmem:[#allocation2 + $0x24] sm:$0xf] }
 0x248   : > { %v11937_v4 = vadd.f32 %v11936_v35, %v11935_v20  ;;  %v5299_v33 = vsel %vm12828_vm11, %v5291_v43, %v5298_v55  ;;  %5614 = vst.msk [vmem:[#allocation2 + $0x1c] sm:$0xf] %vm334_vm0, %v5316_v47  ;;  %5617 = vst [vmem:[#allocation2 + $0x20] sm:$0x1] %v5616_v13 }
 0x249   : > { %v11938_v9 = vpop.f32.mrf.mxu1  ;;  %v5045_v25 = vpop.f32.mrf.mxu0  ;;  %5607 = vst.msk [vmem:[#allocation2 + $0x10] sm:$0xf] %vm334_vm0, %v5299_v33 }
 0x24a   : > { %v4893_v34 = vadd.f32 %v11937_v4, %v14763_v59  ;;  %v5046_v40 = vadd.f32 %v5045_v25, %v4885_v32  ;;  %v5609_v59 = vsel %vm12758_vm4, %v5300_v3, %v5608_v53  ;;  %v14879_v32 = vadd.f32 %v14719_v44, %v14736_v23 }
 0x24b   : > { %v11939_v20 = vpop.f32.mrf.mxu1  ;;  %v12299_v61 = vpop.f32.mrf.mxu0  ;;  %5610 = vst [vmem:[#allocation2 + $0x14] sm:$0x1] %v5609_v59  ;;  %v6614_v44 = vld [vmem:[#allocation2 + $0x18] sm:$0xf] }
 0x24c   : > { %v5054_v10 = vadd.f32 %v12298_v24, %v4893_v34  ;;  %v11940_v28 = vadd.f32 %v11939_v20, %v11938_v9  ;;  %v5160_v27 = vmax.f32 %v5046_v40, 0.0  ;;  %v14889_v24 = vadd.f32 %v14723_v39, %v14736_v23  ;;  %v14891_v19 = vld [vmem:[#allocation2 + $0x18] sm:$0xe]  ;;  %6680 = vrot.lane.b32.xlu0 %v6614_v44, %s12692_s19  ;;  %v14899_v55 = vld [vmem:[#allocation2 + $0xc] sm:$0xe] }
 0x24d   : > { %v11941_v63 = vpop.f32.mrf.mxu1  ;;  %v5048_v35 = vpop.f32.mrf.mxu0  ;;  %v14893_v2 = vld [vmem:[#allocation2 + $0x18] sm:$0xf]  ;;  %v11550_v49 = vrot.slane %v14891_v19, 9  ;;  %v6612_v47 = vld [vmem:[#allocation2 + $0xc] sm:$0xf] }
 0x24e   : > { %v5162_v5 = vmax.f32 %v5054_v10, 0.0  ;;  %v4896_v17 = vadd.f32 %v11940_v28, %v14766_v50  ;;  %v11761_v58 = vpack.c.bf16 %v5160_v27, %v5160_v27  ;;  %v5049_v4 = vadd.f32 %v5048_v35, %v4888_v31  ;;  %v12511_v10 = vld [vmem:[%s17463_s3 + $0x68] sm:$0xff]  }
 0x24f   : > { %v11942_v29 = vpop.f32.mrf.mxu1  ;;  %v5877_v23 = vshrl.u32 %v14893_v2, 16  ;;  %v6615_v27 = vld [vmem:[#allocation2 + $0x1c] sm:$0xf]  ;;  %12037 = vmatprep.subr.bf16.mxu1 %v12511_v10  ;;  %v12512_v44 = vld [vmem:[%s17463_s3 + $0x28] sm:$0xff]  }
 0x250   : > { %v11763_v36 = vpack.c.bf16 %v5162_v5, %v5162_v5  ;;  %v5057_v0 = vadd.f32 %v12299_v61, %v4896_v17  ;;  %v11943_v9 = vadd.f32 %v11942_v29, %v11941_v63  ;;  %v5319_v50 = vshrl.u32 %v11761_v58, 16  ;;  %6676 = vrot.lane.b32.xlu0 %v6612_v47, %s12692_s19  ;;  %v5625_v17 = vld [vmem:[#allocation2 + $0x30] sm:$0xf]  ;;  %6682 = vrot.lane.b32.xlu1 %v6615_v27, %s12692_s19 }
 0x251   : > { %v5322_v53 = vshll.u32 %v11761_v58, 16  ;;  %v5161_v30 = vmax.f32 %v5049_v4, 0.0  ;;  %v11944_v39 = vpop.f32.mrf.mxu1  ;;  %v14901_v13 = vrot.slane %v5877_v23, 4  ;;  %v5880_v61 = vshll.u32 %v14893_v2, 16  ;;  %v5622_v23 = vld [vmem:[#allocation2 + $0x2c] sm:$0x1]  ;;  %12038 = vmatpush3.bf16.msra.mxu1 %v12512_v44 }
 0x252   : > { %v5336_v25 = vshrl.u32 %v11763_v36, 16  ;;  %v5339_v34 = vshll.u32 %v11763_v36, 16  ;;  %v5163_v31 = vmax.f32 %v5057_v0, 0.0  ;;  %v4901_v43 = vadd.f32 %v11943_v9, %v14774_v11  ;;  %v7304_v11 = vld [vmem:[#allocation2 + $0x1c] sm:$0xf] }
 0x253   : > { %v5321_v3 = vrot.slane %v5319_v50, 7  ;;  %v11762_v40 = vpack.c.bf16 %v5161_v30, %v5161_v30  ;;  %v11945_v20 = vpop.f32.mrf.mxu1  ;;  %v7305_v30 = vld [vmem:[#allocation2 + $0x20] sm:$0x1]  ;;  %v6613_v10 = vld [vmem:[#allocation2 + $0x10] sm:$0xf] }
 0x254   : > { %v5338_v28 = vrot.slane %v5336_v25, 7  ;;  %v11764_v33 = vpack.c.bf16 %v5163_v31, %v5163_v31  ;;  %v11946_v59 = vadd.f32 %v11945_v20, %v11944_v39  ;;  %6678 = vrot.lane.b32.xlu1 %v6613_v10, %s12692_s19 }
 0x255   : > { %v5324_v5 = vor.u32 %v5322_v53, %v5321_v3  ;;  %v5325_v35 = vrot.slane %v5321_v3, 4  ;;  %v5327_v58 = vshrl.u32 %v11762_v40, 16  ;;  %v5330_v4 = vshll.u32 %v11762_v40, 16 }
 0x256   : > { %v5341_v36 = vor.u32 %v5339_v34, %v5338_v28  ;;  %v5342_v0 = vrot.slane %v5338_v28, 4  ;;  %v5344_v9 = vshrl.u32 %v11764_v33, 16  ;;  %v5347_v50 = vshll.u32 %v11764_v33, 16  ;;  %v14918_v33 = vld [vmem:[#allocation2 + $0x10] sm:$0xf] }
 0x257   : > { %v5619_v53 = vsel %vm12814_vm10, %v5324_v5, %v5618_v37  ;;  %v5329_v39 = vrot.slane %v5327_v58, 7  ;;  %v4904_v3 = vadd.f32 %v11946_v59, %v14779_v41  ;;  %v7405_v40 = vrot.slane %v7304_v11, 5  ;;  %v5629_v5 = vld [vmem:[#allocation2 + $0x38] sm:$0x1] }
 0x258   : > { %5620 = vst [vmem:[#allocation2 + $0x24] sm:$0xf] %v5619_v53  ;;  %v5626_v20 = vsel %vm12814_vm10, %v5341_v36, %v5625_v17  ;;  %v5346_v34 = vrot.slane %v5344_v9, 7  ;;  %v7408_v28 = vrot.slane %v7305_v30, 5  ;;  %v5787_v53 = vld [vmem:[#allocation2 + $0x1c] sm:$0xf] }
 0x259   : > { %v11947_v29 = vpop.f32.mrf.mxu1  ;;  %5627 = vst [vmem:[#allocation2 + $0x30] sm:$0xf] %v5626_v20  ;;  %v5332_v37 = vor.u32 %v5330_v4, %v5329_v39  ;;  %v5334_v27 = vrot.slane %v5329_v39, 4  ;;  %v7406_v41 = vsel %vm13288_vm14, %v11550_v49, %v7405_v40  ;;  %v7407_v59 = vrot.slane %v7405_v40, 4  ;;  %v7302_v4 = vld [vmem:[#allocation2 + $0x14] sm:$0x1] }
 0x25a   : > { %v5349_v11 = vor.u32 %v5347_v50, %v5346_v34  ;;  %v5351_v17 = vrot.slane %v5346_v34, 4  ;;  %7512 = vrot.lane.b32.xlu0 %v7406_v41, %s12692_s19  ;;  %v7398_v50 = vrot.slane %v14918_v33, 5  ;;  %v7401_v34 = vrot.slane %v7302_v4, 5 }
 0x25b   : > { %v12302_v25 = vpop.f32.mrf.mxu0  ;;  %v11948_v31 = vpop.f32.mrf.mxu1  ;;  %v5333_v36 = vsel %vm12828_vm11, %v5325_v35, %v5332_v37  ;;  %v5623_v9 = vsel %vm12758_vm4, %v5334_v27, %v5622_v23  ;;  %v7409_v49 = vsel %vm13288_vm14, %v7407_v59, %v7408_v28  ;;  %v5886_v37 = vshll.u32 %v5787_v53, 16 }
 0x25c   : > { %v11949_v47 = vadd.f32 %v11948_v31, %v11947_v29  ;;  %5621 = vst.msk [vmem:[#allocation2 + $0x28] sm:$0xf] %vm334_vm0, %v5333_v36  ;;  %5624 = vst [vmem:[#allocation2 + $0x2c] sm:$0x1] %v5623_v9  ;;  %7514 = vrot.lane.b32.xlu1 %v7409_v49, %s12692_s19  ;;  %v7400_v20 = vrot.slane %v7398_v50, 4 }
 0x25d   : > { %v5061_v58 = vpop.f32.mrf.mxu0  ;;  %v11950_v63 = vpop.f32.mrf.mxu1 }
 0x25e   : > { %v5062_v29 = vadd.f32 %v5061_v58, %v4901_v43  ;;  %v4909_v44 = vadd.f32 %v11949_v47, %v14783_v56  ;;  %v5350_v56 = vsel %vm12828_vm11, %v5342_v0, %v5349_v11  ;;  %v5630_v43 = vsel %vm12758_vm4, %v5351_v17, %v5629_v5 }
 0x25f   : > { %v12303_v30 = vpop.f32.mrf.mxu0  ;;  %v11951_v19 = vpop.f32.mrf.mxu1  ;;  %5628 = vst.msk [vmem:[#allocation2 + $0x34] sm:$0xf] %vm334_vm0, %v5350_v56  ;;  %5631 = vst [vmem:[#allocation2 + $0x38] sm:$0x1] %v5630_v43  ;;  %v5882_v0 = vrot.slane %v5880_v61, 5  ;;  %v5890_v58 = vshrl.u32 %v5787_v53, 16 }
 0x260   : > { %v5164_v35 = vmax.f32 %v5062_v29, 0.0  ;;  %v5070_v39 = vadd.f32 %v12302_v25, %v4909_v44  ;;  %v11952_v31 = vadd.f32 %v11951_v19, %v11950_v63  ;;  %v7402_v63 = vsel %vm13288_vm14, %v7400_v20, %v7401_v34  ;;  %v6618_v29 = vld [vmem:[#allocation2 + $0x30] sm:$0xf]  ;;  %v12513_v20 = vld [vmem:[%s17463_s3 + $0x60] sm:$0xff]   ;;  %v5639_v34 = vld [vmem:[#allocation2 + $0x48] sm:$0xf] }
 0x261   : > { %v5064_v23 = vpop.f32.mrf.mxu0  ;;  %v11953_v40 = vpop.f32.mrf.mxu1  ;;  %v5883_v5 = vor.u32 %v5882_v0, %v14901_v13  ;;  %7510 = vrot.lane.b32.xlu1 %v7402_v63, %s12692_s19  ;;  %6688 = vrot.lane.b32.xlu0 %v6618_v29, %s12692_s19  ;;  %v5632_v13 = vld [vmem:[#allocation2 + $0x3c] sm:$0xf]  ;;  %v5892_v43 = vrot.slane %v5890_v58, 4  ;;  %v5636_v58 = vld [vmem:[#allocation2 + $0x44] sm:$0x1] }
 0x262   : > { %v11765_v47 = vpack.c.bf16 %v5164_v35, %v5164_v35  ;;  %v5166_v10 = vmax.f32 %v5070_v39, 0.0  ;;  %v5065_v28 = vadd.f32 %v5064_v23, %v4904_v3  ;;  %v4912_v25 = vadd.f32 %v11952_v31, %v14793_v42  ;;  %12039 = vmatprep.subr.bf16.mxu1 %v12513_v20 }
 0x263   : > { %v11954_v27 = vpop.f32.mrf.mxu1  ;;  %v5884_v42 = vrot.slane %v5883_v5, 4  ;;  %v5888_v3 = vrot.slane %v5886_v37, 5  ;;  %v12514_v37 = vld [vmem:[%s17463_s3 + $0x20] sm:$0xff]  }
 0x264   : > { %v5353_v41 = vshrl.u32 %v11765_v47, 16  ;;  %v5356_v59 = vshll.u32 %v11765_v47, 16  ;;  %v11767_v11 = vpack.c.bf16 %v5166_v10, %v5166_v10  ;;  %v5165_v17 = vmax.f32 %v5065_v28, 0.0  ;;  %12040 = vmatpush3.bf16.msra.mxu1 %v12514_v37 }
 0x265   : > { %v5073_v2 = vadd.f32 %v12303_v30, %v4912_v25  ;;  %v11955_v61 = vadd.f32 %v11954_v27, %v11953_v40  ;;  %v11956_v44 = vpop.f32.mrf.mxu1  ;;  %v5889_v30 = vsel %vm12808_vm9, %v5884_v42, %v5888_v3  ;;  %v12515_v42 = vld [vmem:[%s17463_s3 + $0x58] sm:$0xff]  }
 0x266   : > { %v5355_v4 = vrot.slane %v5353_v41, 7  ;;  %v5370_v36 = vshrl.u32 %v11767_v11, 16  ;;  %v5373_v9 = vshll.u32 %v11767_v11, 16  ;;  %v11766_v19 = vpack.c.bf16 %v5165_v17, %v5165_v17  ;;  %v6619_v40 = vld [vmem:[#allocation2 + $0x34] sm:$0xf]  ;;  %6220 = vrot.lane.b32.xlu0 %v5889_v30, %s12692_s19  ;;  %12041 = vmatprep.subr.bf16.mxu1 %v12515_v42 }
 0x267   : > { %v5167_v49 = vmax.f32 %v5073_v2, 0.0  ;;  %v11957_v53 = vpop.f32.mrf.mxu1  ;;  %v4917_v56 = vadd.f32 %v11955_v61, %v14797_v15  ;;  %6690 = vrot.lane.b32.xlu1 %v6619_v40, %s12692_s19  ;;  %v5893_v15 = vor.u32 %v5892_v43, %v5888_v3  ;;  %v17483_v43 = vrot.slane %v14899_v55, 9  ;;  %v5643_v40 = vld [vmem:[#allocation2 + $0x50] sm:$0x1]  ;;  %v7700_v42 = vld [vmem:[#allocation2 + $0x18] sm:$0xf] }
 0x268   : > { %v5358_v35 = vor.u32 %v5356_v59, %v5355_v4  ;;  %v5359_v39 = vrot.slane %v5355_v4, 4  ;;  %v14954_v23 = vrot.slane %v5370_v36, 7  ;;  %v5361_v31 = vshrl.u32 %v11766_v19, 16  ;;  %v5788_v59 = vld [vmem:[#allocation2 + $0x20] sm:$0x1] }
 0x269   : > { %v5364_v0 = vshll.u32 %v11766_v19, 16  ;;  %v11768_v47 = vpack.c.bf16 %v5167_v49, %v5167_v49  ;;  %v11958_v10 = vadd.f32 %v11957_v53, %v11956_v44  ;;  %v14969_v61 = vrot.slane %v5893_v15, 4  ;;  %v7701_v44 = vld [vmem:[#allocation2 + $0x1c] sm:$0xf] }
 0x26a   : > { %v5633_v25 = vsel %vm12814_vm10, %v5358_v35, %v5632_v13  ;;  %v5375_v27 = vor.u32 %v5373_v9, %v14954_v23  ;;  %v5376_v63 = vrot.slane %v14954_v23, 4  ;;  %v5363_v5 = vrot.slane %v5361_v31, 7  ;;  %v12516_v13 = vld [vmem:[%s17463_s3 + $0x18] sm:$0xff]  }
 0x26b   : > { %5634 = vst [vmem:[#allocation2 + $0x3c] sm:$0xf] %v5633_v25  ;;  %v5378_v11 = vshrl.u32 %v11768_v47, 16  ;;  %v5381_v17 = vshll.u32 %v11768_v47, 16  ;;  %v4920_v2 = vadd.f32 %v11958_v10, %v14800_v26  ;;  %v5896_v30 = vshll.u32 %v5788_v59, 16  ;;  %12042 = vmatpush3.bf16.msra.mxu1 %v12516_v13 }
 0x26c   : > { %v5640_v3 = vsel %vm12814_vm10, %v5375_v27, %v5639_v34  ;;  %v5366_v4 = vor.u32 %v5364_v0, %v5363_v5  ;;  %v5368_v36 = vrot.slane %v5363_v5, 4  ;;  %v7399_v35 = vsel %vm13288_vm14, %v17483_v43, %v7398_v50  ;;  %v5716_v27 = vld [vmem:[#allocation2] sm:$0xf]  ;;  %v6215_v5 = vpop.permute.xlu1 %6214  ;;  %v12519_v43 = vld [vmem:[%s17463_s3 + $0x10] sm:$0xff]  }
 0x26d   : > { %v11959_v28 = vpop.f32.mrf.mxu1  ;;  %5641 = vst [vmem:[#allocation2 + $0x48] sm:$0xf] %v5640_v3  ;;  %v5380_v26 = vrot.slane %v5378_v11, 7  ;;  %7508 = vrot.lane.b32.xlu0 %v7399_v35, %s12692_s19  ;;  %v7758_v34 = vshll.u32 %v7701_v44, 16  ;;  %v5898_v0 = vrot.slane %v5896_v30, 5  ;;  %v7762_v25 = vshrl.u32 %v7701_v44, 16 }
 0x26e   : > { %v5367_v23 = vsel %vm12828_vm11, %v5359_v39, %v5366_v4  ;;  %v5637_v31 = vsel %vm12758_vm4, %v5368_v36, %v5636_v58  ;;  %v12517_v39 = vld [vmem:[%s17463_s3 + $0x50] sm:$0xff]   ;;  %5748 = vst.msk [vmem:[#allocation3] sm:$0xf] %vm334_vm0, %v5716_v27  ;;  %v5717_v3 = vld [vmem:[#allocation2 + $0x4] sm:$0xf]  ;;  %v12518_v44 = vld [vmem:[%s17463_s3 + $0xf8] sm:$0xff]  }
 0x26f   : > { %v12306_v41 = vpop.f32.mrf.mxu0  ;;  %v11960_v29 = vpop.f32.mrf.mxu1  ;;  %5635 = vst.msk [vmem:[#allocation2 + $0x40] sm:$0xf] %vm334_vm0, %v5367_v23  ;;  %5638 = vst [vmem:[#allocation2 + $0x44] sm:$0x1] %v5637_v31  ;;  %v5383_v55 = vor.u32 %v5381_v17, %v5380_v26  ;;  %v5385_v33 = vrot.slane %v5380_v26, 4  ;;  %v14995_v37 = vrot.slane %v7758_v34, 5  ;;  %12043 = vmatprep.subr.bf16.mxu1 %v12517_v39  ;;  %v5899_v4 = vsel %vm12808_vm9, %v14969_v61, %v5898_v0 }
 0x270   : > { %v11961_v19 = vadd.f32 %v11960_v29, %v11959_v28  ;;  %v7764_v36 = vrot.slane %v7762_v25, 4  ;;  %5749 = vst.msk [vmem:[#allocation3 + $0x14] sm:$0xf] %vm334_vm0, %v5717_v3  ;;  %6222 = vrot.lane.b32.xlu1 %v5899_v4, %s12692_s19  ;;  %12145 = vmatprep.subr.bf16.mxu0 %v12518_v44  ;;  %v12520_v34 = vld [vmem:[%s17463_s3 + $0xb8] sm:$0xff]  }
 0x271   : > { %v5077_v9 = vpop.f32.mrf.mxu0  ;;  %v11962_v53 = vpop.f32.mrf.mxu1  ;;  %v5384_v58 = vsel %vm12828_vm11, %v5376_v63, %v5383_v55  ;;  %v5644_v59 = vsel %vm12758_vm4, %v5385_v33, %v5643_v40  ;;  %6309 = vst.msk [vmem:[#allocation3 + $0x14] sm:$0xf] %vm1604_vm15, %v6215_v5  ;;  %v7752_v40 = vshll.u32 %v7700_v42, 16  ;;  %v5646_v55 = vld [vmem:[#allocation2 + $0x54] sm:$0xf]  ;;  %12044 = vmatpush3.bf16.msra.mxu1 %v12519_v43  ;;  %12146 = vmatpush3.bf16.msra.mxu0 %v12520_v34  ;;  %v12523_v43 = vld [vmem:[%s17463_s3 + $0x8] sm:$0xff]  }
 0x272   : > { %v5078_v49 = vadd.f32 %v5077_v9, %v4917_v56  ;;  %v4925_v56 = vadd.f32 %v11961_v19, %v14804_v46  ;;  %v7702_v46 = vld [vmem:[#allocation2 + $0x20] sm:$0x1]  ;;  %5642 = vst.msk [vmem:[#allocation2 + $0x4c] sm:$0xf] %vm334_vm0, %v5384_v58  ;;  %5645 = vst [vmem:[#allocation2 + $0x50] sm:$0x1] %v5644_v59  ;;  %v7765_v61 = vor.u32 %v7764_v36, %v14995_v37 }
 0x273   : > { %v12307_v20 = vpop.f32.mrf.mxu0  ;;  %v11963_v47 = vpop.f32.mrf.mxu1  ;;  %v7768_v26 = vshll.u32 %v7702_v46, 16  ;;  %v12521_v46 = vld [vmem:[%s17463_s3 + $0x48] sm:$0xff]   ;;  %v5650_v36 = vld [vmem:[#allocation2 + $0x5c] sm:$0x1]  ;;  %v5785_v34 = vld [vmem:[#allocation2 + $0x14] sm:$0x1] }
 0x274   : > { %v5168_v50 = vmax.f32 %v5078_v49, 0.0  ;;  %v5086_v10 = vadd.f32 %v12306_v41, %v4925_v56  ;;  %v11964_v15 = vadd.f32 %v11963_v47, %v11962_v53  ;;  %v6213_v41 = vpop.permute.xlu0 %6212  ;;  %v7766_v0 = vrot.slane %v7765_v61, 4  ;;  %12045 = vmatprep.subr.bf16.mxu1 %v12521_v46  ;;  %v7309_v46 = vld [vmem:[#allocation2 + $0x30] sm:$0xe] }
 0x275   : > { %v5080_v28 = vpop.f32.mrf.mxu0  ;;  %6308 = vst.msk [vmem:[#allocation3] sm:$0xf] %vm1604_vm15, %v6213_v41  ;;  %v7770_v31 = vrot.slane %v7768_v26, 5  ;;  %12046 = vmatpush3.bf16.msra.mxu1 %v12523_v43 }
 0x276   : > { %v11769_v11 = vpack.c.bf16 %v5168_v50, %v5168_v50  ;;  %v5081_v17 = vadd.f32 %v5080_v28, %v4920_v2  ;;  %v5170_v63 = vmax.f32 %v5086_v10, 0.0  ;;  %v4928_v2 = vadd.f32 %v11964_v15, %v14807_v16 }
 0x277   : > { %v11965_v29 = vpop.f32.mrf.mxu1  ;;  %v7749_v16 = vshrl.u32 %v7700_v42, 16  ;;  %v7771_v5 = vsel %vm12808_vm9, %v7766_v0, %v7770_v31  ;;  %v7754_v42 = vrot.slane %v7752_v40, 5  ;;  %v6617_v31 = vld [vmem:[#allocation2 + $0x28] sm:$0xf] }
 0x278   : > { %v5387_v9 = vshrl.u32 %v11769_v11, 16  ;;  %v5390_v19 = vshll.u32 %v11769_v11, 16  ;;  %v5169_v13 = vmax.f32 %v5081_v17, 0.0  ;;  %v11771_v53 = vpack.c.bf16 %v5170_v63, %v5170_v63  ;;  %v5653_v11 = vld [vmem:[#allocation2 + $0x60] sm:$0xf]  ;;  %8134 = vrot.lane.b32.xlu1 %v7771_v5, %s12692_s19 }
 0x279   : > { %v11966_v49 = vpop.f32.mrf.mxu1  ;;  %v5089_v30 = vadd.f32 %v12307_v20, %v4928_v2  ;;  %v7751_v58 = vrot.slane %v7749_v16, 4  ;;  %v5784_v63 = vld [vmem:[#allocation2 + $0x10] sm:$0xf]  ;;  %v5872_v5 = vshll.u32 %v5785_v34, 16 }
 0x27a   : > { %v5389_v35 = vrot.slane %v5387_v9, 7  ;;  %v11770_v23 = vpack.c.bf16 %v5169_v13, %v5169_v13  ;;  %v5404_v33 = vshrl.u32 %v11771_v53, 16  ;;  %v5407_v50 = vshll.u32 %v11771_v53, 16  ;;  %v12522_v13 = vld [vmem:[%s17463_s3 + $0xf0] sm:$0xff]  }
 0x27b   : > { %v11968_v56 = vpop.f32.mrf.mxu1  ;;  %v5171_v20 = vmax.f32 %v5089_v30, 0.0  ;;  %v11967_v41 = vadd.f32 %v11966_v49, %v11965_v29  ;;  %v7755_v30 = vor.u32 %v7754_v42, %v7751_v58  ;;  %v5783_v49 = vld [vmem:[#allocation2 + $0xc] sm:$0xf]  ;;  %12147 = vmatprep.subr.bf16.mxu0 %v12522_v13 }
 0x27c   : > { %v5392_v47 = vor.u32 %v5390_v19, %v5389_v35  ;;  %v5393_v39 = vrot.slane %v5389_v35, 4  ;;  %v5395_v10 = vshrl.u32 %v11770_v23, 16  ;;  %v5398_v28 = vshll.u32 %v11770_v23, 16  ;;  %6686 = vrot.lane.b32.xlu1 %v6617_v31, %s12692_s19 }
 0x27d   : > { %v11969_v15 = vpop.f32.mrf.mxu1  ;;  %v5406_v25 = vrot.slane %v5404_v33, 7  ;;  %v11772_v27 = vpack.c.bf16 %v5171_v20, %v5171_v20  ;;  %v4933_v40 = vadd.f32 %v11967_v41, %v14811_v7  ;;  %v7756_v20 = vrot.slane %v7755_v30, 4 }
 0x27e   : > { %v5647_v59 = vsel %vm12814_vm10, %v5392_v47, %v5646_v55  ;;  %v5397_v17 = vrot.slane %v5395_v10, 7  ;;  %v11970_v61 = vadd.f32 %v11969_v15, %v11968_v56  ;;  %v5862_v55 = vshll.u32 %v5784_v63, 16 }
 0x27f   : > { %5648 = vst [vmem:[#allocation2 + $0x54] sm:$0xf] %v5647_v59  ;;  %v5409_v4 = vor.u32 %v5407_v50, %v5406_v25  ;;  %v5410_v2 = vrot.slane %v5406_v25, 4  ;;  %v5412_v9 = vshrl.u32 %v11772_v27, 16  ;;  %v5415_v19 = vshll.u32 %v11772_v27, 16 }
 0x280   : > { %v5400_v26 = vor.u32 %v5398_v28, %v5397_v17  ;;  %v5402_v53 = vrot.slane %v5397_v17, 4  ;;  %v5657_v50 = vld [vmem:[#allocation2 + $0x68] sm:$0x1]  ;;  %v5866_v47 = vshrl.u32 %v5784_v63, 16  ;;  %v7761_v25 = vsel %vm12808_vm9, %v7756_v20, %v14995_v37  ;;  %v7310_v59 = vld [vmem:[#allocation2 + $0x34] sm:$0xf] }
 0x281   : > { %v15029_v3 = vpop.f32.mrf.mxu0  ;;  %v11971_v44 = vpop.f32.mrf.mxu1  ;;  %v5654_v35 = vsel %vm12814_vm10, %v5409_v4, %v5653_v11  ;;  %v5414_v23 = vrot.slane %v5412_v9, 7  ;;  %v5853_v58 = vshrl.u32 %v5783_v49, 16  ;;  %v12524_v17 = vld [vmem:[%s17463_s3 + $0xb0] sm:$0xff]   ;;  %8132 = vrot.lane.b32.xlu0 %v7761_v25, %s12692_s19  ;;  %v5856_v4 = vshll.u32 %v5783_v49, 16  ;;  %v7311_v37 = vld [vmem:[#allocation2 + $0x38] sm:$0x1] }
 0x282   : > { %5655 = vst [vmem:[#allocation2 + $0x60] sm:$0xf] %v5654_v35  ;;  %v5401_v56 = vsel %vm12828_vm11, %v5393_v39, %v5400_v26  ;;  %v5651_v33 = vsel %vm12758_vm4, %v5402_v53, %v5650_v36  ;;  %v15050_v39 = vrot.slane %v5862_v55, 5  ;;  %v5868_v27 = vrot.slane %v5866_v47, 4  ;;  %v12525_v36 = vld [vmem:[%s17463_s3 + $0x40] sm:$0xff]   ;;  %v12526_v9 = vld [vmem:[%s17463_s3 + $0xe8] sm:$0xff]   ;;  %12148 = vmatpush3.bf16.msra.mxu0 %v12524_v17 }
 0x283   : > { %v5093_v29 = vpop.f32.mrf.mxu0  ;;  %v11972_v16 = vpop.f32.mrf.mxu1  ;;  %5649 = vst.msk [vmem:[#allocation2 + $0x58] sm:$0xf] %vm334_vm0, %v5401_v56  ;;  %5652 = vst [vmem:[#allocation2 + $0x5c] sm:$0x1] %v5651_v33  ;;  %v5417_v7 = vor.u32 %v5415_v19, %v5414_v23  ;;  %v5419_v28 = vrot.slane %v5414_v23, 4  ;;  %v5874_v19 = vrot.slane %v5872_v5, 5  ;;  %v4936_v43 = vadd.f32 %v11970_v61, %v14814_v21  ;;  %12047 = vmatprep.subr.bf16.mxu1 %v12525_v36 }
 0x284   : > { %v5094_v15 = vadd.f32 %v5093_v29, %v4933_v40  ;;  %v5855_v13 = vrot.slane %v5853_v58, 4  ;;  %v11973_v26 = vadd.f32 %v11972_v16, %v11971_v44  ;;  %v5858_v49 = vrot.slane %v5856_v4, 5  ;;  %12149 = vmatprep.subr.bf16.mxu0 %v12526_v9  ;;  %v6616_v23 = vld [vmem:[#allocation2 + $0x24] sm:$0xf]  ;;  %v15077_v61 = vld [vmem:[#allocation2 + $0x28] sm:$0xf] }
 0x285   : > { %v15045_v0 = vpop.f32.mrf.mxu0  ;;  %v15047_v10 = vpop.f32.mrf.mxu1  ;;  %v5418_v42 = vsel %vm12828_vm11, %v5410_v2, %v5417_v7  ;;  %v5658_v41 = vsel %vm12758_vm4, %v5419_v28, %v5657_v50  ;;  %v5869_v2 = vor.u32 %v5868_v27, %v15050_v39  ;;  %v7419_v35 = vrot.slane %v7310_v59, 5  ;;  %v12527_v44 = vld [vmem:[%s17463_s3] sm:$0xff]   ;;  %6684 = vrot.lane.b32.xlu0 %v6616_v23, %s12692_s19  ;;  %v7308_v20 = vld [vmem:[#allocation2 + $0x2c] sm:$0x1]  ;;  %v5792_v4 = vld [vmem:[#allocation2 + $0x30] sm:$0xf] }
 0x286   : > { %v5172_v63 = vmax.f32 %v5094_v15, 0.0  ;;  %5656 = vst.msk [vmem:[#allocation2 + $0x64] sm:$0xf] %vm334_vm0, %v5418_v42  ;;  %5659 = vst [vmem:[#allocation2 + $0x68] sm:$0x1] %v5658_v41  ;;  %v4941_v40 = vadd.f32 %v11973_v26, %v14818_v52  ;;  %v7422_v34 = vrot.slane %v7311_v37, 5  ;;  %v5859_v50 = vor.u32 %v5858_v49, %v5855_v13  ;;  %12048 = vmatpush3.bf16.msra.mxu1 %v12527_v44 }
 0x287   : > { %v11975_v11 = vpop.f32.mrf.mxu1  ;;  %v5096_v53 = vpop.f32.mrf.mxu0  ;;  %v5870_v31 = vrot.slane %v5869_v2, 4  ;;  %v11552_v55 = vrot.slane %v7309_v46, 9  ;;  %v7421_v7 = vrot.slane %v7419_v35, 4  ;;  %v12528_v46 = vld [vmem:[%s17463_s3 + $0xa8] sm:$0xff]   ;;  %v7412_v41 = vrot.slane %v15077_v61, 5  ;;  %v12533_v36 = vld [vmem:[%s17463_s3 + $0xa0] sm:$0xff]  }
 0x288   : > { %v11773_v29 = vpack.c.bf16 %v5172_v63, %v5172_v63  ;;  %v5097_v21 = vadd.f32 %v5096_v53, %v4936_v43  ;;  %v5102_v52 = vadd.f32 %v15029_v3, %v4941_v40  ;;  %v5660_v27 = vld [vmem:[#allocation2 + $0x6c] sm:$0xf]  ;;  %v5860_v5 = vrot.slane %v5859_v50, 4  ;;  %v12532_v3 = vld [vmem:[%s17463_s3 + $0xe0] sm:$0xff]   ;;  %12150 = vmatpush3.bf16.msra.mxu0 %v12528_v46  ;;  %v12534_v13 = vld [vmem:[%s17463_s3 + $0xd8] sm:$0xff]  }
 0x289   : > { %v5875_v47 = vsel %vm12808_vm9, %v5870_v31, %v5874_v19  ;;  %v7420_v28 = vsel %vm13288_vm14, %v11552_v55, %v7419_v35  ;;  %v11976_v59 = vadd.f32 %v11975_v11, %v15047_v10  ;;  %v7423_v42 = vsel %vm13288_vm14, %v7421_v7, %v7422_v34  ;;  %12151 = vmatprep.subr.bf16.mxu0 %v12532_v3  ;;  %v5793_v43 = vld [vmem:[#allocation2 + $0x34] sm:$0xf]  ;;  %v5667_v50 = vld [vmem:[#allocation2 + $0x78] sm:$0xf] }
 0x28a   : > { %v11977_v30 = vpop.f32.mrf.mxu1  ;;  %v5421_v16 = vshrl.u32 %v11773_v29, 16  ;;  %v5424_v33 = vshll.u32 %v11773_v29, 16  ;;  %6218 = vrot.lane.b32.xlu1 %v5875_v47, %s12692_s19  ;;  %v5173_v58 = vmax.f32 %v5097_v21, 0.0  ;;  %v5174_v17 = vmax.f32 %v5102_v52, 0.0  ;;  %v5664_v44 = vld [vmem:[#allocation2 + $0x74] sm:$0x1] }
 0x28b   : > { %v7415_v63 = vrot.slane %v7308_v20, 5  ;;  %v5865_v9 = vsel %vm12808_vm9, %v5860_v5, %v15050_v39  ;;  %v4944_v53 = vadd.f32 %v11976_v59, %v14823_v48  ;;  %v7414_v29 = vrot.slane %v7412_v41, 4  ;;  %v7306_v5 = vld [vmem:[#allocation2 + $0x24] sm:$0xe]  ;;  %v5720_v59 = vld [vmem:[#allocation2 + $0x18] sm:$0xf] }
 0x28c   : > { %v11978_v56 = vpop.f32.mrf.mxu1  ;;  %v15087_v25 = vrot.slane %v5421_v16, 7  ;;  %v11774_v2 = vpack.c.bf16 %v5173_v58, %v5173_v58  ;;  %6216 = vrot.lane.b32.xlu0 %v5865_v9, %s12692_s19  ;;  %v11775_v26 = vpack.c.bf16 %v5174_v17, %v5174_v17  ;;  %v5925_v40 = vshrl.u32 %v5792_v4, 16  ;;  %12152 = vmatpush3.bf16.msra.mxu0 %v12533_v36  ;;  %5752 = vst.msk [vmem:[#allocation3 + $0x50] sm:$0xf] %vm334_vm0, %v5720_v59  ;;  %v5794_v9 = vld [vmem:[#allocation2 + $0x38] sm:$0x1] }
 0x28d   : > { %v11979_v49 = vadd.f32 %v11978_v56, %v11977_v30  ;;  %v5105_v48 = vadd.f32 %v15045_v0, %v4944_v53  ;;  %v7416_v30 = vsel %vm13288_vm14, %v7414_v29, %v7415_v63  ;;  %v5928_v47 = vshll.u32 %v5792_v4, 16  ;;  %12153 = vmatprep.subr.bf16.mxu0 %v12534_v13  ;;  %v12536_v0 = vld [vmem:[%s17463_s3 + $0xd0] sm:$0xff]   ;;  %v5721_v4 = vld [vmem:[#allocation2 + $0x1c] sm:$0xf]  ;;  %v12539_v59 = vld [vmem:[%s17463_s3 + $0x88] sm:$0xff]  }
 0x28e   : > { %v11980_v15 = vpop.f32.mrf.mxu1  ;;  %v5426_v10 = vor.u32 %v5424_v33, %v15087_v25  ;;  %v5427_v11 = vrot.slane %v15087_v25, 4  ;;  %v5429_v23 = vshrl.u32 %v11774_v2, 16  ;;  %v5432_v31 = vshll.u32 %v11774_v2, 16  ;;  %7522 = vrot.lane.b32.xlu1 %v7423_v42, %s12692_s19  ;;  %v12535_v33 = vld [vmem:[%s17463_s3 + $0x98] sm:$0xff]   ;;  %5753 = vst.msk [vmem:[#allocation3 + $0x64] sm:$0xf] %vm334_vm0, %v5721_v4 }
 0x28f   : > { %v5438_v34 = vshrl.u32 %v11775_v26, 16  ;;  %v5441_v55 = vshll.u32 %v11775_v26, 16  ;;  %v5927_v20 = vrot.slane %v5925_v40, 4  ;;  %v5934_v52 = vshll.u32 %v5793_v43, 16  ;;  %v7637_v13 = vld [vmem:[#allocation2 + $0x1c] sm:$0xf] }
 0x290   : > { %v11981_v37 = vpop.f32.mrf.mxu1  ;;  %v5661_v39 = vsel %vm12814_vm10, %v5426_v10, %v5660_v27  ;;  %v5431_v21 = vrot.slane %v5429_v23, 7  ;;  %7520 = vrot.lane.b32.xlu0 %v7420_v28, %s12692_s19  ;;  %v5175_v46 = vmax.f32 %v5105_v48, 0.0  ;;  %v5938_v25 = vshrl.u32 %v5793_v43, 16  ;;  %12154 = vmatpush3.bf16.msra.mxu0 %v12535_v33  ;;  %v12537_v26 = vld [vmem:[%s17463_s3 + $0x90] sm:$0xff]   ;;  %7669 = vst.msk [vmem:[#allocation3 + $0x20] sm:$0xf] %vm334_vm0, %v7637_v13 }
 0x291   : > { %5662 = vst [vmem:[#allocation2 + $0x6c] sm:$0xf] %v5661_v39  ;;  %v15130_v7 = vrot.slane %v5438_v34, 7  ;;  %v11982_v27 = vadd.f32 %v11981_v37, %v11980_v15  ;;  %v5930_v42 = vrot.slane %v5928_v47, 5  ;;  %v5936_v63 = vrot.slane %v5934_v52, 5  ;;  %12155 = vmatprep.subr.bf16.mxu0 %v12536_v0  ;;  %v12538_v23 = vld [vmem:[%s17463_s3 + $0xc8] sm:$0xff]  }
 0x292   : > { %v5434_v3 = vor.u32 %v5432_v31, %v5431_v21  ;;  %v5436_v17 = vrot.slane %v5431_v21, 4  ;;  %7518 = vrot.lane.b32.xlu1 %v7416_v30, %s12692_s19  ;;  %v11776_v10 = vpack.c.bf16 %v5175_v46, %v5175_v46  ;;  %v4949_v15 = vadd.f32 %v11979_v49, %v14827_v60  ;;  %v6622_v60 = vld [vmem:[#allocation2 + $0x48] sm:$0xf]  ;;  %v7636_v39 = vld [vmem:[#allocation2 + $0x18] sm:$0xf] }
 0x293   : > { %v5443_v36 = vor.u32 %v5441_v55, %v15130_v7  ;;  %v5444_v28 = vrot.slane %v15130_v7, 4  ;;  %v5931_v49 = vor.u32 %v5930_v42, %v5927_v20  ;;  %v5940_v43 = vrot.slane %v5938_v25, 4  ;;  %v6623_v34 = vld [vmem:[#allocation2 + $0x4c] sm:$0xf]  ;;  %7668 = vst.msk [vmem:[#allocation3 + $0xc] sm:$0xf] %vm334_vm0, %v7636_v39 }
 0x294   : > { %v15105_v19 = vpop.f32.mrf.mxu0  ;;  %v5435_v53 = vsel %vm12828_vm11, %v5427_v11, %v5434_v3  ;;  %v5665_v29 = vsel %vm12758_vm4, %v5436_v17, %v5664_v44  ;;  %v5446_v11 = vshrl.u32 %v11776_v10, 16  ;;  %v5449_v40 = vshll.u32 %v11776_v10, 16  ;;  %6696 = vrot.lane.b32.xlu0 %v6622_v60, %s12692_s19  ;;  %v5671_v48 = vld [vmem:[#allocation2 + $0x80] sm:$0x1]  ;;  %v7707_v20 = vld [vmem:[#allocation2 + $0x34] sm:$0xf]  ;;  %12156 = vmatpush3.bf16.msra.mxu0 %v12537_v26 }
 0x295   : > { %v15114_v35 = vpop.f32.mrf.mxu1  ;;  %v5668_v31 = vsel %vm12814_vm10, %v5443_v36, %v5667_v50  ;;  %5663 = vst.msk [vmem:[#allocation2 + $0x70] sm:$0xf] %vm334_vm0, %v5435_v53  ;;  %5666 = vst [vmem:[#allocation2 + $0x74] sm:$0x1] %v5665_v29  ;;  %v5932_v30 = vrot.slane %v5931_v49, 4  ;;  %v5941_v33 = vor.u32 %v5940_v43, %v5936_v63  ;;  %v5944_v50 = vshll.u32 %v5794_v9, 16  ;;  %12157 = vmatprep.subr.bf16.mxu0 %v12538_v23 }
 0x296   : > { %v5109_v56 = vpop.f32.mrf.mxu0  ;;  %5669 = vst [vmem:[#allocation2 + $0x78] sm:$0xf] %v5668_v31  ;;  %6698 = vrot.lane.b32.xlu1 %v6623_v34, %s12692_s19  ;;  %v11551_v21 = vrot.slane %v7306_v5, 9  ;;  %v5448_v47 = vrot.slane %v5446_v11, 7  ;;  %v5719_v3 = vld [vmem:[#allocation2 + $0x10] sm:$0xf] }
 0x297   : > { %v15122_v16 = vpop.f32.mrf.mxu1  ;;  %v5110_v55 = vadd.f32 %v5109_v56, %v4949_v15  ;;  %v4952_v56 = vadd.f32 %v11982_v27, %v14832_v38  ;;  %v5937_v5 = vsel %vm12808_vm9, %v5932_v30, %v5936_v63  ;;  %v5942_v17 = vrot.slane %v5941_v33, 4  ;;  %v12540_v38 = vld [vmem:[%s17463_s3 + $0xc0] sm:$0xff]   ;;  %5751 = vst.msk [vmem:[#allocation3 + $0x3c] sm:$0xf] %vm334_vm0, %v5719_v3  ;;  %v7708_v15 = vld [vmem:[#allocation2 + $0x38] sm:$0x1] }
 0x298   : > { %v15140_v37 = vpop.f32.mrf.mxu0  ;;  %v11985_v0 = vadd.f32 %v15122_v16, %v15114_v35  ;;  %v5946_v42 = vrot.slane %v5944_v50, 5  ;;  %v7413_v35 = vsel %vm13288_vm14, %v11551_v21, %v7412_v41  ;;  %v5718_v16 = vld [vmem:[#allocation2 + $0xc] sm:$0xf]  ;;  %v5451_v27 = vor.u32 %v5449_v40, %v5448_v47  ;;  %6228 = vrot.lane.b32.xlu0 %v5937_v5, %s12692_s19  ;;  %v7706_v26 = vld [vmem:[#allocation2 + $0x30] sm:$0xf]  ;;  %12158 = vmatpush3.bf16.msra.mxu0 %v12539_v59  ;;  %v12541_v43 = vld [vmem:[%s17463_s3 + $0x80] sm:$0xff]  }
 0x299   : > { %v15133_v58 = vpop.f32.mrf.mxu1  ;;  %v5176_v52 = vmax.f32 %v5110_v55, 0.0  ;;  %v5453_v4 = vrot.slane %v5448_v47, 4  ;;  %5750 = vst.msk [vmem:[#allocation3 + $0x28] sm:$0xf] %vm334_vm0, %v5718_v16  ;;  %v7806_v9 = vshll.u32 %v7707_v20, 16  ;;  %v7810_v13 = vshrl.u32 %v7707_v20, 16  ;;  %12159 = vmatprep.subr.bf16.mxu0 %v12540_v38 }
 0x29a   : > { %v5112_v46 = vpop.f32.mrf.mxu0  ;;  %v4957_v36 = vadd.f32 %v11985_v0, %v14836_v22  ;;  %v5947_v61 = vsel %vm12808_vm9, %v5942_v17, %v5946_v42  ;;  %v5452_v53 = vsel %vm12828_vm11, %v5444_v28, %v5451_v27  ;;  %v7816_v11 = vshll.u32 %v7708_v15, 16  ;;  %v5674_v55 = vld [vmem:[#allocation2 + $0x84] sm:$0xf]  ;;  %v5790_v3 = vld [vmem:[#allocation2 + $0x28] sm:$0xf] }
 0x29b   : > { %v15142_v2 = vpop.f32.mrf.mxu1  ;;  %v11777_v63 = vpack.c.bf16 %v5176_v52, %v5176_v52  ;;  %v5113_v41 = vadd.f32 %v5112_v46, %v4952_v56  ;;  %v5672_v22 = vsel %vm12758_vm4, %v5453_v4, %v5671_v48  ;;  %6230 = vrot.lane.b32.xlu1 %v5947_v61, %s12692_s19  ;;  %5670 = vst.msk [vmem:[#allocation2 + $0x7c] sm:$0xf] %vm334_vm0, %v5452_v53  ;;  %v15203_v39 = vrot.slane %v7806_v9, 5  ;;  %v5789_v53 = vld [vmem:[#allocation2 + $0x24] sm:$0xf] }
 0x29c   : > { %5673 = vst [vmem:[#allocation2 + $0x80] sm:$0x1] %v5672_v22  ;;  %v5118_v7 = vadd.f32 %v15105_v19, %v4957_v36  ;;  %v7812_v23 = vrot.slane %v7810_v13, 4  ;;  %7516 = vrot.lane.b32.xlu0 %v7413_v35, %s12692_s19  ;;  %v7797_v40 = vshrl.u32 %v7706_v26, 16  ;;  %v7800_v34 = vshll.u32 %v7706_v26, 16  ;;  %12160 = vmatpush3.bf16.msra.mxu0 %v12541_v43 }
 0x29d   : > { %v5455_v29 = vshrl.u32 %v11777_v63, 16  ;;  %v5458_v60 = vshll.u32 %v11777_v63, 16  ;;  %v5177_v28 = vmax.f32 %v5113_v41, 0.0  ;;  %v11988_v50 = vadd.f32 %v15142_v2, %v15133_v58  ;;  %v5791_v2 = vld [vmem:[#allocation2 + $0x2c] sm:$0x1] }
 0x29e   : > { %v5178_v48 = vmax.f32 %v5118_v7, 0.0  ;;  %v7813_v33 = vor.u32 %v7812_v23, %v15203_v39  ;;  %v7818_v47 = vrot.slane %v7816_v11, 5  ;;  %v7799_v52 = vrot.slane %v7797_v40, 4  ;;  %v5681_v63 = vld [vmem:[#allocation2 + $0x90] sm:$0xf] }
 0x29f   : > { %v15160_v44 = vpop.f32.mrf.mxu1  ;;  %v5457_v31 = vrot.slane %v5455_v29, 7  ;;  %v11778_v30 = vpack.c.bf16 %v5177_v28, %v5177_v28  ;;  %v7802_v17 = vrot.slane %v7800_v34, 5  ;;  %v4960_v42 = vadd.f32 %v11988_v50, %v14844_v14  ;;  %v5678_v36 = vld [vmem:[#allocation2 + $0x8c] sm:$0x1]  ;;  %v7704_v7 = vld [vmem:[#allocation2 + $0x28] sm:$0xf] }
 0x2a0   : > { %v11779_v0 = vpack.c.bf16 %v5178_v48, %v5178_v48  ;;  %v7814_v59 = vrot.slane %v7813_v33, 4  ;;  %v5920_v26 = vshll.u32 %v5791_v2, 16  ;;  %v5724_v28 = vld [vmem:[#allocation2 + $0x30] sm:$0xf]  ;;  %v6621_v40 = vld [vmem:[#allocation2 + $0x40] sm:$0xf] }
 0x2a1   : > { %v15167_v25 = vpop.f32.mrf.mxu1  ;;  %v5460_v21 = vor.u32 %v5458_v60, %v5457_v31  ;;  %v5461_v20 = vrot.slane %v5457_v31, 4  ;;  %v5463_v56 = vshrl.u32 %v11778_v30, 16  ;;  %v5466_v46 = vshll.u32 %v11778_v30, 16  ;;  %5756 = vst.msk [vmem:[#allocation3 + $0xa0] sm:$0xf] %vm334_vm0, %v5724_v28 }
 0x2a2   : > { %v11991_v58 = vadd.f32 %v15167_v25, %v15160_v44  ;;  %v5472_v35 = vshrl.u32 %v11779_v0, 16  ;;  %v5475_v38 = vshll.u32 %v11779_v0, 16  ;;  %v7819_v27 = vsel %vm12808_vm9, %v7814_v59, %v7818_v47  ;;  %v7640_v47 = vld [vmem:[#allocation2 + $0x30] sm:$0xf]  ;;  %v5685_v2 = vld [vmem:[#allocation2 + $0x98] sm:$0x1] }
 0x2a3   : > { %v15184_v10 = vpop.f32.mrf.mxu1  ;;  %v5675_v5 = vsel %vm12814_vm10, %v5460_v21, %v5674_v55  ;;  %v5465_v16 = vrot.slane %v5463_v56, 7  ;;  %8142 = vrot.lane.b32.xlu1 %v7819_v27, %s12692_s19  ;;  %v7803_v61 = vor.u32 %v7802_v17, %v7799_v52  ;;  %v5121_v14 = vadd.f32 %v15140_v37, %v4960_v42  ;;  %v5725_v55 = vld [vmem:[#allocation2 + $0x34] sm:$0xf]  ;;  %7672 = vst.msk [vmem:[#allocation3 + $0x5c] sm:$0xf] %vm334_vm0, %v7640_v47 }
 0x2a4   : > { %5676 = vst [vmem:[#allocation2 + $0x84] sm:$0xf] %v5675_v5  ;;  %v5910_v44 = vshll.u32 %v5790_v3, 16  ;;  %v5914_v25 = vshrl.u32 %v5790_v3, 16  ;;  %v15224_v15 = vrot.slane %v5472_v35, 7  ;;  %v5922_v50 = vrot.slane %v5920_v26, 5 }
 0x2a5   : > { %v15196_v49 = vpop.f32.mrf.mxu1  ;;  %v5468_v9 = vor.u32 %v5466_v46, %v5465_v16  ;;  %v5470_v13 = vrot.slane %v5465_v16, 4  ;;  %v7804_v22 = vrot.slane %v7803_v61, 4  ;;  %v5179_v29 = vmax.f32 %v5121_v14, 0.0  ;;  %5757 = vst.msk [vmem:[#allocation3 + $0xb4] sm:$0xf] %vm334_vm0, %v5725_v55 }
 0x2a6   : > { %v15226_v60 = vrot.slane %v5910_v44, 5  ;;  %v5916_v43 = vrot.slane %v5914_v25, 4  ;;  %v5477_v23 = vor.u32 %v5475_v38, %v15224_v15  ;;  %v5478_v37 = vrot.slane %v15224_v15, 4  ;;  %v7705_v46 = vld [vmem:[#allocation2 + $0x2c] sm:$0x1] }
 0x2a7   : > { %v5469_v31 = vsel %vm12828_vm11, %v5461_v20, %v5468_v9  ;;  %v5679_v11 = vsel %vm12758_vm4, %v5470_v13, %v5678_v36  ;;  %v7809_v48 = vsel %vm12808_vm9, %v7804_v22, %v15203_v39  ;;  %v11780_v30 = vpack.c.bf16 %v5179_v29, %v5179_v29  ;;  %6694 = vrot.lane.b32.xlu1 %v6621_v40, %s12692_s19  ;;  %v7641_v20 = vld [vmem:[#allocation2 + $0x34] sm:$0xf]  ;;  %v7703_v42 = vld [vmem:[#allocation2 + $0x24] sm:$0xf]  ;;  %v5723_v25 = vld [vmem:[#allocation2 + $0x28] sm:$0xf] }
 0x2a8   : > { %v15222_v41 = vpop.f32.mrf.mxu0  ;;  %5677 = vst.msk [vmem:[#allocation2 + $0x88] sm:$0xf] %vm334_vm0, %v5469_v31  ;;  %5680 = vst [vmem:[#allocation2 + $0x8c] sm:$0x1] %v5679_v11  ;;  %v5917_v33 = vor.u32 %v5916_v43, %v15226_v60  ;;  %v5682_v52 = vsel %vm12814_vm10, %v5477_v23, %v5681_v63  ;;  %8140 = vrot.lane.b32.xlu0 %v7809_v48, %s12692_s19  ;;  %v5901_v0 = vshrl.u32 %v5789_v53, 16  ;;  %v5904_v56 = vshll.u32 %v5789_v53, 16 }
 0x2a9   : > { %v15209_v19 = vpop.f32.mrf.mxu1  ;;  %v11994_v39 = vadd.f32 %v15196_v49, %v15184_v10  ;;  %7673 = vst.msk [vmem:[#allocation3 + $0x70] sm:$0xf] %vm334_vm0, %v7641_v20  ;;  %5683 = vst [vmem:[#allocation2 + $0x90] sm:$0xf] %v5682_v52  ;;  %v5480_v59 = vshrl.u32 %v11780_v30, 16  ;;  %v5483_v3 = vshll.u32 %v11780_v30, 16  ;;  %v4965_v17 = vadd.f32 %v11991_v58, %v14848_v6 }
 0x2aa   : > { %v5125_v21 = vpop.f32.mrf.mxu0  ;;  %v5918_v5 = vrot.slane %v5917_v33, 4  ;;  %v5903_v35 = vrot.slane %v5901_v0, 4  ;;  %v5906_v38 = vrot.slane %v5904_v56, 5  ;;  %v7782_v16 = vshll.u32 %v7704_v7, 16  ;;  %v6620_v49 = vld [vmem:[#allocation2 + $0x3c] sm:$0xf] }
 0x2ab   : > { %v15218_v4 = vpop.f32.mrf.mxu1  ;;  %v7786_v27 = vshrl.u32 %v7704_v7, 16  ;;  %v5482_v10 = vrot.slane %v5480_v59, 7  ;;  %v5126_v61 = vadd.f32 %v5125_v21, %v4965_v17  ;;  %v7792_v44 = vshll.u32 %v7705_v46, 16  ;;  %5755 = vst.msk [vmem:[#allocation3 + $0x8c] sm:$0xf] %vm334_vm0, %v5723_v25 }
 0x2ac   : > { %v5923_v36 = vsel %vm12808_vm9, %v5918_v5, %v5922_v50  ;;  %v15256_v14 = vpop.f32.mrf.mxu0  ;;  %6692 = vrot.lane.b32.xlu0 %v6620_v49, %s12692_s19  ;;  %v5907_v6 = vor.u32 %v5906_v38, %v5903_v35  ;;  %v15260_v58 = vrot.slane %v7782_v16, 5  ;;  %v7773_v13 = vshrl.u32 %v7703_v42, 16  ;;  %v5722_v26 = vld [vmem:[#allocation2 + $0x24] sm:$0xf]  ;;  %v7316_v11 = vld [vmem:[#allocation2 + $0x4c] sm:$0xf] }
 0x2ad   : > { %v15234_v34 = vpop.f32.mrf.mxu1  ;;  %6226 = vrot.lane.b32.xlu1 %v5923_v36, %s12692_s19  ;;  %v7788_v9 = vrot.slane %v7786_v27, 4  ;;  %v5485_v53 = vor.u32 %v5483_v3, %v5482_v10  ;;  %v5487_v22 = vrot.slane %v5482_v10, 4  ;;  %v5180_v29 = vmax.f32 %v5126_v61, 0.0  ;;  %5754 = vst.msk [vmem:[#allocation3 + $0x78] sm:$0xf] %vm334_vm0, %v5722_v26 }
 0x2ae   : > { %v7794_v43 = vrot.slane %v7792_v44, 5  ;;  %v5908_v7 = vrot.slane %v5907_v6, 4  ;;  %v7775_v23 = vrot.slane %v7773_v13, 4  ;;  %v7776_v31 = vshll.u32 %v7703_v42, 16  ;;  %v5128_v50 = vpop.f32.mrf.mxu0  ;;  %v7317_v21 = vld [vmem:[#allocation2 + $0x50] sm:$0x1] }
 0x2af   : > { %v15252_v63 = vpop.f32.mrf.mxu1  ;;  %v7789_v28 = vor.u32 %v7788_v9, %v15260_v58  ;;  %v5486_v55 = vsel %vm12828_vm11, %v5478_v37, %v5485_v53  ;;  %v5686_v48 = vsel %vm12758_vm4, %v5487_v22, %v5685_v2  ;;  %v11781_v30 = vpack.c.bf16 %v5180_v29, %v5180_v29  ;;  %v7315_v52 = vld [vmem:[#allocation2 + $0x48] sm:$0xe]  ;;  %v15282_v59 = vld [vmem:[#allocation2 + $0x40] sm:$0xf]  ;;  %v5688_v35 = vld [vmem:[#allocation2 + $0x9c] sm:$0xf] }
 0x2b0   : > { %v11997_v33 = vadd.f32 %v15218_v4, %v15209_v19  ;;  %5684 = vst.msk [vmem:[#allocation2 + $0x94] sm:$0xf] %vm334_vm0, %v5486_v55  ;;  %5687 = vst [vmem:[#allocation2 + $0x98] sm:$0x1] %v5686_v48  ;;  %v5913_v20 = vsel %vm12808_vm9, %v5908_v7, %v15226_v60  ;;  %v7778_v47 = vrot.slane %v7776_v31, 5  ;;  %v4968_v37 = vadd.f32 %v11994_v39, %v14854_v45 }
 0x2b1   : > { %v7790_v15 = vrot.slane %v7789_v28, 4  ;;  %6224 = vrot.lane.b32.xlu0 %v5913_v20, %s12692_s19  ;;  %v5489_v56 = vshrl.u32 %v11781_v30, 16  ;;  %v5492_v46 = vshll.u32 %v11781_v30, 16  ;;  %v7433_v4 = vrot.slane %v7316_v11, 5  ;;  %v7639_v2 = vld [vmem:[#allocation2 + $0x28] sm:$0xf] }
 0x2b2   : > { %v4973_v19 = vadd.f32 %v11997_v33, %v14866_v54  ;;  %v7779_v5 = vor.u32 %v7778_v47, %v7775_v23  ;;  %v5129_v60 = vadd.f32 %v5128_v50, %v4968_v37  ;;  %v7436_v17 = vrot.slane %v7317_v21, 5  ;;  %v7638_v45 = vld [vmem:[#allocation2 + $0x24] sm:$0xf]  ;;  %7671 = vst.msk [vmem:[#allocation3 + $0x48] sm:$0xf] %vm334_vm0, %v7639_v2  ;;  %v15299_v9 = vpop.f32.mrf.mxu0 }
 0x2b3   : > { %v7795_v3 = vsel %vm12808_vm9, %v7790_v15, %v7794_v43  ;;  %v15286_v39 = vrot.slane %v5489_v56, 7  ;;  %v7435_v54 = vrot.slane %v7433_v4, 4  ;;  %v11554_v16 = vrot.slane %v7315_v52, 9  ;;  %7670 = vst.msk [vmem:[#allocation3 + $0x34] sm:$0xf] %vm334_vm0, %v7638_v45 }
 0x2b4   : > { %8138 = vrot.lane.b32.xlu1 %v7795_v3, %s12692_s19  ;;  %v5134_v38 = vadd.f32 %v15222_v41, %v4973_v19  ;;  %v7780_v27 = vrot.slane %v7779_v5, 4  ;;  %v5181_v10 = vmax.f32 %v5129_v60, 0.0  ;;  %v12000_v49 = vadd.f32 %v15252_v63, %v15234_v34  ;;  %v7314_v36 = vld [vmem:[#allocation2 + $0x44] sm:$0x1]  ;;  %v5798_v22 = vld [vmem:[#allocation2 + $0x48] sm:$0xf]  ;;  %v5141_v50 = vpop.f32.mrf.mxu0 }
 0x2b5   : > { %v7426_v61 = vrot.slane %v15282_v59, 5  ;;  %v5494_v44 = vor.u32 %v5492_v46, %v15286_v39  ;;  %v5495_v25 = vrot.slane %v15286_v39, 4  ;;  %v7437_v41 = vsel %vm13288_vm14, %v7435_v54, %v7436_v17  ;;  %v5692_v56 = vld [vmem:[#allocation2 + $0xa4] sm:$0x1]  ;;  %v15324_v46 = vld [vmem:[%s17463_s3 + $0x118] sm:$0xff]  }
 0x2b6   : > { %v15265_v40 = vpop.f32.mrf.mxu1  ;;  %v5182_v6 = vmax.f32 %v5134_v38, 0.0  ;;  %v7785_v26 = vsel %vm12808_vm9, %v7780_v27, %v15260_v58  ;;  %v11782_v53 = vpack.c.bf16 %v5181_v10, %v5181_v10  ;;  %v7434_v34 = vsel %vm13288_vm14, %v11554_v16, %v7433_v4  ;;  %v5799_v58 = vld [vmem:[#allocation2 + $0x4c] sm:$0xf]  ;;  %v5695_v19 = vld [vmem:[#allocation2 + $0xa8] sm:$0xf]  ;;  %v15329_v38 = vpop.f32.mrf.mxu0  ;;  %12324 = vmatprep.subr.bf16.mxu1 %v15324_v46 }
 0x2b7   : > { %v4976_v63 = vadd.f32 %v12000_v49, %v14875_v8  ;;  %v5689_v29 = vsel %vm12814_vm10, %v5494_v44, %v5688_v35  ;;  %8136 = vrot.lane.b32.xlu0 %v7785_v26, %s12692_s19  ;;  %v7428_v7 = vrot.slane %v7426_v61, 4  ;;  %v7429_v28 = vrot.slane %v7314_v36, 5  ;;  %v7312_v17 = vld [vmem:[#allocation2 + $0x3c] sm:$0xe]  ;;  %v5728_v16 = vld [vmem:[#allocation2 + $0x48] sm:$0xf] }
 0x2b8   : > { %v12002_v0 = vpop.f32.mrf.mxu1  ;;  %v11783_v43 = vpack.c.bf16 %v5182_v6, %v5182_v6  ;;  %7530 = vrot.lane.b32.xlu1 %v7437_v41, %s12692_s19  ;;  %5690 = vst [vmem:[#allocation2 + $0x9c] sm:$0xf] %v5689_v29  ;;  %v5497_v23 = vshrl.u32 %v11782_v53, 16  ;;  %v5500_v31 = vshll.u32 %v11782_v53, 16  ;;  %v5973_v33 = vshrl.u32 %v5798_v22, 16 }
 0x2b9   : > { %v5137_v11 = vadd.f32 %v15256_v14, %v4976_v63  ;;  %v12003_v8 = vadd.f32 %v12002_v0, %v15265_v40  ;;  %v7430_v30 = vsel %vm13288_vm14, %v7428_v7, %v7429_v28  ;;  %v5976_v47 = vshll.u32 %v5798_v22, 16  ;;  %v6626_v44 = vld [vmem:[#allocation2 + $0x60] sm:$0xf]  ;;  %v6627_v6 = vld [vmem:[#allocation2 + $0x64] sm:$0xf] }
 0x2ba   : > { %v12004_v42 = vpop.f32.mrf.mxu1  ;;  %v5506_v55 = vshrl.u32 %v11783_v43, 16  ;;  %v5509_v48 = vshll.u32 %v11783_v43, 16  ;;  %v5499_v20 = vrot.slane %v5497_v23, 7  ;;  %v5982_v37 = vshll.u32 %v5799_v58, 16  ;;  %5760 = vst.msk [vmem:[#allocation3 + $0xf0] sm:$0xf] %vm334_vm0, %v5728_v16 }
 0x2bb   : > { %v5183_v15 = vmax.f32 %v5137_v11, 0.0  ;;  %7528 = vrot.lane.b32.xlu0 %v7434_v34, %s12692_s19  ;;  %v5975_v14 = vrot.slane %v5973_v33, 4  ;;  %v5986_v40 = vshrl.u32 %v5799_v58, 16  ;;  %v5978_v60 = vrot.slane %v5976_v47, 5  ;;  %v5699_v53 = vld [vmem:[#allocation2 + $0xb0] sm:$0x1]  ;;  %v5144_v58 = vpop.f32.mrf.mxu0 }
 0x2bc   : > { %v12005_v13 = vpop.f32.mrf.mxu1  ;;  %v15317_v52 = vrot.slane %v5506_v55, 7  ;;  %7526 = vrot.lane.b32.xlu1 %v7430_v30, %s12692_s19  ;;  %v5502_v4 = vor.u32 %v5500_v31, %v5499_v20  ;;  %v5504_v3 = vrot.slane %v5499_v20, 4  ;;  %v5984_v39 = vrot.slane %v5982_v37, 5  ;;  %v7713_v31 = vld [vmem:[#allocation2 + $0x4c] sm:$0xf] }
 0x2bd   : > { %v12006_v0 = vadd.f32 %v12005_v13, %v12004_v42  ;;  %v11784_v5 = vpack.c.bf16 %v5183_v15, %v5183_v15  ;;  %v4981_v35 = vadd.f32 %v12003_v8, %v14879_v32  ;;  %v5800_v42 = vld [vmem:[#allocation2 + $0x50] sm:$0x1]  ;;  %v5988_v13 = vrot.slane %v5986_v40, 4  ;;  %v5729_v11 = vld [vmem:[#allocation2 + $0x4c] sm:$0xf] }
 0x2be   : > { %v12007_v21 = vpop.f32.mrf.mxu1  ;;  %v5511_v2 = vor.u32 %v5509_v48, %v15317_v52  ;;  %v5512_v45 = vrot.slane %v15317_v52, 4  ;;  %v5503_v27 = vsel %vm12828_vm11, %v5495_v25, %v5502_v4  ;;  %v5693_v10 = vsel %vm12758_vm4, %v5504_v3, %v5692_v56  ;;  %5761 = vst.msk [vmem:[#allocation3 + $0x104] sm:$0xf] %vm334_vm0, %v5729_v11  ;;  %v7714_v20 = vld [vmem:[#allocation2 + $0x50] sm:$0x1] }
 0x2bf   : > { %v5514_v49 = vshrl.u32 %v11784_v5, 16  ;;  %v5517_v36 = vshll.u32 %v11784_v5, 16  ;;  %5691 = vst.msk [vmem:[#allocation2 + $0xa0] sm:$0xf] %vm334_vm0, %v5503_v27  ;;  %5694 = vst [vmem:[#allocation2 + $0xa4] sm:$0x1] %v5693_v10  ;;  %6704 = vrot.lane.b32.xlu0 %v6626_v44, %s12692_s19  ;;  %v5979_v25 = vor.u32 %v5978_v60, %v5975_v14  ;;  %v5142_v41 = vadd.f32 %v5141_v50, %v4981_v35 }
 0x2c0   : > { %v12008_v54 = vpop.f32.mrf.mxu1  ;;  %v5696_v32 = vsel %vm12814_vm10, %v5511_v2, %v5695_v19  ;;  %6706 = vrot.lane.b32.xlu1 %v6627_v6, %s12692_s19  ;;  %v5992_v34 = vshll.u32 %v5800_v42, 16  ;;  %v11553_v63 = vrot.slane %v7312_v17, 9  ;;  %v5989_v7 = vor.u32 %v5988_v13, %v5984_v39  ;;  %v7645_v15 = vld [vmem:[#allocation2 + $0x4c] sm:$0xf]  ;;  %v7712_v52 = vld [vmem:[#allocation2 + $0x48] sm:$0xf] }
 0x2c1   : > { %5697 = vst [vmem:[#allocation2 + $0xa8] sm:$0xf] %v5696_v32  ;;  %v5516_v26 = vrot.slane %v5514_v49, 7  ;;  %v12009_v22 = vadd.f32 %v12008_v54, %v12007_v21  ;;  %v5980_v29 = vrot.slane %v5979_v25, 4  ;;  %v5184_v43 = vmax.f32 %v5142_v41, 0.0  ;;  %v17484_v42 = vld [vmem:[#allocation5_spill] sm:$0xff] }
 0x2c2   : > { %v4984_v28 = vadd.f32 %v12006_v0, %v14885_v18  ;;  %v12010_v23 = vpop.f32.mrf.mxu1  ;;  %v5994_v48 = vrot.slane %v5992_v34, 5  ;;  %v7427_v30 = vsel %vm13288_vm14, %v11553_v63, %v7426_v61  ;;  %v5990_v21 = vrot.slane %v5989_v7, 4  ;;  %7677 = vst.msk [vmem:[#allocation3 + $0xc0] sm:$0xf] %vm334_vm0, %v7645_v15  ;;  %v7644_v56 = vld [vmem:[#allocation2 + $0x48] sm:$0xf] }
 0x2c3   : > { %v5519_v8 = vor.u32 %v5517_v36, %v5516_v26  ;;  %v5521_v55 = vrot.slane %v5516_v26, 4  ;;  %v5985_v33 = vsel %vm12808_vm9, %v5980_v29, %v5984_v39  ;;  %v11785_v50 = vpack.c.bf16 %v5184_v43, %v5184_v43  ;;  %7676 = vst.msk [vmem:[#allocation3 + $0xac] sm:$0xf] %vm334_vm0, %v7644_v56  ;;  %v12650_v35 = vld [vmem:[%s17462_s2] ss:$0 sm:$0xff] }
 0x2c4   : > { %v4989_v18 = vadd.f32 %v12009_v22, %v14889_v24  ;;  %6236 = vrot.lane.b32.xlu0 %v5985_v33, %s12692_s19  ;;  %v5145_v61 = vadd.f32 %v5144_v58, %v4984_v28  ;;  %v7854_v37 = vshll.u32 %v7713_v31, 16  ;;  %v5995_v40 = vsel %vm12808_vm9, %v5990_v21, %v5994_v48  ;;  %v12011_v19 = vpop.f32.mrf.mxu1  ;;  %v5702_v54 = vld [vmem:[#allocation2 + $0xb4] sm:$0xf]  ;;  %v5796_v32 = vld [vmem:[#allocation2 + $0x40] sm:$0xf] }
 0x2c5   : > { %v5520_v47 = vsel %vm12828_vm11, %v5512_v45, %v5519_v8  ;;  %v5700_v59 = vsel %vm12758_vm4, %v5521_v55, %v5699_v53  ;;  %v5523_v24 = vshrl.u32 %v11785_v50, 16  ;;  %v5526_v14 = vshll.u32 %v11785_v50, 16  ;;  %6238 = vrot.lane.b32.xlu1 %v5995_v40, %s12692_s19  ;;  %v15371_v53 = vpop.permute.xlu0 %6680  ;;  %v5709_v43 = vld [vmem:[#allocation2 + $0xc0] sm:$0xf]  ;;  %v5706_v55 = vld [vmem:[#allocation2 + $0xbc] sm:$0x1] }
 0x2c6   : > { %5698 = vst.msk [vmem:[#allocation2 + $0xac] sm:$0xf] %vm334_vm0, %v5520_v47  ;;  %5701 = vst [vmem:[#allocation2 + $0xb0] sm:$0x1] %v5700_v59  ;;  %v5150_v0 = vadd.f32 %v15299_v9, %v4989_v18  ;;  %v5185_v4 = vmax.f32 %v5145_v61, 0.0  ;;  %v15363_v3 = vrot.slane %v7854_v37, 5  ;;  %v4831_v9 = vadd.f32 %v12650_v35, %v17484_v42 }
 0x2c7   : > { %v7858_v5 = vshrl.u32 %v7713_v31, 16  ;;  %v7864_v60 = vshll.u32 %v7714_v20, 16  ;;  %v5525_v17 = vrot.slane %v5523_v24, 7  ;;  %v7845_v45 = vshrl.u32 %v7712_v52, 16  ;;  %v5795_v20 = vld [vmem:[#allocation2 + $0x3c] sm:$0xf] }
 0x2c8   : > { %v5186_v2 = vmax.f32 %v5150_v0, 0.0  ;;  %v7848_v39 = vshll.u32 %v7712_v52, 16  ;;  %7524 = vrot.lane.b32.xlu0 %v7427_v30, %s12692_s19  ;;  %v11786_v16 = vpack.c.bf16 %v5185_v4, %v5185_v4  ;;  %v12012_v10 = vadd.f32 %v12011_v19, %v12010_v23  ;;  %v5797_v23 = vld [vmem:[#allocation2 + $0x44] sm:$0x1]  ;;  %v7710_v15 = vld [vmem:[#allocation2 + $0x40] sm:$0xf] }
 0x2c9   : > { %v7860_v27 = vrot.slane %v7858_v5, 4  ;;  %v5528_v49 = vor.u32 %v5526_v14, %v5525_v17  ;;  %v7866_v44 = vrot.slane %v7864_v60, 5  ;;  %v7847_v6 = vrot.slane %v7845_v45, 4  ;;  %v6677_v47 = vpop.permute.xlu0 %6676  ;;  %v15384_v56 = vld [vmem:[#allocation2 + $0x44] sm:$0x1] }
 0x2ca   : > { %v11787_v36 = vpack.c.bf16 %v5186_v2, %v5186_v2  ;;  %v5529_v25 = vrot.slane %v5525_v17, 4  ;;  %v5531_v41 = vshrl.u32 %v11786_v16, 16  ;;  %v7850_v26 = vrot.slane %v7848_v39, 5  ;;  %6772 = vst.msk [vmem:[#allocation3 + $0x4] sm:$0xf] %vm1604_vm15, %v6677_v47 }
 0x2cb   : > { %v7861_v13 = vor.u32 %v7860_v27, %v15363_v3  ;;  %v5703_v34 = vsel %vm12814_vm10, %v5528_v49, %v5702_v54  ;;  %v5534_v22 = vshll.u32 %v11786_v16, 16  ;;  %v4992_v29 = vadd.f32 %v12012_v10, %v4831_v9  ;;  %v5727_v19 = vld [vmem:[#allocation2 + $0x40] sm:$0xf]  ;;  %v5726_v4 = vld [vmem:[#allocation2 + $0x3c] sm:$0xf] }
 0x2cc   : > { %v5540_v63 = vshrl.u32 %v11787_v36, 16  ;;  %5704 = vst [vmem:[#allocation2 + $0xb4] sm:$0xf] %v5703_v34  ;;  %v5533_v7 = vrot.slane %v5531_v41, 7  ;;  %v7851_v58 = vor.u32 %v7850_v26, %v7847_v6  ;;  %v5958_v31 = vshll.u32 %v5796_v32, 16 }
 0x2cd   : > { %v7862_v28 = vrot.slane %v7861_v13, 4  ;;  %v5543_v8 = vshll.u32 %v11787_v36, 16  ;;  %v5153_v48 = vadd.f32 %v15329_v38, %v4992_v29  ;;  %v5962_v30 = vshrl.u32 %v5796_v32, 16  ;;  %v15386_v38 = vpop.permute.xlu1 %6682  ;;  %v7709_v45 = vld [vmem:[#allocation2 + $0x3c] sm:$0xf] }
 0x2ce   : > { %v15375_v11 = vrot.slane %v5540_v63, 7  ;;  %v5536_v33 = vor.u32 %v5534_v22, %v5533_v7  ;;  %v5538_v50 = vrot.slane %v5533_v7, 4  ;;  %v7852_v18 = vrot.slane %v7851_v58, 4  ;;  %5759 = vst.msk [vmem:[#allocation3 + $0xdc] sm:$0xf] %vm334_vm0, %v5727_v19 }
 0x2cf   : > { %v7867_v21 = vsel %vm12808_vm9, %v7862_v28, %v7866_v44  ;;  %v5187_v61 = vmax.f32 %v5153_v48, 0.0  ;;  %v15382_v37 = vrot.slane %v5958_v31, 5  ;;  %v5968_v52 = vshll.u32 %v5797_v23, 16  ;;  %5758 = vst.msk [vmem:[#allocation3 + $0xc8] sm:$0xf] %vm334_vm0, %v5726_v4 }
 0x2d0   : > { %v5545_v59 = vor.u32 %v5543_v8, %v15375_v11  ;;  %8150 = vrot.lane.b32.xlu1 %v7867_v21, %s12692_s19  ;;  %v5537_v24 = vsel %vm12828_vm11, %v5529_v25, %v5536_v33  ;;  %v5707_v14 = vsel %vm12758_vm4, %v5538_v50, %v5706_v55  ;;  %v7857_v40 = vsel %vm12808_vm9, %v7852_v18, %v15363_v3  ;;  %v6625_v3 = vld [vmem:[#allocation2 + $0x58] sm:$0xf]  ;;  %v5713_v36 = vld [vmem:[#allocation2 + $0xc8] sm:$0x1]  ;;  %v6624_v44 = vld [vmem:[#allocation2 + $0x54] sm:$0xf] }
 0x2d1   : > { %v5964_v0 = vrot.slane %v5962_v30, 4  ;;  %v5546_v5 = vrot.slane %v15375_v11, 4  ;;  %5705 = vst.msk [vmem:[#allocation2 + $0xb8] sm:$0xf] %vm334_vm0, %v5537_v24  ;;  %5708 = vst [vmem:[#allocation2 + $0xbc] sm:$0x1] %v5707_v14  ;;  %8148 = vrot.lane.b32.xlu0 %v7857_v40, %s12692_s19  ;;  %v11788_v17 = vpack.c.bf16 %v5187_v61, %v5187_v61  ;;  %v6679_v49 = vpop.permute.xlu1 %6678  ;;  %v15418_v30 = vpop.permute.xlu0 %7512 }
 0x2d2   : > { %v5710_v60 = vsel %vm12814_vm10, %v5545_v59, %v5709_v43  ;;  %v5949_v2 = vshrl.u32 %v5795_v20, 16  ;;  %v5952_v35 = vshll.u32 %v5795_v20, 16  ;;  %v7830_v42 = vshll.u32 %v7710_v15, 16  ;;  %v15406_v10 = vld [vmem:[#allocation2 + $0x58] sm:$0xf] }
 0x2d3   : > { %5711 = vst [vmem:[#allocation2 + $0xc0] sm:$0xf] %v5710_v60  ;;  %v5965_v39 = vor.u32 %v5964_v0, %v15382_v37  ;;  %v7834_v57 = vshrl.u32 %v7710_v15, 16  ;;  %v5548_v9 = vshrl.u32 %v11788_v17, 16  ;;  %v5970_v54 = vrot.slane %v5968_v52, 5 }
 0x2d4   : > { %6702 = vrot.lane.b32.xlu1 %v6625_v3, %s12692_s19  ;;  %v5951_v16 = vrot.slane %v5949_v2, 4  ;;  %v7840_v27 = vshll.u32 %v15384_v56, 16  ;;  %v5954_v32 = vrot.slane %v5952_v35, 5  ;;  %v15408_v25 = vrot.slane %v7830_v42, 5  ;;  %6773 = vst.msk [vmem:[#allocation3 + $0x18] sm:$0xf] %vm1604_vm15, %v6679_v49 }
 0x2d5   : > { %v5966_v6 = vrot.slane %v5965_v39, 4  ;;  %v7836_v41 = vrot.slane %v7834_v57, 4  ;;  %v5550_v13 = vrot.slane %v5548_v9, 7  ;;  %v5551_v26 = vshll.u32 %v11788_v17, 16  ;;  %6700 = vrot.lane.b32.xlu0 %v6624_v44, %s12692_s19  ;;  %v7643_v22 = vld [vmem:[#allocation2 + $0x40] sm:$0xf]  ;;  %v15420_v33 = vpop.permute.xlu1 %7514  ;;  %v15437_v3 = vpop.permute.xlu0 %6688 }
 0x2d6   : > { %v7821_v34 = vshrl.u32 %v7709_v45, 16  ;;  %v7824_v63 = vshll.u32 %v7709_v45, 16  ;;  %v5955_v43 = vor.u32 %v5954_v32, %v5951_v16  ;;  %v7440_v28 = vrot.slane %v15406_v10, 5  ;;  %v5804_v58 = vld [vmem:[#allocation2 + $0x60] sm:$0xf] }
 0x2d7   : > { %v5971_v29 = vsel %vm12808_vm9, %v5966_v6, %v5970_v54  ;;  %v7837_v7 = vor.u32 %v7836_v41, %v15408_v25  ;;  %7675 = vst.msk [vmem:[#allocation3 + $0x98] sm:$0xf] %vm334_vm0, %v7643_v22  ;;  %v7642_v23 = vld [vmem:[#allocation2 + $0x3c] sm:$0xf]  ;;  %v5553_v31 = vor.u32 %v5551_v26, %v5550_v13  ;;  %v5555_v11 = vrot.slane %v5550_v13, 4 }
 0x2d8   : > { %6234 = vrot.lane.b32.xlu1 %v5971_v29, %s12692_s19  ;;  %v7823_v8 = vrot.slane %v7821_v34, 4  ;;  %v7826_v55 = vrot.slane %v7824_v63, 5  ;;  %v7320_v48 = vld [vmem:[#allocation2 + $0x5c] sm:$0x1]  ;;  %7674 = vst.msk [vmem:[#allocation3 + $0x84] sm:$0xf] %vm334_vm0, %v7642_v23 }
 0x2d9   : > { %v5956_v50 = vrot.slane %v5955_v43, 4  ;;  %v7838_v21 = vrot.slane %v7837_v7, 4  ;;  %v7842_v18 = vrot.slane %v7840_v27, 5  ;;  %v7442_v20 = vrot.slane %v7440_v28, 4  ;;  %v5805_v15 = vld [vmem:[#allocation2 + $0x64] sm:$0xf]  ;;  %v15443_v49 = vpop.permute.xlu1 %7510  ;;  %v6221_v7 = vpop.permute.xlu0 %6220 }
 0x2da   : > { %v6343_v47 = vld [vmem:[#allocation2 + $0xc] sm:$0xe]  ;;  %v5554_v59 = vsel %vm12828_vm11, %v5546_v5, %v5553_v31  ;;  %v5714_v61 = vsel %vm12758_vm4, %v5555_v11, %v5713_v36  ;;  %v7827_v52 = vor.u32 %v7826_v55, %v7823_v8  ;;  %v6021_v56 = vshrl.u32 %v5804_v58, 16  ;;  %v5806_v24 = vld [vmem:[#allocation2 + $0x68] sm:$0x1]  ;;  %v12564_v11 = vld [vmem:[%s17463_s3 + $0x110] sm:$0xff]  }
 0x2db   : > { %v6344_v14 = vld [vmem:[#allocation2 + $0x10] sm:$0xf]  ;;  %5712 = vst.msk [vmem:[#allocation2 + $0xc4] sm:$0xf] %vm334_vm0, %v5554_v59  ;;  %5715 = vst [vmem:[#allocation2 + $0xc8] sm:$0x1] %v5714_v61  ;;  %v5961_v40 = vsel %vm12808_vm9, %v5956_v50, %v15382_v37  ;;  %v7843_v0 = vsel %vm12808_vm9, %v7838_v21, %v7842_v18 }
 0x2dc   : > { %v7443_v19 = vrot.slane %v7320_v48, 5  ;;  %v6024_v12 = vshll.u32 %v5804_v58, 16  ;;  %v7318_v4 = vld [vmem:[#allocation2 + $0x54] sm:$0xe]  ;;  %v6345_v5 = vld [vmem:[#allocation2 + $0x14] sm:$0x1]  ;;  %6232 = vrot.lane.b32.xlu0 %v5961_v40, %s12692_s19  ;;  %8146 = vrot.lane.b32.xlu1 %v7843_v0, %s12692_s19 }
 0x2dd   : > { %v7828_v1 = vrot.slane %v7827_v52, 4  ;;  %v6023_v60 = vrot.slane %v6021_v56, 4  ;;  %v6030_v17 = vshll.u32 %v5805_v15, 16  ;;  %v6034_v2 = vshrl.u32 %v5805_v15, 16  ;;  %v5801_v45 = vld [vmem:[#allocation2 + $0x54] sm:$0xf] }
 0x2de   : > { %v7444_v37 = vsel %vm13288_vm14, %v7442_v20, %v7443_v19  ;;  %v6026_v39 = vrot.slane %v6024_v12, 5  ;;  %v6040_v35 = vshll.u32 %v5806_v24, 16  ;;  %v5802_v42 = vld [vmem:[#allocation2 + $0x58] sm:$0xf]  ;;  %v11534_v16 = vrot.slane %v6343_v47, 9  ;;  %v15479_v24 = vpop.permute.xlu1 %6690 }
 0x2df   : > { %v12529_v57 = vld [vmem:[#allocation3] ss:$20 sps:$4 sm:$0xff]   ;;  %v15441_v9 = vrot.slane %v6030_v17, 5  ;;  %v6036_v54 = vrot.slane %v6034_v2, 4  ;;  %v6445_v27 = vrot.slane %v6344_v14, 5  ;;  %v7833_v44 = vsel %vm12808_vm9, %v7828_v1, %v15408_v25 }
 0x2e0   : > { %v12531_v36 = vld [vmem:[#allocation3 + $0x4] ss:$20 sps:$4 sm:$0xff]   ;;  %v6027_v6 = vor.u32 %v6026_v39, %v6023_v60  ;;  %v11555_v32 = vrot.slane %v7318_v4, 9  ;;  %v6448_v41 = vrot.slane %v6345_v5, 5  ;;  %v6807_v13 = vld [vmem:[#allocation2 + $0x18] sm:$0xf]  ;;  %8144 = vrot.lane.b32.xlu0 %v7833_v44, %s12692_s19  ;;  %7534 = vrot.lane.b32.xlu1 %v7444_v37, %s12692_s19 }
 0x2e1   : > { %v6037_v26 = vor.u32 %v6036_v54, %v15441_v9  ;;  %v6446_v34 = vsel %vm13288_vm14, %v11534_v16, %v6445_v27  ;;  %v6447_v63 = vrot.slane %v6445_v27, 4  ;;  %v5803_v22 = vld [vmem:[#allocation2 + $0x5c] sm:$0x1]  ;;  %v6006_v29 = vshll.u32 %v5802_v42, 16  ;;  %9403 = vmatprep.mubr.bf16.mxu1 %v12531_v36  ;;  %6312 = vst.msk [vmem:[#allocation3 + $0x50] sm:$0xf] %vm1604_vm15, %v6221_v7 }
 0x2e2   : > { %v6808_v43 = vld [vmem:[#allocation2 + $0x1c] sm:$0xf]  ;;  %v6028_v58 = vrot.slane %v6027_v6, 4  ;;  %v6042_v25 = vrot.slane %v6040_v35, 5  ;;  %6582 = vst.msk [vmem:[#allocation3 + $0x2c] sm:$0xf] %vm334_vm0, %v6446_v34  ;;  %v15462_v55 = vsel %vm13288_vm14, %v11555_v32, %v7440_v28  ;;  %9404 = vmatmul.mubr.bf16.vlgmr.msra.gmra.mxu1 %v12529_v57 }
 0x2e3   : > { %v6010_v23 = vshrl.u32 %v5802_v42, 16  ;;  %v5997_v31 = vshrl.u32 %v5801_v45, 16  ;;  %v6630_v8 = vld [vmem:[#allocation2 + $0x78] sm:$0xf]  ;;  %6774 = vst.msk [vmem:[#allocation3 + $0x2c] sm:$0xf] %vm1604_vm15, %v15371_v53  ;;  %v6449_v48 = vsel %vm13288_vm14, %v6447_v63, %v6448_v41  ;;  %12325 = vmatpush3.bf16.msra.mxu1 %v15324_v46  ;;  %v6223_v63 = vpop.permute.xlu1 %6222 }
 0x2e4   : > { %v15468_v50 = vrot.slane %v6006_v29, 5  ;;  %v6000_v21 = vshll.u32 %v5801_v45, 16  ;;  %v7716_v18 = vld [vmem:[#allocation2 + $0x58] sm:$0xf]  ;;  %v6631_v20 = vld [vmem:[#allocation2 + $0x7c] sm:$0xf]  ;;  %6712 = vrot.lane.b32.xlu0 %v6630_v8, %s12692_s19  ;;  %v6033_v53 = vsel %vm12808_vm9, %v6028_v58, %v15441_v9  ;;  %12326 = vmatprep.subr.bf16.mxu1 %v12564_v11 }
 0x2e5   : > { %v6038_v15 = vrot.slane %v6037_v26, 4  ;;  %6583 = vst.msk [vmem:[#allocation3 + $0x40] sm:$0xf] %vm334_vm0, %v6449_v48  ;;  %v6012_v10 = vrot.slane %v6010_v23, 4  ;;  %v6016_v47 = vshll.u32 %v5803_v22, 16  ;;  %v5999_v59 = vrot.slane %v5997_v31, 4  ;;  %6714 = vrot.lane.b32.xlu1 %v6631_v20, %s12692_s19 }
 0x2e6   : > { %6775 = vst.msk [vmem:[#allocation3 + $0x40] sm:$0xf] %vm1604_vm15, %v15386_v38  ;;  %v6002_v28 = vrot.slane %v6000_v21, 5  ;;  %v6877_v61 = vshrl.u32 %v6807_v13, 16  ;;  %v6880_v52 = vshll.u32 %v6807_v13, 16  ;;  %v6886_v46 = vshll.u32 %v6808_v43, 16 }
 0x2e7   : > { %v7717_v56 = vld [vmem:[#allocation2 + $0x5c] sm:$0x1]  ;;  %v6013_v14 = vor.u32 %v6012_v10, %v15468_v50  ;;  %v6890_v40 = vshrl.u32 %v6808_v43, 16  ;;  %v7878_v0 = vshll.u32 %v7716_v18, 16  ;;  %v7715_v19 = vld [vmem:[#allocation2 + $0x54] sm:$0xf]  ;;  %v6043_v38 = vsel %vm12808_vm9, %v6038_v15, %v6042_v25  ;;  %12327 = vmatpush3.bf16.msra.mxu1 %v12564_v11 }
 0x2e8   : > { %v6003_v12 = vor.u32 %v6002_v28, %v5999_v59  ;;  %v6879_v4 = vrot.slane %v6877_v61, 4  ;;  %v6882_v5 = vrot.slane %v6880_v52, 5  ;;  %v7882_v1 = vshrl.u32 %v7716_v18, 16  ;;  %v5732_v60 = vld [vmem:[#allocation2 + $0x60] sm:$0xf]  ;;  %6244 = vrot.lane.b32.xlu0 %v6033_v53, %s12692_s19 }
 0x2e9   : > { %v6888_v17 = vrot.slane %v6886_v46, 5  ;;  %v15484_v2 = vrot.slane %v7878_v0, 5  ;;  %v7888_v45 = vshll.u32 %v7717_v56, 16  ;;  %v6805_v37 = vld [vmem:[#allocation2 + $0x10] sm:$0xf]  ;;  %6246 = vrot.lane.b32.xlu1 %v6043_v38, %s12692_s19  ;;  %v6018_v39 = vrot.slane %v6016_v47, 5 }
 0x2ea   : > { %5764 = vst.msk [vmem:[#allocation3 + $0x140] sm:$0xf] %vm334_vm0, %v5732_v60  ;;  %v6883_v35 = vor.u32 %v6882_v5, %v6879_v4  ;;  %v7884_v42 = vrot.slane %v7882_v1, 4  ;;  %v7869_v57 = vshrl.u32 %v7715_v19, 16  ;;  %v6809_v9 = vld [vmem:[#allocation2 + $0x20] sm:$0x1]  ;;  %v8135_v4 = vpop.permute.xlu1 %8134 }
 0x2eb   : > { %v6014_v54 = vrot.slane %v6013_v14, 4  ;;  %v15489_v16 = vrot.slane %v6003_v12, 4  ;;  %v7872_v27 = vshll.u32 %v7715_v19, 16  ;;  %v6892_v36 = vrot.slane %v6890_v40, 4  ;;  %v6806_v44 = vld [vmem:[#allocation2 + $0x14] sm:$0x1] }
 0x2ec   : > { %v6884_v6 = vrot.slane %v6883_v35, 4  ;;  %v7885_v32 = vor.u32 %v7884_v42, %v15484_v2  ;;  %v15492_v41 = vrot.slane %v7888_v45, 5  ;;  %v7871_v13 = vrot.slane %v7869_v57, 4  ;;  %v6349_v26 = vld [vmem:[#allocation2 + $0x24] sm:$0xe]  ;;  %7532 = vrot.lane.b32.xlu0 %v15462_v55, %s12692_s19 }
 0x2ed   : > { %v6350_v34 = vld [vmem:[#allocation2 + $0x28] sm:$0xf]  ;;  %v5733_v22 = vld [vmem:[#allocation2 + $0x64] sm:$0xf]  ;;  %v6629_v29 = vld [vmem:[#allocation2 + $0x70] sm:$0xf]  ;;  %v6893_v7 = vor.u32 %v6892_v36, %v6888_v17  ;;  %v6019_v55 = vsel %vm12808_vm9, %v6014_v54, %v6018_v39  ;;  %v6009_v59 = vsel %vm12808_vm9, %v15489_v16, %v15468_v50 }
 0x2ee   : > { %v7874_v43 = vrot.slane %v7872_v27, 5  ;;  %v6896_v58 = vshll.u32 %v6809_v9, 16  ;;  %v6862_v25 = vshll.u32 %v6805_v37, 16  ;;  %6313 = vst.msk [vmem:[#allocation3 + $0x64] sm:$0xf] %vm1604_vm15, %v6223_v63  ;;  %6710 = vrot.lane.b32.xlu1 %v6629_v29, %s12692_s19  ;;  %v6889_v23 = vsel %vm12808_vm9, %v6884_v6, %v6888_v17  ;;  %v15529_v17 = vpop.permute.xlu0 %7508 }
 0x2ef   : > { %5765 = vst.msk [vmem:[#allocation3 + $0x154] sm:$0xf] %vm334_vm0, %v5733_v22  ;;  %v7886_v31 = vrot.slane %v7885_v32, 4  ;;  %v6866_v11 = vshrl.u32 %v6805_v37, 16  ;;  %v6872_v8 = vshll.u32 %v6806_v44, 16  ;;  %v6894_v18 = vrot.slane %v6893_v7, 4 }
 0x2f0   : > { %v5811_v48 = vld [vmem:[#allocation2 + $0x7c] sm:$0xf]  ;;  %7270 = vst.msk [vmem:[#allocation3 + $0x30] sm:$0xf] %vm334_vm0, %v6889_v23  ;;  %v7875_v21 = vor.u32 %v7874_v43, %v7871_v13  ;;  %v6898_v20 = vrot.slane %v6896_v58, 5  ;;  %v15502_v15 = vrot.slane %v6862_v25, 5 }
 0x2f1   : > { %v5810_v10 = vld [vmem:[#allocation2 + $0x78] sm:$0xf]  ;;  %v6628_v47 = vld [vmem:[#allocation2 + $0x6c] sm:$0xf]  ;;  %7606 = vst.msk [vmem:[#allocation3 + $0x30] sm:$0xf] %vm1604_vm15, %v15418_v30  ;;  %v7891_v53 = vsel %vm12808_vm9, %v7886_v31, %v15492_v41 }
 0x2f2   : > { %v6868_v28 = vrot.slane %v6866_v11, 4  ;;  %v6351_v61 = vld [vmem:[#allocation2 + $0x2c] sm:$0x1]  ;;  %v6899_v52 = vsel %vm12808_vm9, %v6894_v18, %v6898_v20  ;;  %v11536_v56 = vrot.slane %v6349_v26, 9  ;;  %v6459_v14 = vrot.slane %v6350_v34, 5  ;;  %6708 = vrot.lane.b32.xlu0 %v6628_v47, %s12692_s19  ;;  %6242 = vrot.lane.b32.xlu1 %v6019_v55, %s12692_s19  ;;  %v6687_v20 = vpop.permute.xlu1 %6686 }
 0x2f3   : > { %v15517_v46 = vld [vmem:[#allocation2 + $0x80] sm:$0x1]  ;;  %v6078_v40 = vshll.u32 %v5811_v48, 16  ;;  %7271 = vst.msk [vmem:[#allocation3 + $0x44] sm:$0xf] %vm334_vm0, %v6899_v52  ;;  %v6874_v50 = vrot.slane %v6872_v8, 5  ;;  %v8133_v18 = vpop.permute.xlu0 %8132 }
 0x2f4   : > { %v6869_v30 = vor.u32 %v6868_v28, %v15502_v15  ;;  %v6082_v0 = vshrl.u32 %v5811_v48, 16  ;;  %v6069_v19 = vshrl.u32 %v5810_v10, 16  ;;  %v6804_v12 = vld [vmem:[#allocation2 + $0xc] sm:$0xf]  ;;  %v7876_v5 = vrot.slane %v7875_v21, 4 }
 0x2f5   : > { %7607 = vst.msk [vmem:[#allocation3 + $0x44] sm:$0xf] %vm1604_vm15, %v15420_v33  ;;  %v6460_v1 = vsel %vm13288_vm14, %v11536_v56, %v6459_v14  ;;  %v15527_v60 = vrot.slane %v6078_v40, 5  ;;  %v6072_v38 = vshll.u32 %v5810_v10, 16  ;;  %v5808_v45 = vld [vmem:[#allocation2 + $0x70] sm:$0xf] }
 0x2f6   : > { %8229 = vst.msk [vmem:[#allocation3 + $0x20] sm:$0xf] %vm1604_vm15, %v8135_v4  ;;  %v6870_v37 = vrot.slane %v6869_v30, 4  ;;  %v6084_v39 = vrot.slane %v6082_v0, 4  ;;  %v6088_v35 = vshll.u32 %v15517_v46, 16  ;;  %v6071_v42 = vrot.slane %v6069_v19, 4  ;;  %6240 = vrot.lane.b32.xlu0 %v6009_v59, %s12692_s19  ;;  %8154 = vrot.lane.b32.xlu1 %v7891_v53, %s12692_s19 }
 0x2f7   : > { %6586 = vst.msk [vmem:[#allocation3 + $0x7c] sm:$0xf] %vm334_vm0, %v6460_v1  ;;  %v6074_v33 = vrot.slane %v6072_v38, 5  ;;  %v6461_v57 = vrot.slane %v6459_v14, 4  ;;  %v6462_v9 = vrot.slane %v6351_v61, 5  ;;  %v6853_v54 = vshrl.u32 %v6804_v12, 16  ;;  %v6685_v19 = vpop.permute.xlu0 %6684 }
 0x2f8   : > { %6778 = vst.msk [vmem:[#allocation3 + $0x7c] sm:$0xf] %vm1604_vm15, %v15437_v3  ;;  %v15536_v16 = vld [vmem:[#allocation2 + $0x1c] sm:$0xf]  ;;  %v5731_v27 = vld [vmem:[#allocation2 + $0x58] sm:$0xf]  ;;  %v6875_v36 = vsel %vm12808_vm9, %v6870_v37, %v6874_v50  ;;  %v6085_v44 = vor.u32 %v6084_v39, %v15527_v60  ;;  %v7881_v7 = vsel %vm12808_vm9, %v7876_v5, %v15484_v2 }
 0x2f9   : > { %v6856_v6 = vshll.u32 %v6804_v12, 16  ;;  %v6054_v32 = vshll.u32 %v5808_v45, 16  ;;  %v5807_v41 = vld [vmem:[#allocation2 + $0x6c] sm:$0xf]  ;;  %5763 = vst.msk [vmem:[#allocation3 + $0x12c] sm:$0xf] %vm334_vm0, %v5731_v27  ;;  %v6075_v13 = vor.u32 %v6074_v33, %v6071_v42  ;;  %v6463_v26 = vsel %vm13288_vm14, %v6461_v57, %v6462_v9 }
 0x2fa   : > { %v5730_v3 = vld [vmem:[#allocation2 + $0x54] sm:$0xf]  ;;  %7269 = vst.msk [vmem:[#allocation3 + $0x1c] sm:$0xf] %vm334_vm0, %v6875_v36  ;;  %v6855_v34 = vrot.slane %v6853_v54, 4  ;;  %v6058_v22 = vshrl.u32 %v5808_v45, 16  ;;  %8152 = vrot.lane.b32.xlu0 %v7881_v7, %s12692_s19 }
 0x2fb   : > { %v5809_v63 = vld [vmem:[#allocation2 + $0x74] sm:$0x1]  ;;  %v6348_v29 = vld [vmem:[#allocation2 + $0x20] sm:$0x1]  ;;  %v6346_v43 = vld [vmem:[#allocation2 + $0x18] sm:$0xe] }
 0x2fc   : > { %5762 = vst.msk [vmem:[#allocation3 + $0x118] sm:$0xf] %vm334_vm0, %v5730_v3  ;;  %v6635_v58 = vld [vmem:[#allocation2 + $0x94] sm:$0xf]  ;;  %6587 = vst.msk [vmem:[#allocation3 + $0x90] sm:$0xf] %vm334_vm0, %v6463_v26 }
 0x2fd   : > { %7605 = vst.msk [vmem:[#allocation3 + $0x1c] sm:$0xf] %vm1604_vm15, %v15443_v49  ;;  %v6858_v25 = vrot.slane %v6856_v6, 5  ;;  %v15554_v23 = vrot.slane %v6054_v32, 5  ;;  %v7647_v31 = vld [vmem:[#allocation2 + $0x58] sm:$0xf]  ;;  %6722 = vrot.lane.b32.xlu1 %v6635_v58, %s12692_s19 }
 0x2fe   : > { %v6086_v11 = vrot.slane %v6085_v44, 4  ;;  %6779 = vst.msk [vmem:[#allocation3 + $0x90] sm:$0xf] %vm1604_vm15, %v15479_v24  ;;  %v6060_v8 = vrot.slane %v6058_v22, 4  ;;  %v6045_v48 = vshrl.u32 %v5807_v41, 16  ;;  %v6048_v21 = vshll.u32 %v5807_v41, 16  ;;  %v6217_v22 = vpop.permute.xlu0 %6216 }
 0x2ff   : > { %7679 = vst.msk [vmem:[#allocation3 + $0xe8] sm:$0xf] %vm334_vm0, %v7647_v31  ;;  %v7646_v2 = vld [vmem:[#allocation2 + $0x54] sm:$0xf]  ;;  %v6090_v49 = vrot.slane %v6088_v35, 5  ;;  %v6859_v10 = vor.u32 %v6858_v25, %v6855_v34  ;;  %v6064_v47 = vshll.u32 %v5809_v63, 16 }
 0x300   : > { %8228 = vst.msk [vmem:[#allocation3 + $0xc] sm:$0xf] %vm1604_vm15, %v8133_v18  ;;  %v6452_v55 = vrot.slane %v15536_v16, 5  ;;  %v5817_v24 = vld [vmem:[#allocation2 + $0x94] sm:$0xf]  ;;  %v6076_v59 = vrot.slane %v6075_v13, 4  ;;  %v6061_v53 = vor.u32 %v6060_v8, %v15554_v23  ;;  %v6219_v16 = vpop.permute.xlu1 %6218 }
 0x301   : > { %7678 = vst.msk [vmem:[#allocation3 + $0xd4] sm:$0xf] %vm334_vm0, %v7646_v2  ;;  %v6047_v28 = vrot.slane %v6045_v48, 4  ;;  %v6050_v61 = vrot.slane %v6048_v21, 5  ;;  %v6814_v52 = vld [vmem:[#allocation2 + $0x34] sm:$0xf]  ;;  %v6091_v0 = vsel %vm12808_vm9, %v6086_v11, %v6090_v49 }
 0x302   : > { %v6634_v56 = vld [vmem:[#allocation2 + $0x90] sm:$0xf]  ;;  %v6860_v14 = vrot.slane %v6859_v10, 4  ;;  %v6454_v46 = vrot.slane %v6452_v55, 4  ;;  %v6455_v40 = vrot.slane %v6348_v29, 5  ;;  %v11535_v30 = vrot.slane %v6346_v43, 9  ;;  %6254 = vrot.lane.b32.xlu1 %v6091_v0, %s12692_s19 }
 0x303   : > { %v15565_v50 = vld [vmem:[#allocation2 + $0x38] sm:$0x1]  ;;  %v6126_v12 = vshll.u32 %v5817_v24, 16  ;;  %v6130_v4 = vshrl.u32 %v5817_v24, 16  ;;  %v5816_v5 = vld [vmem:[#allocation2 + $0x90] sm:$0xf]  ;;  %6720 = vrot.lane.b32.xlu0 %v6634_v56, %s12692_s19  ;;  %v6051_v9 = vor.u32 %v6050_v61, %v6047_v28  ;;  %v6081_v36 = vsel %vm12808_vm9, %v6076_v59, %v15527_v60 }
 0x304   : > { %v12575_v1 = vld [vmem:[%s17463_s3 + $0x108] sm:$0xff]   ;;  %v6865_v38 = vsel %vm12808_vm9, %v6860_v14, %v15502_v15  ;;  %v6066_v45 = vrot.slane %v6064_v47, 5  ;;  %v6456_v37 = vsel %vm13288_vm14, %v6454_v46, %v6455_v40  ;;  %v6453_v39 = vsel %vm13288_vm14, %v11535_v30, %v6452_v55  ;;  %v5818_v35 = vld [vmem:[#allocation2 + $0x98] sm:$0x1]  ;;  %v6813_v42 = vld [vmem:[#allocation2 + $0x30] sm:$0xf]  ;;  %v7523_v31 = vpop.permute.xlu1 %7522 }
 0x305   : > { %v6633_v33 = vld [vmem:[#allocation2 + $0x88] sm:$0xf]  ;;  %7268 = vst.msk [vmem:[#allocation3 + $0x8] sm:$0xf] %vm334_vm0, %v6865_v38  ;;  %v6062_v57 = vrot.slane %v6061_v53, 4  ;;  %v15584_v54 = vrot.slane %v6126_v12, 5  ;;  %12328 = vmatprep.subr.bf16.mxu1 %v12575_v1 }
 0x306   : > { %6585 = vst.msk [vmem:[#allocation3 + $0x68] sm:$0xf] %vm334_vm0, %v6456_v37  ;;  %6584 = vst.msk [vmem:[#allocation3 + $0x54] sm:$0xf] %vm334_vm0, %v6453_v39  ;;  %v6132_v15 = vrot.slane %v6130_v4, 4  ;;  %v6117_v44 = vshrl.u32 %v5816_v5, 16  ;;  %12329 = vmatpush3.bf16.msra.mxu1 %v12575_v1  ;;  %6718 = vrot.lane.b32.xlu1 %v6633_v33, %s12692_s19 }
 0x307   : > { %v5814_v27 = vld [vmem:[#allocation2 + $0x88] sm:$0xf]  ;;  %7604 = vst.msk [vmem:[#allocation3 + $0x8] sm:$0xf] %vm1604_vm15, %v15529_v17  ;;  %6777 = vst.msk [vmem:[#allocation3 + $0x68] sm:$0xf] %vm1604_vm15, %v6687_v20  ;;  %6252 = vrot.lane.b32.xlu0 %v6081_v36, %s12692_s19  ;;  %v6067_v7 = vsel %vm12808_vm9, %v6062_v57, %v6066_v45 }
 0x308   : > { %6776 = vst.msk [vmem:[#allocation3 + $0x54] sm:$0xf] %vm1604_vm15, %v6685_v19  ;;  %v6120_v6 = vshll.u32 %v5816_v5, 16  ;;  %6311 = vst.msk [vmem:[#allocation3 + $0x3c] sm:$0xf] %vm1604_vm15, %v6219_v16  ;;  %v6934_v32 = vshll.u32 %v6814_v52, 16  ;;  %v6133_v3 = vor.u32 %v6132_v15, %v15584_v54  ;;  %v15621_v4 = vpop.permute.xlu1 %7518 }
 0x309   : > { %v5737_v41 = vld [vmem:[#allocation2 + $0x7c] sm:$0xf]  ;;  %v6136_v13 = vshll.u32 %v5818_v35, 16  ;;  %v6938_v26 = vshrl.u32 %v6814_v52, 16  ;;  %v6944_v60 = vshll.u32 %v15565_v50, 16  ;;  %v6119_v34 = vrot.slane %v6117_v44, 4  ;;  %v7521_v52 = vpop.permute.xlu0 %7520 }
 0x30a   : > { %5769 = vst.msk [vmem:[#allocation3 + $0x1a4] sm:$0xf] %vm334_vm0, %v5737_v41  ;;  %v5736_v17 = vld [vmem:[#allocation2 + $0x78] sm:$0xf]  ;;  %v6122_v63 = vrot.slane %v6120_v6, 5  ;;  %v15599_v29 = vrot.slane %v6934_v32, 5  ;;  %6250 = vrot.lane.b32.xlu1 %v6067_v7, %s12692_s19 }
 0x30b   : > { %v6925_v43 = vshrl.u32 %v6813_v42, 16  ;;  %5768 = vst.msk [vmem:[#allocation3 + $0x190] sm:$0xf] %vm334_vm0, %v5736_v17  ;;  %v6052_v58 = vrot.slane %v6051_v9, 4  ;;  %v6940_v25 = vrot.slane %v6938_v26, 4  ;;  %v6928_v11 = vshll.u32 %v6813_v42, 16 }
 0x30c   : > { %6310 = vst.msk [vmem:[#allocation3 + $0x28] sm:$0xf] %vm1604_vm15, %v6217_v22  ;;  %v5813_v8 = vld [vmem:[#allocation2 + $0x84] sm:$0xf]  ;;  %v6123_v21 = vor.u32 %v6122_v63, %v6119_v34  ;;  %v6102_v20 = vshll.u32 %v5814_v27, 16  ;;  %v6106_v2 = vshrl.u32 %v5814_v27, 16  ;;  %v15647_v17 = vpop.permute.xlu1 %6698 }
 0x30d   : > { %v6632_v48 = vld [vmem:[#allocation2 + $0x84] sm:$0xf]  ;;  %v6927_v18 = vrot.slane %v6925_v43, 4  ;;  %v6811_v49 = vld [vmem:[#allocation2 + $0x28] sm:$0xf]  ;;  %v15605_v10 = vrot.slane %v6133_v3, 4  ;;  %v6941_v55 = vor.u32 %v6940_v25, %v15599_v29  ;;  %v6057_v30 = vsel %vm12808_vm9, %v6052_v58, %v15554_v23  ;;  %v6697_v27 = vpop.permute.xlu0 %6696 }
 0x30e   : > { %v15607_v47 = vrot.slane %v6136_v13, 5  ;;  %v6930_v24 = vrot.slane %v6928_v11, 5  ;;  %v5815_v59 = vld [vmem:[#allocation2 + $0x8c] sm:$0x1]  ;;  %v6355_v28 = vld [vmem:[#allocation2 + $0x3c] sm:$0xe]  ;;  %6716 = vrot.lane.b32.xlu0 %v6632_v48, %s12692_s19 }
 0x30f   : > { %v15610_v53 = vld [vmem:[#allocation2 + $0x2c] sm:$0x1]  ;;  %v6946_v61 = vrot.slane %v6944_v60, 5  ;;  %v15614_v56 = vrot.slane %v6102_v20, 5  ;;  %v6108_v14 = vrot.slane %v6106_v2, 4  ;;  %v6093_v46 = vshrl.u32 %v5813_v8, 16 }
 0x310   : > { %v15616_v40 = vld [vmem:[#allocation2 + $0x40] sm:$0xf]  ;;  %v12544_v0 = vld [vmem:[#allocation3 + $0xc] ss:$20 sps:$4 sm:$0xff]   ;;  %v6942_v19 = vrot.slane %v6941_v55, 4  ;;  %v6931_v12 = vor.u32 %v6930_v24, %v6927_v18  ;;  %v15623_v5 = vrot.slane %v6123_v21, 4  ;;  %v6139_v57 = vsel %vm12808_vm9, %v15605_v10, %v15607_v47 }
 0x311   : > { %v12542_v50 = vld [vmem:[#allocation3 + $0x8] ss:$20 sps:$4 sm:$0xff]   ;;  %v6109_v1 = vor.u32 %v6108_v14, %v15614_v56  ;;  %v6112_v38 = vshll.u32 %v5815_v59, 16  ;;  %v15626_v45 = vrot.slane %v6093_v46, 4  ;;  %v7719_v37 = vld [vmem:[#allocation2 + $0x64] sm:$0xf]  ;;  %9564 = vmatprep.mubr.bf16.mxu0 %v12544_v0  ;;  %v6229_v2 = vpop.permute.xlu0 %6228 }
 0x312   : > { %v6639_v39 = vld [vmem:[#allocation2 + $0xac] sm:$0xf]  ;;  %v6947_v35 = vsel %vm12808_vm9, %v6942_v19, %v6946_v61  ;;  %v6932_v23 = vrot.slane %v6931_v12, 4  ;;  %v6096_v42 = vshll.u32 %v5813_v8, 16  ;;  %v6910_v33 = vshll.u32 %v6811_v49, 16  ;;  %6248 = vrot.lane.b32.xlu0 %v6057_v30, %s12692_s19  ;;  %9565 = vmatmul.mubr.bf16.vlgmr.msra.gmra.mxu0 %v12542_v50  ;;  %v8541_v11 = vld [vmem:[#allocation3 + $0x3c] sm:$0xff] }
 0x313   : > { %6730 = vrot.lane.b32.xlu1 %v6639_v39, %s12692_s19  ;;  %7275 = vst.msk [vmem:[#allocation3 + $0x94] sm:$0xf] %vm334_vm0, %v6947_v35  ;;  %v6914_v9 = vshrl.u32 %v6811_v49, 16  ;;  %v6920_v15 = vshll.u32 %v15610_v53, 16  ;;  %v11538_v16 = vrot.slane %v6355_v28, 9  ;;  %v6473_v13 = vrot.slane %v15616_v40, 5  ;;  %v6231_v40 = vpop.permute.xlu1 %6230 }
 0x314   : > { %v15638_v36 = vld [vmem:[#allocation2 + $0x68] sm:$0x1]  ;;  %v7718_v44 = vld [vmem:[#allocation2 + $0x60] sm:$0xf]  ;;  %7611 = vst.msk [vmem:[#allocation3 + $0x94] sm:$0xf] %vm1604_vm15, %v7523_v31  ;;  %v6937_v32 = vsel %vm12808_vm9, %v6932_v23, %v15599_v29  ;;  %v6129_v34 = vsel %vm12808_vm9, %v15623_v5, %v15584_v54 }
 0x315   : > { %v6638_v6 = vld [vmem:[#allocation2 + $0xa8] sm:$0xf]  ;;  %v6098_v41 = vrot.slane %v6096_v42, 5  ;;  %v15644_v3 = vrot.slane %v6910_v33, 5  ;;  %v12545_v26 = vld [vmem:[#allocation3 + $0x2c] ss:$20 sps:$4 sm:$0xff]   ;;  %v6474_v25 = vsel %vm13288_vm14, %v11538_v16, %v6473_v13 }
 0x316   : > { %v6357_v60 = vld [vmem:[#allocation2 + $0x44] sm:$0x1]  ;;  %7274 = vst.msk [vmem:[#allocation3 + $0x80] sm:$0xf] %vm334_vm0, %v6937_v32  ;;  %v15654_v63 = vrot.slane %v6112_v38, 5  ;;  %v6916_v22 = vrot.slane %v6914_v9, 4  ;;  %9411 = vmatprep.mubr.bf16.mxu1 %v12545_v26  ;;  %6728 = vrot.lane.b32.xlu0 %v6638_v6, %s12692_s19 }
 0x317   : > { %v7902_v29 = vshll.u32 %v7719_v37, 16  ;;  %v15656_v43 = vld [vmem:[#allocation2 + $0xac] sm:$0xf]  ;;  %7610 = vst.msk [vmem:[#allocation3 + $0x80] sm:$0xf] %vm1604_vm15, %v7521_v52  ;;  %v15659_v7 = vrot.slane %v6109_v1, 4  ;;  %v6099_v58 = vor.u32 %v6098_v41, %v15626_v45  ;;  %6262 = vrot.lane.b32.xlu1 %v6139_v57, %s12692_s19 }
 0x318   : > { %v7906_v31 = vshrl.u32 %v7719_v37, 16  ;;  %v5735_v54 = vld [vmem:[#allocation2 + $0x70] sm:$0xf]  ;;  %v6917_v8 = vor.u32 %v6916_v22, %v15644_v3  ;;  %6590 = vst.msk [vmem:[#allocation3 + $0xcc] sm:$0xf] %vm334_vm0, %v6474_v25  ;;  %v7893_v21 = vshrl.u32 %v7718_v44, 16 }
 0x319   : > { %v15668_v48 = vrot.slane %v7902_v29, 5  ;;  %v7896_v18 = vshll.u32 %v7718_v44, 16  ;;  %v8538_v20 = vld [vmem:[#allocation3 + $0x28] sm:$0xff]  ;;  %5767 = vst.msk [vmem:[#allocation3 + $0x17c] sm:$0xf] %vm334_vm0, %v5735_v54  ;;  %v6922_v47 = vrot.slane %v6920_v15, 5  ;;  %v6115_v42 = vsel %vm12808_vm9, %v15659_v7, %v15654_v63  ;;  %v7517_v54 = vpop.permute.xlu0 %7516 }
 0x31a   : > { %v5734_v49 = vld [vmem:[#allocation2 + $0x6c] sm:$0xf]  ;;  %v6637_v10 = vld [vmem:[#allocation2 + $0xa0] sm:$0xf]  ;;  %6782 = vst.msk [vmem:[#allocation3 + $0xcc] sm:$0xf] %vm1604_vm15, %v6697_v27  ;;  %v11587_v0 = vcombine.low %v8538_v20, %v8541_v11  ;;  %6260 = vrot.lane.b32.xlu0 %v6129_v34, %s12692_s19 }
 0x31b   : > { %v7908_v55 = vrot.slane %v7906_v31, 4  ;;  %v7912_v24 = vshll.u32 %v15638_v36, 16  ;;  %v6475_v59 = vrot.slane %v6473_v13, 4  ;;  %6316 = vst.msk [vmem:[#allocation3 + $0xa0] sm:$0xf] %vm1604_vm15, %v6229_v2  ;;  %v6918_v28 = vrot.slane %v6917_v8, 4  ;;  %6726 = vrot.lane.b32.xlu1 %v6637_v10, %s12692_s19  ;;  %v8143_v10 = vpop.permute.xlu1 %8142 }
 0x31c   : > { %v6810_v53 = vld [vmem:[#allocation2 + $0x24] sm:$0xf]  ;;  %5766 = vst.msk [vmem:[#allocation3 + $0x168] sm:$0xf] %vm334_vm0, %v5734_v49  ;;  %v7895_v61 = vrot.slane %v7893_v21, 4  ;;  %v7898_v52 = vrot.slane %v7896_v18, 5  ;;  %9412 = vmatmul.mubr.bf16.gmra.mxu1 %v11587_v0 }
 0x31d   : > { %v6476_v14 = vrot.slane %v6357_v60, 5  ;;  %v5822_v46 = vld [vmem:[#allocation2 + $0xa8] sm:$0xf]  ;;  %v15675_v30 = vrot.slane %v6099_v58, 4  ;;  %v7909_v50 = vor.u32 %v7908_v55, %v15668_v48  ;;  %v15678_v19 = vld [vmem:[#allocation2 + $0xb0] sm:$0x1]  ;;  %v6923_v1 = vsel %vm12808_vm9, %v6918_v28, %v6922_v47 }
 0x31e   : > { %v6174_v12 = vshll.u32 %v15656_v43, 16  ;;  %6317 = vst.msk [vmem:[#allocation3 + $0xb4] sm:$0xf] %vm1604_vm15, %v6231_v40  ;;  %v5741_v5 = vld [vmem:[#allocation2 + $0x94] sm:$0xf]  ;;  %v7899_v38 = vor.u32 %v7898_v52, %v7895_v61  ;;  %v6178_v39 = vshrl.u32 %v15656_v43, 16 }
 0x31f   : > { %v6477_v45 = vsel %vm13288_vm14, %v6475_v59, %v6476_v14  ;;  %v12547_v37 = vld [vmem:[#allocation3 + $0x54] ss:$20 sps:$4 sm:$0xff]   ;;  %5773 = vst.msk [vmem:[#allocation3 + $0x1f4] sm:$0xf] %vm334_vm0, %v5741_v5  ;;  %v5740_v35 = vld [vmem:[#allocation2 + $0x90] sm:$0xf]  ;;  %6258 = vrot.lane.b32.xlu1 %v6115_v42, %s12692_s19 }
 0x320   : > { %v6636_v23 = vld [vmem:[#allocation2 + $0x9c] sm:$0xf]  ;;  %7273 = vst.msk [vmem:[#allocation3 + $0x6c] sm:$0xf] %vm334_vm0, %v6923_v1  ;;  %v7910_v33 = vrot.slane %v7909_v50, 4  ;;  %v15696_v57 = vrot.slane %v6174_v12, 5  ;;  %9419 = vmatprep.mubr.bf16.mxu1 %v12547_v37  ;;  %v6695_v37 = vpop.permute.xlu1 %6694 }
 0x321   : > { %6591 = vst.msk [vmem:[#allocation3 + $0xe0] sm:$0xf] %vm334_vm0, %v6477_v45  ;;  %v6165_v9 = vshrl.u32 %v5822_v46, 16  ;;  %v5820_v15 = vld [vmem:[#allocation2 + $0xa0] sm:$0xf]  ;;  %v7914_v27 = vrot.slane %v7912_v24, 5  ;;  %6724 = vrot.lane.b32.xlu0 %v6636_v23, %s12692_s19 }
 0x322   : > { %v5819_v16 = vld [vmem:[#allocation2 + $0x9c] sm:$0xf]  ;;  %5772 = vst.msk [vmem:[#allocation3 + $0x1e0] sm:$0xf] %vm334_vm0, %v5740_v35  ;;  %v8544_v36 = vld [vmem:[#allocation3 + $0x50] sm:$0xff]  ;;  %v6180_v6 = vrot.slane %v6178_v39, 4 }
 0x323   : > { %7609 = vst.msk [vmem:[#allocation3 + $0x6c] sm:$0xf] %vm1604_vm15, %v15621_v4  ;;  %6783 = vst.msk [vmem:[#allocation3 + $0xe0] sm:$0xf] %vm1604_vm15, %v15647_v17  ;;  %v8547_v44 = vld [vmem:[#allocation3 + $0x64] sm:$0xff]  ;;  %v6168_v32 = vshll.u32 %v5822_v46, 16  ;;  %v6105_v4 = vsel %vm12808_vm9, %v15675_v30, %v15614_v56  ;;  %v7915_v31 = vsel %vm12808_vm9, %v7910_v33, %v7914_v27  ;;  %v8141_v33 = vpop.permute.xlu0 %8140 }
 0x324   : > { %v6901_v41 = vshrl.u32 %v6810_v53, 16  ;;  %v15703_v13 = vrot.slane %v7899_v38, 4  ;;  %v6184_v26 = vshll.u32 %v15678_v19, 16  ;;  %v6167_v60 = vrot.slane %v6165_v9, 4  ;;  %v15706_v63 = vld [vmem:[#allocation2 + $0xa4] sm:$0x1]  ;;  %8158 = vrot.lane.b32.xlu1 %v7915_v31, %s12692_s19 }
 0x325   : > { %v6904_v34 = vshll.u32 %v6810_v53, 16  ;;  %v5739_v22 = vld [vmem:[#allocation2 + $0x88] sm:$0xf]  ;;  %v6181_v17 = vor.u32 %v6180_v6, %v15696_v57  ;;  %v6170_v29 = vrot.slane %v6168_v32, 5  ;;  %v6353_v7 = vld [vmem:[#allocation2 + $0x34] sm:$0xf]  ;;  %v11592_v47 = vcombine.low %v8544_v36, %v8547_v44  ;;  %6256 = vrot.lane.b32.xlu0 %v6105_v4, %s12692_s19 }
 0x326   : > { %v6903_v43 = vrot.slane %v6901_v41, 4  ;;  %5771 = vst.msk [vmem:[#allocation3 + $0x1cc] sm:$0xf] %vm334_vm0, %v5739_v22  ;;  %v5738_v58 = vld [vmem:[#allocation2 + $0x84] sm:$0xf]  ;;  %v6150_v8 = vshll.u32 %v5820_v15, 16  ;;  %v7905_v46 = vsel %vm12808_vm9, %v15703_v13, %v15668_v48 }
 0x327   : > { %v7649_v25 = vld [vmem:[#allocation2 + $0x64] sm:$0xf]  ;;  %v6906_v11 = vrot.slane %v6904_v34, 5  ;;  %v6154_v21 = vshrl.u32 %v5820_v15, 16  ;;  %v6354_v18 = vld [vmem:[#allocation2 + $0x38] sm:$0x1]  ;;  %v6171_v49 = vor.u32 %v6170_v29, %v6167_v60  ;;  %9420 = vmatmul.mubr.bf16.gmra.mxu1 %v11592_v47 }
 0x328   : > { %v6352_v20 = vld [vmem:[#allocation2 + $0x30] sm:$0xe]  ;;  %5770 = vst.msk [vmem:[#allocation3 + $0x1b8] sm:$0xf] %vm334_vm0, %v5738_v58  ;;  %7681 = vst.msk [vmem:[#allocation3 + $0x110] sm:$0xf] %vm334_vm0, %v7649_v25  ;;  %v6693_v58 = vpop.permute.xlu0 %6692 }
 0x329   : > { %v7648_v56 = vld [vmem:[#allocation2 + $0x60] sm:$0xf]  ;;  %v6182_v2 = vrot.slane %v6181_v17, 4  ;;  %v6141_v55 = vshrl.u32 %v5819_v16, 16  ;;  %v15720_v24 = vld [vmem:[#allocation2 + $0x64] sm:$0xf]  ;;  %v6907_v53 = vor.u32 %v6906_v11, %v6903_v43  ;;  %8156 = vrot.lane.b32.xlu0 %v7905_v46, %s12692_s19 }
 0x32a   : > { %7680 = vst.msk [vmem:[#allocation3 + $0xfc] sm:$0xf] %vm334_vm0, %v7648_v56  ;;  %v5745_v59 = vld [vmem:[#allocation2 + $0xac] sm:$0xf]  ;;  %v15724_v28 = vrot.slane %v6150_v8, 5  ;;  %v6156_v61 = vrot.slane %v6154_v21, 4 }
 0x32b   : > { %8233 = vst.msk [vmem:[#allocation3 + $0x70] sm:$0xf] %vm1604_vm15, %v8143_v10  ;;  %v6144_v52 = vshll.u32 %v5819_v16, 16  ;;  %v5744_v14 = vld [vmem:[#allocation2 + $0xa8] sm:$0xf]  ;;  %v6186_v40 = vrot.slane %v6184_v26, 5 }
 0x32c   : > { %5777 = vst.msk [vmem:[#allocation3 + $0x244] sm:$0xf] %vm334_vm0, %v5745_v59  ;;  %v6160_v30 = vshll.u32 %v15706_v63, 16  ;;  %v6143_v50 = vrot.slane %v6141_v55, 4  ;;  %5776 = vst.msk [vmem:[#allocation3 + $0x230] sm:$0xf] %vm334_vm0, %v5744_v14  ;;  %v6157_v19 = vor.u32 %v6156_v61, %v15724_v28 }
 0x32d   : > { %v6908_v0 = vrot.slane %v6907_v53, 4  ;;  %v6146_v12 = vrot.slane %v6144_v52, 5  ;;  %v6466_v5 = vrot.slane %v6353_v7, 5  ;;  %v15736_v1 = vld [vmem:[#allocation2 + $0x68] sm:$0x1]  ;;  %v6172_v38 = vrot.slane %v6171_v49, 4 }
 0x32e   : > { %v6469_v45 = vrot.slane %v6354_v18, 5  ;;  %v11537_v39 = vrot.slane %v6352_v20, 9  ;;  %v7447_v48 = vrot.slane %v15720_v24, 5  ;;  %v7722_v35 = vld [vmem:[#allocation2 + $0x70] sm:$0xf]  ;;  %v6187_v23 = vsel %vm12808_vm9, %v6182_v2, %v6186_v40  ;;  %v12588_v32 = vld [vmem:[%s17463_s3 + $0x100] sm:$0xff]  }
 0x32f   : > { %v6913_v42 = vsel %vm12808_vm9, %v6908_v0, %v15644_v3  ;;  %v15744_v9 = vrot.slane %v6157_v19, 4  ;;  %v6468_v15 = vrot.slane %v6466_v5, 4  ;;  %v5743_v16 = vld [vmem:[#allocation2 + $0xa0] sm:$0xf]  ;;  %v5742_v27 = vld [vmem:[#allocation2 + $0x9c] sm:$0xf]  ;;  %6270 = vrot.lane.b32.xlu1 %v6187_v23, %s12692_s19  ;;  %v6147_v36 = vor.u32 %v6146_v12, %v6143_v50  ;;  %12330 = vmatprep.subr.bf16.mxu1 %v12588_v32 }
 0x330   : > { %7272 = vst.msk [vmem:[#allocation3 + $0x58] sm:$0xf] %vm334_vm0, %v6913_v42  ;;  %v6467_v44 = vsel %vm13288_vm14, %v11537_v39, %v6466_v5  ;;  %v15752_v6 = vld [vmem:[#allocation2 + $0x74] sm:$0x1]  ;;  %v7721_v3 = vld [vmem:[#allocation2 + $0x6c] sm:$0xf]  ;;  %v6177_v63 = vsel %vm12808_vm9, %v6172_v38, %v15696_v57  ;;  %v6227_v57 = vpop.permute.xlu1 %6226  ;;  %12331 = vmatpush3.bf16.msra.mxu1 %v12588_v32  ;;  %v6225_v5 = vpop.permute.xlu0 %6224 }
 0x331   : > { %8232 = vst.msk [vmem:[#allocation3 + $0x5c] sm:$0xf] %vm1604_vm15, %v8141_v33  ;;  %7608 = vst.msk [vmem:[#allocation3 + $0x58] sm:$0xf] %vm1604_vm15, %v7517_v54  ;;  %v6162_v41 = vrot.slane %v6160_v30, 5  ;;  %v6470_v13 = vsel %vm13288_vm14, %v6468_v15, %v6469_v45  ;;  %v7926_v26 = vshll.u32 %v7722_v35, 16  ;;  %6268 = vrot.lane.b32.xlu0 %v6177_v63, %s12692_s19 }
 0x332   : > { %5775 = vst.msk [vmem:[#allocation3 + $0x21c] sm:$0xf] %vm334_vm0, %v5743_v16  ;;  %5774 = vst.msk [vmem:[#allocation3 + $0x208] sm:$0xf] %vm334_vm0, %v5742_v27  ;;  %v6820_v60 = vld [vmem:[#allocation2 + $0x4c] sm:$0xf] }
 0x333   : > { %6588 = vst.msk [vmem:[#allocation3 + $0xa4] sm:$0xf] %vm334_vm0, %v6467_v44  ;;  %v15763_v34 = vld [vmem:[#allocation2 + $0x50] sm:$0x1]  ;;  %6589 = vst.msk [vmem:[#allocation3 + $0xb8] sm:$0xf] %vm334_vm0, %v6470_v13  ;;  %v6163_v7 = vsel %vm12808_vm9, %v15744_v9, %v6162_v41 }
 0x334   : > { %v15771_v22 = vrot.slane %v7447_v48, 4  ;;  %v7450_v4 = vrot.slane %v15736_v1, 5  ;;  %v7930_v17 = vshrl.u32 %v7722_v35, 16  ;;  %v6819_v29 = vld [vmem:[#allocation2 + $0x48] sm:$0xf]  ;;  %v15780_v31 = vrot.slane %v7926_v26, 5  ;;  %v8139_v27 = vpop.permute.xlu1 %8138 }
 0x335   : > { %v6641_v43 = vld [vmem:[#allocation2 + $0xb8] sm:$0xf]  ;;  %6781 = vst.msk [vmem:[#allocation3 + $0xb8] sm:$0xf] %vm1604_vm15, %v6695_v37  ;;  %v15778_v25 = vld [vmem:[#allocation2 + $0x60] sm:$0xe] }
 0x336   : > { %v7917_v11 = vshrl.u32 %v7721_v3, 16  ;;  %v7920_v54 = vshll.u32 %v7721_v3, 16  ;;  %6734 = vrot.lane.b32.xlu1 %v6641_v43, %s12692_s19  ;;  %v6148_v8 = vrot.slane %v6147_v36, 4  ;;  %6780 = vst.msk [vmem:[#allocation3 + $0xa4] sm:$0xf] %vm1604_vm15, %v6693_v58  ;;  %v7932_v21 = vrot.slane %v7930_v17, 4 }
 0x337   : > { %6315 = vst.msk [vmem:[#allocation3 + $0x8c] sm:$0xf] %vm1604_vm15, %v6227_v57  ;;  %v6982_v18 = vshll.u32 %v6820_v60, 16  ;;  %v6986_v20 = vshrl.u32 %v6820_v60, 16  ;;  %v5826_v56 = vld [vmem:[#allocation2 + $0xb8] sm:$0xf] }
 0x338   : > { %v5825_v2 = vld [vmem:[#allocation2 + $0xb4] sm:$0xf]  ;;  %v7936_v49 = vshll.u32 %v15752_v6, 16  ;;  %v7919_v10 = vrot.slane %v7917_v11, 4  ;;  %v7922_v47 = vrot.slane %v7920_v54, 5  ;;  %v6973_v55 = vshrl.u32 %v6819_v29, 16 }
 0x339   : > { %v7651_v59 = vld [vmem:[#allocation2 + $0x70] sm:$0xf]  ;;  %v15787_v53 = vrot.slane %v6982_v18, 5  ;;  %v6988_v61 = vrot.slane %v6986_v20, 4  ;;  %v6992_v52 = vshll.u32 %v15763_v34, 16  ;;  %v6976_v14 = vshll.u32 %v6819_v29, 16  ;;  %v8137_v18 = vpop.permute.xlu0 %8136  ;;  %v7531_v20 = vpop.permute.xlu1 %7530 }
 0x33a   : > { %7683 = vst.msk [vmem:[#allocation3 + $0x138] sm:$0xf] %vm334_vm0, %v7651_v59  ;;  %v7650_v46 = vld [vmem:[#allocation2 + $0x6c] sm:$0xf]  ;;  %v6640_v40 = vld [vmem:[#allocation2 + $0xb4] sm:$0xf]  ;;  %v7933_v30 = vor.u32 %v7932_v21, %v15780_v31  ;;  %v7923_v50 = vor.u32 %v7922_v47, %v7919_v10  ;;  %6266 = vrot.lane.b32.xlu1 %v6163_v7, %s12692_s19  ;;  %v6153_v23 = vsel %vm12808_vm9, %v6148_v8, %v15724_v28 }
 0x33b   : > { %v6975_v0 = vrot.slane %v6973_v55, 4  ;;  %v6198_v19 = vshll.u32 %v5826_v56, 16  ;;  %v6817_v12 = vld [vmem:[#allocation2 + $0x40] sm:$0xf]  ;;  %7682 = vst.msk [vmem:[#allocation3 + $0x124] sm:$0xf] %vm334_vm0, %v7650_v46  ;;  %6732 = vrot.lane.b32.xlu0 %v6640_v40, %s12692_s19  ;;  %v6989_v45 = vor.u32 %v6988_v61, %v15787_v53  ;;  %v7451_v61 = vsel %vm13288_vm14, %v15771_v22, %v7450_v4 }
 0x33c   : > { %v11556_v38 = vrot.slane %v15778_v25, 9  ;;  %v6978_v37 = vrot.slane %v6976_v14, 5  ;;  %v6202_v39 = vshrl.u32 %v5826_v56, 16  ;;  %v15797_v35 = vld [vmem:[#allocation2 + $0x44] sm:$0x1]  ;;  %v15803_v42 = vrot.slane %v7936_v49, 5 }
 0x33d   : > { %6314 = vst.msk [vmem:[#allocation3 + $0x78] sm:$0xf] %vm1604_vm15, %v6225_v5  ;;  %v15805_v33 = vld [vmem:[#allocation2 + $0xbc] sm:$0x1]  ;;  %v15807_v9 = vrot.slane %v6198_v19, 5  ;;  %v6189_v15 = vshrl.u32 %v5825_v2, 16 }
 0x33e   : > { %v6361_v16 = vld [vmem:[#allocation2 + $0x54] sm:$0xe]  ;;  %v6990_v36 = vrot.slane %v6989_v45, 4  ;;  %v6994_v44 = vrot.slane %v6992_v52, 5  ;;  %v6979_v6 = vor.u32 %v6978_v37, %v6975_v0  ;;  %v6204_v3 = vrot.slane %v6202_v39, 4  ;;  %v7529_v45 = vpop.permute.xlu0 %7528  ;;  %v7527_v39 = vpop.permute.xlu1 %7526 }
 0x33f   : > { %v15809_v32 = vld [vmem:[#allocation2 + $0x58] sm:$0xf]  ;;  %v6643_v41 = vld [vmem:[#allocation2 + $0xc4] sm:$0xf]  ;;  %8231 = vst.msk [vmem:[#allocation3 + $0x48] sm:$0xf] %vm1604_vm15, %v8139_v27  ;;  %6264 = vrot.lane.b32.xlu0 %v6153_v23, %s12692_s19 }
 0x340   : > { %v15812_v28 = vrot.slane %v7933_v30, 4  ;;  %v15814_v13 = vrot.slane %v7923_v50, 4  ;;  %v15816_v26 = vrot.slane %v6189_v15, 4  ;;  %v6192_v60 = vshll.u32 %v5825_v2, 16  ;;  %v15818_v34 = vld [vmem:[#allocation2 + $0x70] sm:$0xf]  ;;  %6738 = vrot.lane.b32.xlu1 %v6643_v41, %s12692_s19 }
 0x341   : > { %v6995_v63 = vsel %vm12808_vm9, %v6990_v36, %v6994_v44  ;;  %v6980_v17 = vrot.slane %v6979_v6, 4  ;;  %v6208_v29 = vshll.u32 %v15805_v33, 16  ;;  %v6958_v43 = vshll.u32 %v6817_v12, 16  ;;  %v5747_v7 = vld [vmem:[#allocation2 + $0xb8] sm:$0xf]  ;;  %v8553_v2 = vld [vmem:[#allocation3 + $0x8c] sm:$0xff] }
 0x342   : > { %7279 = vst.msk [vmem:[#allocation3 + $0xe4] sm:$0xf] %vm334_vm0, %v6995_v63  ;;  %v6205_v58 = vor.u32 %v6204_v3, %v15807_v9  ;;  %v6194_v57 = vrot.slane %v6192_v60, 5  ;;  %v6962_v25 = vshrl.u32 %v6817_v12, 16  ;;  %v6968_v11 = vshll.u32 %v15797_v35, 16 }
 0x343   : > { %v15828_v54 = vld [vmem:[#allocation2 + $0x5c] sm:$0x1]  ;;  %5779 = vst.msk [vmem:[#allocation3 + $0x26c] sm:$0xf] %vm334_vm0, %v5747_v7  ;;  %v5746_v21 = vld [vmem:[#allocation2 + $0xb4] sm:$0xf]  ;;  %v6985_v56 = vsel %vm12808_vm9, %v6980_v17, %v15787_v53  ;;  %v7448_v53 = vsel %vm13288_vm14, %v11556_v38, %v7447_v48  ;;  %v7939_v24 = vsel %vm12808_vm9, %v15812_v28, %v15803_v42  ;;  %v7929_v48 = vsel %vm12808_vm9, %v15814_v13, %v15780_v31 }
 0x344   : > { %v15830_v8 = vld [vmem:[#allocation2 + $0x7c] sm:$0xf]  ;;  %v15836_v49 = vrot.slane %v6958_v43, 5  ;;  %v11540_v10 = vrot.slane %v6361_v16, 9  ;;  %v6487_v47 = vrot.slane %v15809_v32, 5  ;;  %v6195_v52 = vor.u32 %v6194_v57, %v15816_v26  ;;  %7538 = vrot.lane.b32.xlu1 %v7451_v61, %s12692_s19  ;;  %v8550_v22 = vld [vmem:[#allocation3 + $0x78] sm:$0xff] }
 0x345   : > { %5778 = vst.msk [vmem:[#allocation3 + $0x258] sm:$0xf] %vm334_vm0, %v5746_v21  ;;  %v7653_v55 = vld [vmem:[#allocation2 + $0x7c] sm:$0xf]  ;;  %v6642_v59 = vld [vmem:[#allocation2 + $0xc0] sm:$0xf]  ;;  %v11597_v12 = vcombine.low %v8550_v22, %v8553_v2  ;;  %v6707_v21 = vpop.permute.xlu1 %6706 }
 0x346   : > { %8230 = vst.msk [vmem:[#allocation3 + $0x34] sm:$0xf] %vm1604_vm15, %v8137_v18  ;;  %7615 = vst.msk [vmem:[#allocation3 + $0xe4] sm:$0xf] %vm1604_vm15, %v7531_v20  ;;  %v6964_v14 = vrot.slane %v6962_v25, 4  ;;  %6736 = vrot.lane.b32.xlu0 %v6642_v59, %s12692_s19  ;;  %v6488_v46 = vsel %vm13288_vm14, %v11540_v10, %v6487_v47  ;;  %v7454_v40 = vrot.slane %v15818_v34, 5 }
 0x347   : > { %7278 = vst.msk [vmem:[#allocation3 + $0xd0] sm:$0xf] %vm334_vm0, %v6985_v56  ;;  %7685 = vst.msk [vmem:[#allocation3 + $0x160] sm:$0xf] %vm334_vm0, %v7653_v55  ;;  %v7652_v1 = vld [vmem:[#allocation2 + $0x78] sm:$0xf] }
 0x348   : > { %v12549_v4 = vld [vmem:[#allocation3 + $0x7c] ss:$20 sps:$4 sm:$0xff]   ;;  %v15867_v30 = vld [vmem:[#allocation2 + $0x6c] sm:$0xe]  ;;  %7684 = vst.msk [vmem:[#allocation3 + $0x14c] sm:$0xf] %vm334_vm0, %v7652_v1  ;;  %v6965_v19 = vor.u32 %v6964_v14, %v15836_v49  ;;  %8162 = vrot.lane.b32.xlu1 %v7939_v24, %s12692_s19 }
 0x349   : > { %v6206_v50 = vrot.slane %v6205_v58, 4  ;;  %v6210_v0 = vrot.slane %v6208_v29, 5  ;;  %6594 = vst.msk [vmem:[#allocation3 + $0x11c] sm:$0xf] %vm334_vm0, %v6488_v46  ;;  %v15872_v5 = vld [vmem:[#allocation2 + $0x80] sm:$0x1]  ;;  %9427 = vmatprep.mubr.bf16.mxu1 %v12549_v4 }
 0x34a   : > { %v7724_v38 = vld [vmem:[#allocation2 + $0x78] sm:$0xf]  ;;  %v6970_v37 = vrot.slane %v6968_v11, 5  ;;  %v6489_v35 = vrot.slane %v6487_v47, 4  ;;  %v6490_v23 = vrot.slane %v15828_v54, 5  ;;  %v7950_v42 = vshll.u32 %v15830_v8, 16  ;;  %9428 = vmatmul.mubr.bf16.gmra.mxu1 %v11597_v12  ;;  %7536 = vrot.lane.b32.xlu0 %v7448_v53, %s12692_s19  ;;  %v6705_v11 = vpop.permute.xlu0 %6704 }
 0x34b   : > { %v6816_v33 = vld [vmem:[#allocation2 + $0x3c] sm:$0xf]  ;;  %7614 = vst.msk [vmem:[#allocation3 + $0xd0] sm:$0xf] %vm1604_vm15, %v7529_v45  ;;  %v15877_v15 = vrot.slane %v6195_v52, 4  ;;  %v6966_v16 = vrot.slane %v6965_v19, 4  ;;  %v6211_v25 = vsel %vm12808_vm9, %v6206_v50, %v6210_v0 }
 0x34c   : > { %v12551_v27 = vld [vmem:[#allocation3 + $0xa4] ss:$20 sps:$4 sm:$0xff]   ;;  %v7326_v36 = vld [vmem:[#allocation2 + $0x74] sm:$0x1]  ;;  %v11557_v44 = vrot.slane %v15867_v30, 9  ;;  %v7954_v6 = vshrl.u32 %v15830_v8, 16  ;;  %v6491_v28 = vsel %vm13288_vm14, %v6489_v35, %v6490_v23  ;;  %6274 = vrot.lane.b32.xlu1 %v6211_v25, %s12692_s19 }
 0x34d   : > { %v15881_v3 = vld [vmem:[#allocation2 + $0x7c] sm:$0xf]  ;;  %v7456_v32 = vrot.slane %v7454_v40, 4  ;;  %v15889_v26 = vrot.slane %v7950_v42, 5  ;;  %v7941_v60 = vshrl.u32 %v7724_v38, 16  ;;  %v6971_v17 = vsel %vm12808_vm9, %v6966_v16, %v6970_v37  ;;  %v8559_v43 = vld [vmem:[#allocation3 + $0xb4] sm:$0xff]  ;;  %9435 = vmatprep.mubr.bf16.mxu1 %v12551_v27 }
 0x34e   : > { %v8542_v41 = vld [vmem:[#allocation3 + $0x44] sm:$0xff]  ;;  %v15891_v63 = vld [vmem:[#allocation2 + $0x88] sm:$0xf]  ;;  %6595 = vst.msk [vmem:[#allocation3 + $0x130] sm:$0xf] %vm334_vm0, %v6491_v28  ;;  %v7956_v7 = vrot.slane %v7954_v6, 4  ;;  %8160 = vrot.lane.b32.xlu0 %v7929_v48, %s12692_s19  ;;  %v7455_v52 = vsel %vm13288_vm14, %v11557_v44, %v7454_v40  ;;  %v6201_v34 = vsel %vm12808_vm9, %v15877_v15, %v15807_v9 }
 0x34f   : > { %v8556_v29 = vld [vmem:[#allocation3 + $0xa0] sm:$0xff]  ;;  %v7944_v58 = vshll.u32 %v7724_v38, 16  ;;  %v6949_v57 = vshrl.u32 %v6816_v33, 16  ;;  %7277 = vst.msk [vmem:[#allocation3 + $0xbc] sm:$0xf] %vm334_vm0, %v6971_v17  ;;  %v8539_v54 = vld [vmem:[#allocation3 + $0x30] sm:$0xff]  ;;  %v6237_v38 = vpop.permute.xlu0 %6236 }
 0x350   : > { %v12553_v8 = vld [vmem:[#allocation3 + $0x34] ss:$20 sps:$4 sm:$0xff]   ;;  %v7960_v18 = vshll.u32 %v15872_v5, 16  ;;  %v7943_v20 = vrot.slane %v7941_v60, 4  ;;  %v6952_v56 = vshll.u32 %v6816_v33, 16  ;;  %v11589_v2 = vcombine.low %v8539_v54, %v8542_v41  ;;  %v8548_v44 = vld [vmem:[#allocation3 + $0x6c] sm:$0xff] }
 0x351   : > { %7613 = vst.msk [vmem:[#allocation3 + $0xbc] sm:$0xf] %vm1604_vm15, %v7527_v39  ;;  %6786 = vst.msk [vmem:[#allocation3 + $0x11c] sm:$0xf] %vm1604_vm15, %v6705_v11  ;;  %v7957_v10 = vor.u32 %v7956_v7, %v15889_v26  ;;  %v7946_v47 = vrot.slane %v7944_v58, 5  ;;  %v6951_v55 = vrot.slane %v6949_v57, 4  ;;  %9572 = vmatprep.mubr.bf16.mxu0 %v12553_v8  ;;  %v11602_v13 = vcombine.low %v8556_v29, %v8559_v43 }
 0x352   : > { %6787 = vst.msk [vmem:[#allocation3 + $0x130] sm:$0xf] %vm1604_vm15, %v6707_v21  ;;  %v15904_v59 = vld [vmem:[#allocation2 + $0x80] sm:$0x1]  ;;  %v7727_v61 = vld [vmem:[#allocation2 + $0x84] sm:$0xf]  ;;  %9573 = vmatmul.mubr.bf16.gmra.mxu0 %v11589_v2  ;;  %6272 = vrot.lane.b32.xlu0 %v6201_v34, %s12692_s19 }
 0x353   : > { %v7457_v53 = vrot.slane %v7326_v36, 5  ;;  %v6954_v14 = vrot.slane %v6952_v56, 5  ;;  %v7461_v1 = vrot.slane %v15881_v3, 5  ;;  %v15918_v24 = vld [vmem:[#allocation2 + $0x8c] sm:$0x1]  ;;  %v7958_v46 = vrot.slane %v7957_v10, 4  ;;  %9436 = vmatmul.mubr.bf16.gmra.mxu1 %v11602_v13  ;;  %v7525_v7 = vpop.permute.xlu0 %7524 }
 0x354   : > { %v15920_v22 = vld [vmem:[#allocation2 + $0x4c] sm:$0xf]  ;;  %v12556_v4 = vld [vmem:[#allocation3 + $0x5c] ss:$20 sps:$4 sm:$0xff]   ;;  %v7947_v31 = vor.u32 %v7946_v47, %v7943_v20  ;;  %v7974_v48 = vshll.u32 %v15891_v63, 16  ;;  %v7962_v40 = vrot.slane %v7960_v18, 5 }
 0x355   : > { %v6360_v30 = vld [vmem:[#allocation2 + $0x50] sm:$0x1]  ;;  %v6955_v50 = vor.u32 %v6954_v14, %v6951_v55  ;;  %v7978_v0 = vshrl.u32 %v15891_v63, 16  ;;  %v6358_v19 = vld [vmem:[#allocation2 + $0x48] sm:$0xe]  ;;  %v7458_v5 = vsel %vm13288_vm14, %v7456_v32, %v7457_v53  ;;  %9580 = vmatprep.mubr.bf16.mxu0 %v12556_v4  ;;  %v7463_v45 = vrot.slane %v7461_v1, 4  ;;  %v6239_v32 = vpop.permute.xlu1 %6238 }
 0x356   : > { %v15928_v12 = vld [vmem:[#allocation2 + $0x88] sm:$0xf]  ;;  %v7464_v37 = vrot.slane %v15904_v59, 5  ;;  %v15935_v9 = vld [vmem:[#allocation2 + $0x78] sm:$0xe]  ;;  %v15937_v39 = vrot.slane %v7974_v48, 5  ;;  %7542 = vrot.lane.b32.xlu1 %v7458_v5, %s12692_s19  ;;  %v7963_v42 = vsel %vm12808_vm9, %v7958_v46, %v7962_v40  ;;  %7540 = vrot.lane.b32.xlu0 %v7455_v52, %s12692_s19 }
 0x357   : > { %v15939_v35 = vld [vmem:[#allocation2 + $0x94] sm:$0xf]  ;;  %v7655_v23 = vld [vmem:[#allocation2 + $0x88] sm:$0xf]  ;;  %6320 = vst.msk [vmem:[#allocation3 + $0xf0] sm:$0xf] %vm1604_vm15, %v6237_v38 }
 0x358   : > { %v6956_v33 = vrot.slane %v6955_v50, 4  ;;  %v7980_v15 = vrot.slane %v7978_v0, 4  ;;  %v7965_v16 = vshrl.u32 %v7727_v61, 16  ;;  %7687 = vst.msk [vmem:[#allocation3 + $0x188] sm:$0xf] %vm334_vm0, %v7655_v23  ;;  %v8545_v36 = vld [vmem:[#allocation3 + $0x58] sm:$0xff] }
 0x359   : > { %v7654_v27 = vld [vmem:[#allocation2 + $0x84] sm:$0xf]  ;;  %v7948_v6 = vrot.slane %v7947_v31, 4  ;;  %v7984_v41 = vshll.u32 %v15918_v24, 16  ;;  %v7968_v28 = vshll.u32 %v7727_v61, 16  ;;  %v6480_v60 = vrot.slane %v15920_v22, 5 }
 0x35a   : > { %7686 = vst.msk [vmem:[#allocation3 + $0x174] sm:$0xf] %vm334_vm0, %v7654_v27  ;;  %v6961_v63 = vsel %vm12808_vm9, %v6956_v33, %v15836_v49  ;;  %v7981_v17 = vor.u32 %v7980_v15, %v15937_v39  ;;  %v7967_v29 = vrot.slane %v7965_v16, 4  ;;  %v6483_v43 = vrot.slane %v6360_v30, 5  ;;  %8166 = vrot.lane.b32.xlu1 %v7963_v42, %s12692_s19  ;;  %v7332_v21 = vld [vmem:[#allocation2 + $0x8c] sm:$0x1] }
 0x35b   : > { %6321 = vst.msk [vmem:[#allocation3 + $0x104] sm:$0xf] %vm1604_vm15, %v6239_v32  ;;  %v7970_v58 = vrot.slane %v7968_v28, 5  ;;  %v6482_v57 = vrot.slane %v6480_v60, 4  ;;  %v11539_v25 = vrot.slane %v6358_v19, 9  ;;  %v7468_v11 = vrot.slane %v15928_v12, 5 }
 0x35c   : > { %7276 = vst.msk [vmem:[#allocation3 + $0xa8] sm:$0xf] %vm334_vm0, %v6961_v63  ;;  %v7465_v49 = vsel %vm13288_vm14, %v7463_v45, %v7464_v37  ;;  %v11558_v54 = vrot.slane %v15935_v9, 9  ;;  %v11594_v8 = vcombine.low %v8545_v36, %v8548_v44  ;;  %v7330_v18 = vld [vmem:[#allocation2 + $0x84] sm:$0xe]  ;;  %v7998_v20 = vshll.u32 %v15939_v35, 16 }
 0x35d   : > { %7612 = vst.msk [vmem:[#allocation3 + $0xa8] sm:$0xf] %vm1604_vm15, %v7525_v7  ;;  %v7730_v56 = vld [vmem:[#allocation2 + $0x90] sm:$0xf]  ;;  %v7982_v2 = vrot.slane %v7981_v17, 4  ;;  %v7971_v10 = vor.u32 %v7970_v58, %v7967_v29  ;;  %v6484_v47 = vsel %vm13288_vm14, %v6482_v57, %v6483_v43  ;;  %v6481_v55 = vsel %vm13288_vm14, %v11539_v25, %v6480_v60 }
 0x35e   : > { %v7732_v59 = vld [vmem:[#allocation2 + $0x98] sm:$0x1]  ;;  %v15968_v61 = vld [vmem:[#allocation2 + $0x94] sm:$0xf]  ;;  %v7953_v53 = vsel %vm12808_vm9, %v7948_v6, %v15889_v26  ;;  %9581 = vmatmul.mubr.bf16.gmra.mxu0 %v11594_v8  ;;  %v7986_v52 = vrot.slane %v7984_v41, 5  ;;  %v15975_v14 = vrot.slane %v7998_v20, 5  ;;  %7546 = vrot.lane.b32.xlu1 %v7465_v49, %s12692_s19  ;;  %v7462_v26 = vsel %vm13288_vm14, %v11558_v54, %v7461_v1  ;;  %v8151_v1 = vpop.permute.xlu1 %8150  ;;  %v8149_v6 = vpop.permute.xlu0 %8148 }
 0x35f   : > { %6593 = vst.msk [vmem:[#allocation3 + $0x108] sm:$0xf] %vm334_vm0, %v6484_v47  ;;  %6592 = vst.msk [vmem:[#allocation3 + $0xf4] sm:$0xf] %vm334_vm0, %v6481_v55  ;;  %v8002_v24 = vshrl.u32 %v15939_v35, 16  ;;  %v7972_v46 = vrot.slane %v7971_v10, 4  ;;  %8164 = vrot.lane.b32.xlu0 %v7953_v53, %s12692_s19 }
 0x360   : > { %v15978_v22 = vld [vmem:[#allocation2 + $0x98] sm:$0x1]  ;;  %v7470_v31 = vrot.slane %v7468_v11, 4  ;;  %v11559_v13 = vrot.slane %v7330_v18, 9  ;;  %v7989_v48 = vshrl.u32 %v7730_v56, 16  ;;  %v8008_v50 = vshll.u32 %v7732_v59, 16 }
 0x361   : > { %v6823_v4 = vld [vmem:[#allocation2 + $0x58] sm:$0xf]  ;;  %v6824_v30 = vld [vmem:[#allocation2 + $0x5c] sm:$0x1]  ;;  %v7657_v34 = vld [vmem:[#allocation2 + $0x94] sm:$0xf]  ;;  %v7987_v12 = vsel %vm12808_vm9, %v7982_v2, %v7986_v52  ;;  %v7977_v15 = vsel %vm12808_vm9, %v7972_v46, %v15937_v39 }
 0x362   : > { %v8004_v40 = vrot.slane %v8002_v24, 4  ;;  %v7992_v0 = vshll.u32 %v7730_v56, 16  ;;  %7689 = vst.msk [vmem:[#allocation3 + $0x1b0] sm:$0xf] %vm334_vm0, %v7657_v34  ;;  %v7656_v19 = vld [vmem:[#allocation2 + $0x90] sm:$0xf]  ;;  %v15991_v38 = vsel %vm13288_vm14, %v11559_v13, %v7468_v11  ;;  %8170 = vrot.lane.b32.xlu1 %v7987_v12, %s12692_s19  ;;  %v6703_v57 = vpop.permute.xlu1 %6702  ;;  %v6701_v47 = vpop.permute.xlu0 %6700 }
 0x363   : > { %v7471_v5 = vrot.slane %v7332_v21, 5  ;;  %v7991_v45 = vrot.slane %v7989_v48, 4  ;;  %v6367_v37 = vld [vmem:[#allocation2 + $0x6c] sm:$0xe]  ;;  %v6368_v3 = vld [vmem:[#allocation2 + $0x70] sm:$0xf]  ;;  %7544 = vrot.lane.b32.xlu0 %v7462_v26, %s12692_s19 }
 0x364   : > { %7688 = vst.msk [vmem:[#allocation3 + $0x19c] sm:$0xf] %vm334_vm0, %v7656_v19  ;;  %v8005_v9 = vor.u32 %v8004_v40, %v15975_v14  ;;  %v7994_v35 = vrot.slane %v7992_v0, 5  ;;  %v7475_v23 = vrot.slane %v15968_v61, 5  ;;  %v7006_v42 = vshll.u32 %v6823_v4, 16 }
 0x365   : > { %v7734_v33 = vld [vmem:[#allocation2 + $0xa0] sm:$0xf]  ;;  %8237 = vst.msk [vmem:[#allocation3 + $0xc0] sm:$0xf] %vm1604_vm15, %v8151_v1  ;;  %v7472_v16 = vsel %vm13288_vm14, %v7470_v31, %v7471_v5  ;;  %v7478_v27 = vrot.slane %v15978_v22, 5  ;;  %v7010_v44 = vshrl.u32 %v6823_v4, 16 }
 0x366   : > { %v16003_v36 = vld [vmem:[#allocation2 + $0x90] sm:$0xe]  ;;  %v8010_v32 = vrot.slane %v8008_v50, 5  ;;  %v7995_v41 = vor.u32 %v7994_v35, %v7991_v45  ;;  %v16007_v28 = vrot.slane %v7006_v42, 5  ;;  %v7016_v60 = vshll.u32 %v6824_v30, 16  ;;  %7550 = vrot.lane.b32.xlu1 %v7472_v16, %s12692_s19  ;;  %v6235_v48 = vpop.permute.xlu1 %6234 }
 0x367   : > { %v7733_v63 = vld [vmem:[#allocation2 + $0x9c] sm:$0xf]  ;;  %8236 = vst.msk [vmem:[#allocation3 + $0xac] sm:$0xf] %vm1604_vm15, %v8149_v6  ;;  %v7012_v39 = vrot.slane %v7010_v44, 4  ;;  %v11542_v17 = vrot.slane %v6367_v37, 9  ;;  %8168 = vrot.lane.b32.xlu0 %v7977_v15, %s12692_s19 }
 0x368   : > { %v6501_v29 = vrot.slane %v6368_v3, 5  ;;  %v16010_v43 = vld [vmem:[#allocation2 + $0xa4] sm:$0x1]  ;;  %v8022_v7 = vshll.u32 %v7734_v33, 16  ;;  %v6369_v58 = vld [vmem:[#allocation2 + $0x74] sm:$0x1] }
 0x369   : > { %v8006_v25 = vrot.slane %v8005_v9, 4  ;;  %v7477_v11 = vrot.slane %v7475_v23, 4  ;;  %v11560_v49 = vrot.slane %v16003_v36, 9  ;;  %v8026_v54 = vshrl.u32 %v7734_v33, 16  ;;  %v16015_v8 = vld [vmem:[#allocation2 + $0xa0] sm:$0xf]  ;;  %v6233_v36 = vpop.permute.xlu0 %6232 }
 0x36a   : > { %6785 = vst.msk [vmem:[#allocation3 + $0x108] sm:$0xf] %vm1604_vm15, %v6703_v57  ;;  %v7013_v21 = vor.u32 %v7012_v39, %v16007_v28  ;;  %v6502_v18 = vsel %vm13288_vm14, %v11542_v17, %v6501_v29  ;;  %v16021_v20 = vrot.slane %v8022_v7, 5  ;;  %v8013_v56 = vshrl.u32 %v7733_v63, 16  ;;  %v7659_v2 = vld [vmem:[#allocation2 + $0xa0] sm:$0xf] }
 0x36b   : > { %v7658_v10 = vld [vmem:[#allocation2 + $0x9c] sm:$0xf]  ;;  %v7996_v55 = vrot.slane %v7995_v41, 4  ;;  %v7018_v59 = vrot.slane %v7016_v60, 5  ;;  %6598 = vst.msk [vmem:[#allocation3 + $0x16c] sm:$0xf] %vm334_vm0, %v6502_v18  ;;  %v8011_v30 = vsel %vm12808_vm9, %v8006_v25, %v8010_v32  ;;  %7548 = vrot.lane.b32.xlu0 %v15991_v38, %s12692_s19  ;;  %v7479_v1 = vsel %vm13288_vm14, %v7477_v11, %v7478_v27  ;;  %v8147_v27 = vpop.permute.xlu1 %8146 }
 0x36c   : > { %v8028_v53 = vrot.slane %v8026_v54, 4  ;;  %v8016_v52 = vshll.u32 %v7733_v63, 16  ;;  %v6822_v24 = vld [vmem:[#allocation2 + $0x54] sm:$0xf]  ;;  %7691 = vst.msk [vmem:[#allocation3 + $0x1d8] sm:$0xf] %vm334_vm0, %v7659_v2  ;;  %8174 = vrot.lane.b32.xlu1 %v8011_v30, %s12692_s19  ;;  %v7476_v9 = vsel %vm13288_vm14, %v11560_v49, %v7475_v23 }
 0x36d   : > { %7690 = vst.msk [vmem:[#allocation3 + $0x1c4] sm:$0xf] %vm334_vm0, %v7658_v10  ;;  %v7014_v4 = vrot.slane %v7013_v21, 4  ;;  %v8015_v46 = vrot.slane %v8013_v56, 4  ;;  %v6503_v31 = vrot.slane %v6501_v29, 4  ;;  %v6504_v13 = vrot.slane %v6369_v58, 5  ;;  %v8145_v21 = vpop.permute.xlu0 %8144 }
 0x36e   : > { %6784 = vst.msk [vmem:[#allocation3 + $0xf4] sm:$0xf] %vm1604_vm15, %v6701_v47  ;;  %v8029_v34 = vor.u32 %v8028_v53, %v16021_v20  ;;  %v8032_v26 = vshll.u32 %v16010_v43, 16  ;;  %v8018_v40 = vrot.slane %v8016_v52, 5  ;;  %v7737_v50 = vld [vmem:[#allocation2 + $0xac] sm:$0xf]  ;;  %v8001_v3 = vsel %vm12808_vm9, %v7996_v55, %v15975_v14 }
 0x36f   : > { %6319 = vst.msk [vmem:[#allocation3 + $0xdc] sm:$0xf] %vm1604_vm15, %v6235_v48  ;;  %v7019_v0 = vsel %vm12808_vm9, %v7014_v4, %v7018_v59  ;;  %v6505_v19 = vsel %vm13288_vm14, %v6503_v31, %v6504_v13  ;;  %v7338_v12 = vld [vmem:[#allocation2 + $0xa4] sm:$0x1]  ;;  %v7482_v5 = vrot.slane %v16015_v8, 5  ;;  %v6997_v37 = vshrl.u32 %v6822_v24, 16  ;;  %8172 = vrot.lane.b32.xlu0 %v8001_v3, %s12692_s19  ;;  %v7535_v18 = vpop.permute.xlu1 %7534 }
 0x370   : > { %v7336_v45 = vld [vmem:[#allocation2 + $0x9c] sm:$0xe]  ;;  %7281 = vst.msk [vmem:[#allocation3 + $0x10c] sm:$0xf] %vm334_vm0, %v7019_v0  ;;  %6599 = vst.msk [vmem:[#allocation3 + $0x180] sm:$0xf] %vm334_vm0, %v6505_v19  ;;  %v8019_v33 = vor.u32 %v8018_v40, %v8015_v46  ;;  %7554 = vrot.lane.b32.xlu1 %v7479_v1, %s12692_s19 }
 0x371   : > { %v7000_v38 = vshll.u32 %v6822_v24, 16  ;;  %v16055_v35 = vld [vmem:[#allocation2 + $0xb0] sm:$0x1]  ;;  %v7736_v42 = vld [vmem:[#allocation2 + $0xa8] sm:$0xf]  ;;  %v6999_v14 = vrot.slane %v6997_v37, 4  ;;  %v6713_v1 = vpop.permute.xlu0 %6712 }
 0x372   : > { %v8046_v15 = vshll.u32 %v7737_v50, 16  ;;  %v8050_v22 = vshrl.u32 %v7737_v50, 16  ;;  %v6365_v16 = vld [vmem:[#allocation2 + $0x64] sm:$0xf]  ;;  %v8030_v44 = vrot.slane %v8029_v34, 4  ;;  %v8034_v61 = vrot.slane %v8032_v26, 5 }
 0x373   : > { %v7485_v6 = vrot.slane %v7338_v12, 5  ;;  %v7002_v32 = vrot.slane %v7000_v38, 5  ;;  %v6366_v23 = vld [vmem:[#allocation2 + $0x68] sm:$0x1]  ;;  %6318 = vst.msk [vmem:[#allocation3 + $0xc8] sm:$0xf] %vm1604_vm15, %v6233_v36  ;;  %7552 = vrot.lane.b32.xlu0 %v7476_v9, %s12692_s19 }
 0x374   : > { %8235 = vst.msk [vmem:[#allocation3 + $0x98] sm:$0xf] %vm1604_vm15, %v8147_v27  ;;  %v7484_v41 = vrot.slane %v7482_v5, 4  ;;  %v16059_v60 = vrot.slane %v8046_v15, 5  ;;  %v8052_v63 = vrot.slane %v8050_v22, 4  ;;  %v8037_v39 = vshrl.u32 %v7736_v42, 16 }
 0x375   : > { %v6364_v17 = vld [vmem:[#allocation2 + $0x60] sm:$0xe]  ;;  %v11561_v29 = vrot.slane %v7336_v45, 9  ;;  %v7003_v43 = vor.u32 %v7002_v32, %v6999_v14  ;;  %v8040_v7 = vshll.u32 %v7736_v42, 16  ;;  %v6494_v58 = vrot.slane %v6365_v16, 5  ;;  %v16075_v52 = vld [vmem:[#allocation3 + $0xf0] sm:$0xff] }
 0x376   : > { %v16063_v57 = vld [vmem:[#allocation2 + $0xac] sm:$0xf]  ;;  %v8020_v25 = vrot.slane %v8019_v33, 4  ;;  %v8053_v11 = vor.u32 %v8052_v63, %v16059_v60  ;;  %v8056_v49 = vshll.u32 %v16055_v35, 16  ;;  %v8039_v54 = vrot.slane %v8037_v39, 4  ;;  %v16077_v24 = vld [vmem:[#allocation3 + $0x104] sm:$0xff] }
 0x377   : > { %v16067_v8 = vld [vmem:[#allocation2 + $0xb0] sm:$0x1]  ;;  %v7004_v56 = vrot.slane %v7003_v43, 4  ;;  %v8042_v2 = vrot.slane %v8040_v7, 5  ;;  %v6496_v10 = vrot.slane %v6494_v58, 4  ;;  %v6497_v47 = vrot.slane %v6366_v23, 5 }
 0x378   : > { %v16069_v55 = vld [vmem:[#allocation2 + $0xa8] sm:$0xe]  ;;  %v7740_v59 = vld [vmem:[#allocation2 + $0xb8] sm:$0xf]  ;;  %8234 = vst.msk [vmem:[#allocation3 + $0x84] sm:$0xf] %vm1604_vm15, %v8145_v21  ;;  %v8035_v53 = vsel %vm12808_vm9, %v8030_v44, %v8034_v61  ;;  %v7486_v4 = vsel %vm13288_vm14, %v7484_v41, %v7485_v6  ;;  %v16083_v46 = vsel %vm13288_vm14, %v11561_v29, %v7482_v5  ;;  %v8025_v12 = vsel %vm12808_vm9, %v8020_v25, %v16021_v20  ;;  %v6715_v20 = vpop.permute.xlu1 %6714 }
 0x379   : > { %7617 = vst.msk [vmem:[#allocation3 + $0x10c] sm:$0xf] %vm1604_vm15, %v7535_v18  ;;  %v11541_v31 = vrot.slane %v6364_v17, 9  ;;  %v7661_v13 = vld [vmem:[#allocation2 + $0xac] sm:$0xf]  ;;  %8178 = vrot.lane.b32.xlu1 %v8035_v53, %s12692_s19  ;;  %v8565_v48 = vld [vmem:[#allocation3 + $0xdc] sm:$0xff]  ;;  %v7009_v30 = vsel %vm12808_vm9, %v7004_v56, %v16007_v28  ;;  %v8043_v26 = vor.u32 %v8042_v2, %v8039_v54  ;;  %v6498_v40 = vsel %vm13288_vm14, %v6496_v10, %v6497_v47 }
 0x37a   : > { %v16090_v34 = vrot.slane %v8053_v11, 4  ;;  %v16094_v50 = vld [vmem:[#allocation2 + $0xbc] sm:$0x1]  ;;  %v7739_v0 = vld [vmem:[#allocation2 + $0xb4] sm:$0xf]  ;;  %v7489_v5 = vrot.slane %v16063_v57, 5  ;;  %v11612_v42 = vcombine.low %v16075_v52, %v16077_v24  ;;  %8176 = vrot.lane.b32.xlu0 %v8025_v12, %s12692_s19 }
 0x37b   : > { %7693 = vst.msk [vmem:[#allocation3 + $0x200] sm:$0xf] %vm334_vm0, %v7661_v13  ;;  %v7660_v19 = vld [vmem:[#allocation2 + $0xa8] sm:$0xf]  ;;  %7280 = vst.msk [vmem:[#allocation3 + $0xf8] sm:$0xf] %vm334_vm0, %v7009_v30  ;;  %v6495_v28 = vsel %vm13288_vm14, %v11541_v31, %v6494_v58 }
 0x37c   : > { %6597 = vst.msk [vmem:[#allocation3 + $0x158] sm:$0xf] %vm334_vm0, %v6498_v40  ;;  %v8070_v45 = vshll.u32 %v7740_v59, 16  ;;  %v16105_v37 = vld [vmem:[#allocation2 + $0xb8] sm:$0xf]  ;;  %v8562_v9 = vld [vmem:[#allocation3 + $0xc8] sm:$0xff]  ;;  %v6247_v18 = vpop.permute.xlu1 %6246 }
 0x37d   : > { %v16107_v3 = vld [vmem:[#allocation2 + $0x88] sm:$0xf]  ;;  %7692 = vst.msk [vmem:[#allocation3 + $0x1ec] sm:$0xf] %vm334_vm0, %v7660_v19  ;;  %v12558_v38 = vld [vmem:[#allocation3 + $0xcc] ss:$20 sps:$4 sm:$0xff]   ;;  %v11607_v22 = vcombine.low %v8562_v9, %v8565_v48  ;;  %7558 = vrot.lane.b32.xlu1 %v7486_v4, %s12692_s19 }
 0x37e   : > { %v8058_v35 = vrot.slane %v8056_v49, 5  ;;  %6596 = vst.msk [vmem:[#allocation3 + $0x144] sm:$0xf] %vm334_vm0, %v6495_v28  ;;  %v7492_v33 = vrot.slane %v16067_v8, 5  ;;  %v8074_v14 = vshrl.u32 %v7740_v59, 16  ;;  %v16118_v36 = vrot.slane %v8043_v26, 4  ;;  %9443 = vmatprep.mubr.bf16.mxu1 %v12558_v38  ;;  %v6245_v49 = vpop.permute.xlu0 %6244  ;;  %7556 = vrot.lane.b32.xlu0 %v16083_v46, %s12692_s19 }
 0x37f   : > { %v16114_v15 = vld [vmem:[#allocation2 + $0xbc] sm:$0x1]  ;;  %6790 = vst.msk [vmem:[#allocation3 + $0x16c] sm:$0xf] %vm1604_vm15, %v6713_v1  ;;  %6791 = vst.msk [vmem:[#allocation3 + $0x180] sm:$0xf] %vm1604_vm15, %v6715_v20  ;;  %9444 = vmatmul.mubr.bf16.gmra.mxu1 %v11607_v22 }
 0x380   : > { %v12560_v16 = vld [vmem:[#allocation3 + $0xf4] ss:$20 sps:$4 sm:$0xff]   ;;  %v11562_v27 = vrot.slane %v16069_v55, 9  ;;  %v16121_v44 = vrot.slane %v8070_v45, 5  ;;  %v6373_v6 = vld [vmem:[#allocation2 + $0x84] sm:$0xe]  ;;  %v8059_v23 = vsel %vm12808_vm9, %v16090_v34, %v8058_v35  ;;  %v8049_v59 = vsel %vm12808_vm9, %v16118_v36, %v16059_v60  ;;  %v6711_v28 = vpop.permute.xlu1 %6710 }
 0x381   : > { %v6375_v61 = vld [vmem:[#allocation2 + $0x8c] sm:$0x1]  ;;  %v8076_v41 = vrot.slane %v8074_v14, 4  ;;  %v8061_v63 = vshrl.u32 %v7739_v0, 16  ;;  %v8064_v39 = vshll.u32 %v7739_v0, 16  ;;  %v7491_v7 = vrot.slane %v7489_v5, 4  ;;  %9451 = vmatprep.mubr.bf16.mxu1 %v12560_v16  ;;  %8182 = vrot.lane.b32.xlu1 %v8059_v23, %s12692_s19 }
 0x382   : > { %v8554_v32 = vld [vmem:[#allocation3 + $0x94] sm:$0xff]  ;;  %v16127_v17 = vld [vmem:[#allocation2 + $0xb4] sm:$0xe]  ;;  %v7743_v29 = vld [vmem:[#allocation2 + $0xc4] sm:$0xf]  ;;  %v16132_v58 = vsel %vm13288_vm14, %v11562_v27, %v7489_v5  ;;  %v8080_v57 = vshll.u32 %v16094_v50, 16  ;;  %v7533_v12 = vpop.permute.xlu0 %7532  ;;  %8180 = vrot.lane.b32.xlu0 %v8049_v59, %s12692_s19 }
 0x383   : > { %v7663_v43 = vld [vmem:[#allocation2 + $0xb8] sm:$0xf]  ;;  %v7496_v25 = vrot.slane %v16105_v37, 5  ;;  %v7662_v11 = vld [vmem:[#allocation2 + $0xb4] sm:$0xf]  ;;  %v8077_v56 = vor.u32 %v8076_v41, %v16121_v44  ;;  %v8063_v2 = vrot.slane %v8061_v63, 4  ;;  %v7493_v22 = vsel %vm13288_vm14, %v7491_v7, %v7492_v33 }
 0x384   : > { %7695 = vst.msk [vmem:[#allocation3 + $0x228] sm:$0xf] %vm334_vm0, %v7663_v43  ;;  %v8551_v54 = vld [vmem:[#allocation3 + $0x80] sm:$0xff]  ;;  %v8066_v10 = vrot.slane %v8064_v39, 5  ;;  %v6515_v47 = vrot.slane %v16107_v3, 5  ;;  %v7499_v4 = vrot.slane %v16114_v15, 5  ;;  %v6243_v43 = vpop.permute.xlu1 %6242 }
 0x385   : > { %v12562_v21 = vld [vmem:[#allocation3 + $0x84] ss:$20 sps:$4 sm:$0xff]   ;;  %7694 = vst.msk [vmem:[#allocation3 + $0x214] sm:$0xf] %vm334_vm0, %v7662_v11  ;;  %v11599_v55 = vcombine.low %v8551_v54, %v8554_v32  ;;  %v7498_v53 = vrot.slane %v7496_v25, 4  ;;  %v6518_v26 = vrot.slane %v6375_v61, 5  ;;  %7562 = vrot.lane.b32.xlu1 %v7493_v22, %s12692_s19 }
 0x386   : > { %6324 = vst.msk [vmem:[#allocation3 + $0x140] sm:$0xf] %vm1604_vm15, %v6245_v49  ;;  %6325 = vst.msk [vmem:[#allocation3 + $0x154] sm:$0xf] %vm1604_vm15, %v6247_v18  ;;  %v7744_v31 = vld [vmem:[#allocation2 + $0xc8] sm:$0x1]  ;;  %9588 = vmatprep.mubr.bf16.mxu0 %v12562_v21  ;;  %v8067_v30 = vor.u32 %v8066_v10, %v8063_v2  ;;  %7560 = vrot.lane.b32.xlu0 %v16132_v58, %s12692_s19 }
 0x387   : > { %v7742_v13 = vld [vmem:[#allocation2 + $0xc0] sm:$0xf]  ;;  %v12567_v48 = vld [vmem:[#allocation3 + $0xac] ss:$20 sps:$4 sm:$0xff]   ;;  %v6517_v34 = vrot.slane %v6515_v47, 4  ;;  %v11544_v40 = vrot.slane %v6373_v6, 9  ;;  %9589 = vmatmul.mubr.bf16.gmra.mxu0 %v11599_v55  ;;  %v16176_v16 = vsel %vm13288_vm14, %v7498_v53, %v7499_v4  ;;  %9452 = vmatmul.mubr.bf16.gmra.mxu1 %v11612_v42 }
 0x388   : > { %v16150_v50 = vrot.slane %v8077_v56, 4  ;;  %v11563_v60 = vrot.slane %v16127_v17, 9  ;;  %v8094_v0 = vshll.u32 %v7743_v29, 16  ;;  %v8098_v19 = vshrl.u32 %v7743_v29, 16  ;;  %9596 = vmatprep.mubr.bf16.mxu0 %v12567_v48  ;;  %v16159_v3 = vld [vmem:[#allocation2 + $0xc4] sm:$0xf]  ;;  %v6709_v29 = vpop.permute.xlu0 %6708 }
 0x389   : > { %v16153_v5 = vrot.slane %v8067_v30, 4  ;;  %v6519_v46 = vsel %vm13288_vm14, %v6517_v34, %v6518_v26  ;;  %v6516_v45 = vsel %vm13288_vm14, %v11544_v40, %v6515_v47  ;;  %v8104_v37 = vshll.u32 %v7744_v31, 16  ;;  %v6371_v1 = vld [vmem:[#allocation2 + $0x7c] sm:$0xf]  ;;  %7616 = vst.msk [vmem:[#allocation3 + $0xf8] sm:$0xf] %vm1604_vm15, %v7533_v12  ;;  %v8155_v30 = vpop.permute.xlu1 %8154 }
 0x38a   : > { %6789 = vst.msk [vmem:[#allocation3 + $0x158] sm:$0xf] %vm1604_vm15, %v6711_v28  ;;  %v8082_v9 = vrot.slane %v8080_v57, 5  ;;  %v16165_v38 = vrot.slane %v8094_v0, 5  ;;  %v8100_v20 = vrot.slane %v8098_v19, 4  ;;  %v8085_v35 = vshrl.u32 %v7742_v13, 16 }
 0x38b   : > { %6603 = vst.msk [vmem:[#allocation3 + $0x1d0] sm:$0xf] %vm334_vm0, %v6519_v46  ;;  %6602 = vst.msk [vmem:[#allocation3 + $0x1bc] sm:$0xf] %vm334_vm0, %v6516_v45  ;;  %v16167_v14 = vld [vmem:[#allocation2 + $0xc8] sm:$0x1]  ;;  %v16180_v36 = vsel %vm13288_vm14, %v11563_v60, %v7496_v25  ;;  %v8073_v52 = vsel %vm12808_vm9, %v16153_v5, %v16121_v44 }
 0x38c   : > { %v6370_v15 = vld [vmem:[#allocation2 + $0x78] sm:$0xe]  ;;  %v8088_v27 = vshll.u32 %v7742_v13, 16  ;;  %v7345_v61 = vld [vmem:[#allocation2 + $0xc0] sm:$0xe]  ;;  %v8083_v8 = vsel %vm12808_vm9, %v16150_v50, %v8082_v9  ;;  %v8101_v33 = vor.u32 %v8100_v20, %v16165_v38  ;;  %v16190_v41 = vrot.slane %v8085_v35, 4  ;;  %v6241_v48 = vpop.permute.xlu0 %6240  ;;  %8184 = vrot.lane.b32.xlu0 %v8073_v52, %s12692_s19 }
 0x38d   : > { %v6372_v6 = vld [vmem:[#allocation2 + $0x80] sm:$0x1]  ;;  %v7746_v32 = vld [vmem:[#allocation2 + $0xd0] sm:$0xf]  ;;  %v6508_v63 = vrot.slane %v6371_v1, 5  ;;  %v16198_v24 = vrot.slane %v8104_v37, 5  ;;  %8186 = vrot.lane.b32.xlu1 %v8083_v8, %s12692_s19 }
 0x38e   : > { %v12565_v23 = vld [vmem:[#allocation3 + $0xa8] ss:$20 sps:$4 sm:$0xff]   ;;  %v7745_v17 = vld [vmem:[#allocation2 + $0xcc] sm:$0xf]  ;;  %v8090_v42 = vrot.slane %v8088_v27, 5  ;;  %v11543_v7 = vrot.slane %v6370_v15, 9 }
 0x38f   : > { %v16192_v39 = vld [vmem:[#allocation2 + $0xd4] sm:$0x1]  ;;  %v6380_v57 = vld [vmem:[#allocation2 + $0xa0] sm:$0xf]  ;;  %v7665_v25 = vld [vmem:[#allocation2 + $0xc4] sm:$0xf]  ;;  %9597 = vmatmul.mubr.bf16.gmra.mxu0 %v12565_v23 }
 0x390   : > { %6788 = vst.msk [vmem:[#allocation3 + $0x144] sm:$0xf] %vm1604_vm15, %v6709_v29  ;;  %6323 = vst.msk [vmem:[#allocation3 + $0x12c] sm:$0xf] %vm1604_vm15, %v6243_v43  ;;  %v7503_v11 = vrot.slane %v16159_v3, 5  ;;  %v6510_v49 = vrot.slane %v6508_v63, 4  ;;  %v6509_v2 = vsel %vm13288_vm14, %v11543_v7, %v6508_v63  ;;  %v8091_v59 = vor.u32 %v8090_v42, %v16190_v41  ;;  %7564 = vrot.lane.b32.xlu0 %v16180_v36, %s12692_s19 }
 0x391   : > { %v6511_v54 = vrot.slane %v6372_v6, 5  ;;  %v8118_v21 = vshll.u32 %v7746_v32, 16  ;;  %7697 = vst.msk [vmem:[#allocation3 + $0x250] sm:$0xf] %vm334_vm0, %v7665_v25  ;;  %v7664_v18 = vld [vmem:[#allocation2 + $0xc0] sm:$0xf]  ;;  %7566 = vrot.lane.b32.xlu1 %v16176_v16, %s12692_s19  ;;  %v8153_v6 = vpop.permute.xlu0 %8152 }
 0x392   : > { %v16206_v44 = vrot.slane %v8101_v33, 4  ;;  %v7506_v56 = vrot.slane %v16167_v14, 5  ;;  %v8122_v10 = vshrl.u32 %v7746_v32, 16  ;;  %v6381_v47 = vld [vmem:[#allocation2 + $0xa4] sm:$0x1]  ;;  %v11564_v53 = vrot.slane %v7345_v61, 9  ;;  %v6723_v32 = vpop.permute.xlu1 %6722 }
 0x393   : > { %v6379_v55 = vld [vmem:[#allocation2 + $0x9c] sm:$0xe]  ;;  %7696 = vst.msk [vmem:[#allocation3 + $0x23c] sm:$0xf] %vm334_vm0, %v7664_v18  ;;  %v6512_v58 = vsel %vm13288_vm14, %v6510_v49, %v6511_v54  ;;  %6600 = vst.msk [vmem:[#allocation3 + $0x194] sm:$0xf] %vm334_vm0, %v6509_v2 }
 0x394   : > { %v16217_v4 = vrot.slane %v8118_v21, 5  ;;  %v6377_v31 = vld [vmem:[#allocation2 + $0x94] sm:$0xf]  ;;  %v6376_v13 = vld [vmem:[#allocation2 + $0x90] sm:$0xe]  ;;  %v8124_v34 = vrot.slane %v8122_v10, 4  ;;  %v16227_v12 = vsel %vm13288_vm14, %v11564_v53, %v7503_v11  ;;  %v8107_v45 = vsel %vm12808_vm9, %v16206_v44, %v16198_v24 }
 0x395   : > { %6601 = vst.msk [vmem:[#allocation3 + $0x1a8] sm:$0xf] %vm334_vm0, %v6512_v58  ;;  %v8128_v26 = vshll.u32 %v16192_v39, 16  ;;  %v8109_v40 = vshrl.u32 %v7745_v17, 16  ;;  %v8112_v50 = vshll.u32 %v7745_v17, 16  ;;  %v7505_v19 = vrot.slane %v7503_v11, 4  ;;  %8190 = vrot.lane.b32.xlu1 %v8107_v45, %s12692_s19  ;;  %v6721_v44 = vpop.permute.xlu0 %6720 }
 0x396   : > { %v6378_v60 = vld [vmem:[#allocation2 + $0x98] sm:$0x1]  ;;  %v16221_v0 = vld [vmem:[#allocation2 + $0xac] sm:$0xf]  ;;  %6322 = vst.msk [vmem:[#allocation3 + $0x118] sm:$0xf] %vm1604_vm15, %v6241_v48  ;;  %v8125_v37 = vor.u32 %v8124_v34, %v16217_v4 }
 0x397   : > { %8239 = vst.msk [vmem:[#allocation3 + $0xe8] sm:$0xf] %vm1604_vm15, %v8155_v30  ;;  %v6529_v28 = vrot.slane %v6380_v57, 5  ;;  %v11546_v5 = vrot.slane %v6379_v55, 9  ;;  %v6384_v46 = vld [vmem:[#allocation2 + $0xb0] sm:$0x1]  ;;  %v6255_v55 = vpop.permute.xlu1 %6254 }
 0x398   : > { %v8111_v3 = vrot.slane %v8109_v40, 4  ;;  %v8114_v1 = vrot.slane %v8112_v50, 5  ;;  %v6382_v9 = vld [vmem:[#allocation2 + $0xa8] sm:$0xe]  ;;  %v16235_v20 = vld [vmem:[#allocation2 + $0xb8] sm:$0xf] }
 0x399   : > { %v6531_v35 = vrot.slane %v6529_v28, 4  ;;  %v6532_v15 = vrot.slane %v6381_v47, 5  ;;  %v6530_v22 = vsel %vm13288_vm14, %v11546_v5, %v6529_v28  ;;  %v6522_v27 = vrot.slane %v6377_v31, 5  ;;  %v16241_v61 = vld [vmem:[#allocation2 + $0xbc] sm:$0x1]  ;;  %v8577_v24 = vld [vmem:[#allocation3 + $0x12c] sm:$0xff] }
 0x39a   : > { %v8092_v23 = vrot.slane %v8091_v59, 4  ;;  %v16243_v8 = vrot.slane %v8128_v26, 5  ;;  %v8115_v33 = vor.u32 %v8114_v1, %v8111_v3  ;;  %6606 = vst.msk [vmem:[#allocation3 + $0x20c] sm:$0xf] %vm334_vm0, %v6530_v22  ;;  %v11545_v41 = vrot.slane %v6376_v13, 9  ;;  %v16282_v13 = vld [vmem:[#allocation3 + $0x140] sm:$0xff] }
 0x39b   : > { %v6385_v63 = vld [vmem:[#allocation2 + $0xb4] sm:$0xe]  ;;  %8238 = vst.msk [vmem:[#allocation3 + $0xd4] sm:$0xf] %vm1604_vm15, %v8153_v6  ;;  %6795 = vst.msk [vmem:[#allocation3 + $0x1d0] sm:$0xf] %vm1604_vm15, %v6723_v32  ;;  %v6533_v16 = vsel %vm13288_vm14, %v6531_v35, %v6532_v15  ;;  %v7507_v59 = vsel %vm13288_vm14, %v7505_v19, %v7506_v56 }
 0x39c   : > { %v6524_v39 = vrot.slane %v6522_v27, 4  ;;  %v6525_v17 = vrot.slane %v6378_v60, 5  ;;  %v6536_v29 = vrot.slane %v16221_v0, 5  ;;  %v16251_v43 = vld [vmem:[#allocation2 + $0x64] sm:$0xf]  ;;  %v16257_v42 = vrot.slane %v8125_v37, 4  ;;  %7570 = vrot.lane.b32.xlu1 %v7507_v59, %s12692_s19  ;;  %v6253_v37 = vpop.permute.xlu0 %6252 }
 0x39d   : > { %v16253_v52 = vld [vmem:[#allocation2 + $0x68] sm:$0x1]  ;;  %v16259_v7 = vrot.slane %v8115_v33, 4  ;;  %6607 = vst.msk [vmem:[#allocation3 + $0x220] sm:$0xf] %vm334_vm0, %v6533_v16  ;;  %v6523_v57 = vsel %vm13288_vm14, %v11545_v41, %v6522_v27  ;;  %v6539_v25 = vrot.slane %v6384_v46, 5  ;;  %v8097_v2 = vsel %vm12808_vm9, %v8092_v23, %v16165_v38 }
 0x39e   : > { %v6825_v11 = vld [vmem:[#allocation2 + $0x60] sm:$0xf]  ;;  %v6526_v49 = vsel %vm13288_vm14, %v6524_v39, %v6525_v17  ;;  %6604 = vst.msk [vmem:[#allocation3 + $0x1e4] sm:$0xf] %vm334_vm0, %v6523_v57  ;;  %v6538_v36 = vrot.slane %v6536_v29, 4  ;;  %v11547_v54 = vrot.slane %v6382_v9, 9  ;;  %8188 = vrot.lane.b32.xlu0 %v8097_v2, %s12692_s19  ;;  %v6719_v9 = vpop.permute.xlu1 %6718 }
 0x39f   : > { %v6543_v21 = vrot.slane %v16235_v20, 5  ;;  %v16269_v18 = vld [vmem:[#allocation2 + $0x70] sm:$0xf]  ;;  %v12568_v47 = vld [vmem:[#allocation3 + $0x11c] ss:$20 sps:$4 sm:$0xff]   ;;  %v6546_v53 = vrot.slane %v16241_v61, 5  ;;  %v8131_v20 = vsel %vm12808_vm9, %v16257_v42, %v16243_v8  ;;  %v8121_v35 = vsel %vm12808_vm9, %v16259_v7, %v16217_v4 }
 0x3a0   : > { %v8574_v10 = vld [vmem:[#allocation3 + $0x118] sm:$0xff]  ;;  %6605 = vst.msk [vmem:[#allocation3 + $0x1f8] sm:$0xf] %vm334_vm0, %v6526_v49  ;;  %v11548_v58 = vrot.slane %v6385_v63, 9  ;;  %v6540_v14 = vsel %vm13288_vm14, %v6538_v36, %v6539_v25  ;;  %v6537_v56 = vsel %vm13288_vm14, %v11547_v54, %v6536_v29  ;;  %v6828_v34 = vld [vmem:[#allocation2 + $0x6c] sm:$0xf]  ;;  %9459 = vmatprep.mubr.bf16.mxu1 %v12568_v47  ;;  %8194 = vrot.lane.b32.xlu1 %v8131_v20, %s12692_s19 }
 0x3a1   : > { %6794 = vst.msk [vmem:[#allocation3 + $0x1bc] sm:$0xf] %vm1604_vm15, %v6721_v44  ;;  %6329 = vst.msk [vmem:[#allocation3 + $0x1a4] sm:$0xf] %vm1604_vm15, %v6255_v55  ;;  %v11617_v31 = vcombine.low %v8574_v10, %v8577_v24  ;;  %v16284_v38 = vld [vmem:[#allocation3 + $0x154] sm:$0xff]  ;;  %v6545_v48 = vrot.slane %v6543_v21, 4 }
 0x3a2   : > { %v6830_v30 = vld [vmem:[#allocation2 + $0x74] sm:$0x1]  ;;  %v12570_v26 = vld [vmem:[#allocation3 + $0x144] ss:$20 sps:$4 sm:$0xff]   ;;  %6609 = vst.msk [vmem:[#allocation3 + $0x248] sm:$0xf] %vm334_vm0, %v6540_v14  ;;  %v6544_v40 = vsel %vm13288_vm14, %v11548_v58, %v6543_v21  ;;  %v11622_v15 = vcombine.low %v16282_v13, %v16284_v38  ;;  %7568 = vrot.lane.b32.xlu0 %v16227_v12, %s12692_s19 }
 0x3a3   : > { %6608 = vst.msk [vmem:[#allocation3 + $0x234] sm:$0xf] %vm334_vm0, %v6537_v56  ;;  %v7030_v50 = vshll.u32 %v16251_v43, 16  ;;  %v7034_v60 = vshrl.u32 %v16251_v43, 16  ;;  %v7040_v0 = vshll.u32 %v16253_v52, 16  ;;  %9460 = vmatmul.mubr.bf16.gmra.mxu1 %v11617_v31  ;;  %v6547_v19 = vsel %vm13288_vm14, %v6545_v48, %v6546_v53  ;;  %v6717_v43 = vpop.permute.xlu0 %6716  ;;  %v6251_v52 = vpop.permute.xlu1 %6250 }
 0x3a4   : > { %6610 = vst.msk [vmem:[#allocation3 + $0x25c] sm:$0xf] %vm334_vm0, %v6544_v40  ;;  %v7021_v28 = vshrl.u32 %v6825_v11, 16  ;;  %v7024_v5 = vshll.u32 %v6825_v11, 16  ;;  %v7054_v46 = vshll.u32 %v16269_v18, 16  ;;  %9467 = vmatprep.mubr.bf16.mxu1 %v12570_v26  ;;  %v7058_v4 = vshrl.u32 %v16269_v18, 16 }
 0x3a5   : > { %v6832_v45 = vld [vmem:[#allocation2 + $0x7c] sm:$0xf]  ;;  %v12574_v1 = vld [vmem:[#allocation3 + $0xd4] ss:$20 sps:$4 sm:$0xff]   ;;  %6611 = vst.msk [vmem:[#allocation3 + $0x270] sm:$0xf] %vm334_vm0, %v6547_v19 }
 0x3a6   : > { %v12572_v3 = vld [vmem:[#allocation3 + $0xd0] ss:$20 sps:$4 sm:$0xff]   ;;  %v7032_v22 = vrot.slane %v7030_v50, 5  ;;  %6328 = vst.msk [vmem:[#allocation3 + $0x190] sm:$0xf] %vm1604_vm15, %v6253_v37  ;;  %v7036_v27 = vrot.slane %v7034_v60, 4  ;;  %9604 = vmatprep.mubr.bf16.mxu0 %v12574_v1  ;;  %8192 = vrot.lane.b32.xlu0 %v8121_v35, %s12692_s19 }
 0x3a7   : > { %6793 = vst.msk [vmem:[#allocation3 + $0x1a8] sm:$0xf] %vm1604_vm15, %v6719_v9  ;;  %v7042_v61 = vrot.slane %v7040_v0, 5  ;;  %v7023_v6 = vrot.slane %v7021_v28, 4  ;;  %v7026_v32 = vrot.slane %v7024_v5, 5  ;;  %v16318_v23 = vrot.slane %v7054_v46, 5  ;;  %9605 = vmatmul.mubr.bf16.gmra.mxu0 %v12572_v3  ;;  %v6249_v31 = vpop.permute.xlu0 %6248  ;;  %v6731_v13 = vpop.permute.xlu1 %6730 }
 0x3a8   : > { %v7064_v8 = vshll.u32 %v6830_v30, 16  ;;  %v7045_v33 = vshrl.u32 %v6828_v34, 16  ;;  %v7037_v41 = vor.u32 %v7036_v27, %v7032_v22  ;;  %v7048_v16 = vshll.u32 %v6828_v34, 16  ;;  %v6833_v39 = vld [vmem:[#allocation2 + $0x80] sm:$0x1] }
 0x3a9   : > { %v7027_v63 = vor.u32 %v7026_v32, %v7023_v6  ;;  %v7078_v17 = vshll.u32 %v6832_v45, 16  ;;  %v6831_v29 = vld [vmem:[#allocation2 + $0x78] sm:$0xf]  ;;  %v7060_v24 = vrot.slane %v7058_v4, 4  ;;  %v7082_v7 = vshrl.u32 %v6832_v45, 16 }
 0x3aa   : > { %v7066_v12 = vrot.slane %v7064_v8, 5  ;;  %v7047_v42 = vrot.slane %v7045_v33, 4  ;;  %6792 = vst.msk [vmem:[#allocation3 + $0x194] sm:$0xf] %vm1604_vm15, %v6717_v43  ;;  %6327 = vst.msk [vmem:[#allocation3 + $0x17c] sm:$0xf] %vm1604_vm15, %v6251_v52 }
 0x3ab   : > { %v7038_v57 = vrot.slane %v7037_v41, 4  ;;  %v7028_v25 = vrot.slane %v7027_v63, 4  ;;  %v7050_v11 = vrot.slane %v7048_v16, 5  ;;  %v16324_v49 = vrot.slane %v7078_v17, 5  ;;  %v8260_v36 = vld [vmem:[#allocation2 + $0x18] sm:$0xe]  ;;  %9468 = vmatmul.mubr.bf16.gmra.mxu1 %v11622_v15  ;;  %v6729_v35 = vpop.permute.xlu0 %6728  ;;  %v6263_v15 = vpop.permute.xlu1 %6262 }
 0x3ac   : > { %v7061_v54 = vor.u32 %v7060_v24, %v16318_v23  ;;  %v7084_v21 = vrot.slane %v7082_v7, 4  ;;  %v7088_v18 = vshll.u32 %v6833_v39, 16  ;;  %v7069_v44 = vshrl.u32 %v6831_v29, 16  ;;  %v8261_v2 = vld [vmem:[#allocation2 + $0x1c] sm:$0xf] }
 0x3ad   : > { %v7043_v10 = vsel %vm12808_vm9, %v7038_v57, %v7042_v61  ;;  %v7033_v47 = vsel %vm12808_vm9, %v7028_v25, %v7032_v22  ;;  %v7051_v55 = vor.u32 %v7050_v11, %v7047_v42  ;;  %v7072_v59 = vshll.u32 %v6831_v29, 16  ;;  %v8262_v53 = vld [vmem:[#allocation2 + $0x20] sm:$0x1]  ;;  %v6835_v58 = vld [vmem:[#allocation2 + $0x88] sm:$0xf] }
 0x3ae   : > { %7283 = vst.msk [vmem:[#allocation3 + $0x134] sm:$0xf] %vm334_vm0, %v7043_v10  ;;  %7282 = vst.msk [vmem:[#allocation3 + $0x120] sm:$0xf] %vm334_vm0, %v7033_v47  ;;  %v7062_v38 = vrot.slane %v7061_v54, 4  ;;  %v7085_v14 = vor.u32 %v7084_v21, %v16324_v49  ;;  %v7090_v56 = vrot.slane %v7088_v18, 5 }
 0x3af   : > { %v7071_v48 = vrot.slane %v7069_v44, 4  ;;  %6326 = vst.msk [vmem:[#allocation3 + $0x168] sm:$0xf] %vm1604_vm15, %v6249_v31  ;;  %6799 = vst.msk [vmem:[#allocation3 + $0x220] sm:$0xf] %vm1604_vm15, %v6731_v13  ;;  %v7052_v30 = vrot.slane %v7051_v55, 4  ;;  %v6261_v7 = vpop.permute.xlu0 %6260  ;;  %v6727_v11 = vpop.permute.xlu1 %6726 }
 0x3b0   : > { %v7074_v34 = vrot.slane %v7072_v59, 5  ;;  %v11565_v26 = vrot.slane %v8260_v36, 9  ;;  %v8358_v40 = vrot.slane %v8261_v2, 5  ;;  %v8263_v50 = vld [vmem:[#allocation2 + $0x24] sm:$0xe]  ;;  %v7067_v60 = vsel %vm12808_vm9, %v7062_v38, %v7066_v12  ;;  %v16366_v44 = vld [vmem:[#allocation3 + $0x1a4] sm:$0xff] }
 0x3b1   : > { %v7086_v0 = vrot.slane %v7085_v14, 4  ;;  %v8361_v19 = vrot.slane %v8262_v53, 5  ;;  %v6836_v28 = vld [vmem:[#allocation2 + $0x8c] sm:$0x1]  ;;  %v7102_v5 = vshll.u32 %v6835_v58, 16  ;;  %v7057_v45 = vsel %vm12808_vm9, %v7052_v30, %v16318_v23  ;;  %v8589_v63 = vld [vmem:[#allocation3 + $0x17c] sm:$0xff] }
 0x3b2   : > { %v8264_v46 = vld [vmem:[#allocation2 + $0x28] sm:$0xf]  ;;  %7285 = vst.msk [vmem:[#allocation3 + $0x15c] sm:$0xf] %vm334_vm0, %v7067_v60  ;;  %v7075_v37 = vor.u32 %v7074_v34, %v7071_v48  ;;  %v8359_v3 = vsel %vm13288_vm14, %v11565_v26, %v8358_v40  ;;  %v8360_v1 = vrot.slane %v8358_v40, 4  ;;  %v7106_v61 = vshrl.u32 %v6835_v58, 16 }
 0x3b3   : > { %v6834_v9 = vld [vmem:[#allocation2 + $0x84] sm:$0xf]  ;;  %v8265_v20 = vld [vmem:[#allocation2 + $0x2c] sm:$0x1]  ;;  %7284 = vst.msk [vmem:[#allocation3 + $0x148] sm:$0xf] %vm334_vm0, %v7057_v45  ;;  %v7091_v22 = vsel %vm12808_vm9, %v7086_v0, %v7090_v56  ;;  %v6725_v60 = vpop.permute.xlu0 %6724  ;;  %v6259_v0 = vpop.permute.xlu1 %6258 }
 0x3b4   : > { %8500 = vst.msk [vmem:[#allocation3 + $0x10] sm:$0xf] %vm334_vm0, %v8359_v3  ;;  %v16349_v27 = vrot.slane %v7102_v5, 5  ;;  %v8266_v6 = vld [vmem:[#allocation2 + $0x30] sm:$0xe]  ;;  %v7076_v23 = vrot.slane %v7075_v37, 4  ;;  %v8362_v4 = vsel %vm13288_vm14, %v8360_v1, %v8361_v19 }
 0x3b5   : > { %v8267_v32 = vld [vmem:[#allocation2 + $0x34] sm:$0xf]  ;;  %6798 = vst.msk [vmem:[#allocation3 + $0x20c] sm:$0xf] %vm1604_vm15, %v6729_v35  ;;  %6333 = vst.msk [vmem:[#allocation3 + $0x1f4] sm:$0xf] %vm1604_vm15, %v6263_v15 }
 0x3b6   : > { %7287 = vst.msk [vmem:[#allocation3 + $0x184] sm:$0xf] %vm334_vm0, %v7091_v22  ;;  %v7112_v8 = vshll.u32 %v6836_v28, 16  ;;  %v16356_v33 = vld [vmem:[#allocation2 + $0x38] sm:$0x1]  ;;  %v7108_v16 = vrot.slane %v7106_v61, 4  ;;  %v7081_v43 = vsel %vm12808_vm9, %v7076_v23, %v16324_v49 }
 0x3b7   : > { %v6838_v41 = vld [vmem:[#allocation2 + $0x94] sm:$0xf]  ;;  %8501 = vst.msk [vmem:[#allocation3 + $0x24] sm:$0xf] %vm334_vm0, %v8362_v4  ;;  %v7093_v39 = vshrl.u32 %v6834_v9, 16  ;;  %v7096_v17 = vshll.u32 %v6834_v9, 16 }
 0x3b8   : > { %v11566_v29 = vrot.slane %v8263_v50, 9  ;;  %v7114_v52 = vrot.slane %v7112_v8, 5  ;;  %v8365_v24 = vrot.slane %v8264_v46, 5  ;;  %v8368_v12 = vrot.slane %v8265_v20, 5  ;;  %v6839_v42 = vld [vmem:[#allocation2 + $0x98] sm:$0x1] }
 0x3b9   : > { %v8586_v57 = vld [vmem:[#allocation3 + $0x168] sm:$0xff]  ;;  %7286 = vst.msk [vmem:[#allocation3 + $0x170] sm:$0xf] %vm334_vm0, %v7081_v43  ;;  %v7109_v36 = vor.u32 %v7108_v16, %v16349_v27  ;;  %v7095_v54 = vrot.slane %v7093_v39, 4  ;;  %v7098_v21 = vrot.slane %v7096_v17, 5  ;;  %v11567_v18 = vrot.slane %v8266_v6, 9 }
 0x3ba   : > { %v12576_v25 = vld [vmem:[#allocation3 + $0x16c] ss:$20 sps:$4 sm:$0xff]   ;;  %6332 = vst.msk [vmem:[#allocation3 + $0x1e0] sm:$0xf] %vm1604_vm15, %v6261_v7  ;;  %6797 = vst.msk [vmem:[#allocation3 + $0x1f8] sm:$0xf] %vm1604_vm15, %v6727_v11  ;;  %v11627_v49 = vcombine.low %v8586_v57, %v8589_v63  ;;  %v8366_v2 = vsel %vm13288_vm14, %v11566_v29, %v8365_v24 }
 0x3bb   : > { %v8367_v10 = vrot.slane %v8365_v24, 4  ;;  %v8372_v47 = vrot.slane %v8267_v32, 5  ;;  %v6837_v55 = vld [vmem:[#allocation2 + $0x90] sm:$0xf]  ;;  %v8269_v59 = vld [vmem:[#allocation2 + $0x3c] sm:$0xe]  ;;  %9475 = vmatprep.mubr.bf16.mxu1 %v12576_v25  ;;  %v7099_v13 = vor.u32 %v7098_v21, %v7095_v54 }
 0x3bc   : > { %v16370_v53 = vld [vmem:[#allocation3 + $0x190] sm:$0xff]  ;;  %v7110_v31 = vrot.slane %v7109_v36, 4  ;;  %8502 = vst.msk [vmem:[#allocation3 + $0x38] sm:$0xf] %vm334_vm0, %v8366_v2  ;;  %v8375_v38 = vrot.slane %v16356_v33, 5  ;;  %v7126_v14 = vshll.u32 %v6838_v41, 16  ;;  %9476 = vmatmul.mubr.bf16.gmra.mxu1 %v11627_v49  ;;  %v6257_v33 = vpop.permute.xlu0 %6256 }
 0x3bd   : > { %v12578_v58 = vld [vmem:[#allocation3 + $0x194] ss:$20 sps:$4 sm:$0xff]   ;;  %v8271_v48 = vld [vmem:[#allocation2 + $0x44] sm:$0x1]  ;;  %v8369_v30 = vsel %vm13288_vm14, %v8367_v10, %v8368_v12  ;;  %v8373_v34 = vsel %vm13288_vm14, %v11567_v18, %v8372_v47  ;;  %v8374_v26 = vrot.slane %v8372_v47, 4  ;;  %v7130_v40 = vshrl.u32 %v6838_v41, 16  ;;  %v8159_v41 = vpop.permute.xlu1 %8158 }
 0x3be   : > { %v8270_v56 = vld [vmem:[#allocation2 + $0x40] sm:$0xf]  ;;  %v8272_v50 = vld [vmem:[#allocation2 + $0x48] sm:$0xe]  ;;  %9483 = vmatprep.mubr.bf16.mxu1 %v12578_v58  ;;  %v7115_v19 = vsel %vm12808_vm9, %v7110_v31, %v7114_v52  ;;  %v7100_v28 = vrot.slane %v7099_v13, 4  ;;  %v16382_v5 = vrot.slane %v7126_v14, 5  ;;  %v11632_v37 = vcombine.low %v16370_v53, %v16366_v44 }
 0x3bf   : > { %8503 = vst.msk [vmem:[#allocation3 + $0x4c] sm:$0xf] %vm334_vm0, %v8369_v30  ;;  %8504 = vst.msk [vmem:[#allocation3 + $0x60] sm:$0xf] %vm334_vm0, %v8373_v34  ;;  %v7136_v46 = vshll.u32 %v6839_v42, 16  ;;  %v8376_v3 = vsel %vm13288_vm14, %v8374_v26, %v8375_v38  ;;  %v7132_v1 = vrot.slane %v7130_v40, 4 }
 0x3c0   : > { %v8273_v45 = vld [vmem:[#allocation2 + $0x4c] sm:$0xf]  ;;  %6796 = vst.msk [vmem:[#allocation3 + $0x1e4] sm:$0xf] %vm1604_vm15, %v6725_v60  ;;  %6331 = vst.msk [vmem:[#allocation3 + $0x1cc] sm:$0xf] %vm1604_vm15, %v6259_v0  ;;  %v7105_v35 = vsel %vm12808_vm9, %v7100_v28, %v16349_v27  ;;  %v8157_v18 = vpop.permute.xlu0 %8156 }
 0x3c1   : > { %7289 = vst.msk [vmem:[#allocation3 + $0x1ac] sm:$0xf] %vm334_vm0, %v7115_v19  ;;  %v7117_v9 = vshrl.u32 %v6837_v55, 16  ;;  %v8274_v20 = vld [vmem:[#allocation2 + $0x50] sm:$0x1]  ;;  %v7138_v15 = vrot.slane %v7136_v46, 5  ;;  %v7133_v32 = vor.u32 %v7132_v1, %v16382_v5  ;;  %v6271_v49 = vpop.permute.xlu1 %6270 }
 0x3c2   : > { %8505 = vst.msk [vmem:[#allocation3 + $0x74] sm:$0xf] %vm334_vm0, %v8376_v3  ;;  %v7120_v22 = vshll.u32 %v6837_v55, 16  ;;  %v11568_v61 = vrot.slane %v8269_v59, 9  ;;  %v6841_v6 = vld [vmem:[#allocation2 + $0xa0] sm:$0xf] }
 0x3c3   : > { %7288 = vst.msk [vmem:[#allocation3 + $0x198] sm:$0xf] %vm334_vm0, %v7105_v35  ;;  %v7119_v23 = vrot.slane %v7117_v9, 4  ;;  %v8379_v4 = vrot.slane %v8270_v56, 5  ;;  %v8382_v8 = vrot.slane %v8271_v48, 5  ;;  %v11569_v16 = vrot.slane %v8272_v50, 9 }
 0x3c4   : > { %v7122_v63 = vrot.slane %v7120_v22, 5  ;;  %v8386_v39 = vrot.slane %v8273_v45, 5  ;;  %v8389_v17 = vrot.slane %v8274_v20, 5  ;;  %6330 = vst.msk [vmem:[#allocation3 + $0x1b8] sm:$0xf] %vm1604_vm15, %v6257_v33  ;;  %v7134_v27 = vrot.slane %v7133_v32, 4  ;;  %9484 = vmatmul.mubr.bf16.gmra.mxu1 %v11632_v37  ;;  %v6269_v40 = vpop.permute.xlu0 %6268 }
 0x3c5   : > { %8241 = vst.msk [vmem:[#allocation3 + $0x110] sm:$0xf] %vm1604_vm15, %v8159_v41  ;;  %v8380_v29 = vsel %vm13288_vm14, %v11568_v61, %v8379_v4  ;;  %v8381_v43 = vrot.slane %v8379_v4, 4  ;;  %v7150_v52 = vshll.u32 %v6841_v6, 16  ;;  %v6842_v7 = vld [vmem:[#allocation2 + $0xa4] sm:$0x1]  ;;  %v6735_v0 = vpop.permute.xlu1 %6734 }
 0x3c6   : > { %v7123_v24 = vor.u32 %v7122_v63, %v7119_v23  ;;  %8506 = vst.msk [vmem:[#allocation3 + $0x88] sm:$0xf] %vm334_vm0, %v8380_v29  ;;  %v8387_v12 = vsel %vm13288_vm14, %v11569_v16, %v8386_v39  ;;  %v8388_v42 = vrot.slane %v8386_v39, 4  ;;  %v7154_v57 = vshrl.u32 %v6841_v6, 16  ;;  %v8275_v25 = vld [vmem:[#allocation2 + $0x54] sm:$0xe] }
 0x3c7   : > { %v8276_v11 = vld [vmem:[#allocation2 + $0x58] sm:$0xf]  ;;  %v7139_v36 = vsel %vm12808_vm9, %v7134_v27, %v7138_v15  ;;  %v8383_v54 = vsel %vm13288_vm14, %v8381_v43, %v8382_v8  ;;  %8508 = vst.msk [vmem:[#allocation3 + $0xb0] sm:$0xf] %vm334_vm0, %v8387_v12  ;;  %v6840_v21 = vld [vmem:[#allocation2 + $0x9c] sm:$0xf] }
 0x3c8   : > { %7291 = vst.msk [vmem:[#allocation3 + $0x1d4] sm:$0xf] %vm334_vm0, %v7139_v36  ;;  %v7124_v44 = vrot.slane %v7123_v24, 4  ;;  %8507 = vst.msk [vmem:[#allocation3 + $0x9c] sm:$0xf] %vm334_vm0, %v8383_v54  ;;  %v8390_v2 = vsel %vm13288_vm14, %v8388_v42, %v8389_v17  ;;  %v16413_v10 = vrot.slane %v7150_v52, 5  ;;  %v6733_v63 = vpop.permute.xlu0 %6732 }
 0x3c9   : > { %v8277_v47 = vld [vmem:[#allocation2 + $0x5c] sm:$0x1]  ;;  %8240 = vst.msk [vmem:[#allocation3 + $0xfc] sm:$0xf] %vm1604_vm15, %v8157_v18  ;;  %6337 = vst.msk [vmem:[#allocation3 + $0x244] sm:$0xf] %vm1604_vm15, %v6271_v49  ;;  %v6267_v17 = vpop.permute.xlu1 %6266 }
 0x3ca   : > { %8509 = vst.msk [vmem:[#allocation3 + $0xc4] sm:$0xf] %vm334_vm0, %v8390_v2  ;;  %v8278_v55 = vld [vmem:[#allocation2 + $0x60] sm:$0xe]  ;;  %v8279_v59 = vld [vmem:[#allocation2 + $0x64] sm:$0xf]  ;;  %v7129_v58 = vsel %vm12808_vm9, %v7124_v44, %v16382_v5 }
 0x3cb   : > { %v8601_v53 = vld [vmem:[#allocation3 + $0x1cc] sm:$0xff]  ;;  %v7156_v31 = vrot.slane %v7154_v57, 4  ;;  %v7160_v13 = vshll.u32 %v6842_v7, 16  ;;  %v7141_v38 = vshrl.u32 %v6840_v21, 16  ;;  %7290 = vst.msk [vmem:[#allocation3 + $0x1c0] sm:$0xf] %vm334_vm0, %v7129_v58 }
 0x3cc   : > { %v8280_v14 = vld [vmem:[#allocation2 + $0x68] sm:$0x1]  ;;  %v7144_v56 = vshll.u32 %v6840_v21, 16  ;;  %v11570_v48 = vrot.slane %v8275_v25, 9  ;;  %v8393_v30 = vrot.slane %v8276_v11, 5  ;;  %v8396_v34 = vrot.slane %v8277_v47, 5 }
 0x3cd   : > { %v6844_v26 = vld [vmem:[#allocation2 + $0xac] sm:$0xf]  ;;  %v8598_v50 = vld [vmem:[#allocation3 + $0x1b8] sm:$0xff]  ;;  %v7157_v19 = vor.u32 %v7156_v31, %v16413_v10  ;;  %v7162_v28 = vrot.slane %v7160_v13, 5  ;;  %v7143_v46 = vrot.slane %v7141_v38, 4  ;;  %v11571_v35 = vrot.slane %v8278_v55, 9  ;;  %v6265_v55 = vpop.permute.xlu0 %6264 }
 0x3ce   : > { %v12580_v60 = vld [vmem:[#allocation3 + $0x1bc] ss:$20 sps:$4 sm:$0xff]   ;;  %6336 = vst.msk [vmem:[#allocation3 + $0x230] sm:$0xf] %vm1604_vm15, %v6269_v40  ;;  %6801 = vst.msk [vmem:[#allocation3 + $0x248] sm:$0xf] %vm1604_vm15, %v6735_v0  ;;  %v11637_v5 = vcombine.low %v8598_v50, %v8601_v53  ;;  %v8394_v3 = vsel %vm13288_vm14, %v11570_v48, %v8393_v30 }
 0x3cf   : > { %v12584_v45 = vld [vmem:[#allocation3 + $0x1e4] ss:$20 sps:$4 sm:$0xff]   ;;  %v7146_v37 = vrot.slane %v7144_v56, 5  ;;  %v8395_v1 = vrot.slane %v8393_v30, 4  ;;  %9491 = vmatprep.mubr.bf16.mxu1 %v12580_v60  ;;  %v7158_v20 = vrot.slane %v7157_v19, 4  ;;  %v8400_v15 = vrot.slane %v8279_v59, 5  ;;  %v6739_v59 = vpop.permute.xlu1 %6738 }
 0x3d0   : > { %v6845_v9 = vld [vmem:[#allocation2 + $0xb0] sm:$0x1]  ;;  %8510 = vst.msk [vmem:[#allocation3 + $0xd8] sm:$0xf] %vm334_vm0, %v8394_v3  ;;  %v8403_v22 = vrot.slane %v8280_v14, 5  ;;  %9492 = vmatmul.mubr.bf16.gmra.mxu1 %v11637_v5  ;;  %v7174_v4 = vshll.u32 %v6844_v26, 16 }
 0x3d1   : > { %v8281_v61 = vld [vmem:[#allocation2 + $0x6c] sm:$0xe]  ;;  %v8282_v6 = vld [vmem:[#allocation2 + $0x70] sm:$0xf]  ;;  %v7147_v32 = vor.u32 %v7146_v37, %v7143_v46  ;;  %v8397_v23 = vsel %vm13288_vm14, %v8395_v1, %v8396_v34  ;;  %v7178_v8 = vshrl.u32 %v6844_v26, 16  ;;  %9499 = vmatprep.mubr.bf16.mxu1 %v12584_v45  ;;  %v7163_v27 = vsel %vm12808_vm9, %v7158_v20, %v7162_v28  ;;  %v6737_v46 = vpop.permute.xlu0 %6736 }
 0x3d2   : > { %v6843_v33 = vld [vmem:[#allocation2 + $0xa8] sm:$0xf]  ;;  %v8283_v41 = vld [vmem:[#allocation2 + $0x74] sm:$0x1]  ;;  %v12585_v16 = vld [vmem:[#allocation3 + $0xf8] ss:$20 sps:$4 sm:$0xff]   ;;  %v8401_v29 = vsel %vm13288_vm14, %v11571_v35, %v8400_v15 }
 0x3d3   : > { %v12587_v39 = vld [vmem:[#allocation3 + $0xfc] ss:$20 sps:$4 sm:$0xff]   ;;  %8511 = vst.msk [vmem:[#allocation3 + $0xec] sm:$0xf] %vm334_vm0, %v8397_v23  ;;  %v8402_v43 = vrot.slane %v8400_v15, 4  ;;  %v7148_v24 = vrot.slane %v7147_v32, 4  ;;  %v7539_v5 = vpop.permute.xlu1 %7538 }
 0x3d4   : > { %v8284_v52 = vld [vmem:[#allocation2 + $0x78] sm:$0xe]  ;;  %6800 = vst.msk [vmem:[#allocation3 + $0x234] sm:$0xf] %vm1604_vm15, %v6733_v63  ;;  %6335 = vst.msk [vmem:[#allocation3 + $0x21c] sm:$0xf] %vm1604_vm15, %v6267_v17  ;;  %9612 = vmatprep.mubr.bf16.mxu0 %v12587_v39 }
 0x3d5   : > { %7293 = vst.msk [vmem:[#allocation3 + $0x1fc] sm:$0xf] %vm334_vm0, %v7163_v27  ;;  %8512 = vst.msk [vmem:[#allocation3 + $0x100] sm:$0xf] %vm334_vm0, %v8401_v29  ;;  %v16439_v12 = vrot.slane %v7174_v4, 5  ;;  %v8404_v57 = vsel %vm13288_vm14, %v8402_v43, %v8403_v22  ;;  %v7180_v25 = vrot.slane %v7178_v8, 4  ;;  %9613 = vmatmul.mubr.bf16.gmra.mxu0 %v12585_v16  ;;  %v7153_v21 = vsel %vm12808_vm9, %v7148_v24, %v16413_v10  ;;  %v7537_v39 = vpop.permute.xlu0 %7536  ;;  %v12049_v24 = vpop.f32.mrf.mxu1 }
 0x3d6   : > { %v8285_v42 = vld [vmem:[#allocation2 + $0x7c] sm:$0xf]  ;;  %v8286_v7 = vld [vmem:[#allocation2 + $0x80] sm:$0x1]  ;;  %v7184_v11 = vshll.u32 %v6845_v9, 16  ;;  %v7165_v36 = vshrl.u32 %v6843_v33, 16 }
 0x3d7   : > { %v6847_v54 = vld [vmem:[#allocation2 + $0xb8] sm:$0xf]  ;;  %8513 = vst.msk [vmem:[#allocation3 + $0x114] sm:$0xf] %vm334_vm0, %v8404_v57  ;;  %v7168_v18 = vshll.u32 %v6843_v33, 16  ;;  %v11572_v49 = vrot.slane %v8281_v61, 9  ;;  %v7181_v53 = vor.u32 %v7180_v25, %v16439_v12  ;;  %v8163_v29 = vpop.permute.xlu1 %8162 }
 0x3d8   : > { %v8407_v44 = vrot.slane %v8282_v6, 5  ;;  %v6848_v2 = vld [vmem:[#allocation2 + $0xbc] sm:$0x1]  ;;  %v12582_v47 = vld [vmem:[#allocation3 + $0x1e0] ss:$20 sps:$4 sm:$0xff]   ;;  %v7186_v58 = vrot.slane %v7184_v11, 5 }
 0x3d9   : > { %7292 = vst.msk [vmem:[#allocation3 + $0x1e8] sm:$0xf] %vm334_vm0, %v7153_v21  ;;  %v7167_v31 = vrot.slane %v7165_v36, 4  ;;  %v8410_v13 = vrot.slane %v8283_v41, 5  ;;  %v7170_v10 = vrot.slane %v7168_v18, 5  ;;  %v11573_v56 = vrot.slane %v8284_v52, 9  ;;  %9500 = vmatmul.mubr.bf16.gmra.mxu1 %v12582_v47 }
 0x3da   : > { %6334 = vst.msk [vmem:[#allocation3 + $0x208] sm:$0xf] %vm1604_vm15, %v6265_v55  ;;  %6803 = vst.msk [vmem:[#allocation3 + $0x270] sm:$0xf] %vm1604_vm15, %v6739_v59  ;;  %v8408_v38 = vsel %vm13288_vm14, %v11572_v49, %v8407_v44  ;;  %v8409_v14 = vrot.slane %v8407_v44, 4  ;;  %v7182_v48 = vrot.slane %v7181_v53, 4  ;;  %v12050_v49 = vpop.f32.mrf.mxu1  ;;  %v8161_v53 = vpop.permute.xlu0 %8160 }
 0x3db   : > { %8514 = vst.msk [vmem:[#allocation3 + $0x128] sm:$0xf] %vm334_vm0, %v8408_v38  ;;  %v8414_v30 = vrot.slane %v8285_v42, 5  ;;  %v8417_v34 = vrot.slane %v8286_v7, 5  ;;  %v7198_v26 = vshll.u32 %v6847_v54, 16  ;;  %v7171_v50 = vor.u32 %v7170_v10, %v7167_v31 }
 0x3dc   : > { %v8287_v40 = vld [vmem:[#allocation2 + $0x84] sm:$0xe]  ;;  %v8411_v60 = vsel %vm13288_vm14, %v8409_v14, %v8410_v13  ;;  %v7202_v0 = vshrl.u32 %v6847_v54, 16  ;;  %v7208_v19 = vshll.u32 %v6848_v2, 16  ;;  %v6846_v28 = vld [vmem:[#allocation2 + $0xb4] sm:$0xf]  ;;  %v7187_v45 = vsel %vm12808_vm9, %v7182_v48, %v7186_v58  ;;  %v6275_v58 = vpop.permute.xlu1 %6274 }
 0x3dd   : > { %8515 = vst.msk [vmem:[#allocation3 + $0x13c] sm:$0xf] %vm334_vm0, %v8411_v60  ;;  %v8415_v37 = vsel %vm13288_vm14, %v11573_v56, %v8414_v30  ;;  %v8416_v3 = vrot.slane %v8414_v30, 4  ;;  %v16461_v1 = vrot.slane %v7198_v26, 5  ;;  %v8288_v9 = vld [vmem:[#allocation2 + $0x88] sm:$0xf]  ;;  %v16486_v31 = vadd.f32 %v12050_v49, %v12049_v24  ;;  %v12052_v56 = vpop.f32.mrf.mxu1 }
 0x3de   : > { %v16463_v20 = vld [vmem:[#allocation2 + $0x8c] sm:$0x1]  ;;  %6802 = vst.msk [vmem:[#allocation3 + $0x25c] sm:$0xf] %vm1604_vm15, %v6737_v46  ;;  %7619 = vst.msk [vmem:[#allocation3 + $0x134] sm:$0xf] %vm1604_vm15, %v7539_v5 }
 0x3df   : > { %7295 = vst.msk [vmem:[#allocation3 + $0x224] sm:$0xf] %vm334_vm0, %v7187_v45  ;;  %v7172_v35 = vrot.slane %v7171_v50, 4  ;;  %8516 = vst.msk [vmem:[#allocation3 + $0x150] sm:$0xf] %vm334_vm0, %v8415_v37  ;;  %v7204_v15 = vrot.slane %v7202_v0, 4  ;;  %v8418_v61 = vsel %vm13288_vm14, %v8416_v3, %v8417_v34  ;;  %v6273_v3 = vpop.permute.xlu0 %6272 }
 0x3e0   : > { %v8290_v22 = vld [vmem:[#allocation2 + $0x90] sm:$0xe]  ;;  %v7210_v6 = vrot.slane %v7208_v19, 5  ;;  %v7189_v32 = vshrl.u32 %v6846_v28, 16  ;;  %v8291_v23 = vld [vmem:[#allocation2 + $0x94] sm:$0xf] }
 0x3e1   : > { %v7177_v4 = vsel %vm12808_vm9, %v7172_v35, %v16439_v12  ;;  %8517 = vst.msk [vmem:[#allocation3 + $0x164] sm:$0xf] %vm334_vm0, %v8418_v61  ;;  %v7205_v8 = vor.u32 %v7204_v15, %v16461_v1  ;;  %v7192_v33 = vshll.u32 %v6846_v28, 16  ;;  %v11574_v41 = vrot.slane %v8287_v40, 9  ;;  %v8292_v63 = vld [vmem:[#allocation2 + $0x98] sm:$0x1]  ;;  %v12053_v28 = vpop.f32.mrf.mxu1 }
 0x3e2   : > { %v6850_v16 = vld [vmem:[#allocation2 + $0xc4] sm:$0xf]  ;;  %v12589_v17 = vld [vmem:[#allocation3 + $0x208] ss:$20 sps:$4 sm:$0xff]   ;;  %7294 = vst.msk [vmem:[#allocation3 + $0x210] sm:$0xf] %vm334_vm0, %v7177_v4 }
 0x3e3   : > { %v12591_v27 = vld [vmem:[#allocation3 + $0x20c] ss:$20 sps:$4 sm:$0xff]   ;;  %v7191_v43 = vrot.slane %v7189_v32, 4  ;;  %v16477_v52 = vld [vmem:[#allocation2 + $0xc8] sm:$0x1]  ;;  %v7206_v12 = vrot.slane %v7205_v8, 4 }
 0x3e4   : > { %7618 = vst.msk [vmem:[#allocation3 + $0x120] sm:$0xf] %vm1604_vm15, %v7537_v39  ;;  %8243 = vst.msk [vmem:[#allocation3 + $0x138] sm:$0xf] %vm1604_vm15, %v8163_v29  ;;  %v7194_v42 = vrot.slane %v7192_v33, 5  ;;  %v8421_v7 = vrot.slane %v8288_v9, 5  ;;  %9507 = vmatprep.mubr.bf16.mxu1 %v12591_v27  ;;  %v7543_v9 = vpop.permute.xlu1 %7542 }
 0x3e5   : > { %v8424_v57 = vrot.slane %v16463_v20, 5  ;;  %v6849_v25 = vld [vmem:[#allocation2 + $0xc0] sm:$0xf]  ;;  %v11575_v36 = vrot.slane %v8290_v22, 9  ;;  %v8428_v54 = vrot.slane %v8291_v23, 5  ;;  %v8431_v21 = vrot.slane %v8292_v63, 5  ;;  %9508 = vmatmul.mubr.bf16.gmra.mxu1 %v12589_v17 }
 0x3e6   : > { %v12594_v11 = vld [vmem:[#allocation3 + $0x234] ss:$20 sps:$4 sm:$0xff]   ;;  %v7222_v18 = vshll.u32 %v6850_v16, 16  ;;  %v7211_v44 = vsel %vm12808_vm9, %v7206_v12, %v7210_v6  ;;  %v7195_v2 = vor.u32 %v7194_v42, %v7191_v43  ;;  %v8422_v47 = vsel %vm13288_vm14, %v11574_v41, %v8421_v7  ;;  %v8293_v59 = vld [vmem:[#allocation2 + $0x9c] sm:$0xe]  ;;  %v7541_v42 = vpop.permute.xlu0 %7540 }
 0x3e7   : > { %v8423_v55 = vrot.slane %v8421_v7, 4  ;;  %9515 = vmatprep.mubr.bf16.mxu1 %v12594_v11  ;;  %7297 = vst.msk [vmem:[#allocation3 + $0x24c] sm:$0xf] %vm334_vm0, %v7211_v44  ;;  %8518 = vst.msk [vmem:[#allocation3 + $0x178] sm:$0xf] %vm334_vm0, %v8422_v47  ;;  %v8429_v13 = vsel %vm13288_vm14, %v11575_v36, %v8428_v54  ;;  %v8430_v10 = vrot.slane %v8428_v54, 4  ;;  %v16507_v20 = vadd.f32 %v12053_v28, %v12052_v56 }
 0x3e8   : > { %v16492_v38 = vrot.slane %v7222_v18, 5  ;;  %v8294_v14 = vld [vmem:[#allocation2 + $0xa0] sm:$0xf]  ;;  %8242 = vst.msk [vmem:[#allocation3 + $0x124] sm:$0xf] %vm1604_vm15, %v8161_v53  ;;  %v7196_v48 = vrot.slane %v7195_v2, 4 }
 0x3e9   : > { %6339 = vst.msk [vmem:[#allocation3 + $0x26c] sm:$0xf] %vm1604_vm15, %v6275_v58  ;;  %v8425_v30 = vsel %vm13288_vm14, %v8423_v55, %v8424_v57  ;;  %v7226_v34 = vshrl.u32 %v6850_v16, 16  ;;  %v7232_v26 = vshll.u32 %v16477_v52, 16  ;;  %v8296_v40 = vld [vmem:[#allocation2 + $0xa8] sm:$0xe]  ;;  %v8432_v50 = vsel %vm13288_vm14, %v8430_v10, %v8431_v21 }
 0x3ea   : > { %8520 = vst.msk [vmem:[#allocation3 + $0x1a0] sm:$0xf] %vm334_vm0, %v8429_v13  ;;  %8519 = vst.msk [vmem:[#allocation3 + $0x18c] sm:$0xf] %vm334_vm0, %v8425_v30  ;;  %v7213_v60 = vshrl.u32 %v6849_v25, 16  ;;  %v7216_v0 = vshll.u32 %v6849_v25, 16  ;;  %v7201_v46 = vsel %vm12808_vm9, %v7196_v48, %v16461_v1  ;;  %v8167_v25 = vpop.permute.xlu1 %8166  ;;  %v8165_v53 = vpop.permute.xlu0 %8164 }
 0x3eb   : > { %v8297_v19 = vld [vmem:[#allocation2 + $0xac] sm:$0xf]  ;;  %8521 = vst.msk [vmem:[#allocation3 + $0x1b4] sm:$0xf] %vm334_vm0, %v8432_v50  ;;  %v7228_v5 = vrot.slane %v7226_v34, 4  ;;  %v11576_v37 = vrot.slane %v8293_v59, 9 }
 0x3ec   : > { %v8295_v45 = vld [vmem:[#allocation2 + $0xa4] sm:$0x1]  ;;  %7296 = vst.msk [vmem:[#allocation3 + $0x238] sm:$0xf] %vm334_vm0, %v7201_v46  ;;  %v7215_v35 = vrot.slane %v7213_v60, 4  ;;  %v7218_v15 = vrot.slane %v7216_v0, 5 }
 0x3ed   : > { %v8435_v22 = vrot.slane %v8294_v14, 5  ;;  %v8298_v61 = vld [vmem:[#allocation2 + $0xb0] sm:$0x1]  ;;  %v12592_v6 = vld [vmem:[#allocation3 + $0x230] ss:$20 sps:$4 sm:$0xff]   ;;  %v7229_v1 = vor.u32 %v7228_v5, %v16492_v38  ;;  %v7234_v32 = vrot.slane %v7232_v26, 5 }
 0x3ee   : > { %6338 = vst.msk [vmem:[#allocation3 + $0x258] sm:$0xf] %vm1604_vm15, %v6273_v3  ;;  %7621 = vst.msk [vmem:[#allocation3 + $0x15c] sm:$0xf] %vm1604_vm15, %v7543_v9  ;;  %v11577_v23 = vrot.slane %v8296_v40, 9  ;;  %v8442_v4 = vrot.slane %v8297_v19, 5  ;;  %v7219_v33 = vor.u32 %v7218_v15, %v7215_v35  ;;  %9516 = vmatmul.mubr.bf16.gmra.mxu1 %v12592_v6  ;;  %v7547_v10 = vpop.permute.xlu1 %7546  ;;  %v7545_v40 = vpop.permute.xlu0 %7544 }
 0x3ef   : > { %v8299_v8 = vld [vmem:[#allocation2 + $0xb4] sm:$0xe]  ;;  %v8436_v41 = vsel %vm13288_vm14, %v11576_v37, %v8435_v22  ;;  %v8437_v63 = vrot.slane %v8435_v22, 4  ;;  %v8438_v16 = vrot.slane %v8295_v45, 5  ;;  %v8300_v39 = vld [vmem:[#allocation2 + $0xb8] sm:$0xf] }
 0x3f0   : > { %v8301_v17 = vld [vmem:[#allocation2 + $0xbc] sm:$0x1]  ;;  %v8302_v27 = vld [vmem:[#allocation2 + $0xc0] sm:$0xe]  ;;  %v8303_v29 = vld [vmem:[#allocation2 + $0xc4] sm:$0xf]  ;;  %v8443_v52 = vsel %vm13288_vm14, %v11577_v23, %v8442_v4 }
 0x3f1   : > { %v7230_v43 = vrot.slane %v7229_v1, 4  ;;  %8522 = vst.msk [vmem:[#allocation3 + $0x1c8] sm:$0xf] %vm334_vm0, %v8436_v41  ;;  %v8444_v24 = vrot.slane %v8442_v4, 4  ;;  %v8445_v12 = vrot.slane %v8298_v61, 5  ;;  %v7220_v11 = vrot.slane %v7219_v33, 4  ;;  %v12161_v1 = vpop.f32.mrf.mxu0 }
 0x3f2   : > { %v12595_v7 = vld [vmem:[#allocation3 + $0x120] ss:$20 sps:$4 sm:$0xff]   ;;  %v12597_v57 = vld [vmem:[#allocation3 + $0x124] ss:$20 sps:$4 sm:$0xff]   ;;  %v8439_v36 = vsel %vm13288_vm14, %v8437_v63, %v8438_v16  ;;  %8524 = vst.msk [vmem:[#allocation3 + $0x1f0] sm:$0xf] %vm334_vm0, %v8443_v52  ;;  %v8171_v50 = vpop.permute.xlu1 %8170  ;;  %v8169_v60 = vpop.permute.xlu0 %8168 }
 0x3f3   : > { %7620 = vst.msk [vmem:[#allocation3 + $0x148] sm:$0xf] %vm1604_vm15, %v7541_v42  ;;  %8245 = vst.msk [vmem:[#allocation3 + $0x160] sm:$0xf] %vm1604_vm15, %v8167_v25  ;;  %v7235_v54 = vsel %vm12808_vm9, %v7230_v43, %v7234_v32  ;;  %v8446_v21 = vsel %vm13288_vm14, %v8444_v24, %v8445_v12  ;;  %v8304_v18 = vld [vmem:[#allocation2 + $0xc8] sm:$0x1]  ;;  %9620 = vmatprep.mubr.bf16.mxu0 %v12597_v57  ;;  %v7225_v49 = vsel %vm12808_vm9, %v7220_v11, %v16492_v38  ;;  %v12162_v41 = vpop.f32.mrf.mxu0 }
 0x3f4   : > { %8523 = vst.msk [vmem:[#allocation3 + $0x1dc] sm:$0xf] %vm334_vm0, %v8439_v36  ;;  %7299 = vst.msk [vmem:[#allocation3 + $0x274] sm:$0xf] %vm334_vm0, %v7235_v54  ;;  %v11578_v44 = vrot.slane %v8299_v8, 9  ;;  %9621 = vmatmul.mubr.bf16.gmra.mxu0 %v12595_v7  ;;  %v8449_v2 = vrot.slane %v8300_v39, 5  ;;  %v16565_v16 = vadd.f32 %v12162_v41, %v12161_v1 }
 0x3f5   : > { %8525 = vst.msk [vmem:[#allocation3 + $0x204] sm:$0xf] %vm334_vm0, %v8446_v21  ;;  %7298 = vst.msk [vmem:[#allocation3 + $0x260] sm:$0xf] %vm334_vm0, %v7225_v49  ;;  %v8452_v47 = vrot.slane %v8301_v17, 5  ;;  %v11579_v55 = vrot.slane %v8302_v27, 9  ;;  %v12055_v27 = vpop.f32.mrf.mxu1 }
 0x3f6   : > { %v8456_v59 = vrot.slane %v8303_v29, 5  ;;  %v12598_v58 = vld [vmem:[#allocation3 + $0x258] ss:$20 sps:$4 sm:$0xff]   ;;  %v12600_v13 = vld [vmem:[#allocation3 + $0x25c] ss:$20 sps:$4 sm:$0xff]   ;;  %v8459_v14 = vrot.slane %v8304_v18, 5  ;;  %v8450_v51 = vsel %vm13288_vm14, %v11578_v44, %v8449_v2  ;;  %v7551_v28 = vpop.permute.xlu1 %7550  ;;  %v7549_v5 = vpop.permute.xlu0 %7548 }
 0x3f7   : > { %8244 = vst.msk [vmem:[#allocation3 + $0x14c] sm:$0xf] %vm1604_vm15, %v8165_v53  ;;  %7623 = vst.msk [vmem:[#allocation3 + $0x184] sm:$0xf] %vm1604_vm15, %v7547_v10  ;;  %v8451_v38 = vrot.slane %v8449_v2, 4  ;;  %9523 = vmatprep.mubr.bf16.mxu1 %v12600_v13  ;;  %v12056_v42 = vpop.f32.mrf.mxu1  ;;  %v12641_v36 = vld [vmem:[%s17465_s5 + $0x18] sm:$0xff]  }
 0x3f8   : > { %v8457_v56 = vsel %vm13288_vm14, %v11579_v55, %v8456_v59  ;;  %v8458_v48 = vrot.slane %v8456_v59, 4  ;;  %v12601_v30 = vld [vmem:[#allocation3 + $0x10] ss:$20 sps:$4 sm:$0xff]   ;;  %8526 = vst.msk [vmem:[#allocation3 + $0x218] sm:$0xf] %vm334_vm0, %v8450_v51  ;;  %9524 = vmatmul.mubr.bf16.gmra.mxu1 %v12598_v58  ;;  %v16573_v57 = vadd.f32 %v12056_v42, %v12055_v27  ;;  %v12693_v18 = vmov 0.0  }
 0x3f9   : > { %8528 = vst.msk [vmem:[#allocation3 + $0x240] sm:$0xf] %vm334_vm0, %v8457_v56  ;;  %v8453_v34 = vsel %vm13288_vm14, %v8451_v38, %v8452_v47  ;;  %12332 = vmatprep.mubr.msk.bf16.mxu1 %vm4624_vm1, %v12601_v30  ;;  %v12605_v62 = vld [vmem:[#allocation3 + $0x38] ss:$20 sps:$4 sm:$0xff]   ;;  %v12606_v46 = vld [vmem:[#allocation3 + $0x60] ss:$20 sps:$4 sm:$0xff]   ;;  %v12058_v25 = vpop.f32.mrf.mxu1  ;;  %12364 = vmatprep.subr.bf16.mxu0 %v12693_v18 }
 0x3fa   : > { %v8460_v26 = vsel %vm13288_vm14, %v8458_v48, %v8459_v14  ;;  %8527 = vst.msk [vmem:[#allocation3 + $0x22c] sm:$0xf] %vm334_vm0, %v8453_v34  ;;  %v12602_v0 = vld [vmem:[#allocation3 + $0x148] ss:$20 sps:$4 sm:$0xff]   ;;  %v8175_v45 = vpop.permute.xlu1 %8174  ;;  %v8173_v37 = vpop.permute.xlu0 %8172  ;;  %v12611_v22 = vld [vmem:[#allocation3 + $0xb0] ss:$20 sps:$4 sm:$0xff]   ;;  %12376 = vmatprep.subr.bf16.mxu1 %v12693_v18  ;;  %12365 = vmatpush3.bf16.msra.mxu0 %v12641_v36 }
 0x3fb   : > { %8529 = vst.msk [vmem:[#allocation3 + $0x254] sm:$0xf] %vm334_vm0, %v8460_v26  ;;  %v12610_v15 = vld [vmem:[#allocation3 + $0x88] ss:$20 sps:$4 sm:$0xff]   ;;  %v12615_v33 = vld [vmem:[#allocation3 + $0xd8] ss:$20 sps:$4 sm:$0xff]   ;;  %v12059_v21 = vpop.f32.mrf.mxu1  ;;  %12366 = vmatprep.subr.bf16.mxu0 %v12693_v18 }
 0x3fc   : > { %7622 = vst.msk [vmem:[#allocation3 + $0x170] sm:$0xf] %vm1604_vm15, %v7545_v40  ;;  %8247 = vst.msk [vmem:[#allocation3 + $0x188] sm:$0xf] %vm1604_vm15, %v8171_v50  ;;  %v12616_v63 = vld [vmem:[#allocation3 + $0x100] ss:$20 sps:$4 sm:$0xff]   ;;  %v16584_v49 = vadd.f32 %v12059_v21, %v12058_v25 }
 0x3fd   : > { %8246 = vst.msk [vmem:[#allocation3 + $0x174] sm:$0xf] %vm1604_vm15, %v8169_v60  ;;  %7625 = vst.msk [vmem:[#allocation3 + $0x1ac] sm:$0xf] %vm1604_vm15, %v7551_v28  ;;  %v12620_v12 = vld [vmem:[#allocation3 + $0x128] ss:$20 sps:$4 sm:$0xff]   ;;  %v12061_v44 = vpop.f32.mrf.mxu1 }
 0x3fe   : > { %v12604_v19 = vld [vmem:[#allocation3 + $0x14c] ss:$20 sps:$4 sm:$0xff]   ;;  %7624 = vst.msk [vmem:[#allocation3 + $0x198] sm:$0xf] %vm1604_vm15, %v7549_v5  ;;  %8249 = vst.msk [vmem:[#allocation3 + $0x1b0] sm:$0xf] %vm1604_vm15, %v8175_v45  ;;  %v7555_v35 = vpop.permute.xlu1 %7554  ;;  %v7553_v61 = vpop.permute.xlu0 %7552 }
 0x3ff   : > { %9628 = vmatprep.mubr.bf16.mxu0 %v12604_v19  ;;  %8248 = vst.msk [vmem:[#allocation3 + $0x19c] sm:$0xf] %vm1604_vm15, %v8173_v37  ;;  %7627 = vst.msk [vmem:[#allocation3 + $0x1d4] sm:$0xf] %vm1604_vm15, %v7555_v35  ;;  %v12621_v7 = vld [vmem:[#allocation3 + $0x150] ss:$20 sps:$4 sm:$0xff]   ;;  %v12062_v58 = vpop.f32.mrf.mxu1 }
 0x400   : > { %9629 = vmatmul.mubr.bf16.gmra.mxu0 %v12602_v0  ;;  %12333 = vmatmul.mubr.msk.bf16.vlgmr.msra.gmra.mxu1 %vm4624_vm1, %v12605_v62  ;;  %7626 = vst.msk [vmem:[#allocation3 + $0x1c0] sm:$0xf] %vm1604_vm15, %v7553_v61  ;;  %v12625_v53 = vld [vmem:[#allocation3 + $0x178] ss:$20 sps:$4 sm:$0xff]   ;;  %v12626_v13 = vld [vmem:[#allocation3 + $0x1a0] ss:$20 sps:$4 sm:$0xff]   ;;  %v16589_v10 = vadd.f32 %v12062_v58, %v12061_v44 }
 0x401   : > { %12336 = vmatprep.mubr.msk.bf16.mxu1 %vm4624_vm1, %v12606_v46  ;;  %v12064_v14 = vpop.f32.mrf.mxu1  ;;  %v12630_v50 = vld [vmem:[#allocation3 + $0x1c8] ss:$20 sps:$4 sm:$0xff]   ;;  %v12631_v60 = vld [vmem:[#allocation3 + $0x1f0] ss:$20 sps:$4 sm:$0xff]   ;;  %v12635_v5 = vld [vmem:[#allocation3 + $0x218] ss:$20 sps:$4 sm:$0xff]  }
 0x402   : > { %v8179_v6 = vpop.permute.xlu1 %8178  ;;  %v8177_v32 = vpop.permute.xlu0 %8176  ;;  %v12636_v45 = vld [vmem:[#allocation3 + $0x240] ss:$20 sps:$4 sm:$0xff]   ;;  %vm12694_vm0 = vmmov 0   ;;  %vm10193_vm4 = vcmask 1041409   ;;  %vm10208_vm9 = vcmask 1046534   ;;  %vm10211_vm10 = vcmask 1047559  }
 0x403   : > { %v12607_v3 = vld [vmem:[#allocation3 + $0x170] ss:$20 sps:$4 sm:$0xff]   ;;  %8251 = vst.msk [vmem:[#allocation3 + $0x1d8] sm:$0xf] %vm1604_vm15, %v8179_v6  ;;  %8250 = vst.msk [vmem:[#allocation3 + $0x1c4] sm:$0xf] %vm1604_vm15, %v8177_v32  ;;  %v12065_v56 = vpop.f32.mrf.mxu1 }
 0x404   : > { %v12609_v9 = vld [vmem:[#allocation3 + $0x174] ss:$20 sps:$4 sm:$0xff]   ;;  %v16595_v48 = vadd.f32 %v12065_v56, %v12064_v14  ;;  %v12642_v32 = vld [vmem:[%s17465_s5 + $0x10] sm:$0xff]   ;;  %vm10297_vm11 = vcmask 1048064  }
 0x405   : > { %9636 = vmatprep.mubr.bf16.mxu0 %v12609_v9  ;;  %v12612_v23 = vld [vmem:[#allocation3 + $0x198] ss:$20 sps:$4 sm:$0xff]   ;;  %12367 = vmatpush3.bf16.msra.mxu0 %v12642_v32 }
 0x406   : > { %v12614_v4 = vld [vmem:[#allocation3 + $0x19c] ss:$20 sps:$4 sm:$0xff]   ;;  %v7559_v8 = vpop.permute.xlu1 %7558  ;;  %v7557_v39 = vpop.permute.xlu0 %7556  ;;  %12368 = vmatprep.subr.bf16.mxu0 %v12693_v18 }
 0x407   : > { %7629 = vst.msk [vmem:[#allocation3 + $0x1fc] sm:$0xf] %vm1604_vm15, %v7559_v8  ;;  %7628 = vst.msk [vmem:[#allocation3 + $0x1e8] sm:$0xf] %vm1604_vm15, %v7557_v39  ;;  %v12617_v43 = vld [vmem:[#allocation3 + $0x1c0] ss:$20 sps:$4 sm:$0xff]  }
 0x408   : > { %9637 = vmatmul.mubr.bf16.gmra.mxu0 %v12607_v3  ;;  %12337 = vmatmul.mubr.msk.bf16.gmra.mxu1 %vm4624_vm1, %v12610_v15  ;;  %v12640_v3 = vld [vmem:[#allocation3 + $0x268] ss:$20 sps:$4 sm:$0xff]  }
 0x409   : > { %12340 = vmatprep.mubr.msk.bf16.mxu1 %vm4624_vm1, %v12611_v22  ;;  %9644 = vmatprep.mubr.bf16.mxu0 %v12614_v4 }
 0x40a   : > { %v8183_v17 = vpop.permute.xlu1 %8182  ;;  %v8181_v29 = vpop.permute.xlu0 %8180  ;;  %v12619_v52 = vld [vmem:[#allocation3 + $0x1c4] ss:$20 sps:$4 sm:$0xff]  }
 0x40b   : > { %8253 = vst.msk [vmem:[#allocation3 + $0x200] sm:$0xf] %vm1604_vm15, %v8183_v17  ;;  %8252 = vst.msk [vmem:[#allocation3 + $0x1ec] sm:$0xf] %vm1604_vm15, %v8181_v29  ;;  %v12067_v37 = vpop.f32.mrf.mxu1  ;;  %v16629_v29 = vpop.f32.mrf.mxu0 }
 0x40d   : > { %v12068_v9 = vpop.f32.mrf.mxu1 }
 0x40e   : > { %v7563_v24 = vpop.permute.xlu1 %7562  ;;  %v7561_v11 = vpop.permute.xlu0 %7560  ;;  %v12622_v47 = vld [vmem:[#allocation3 + $0x1e8] ss:$20 sps:$4 sm:$0xff]   ;;  %v16606_v22 = vadd.f32 %v12068_v9, %v12067_v37 }
 0x40f   : > { %7631 = vst.msk [vmem:[#allocation3 + $0x224] sm:$0xf] %vm1604_vm15, %v7563_v24  ;;  %7630 = vst.msk [vmem:[#allocation3 + $0x210] sm:$0xf] %vm1604_vm15, %v7561_v11  ;;  %v12070_v61 = vpop.f32.mrf.mxu1 }
 0x410   : > { %9645 = vmatmul.mubr.bf16.gmra.mxu0 %v12612_v23  ;;  %12341 = vmatmul.mubr.msk.bf16.gmra.mxu1 %vm4624_vm1, %v12615_v33  ;;  %v16620_v33 = vld [vmem:[%s17464_s4] ss:$0 sm:$0xff] }
 0x411   : > { %12344 = vmatprep.mubr.msk.bf16.mxu1 %vm4624_vm1, %v12616_v63  ;;  %9652 = vmatprep.mubr.bf16.mxu0 %v12619_v52  ;;  %v12071_v6 = vpop.f32.mrf.mxu1  ;;  %v9406_v39 = vadd.f32 %v16486_v31, %v16620_v33 }
 0x412   : > { %v8187_v54 = vpop.permute.xlu1 %8186  ;;  %v8185_v2 = vpop.permute.xlu0 %8184  ;;  %v12624_v55 = vld [vmem:[#allocation3 + $0x1ec] ss:$20 sps:$4 sm:$0xff]   ;;  %v16609_v1 = vadd.f32 %v12071_v6, %v12070_v61 }
 0x413   : > { %8255 = vst.msk [vmem:[#allocation3 + $0x228] sm:$0xf] %vm1604_vm15, %v8187_v54  ;;  %8254 = vst.msk [vmem:[#allocation3 + $0x214] sm:$0xf] %vm1604_vm15, %v8185_v2  ;;  %v12073_v23 = vpop.f32.mrf.mxu1  ;;  %v16627_v27 = vadd.f32 %v16565_v16, %v9406_v39 }
 0x415   : > { %v12074_v4 = vpop.f32.mrf.mxu1 }
 0x416   : > { %v7567_v59 = vpop.permute.xlu1 %7566  ;;  %v7565_v51 = vpop.permute.xlu0 %7564  ;;  %v12627_v34 = vld [vmem:[#allocation3 + $0x210] ss:$20 sps:$4 sm:$0xff]   ;;  %v16615_v8 = vadd.f32 %v12074_v4, %v12073_v23 }
 0x417   : > { %7633 = vst.msk [vmem:[#allocation3 + $0x24c] sm:$0xf] %vm1604_vm15, %v7567_v59  ;;  %7632 = vst.msk [vmem:[#allocation3 + $0x238] sm:$0xf] %vm1604_vm15, %v7565_v51  ;;  %v12076_v41 = vpop.f32.mrf.mxu1 }
 0x418   : > { %9653 = vmatmul.mubr.bf16.gmra.mxu0 %v12617_v43  ;;  %12345 = vmatmul.mubr.msk.bf16.gmra.mxu1 %vm4624_vm1, %v12620_v12  ;;  %v16631_v43 = vpop.f32.mrf.mxu0  ;;  %v12643_v12 = vld [vmem:[%s17465_s5 + $0x8] sm:$0xff]  }
 0x419   : > { %12348 = vmatprep.mubr.msk.bf16.mxu1 %vm4624_vm1, %v12621_v7  ;;  %9660 = vmatprep.mubr.bf16.mxu0 %v12624_v55  ;;  %v12077_v63 = vpop.f32.mrf.mxu1 }
 0x41a   : > { %v8191_v38 = vpop.permute.xlu1 %8190  ;;  %v8189_v30 = vpop.permute.xlu0 %8188  ;;  %v12629_v26 = vld [vmem:[#allocation3 + $0x214] ss:$20 sps:$4 sm:$0xff]   ;;  %v16624_v17 = vadd.f32 %v12077_v63, %v12076_v41  ;;  %12369 = vmatpush3.bf16.msra.mxu0 %v12643_v12 }
 0x41b   : > { %8257 = vst.msk [vmem:[#allocation3 + $0x250] sm:$0xf] %vm1604_vm15, %v8191_v38  ;;  %8256 = vst.msk [vmem:[#allocation3 + $0x23c] sm:$0xf] %vm1604_vm15, %v8189_v30  ;;  %v16633_v52 = vpop.f32.mrf.mxu0  ;;  %12370 = vmatprep.subr.bf16.mxu0 %v12693_v18 }
 0x41d   : > { %v16641_v31 = vpop.f32.mrf.mxu0 }
 0x41e   : > { %v7571_v40 = vpop.permute.xlu1 %7570  ;;  %v7569_v0 = vpop.permute.xlu0 %7568  ;;  %v12632_v62 = vld [vmem:[#allocation3 + $0x238] ss:$20 sps:$4 sm:$0xff]  }
 0x41f   : > { %7635 = vst.msk [vmem:[#allocation3 + $0x274] sm:$0xf] %vm1604_vm15, %v7571_v40  ;;  %7634 = vst.msk [vmem:[#allocation3 + $0x260] sm:$0xf] %vm1604_vm15, %v7569_v0  ;;  %v16645_v36 = vpop.f32.mrf.mxu0 }
 0x420   : > { %9661 = vmatmul.mubr.bf16.gmra.mxu0 %v12622_v47  ;;  %12349 = vmatmul.mubr.msk.bf16.gmra.mxu1 %vm4624_vm1, %v12625_v53 }
 0x421   : > { %12352 = vmatprep.mubr.msk.bf16.mxu1 %vm4624_vm1, %v12626_v13  ;;  %9668 = vmatprep.mubr.bf16.mxu0 %v12629_v26  ;;  %v16649_v2 = vpop.f32.mrf.mxu0 }
 0x422   : > { %v8195_v19 = vpop.permute.xlu1 %8194  ;;  %v8193_v28 = vpop.permute.xlu0 %8192  ;;  %v12634_v46 = vld [vmem:[#allocation3 + $0x23c] ss:$20 sps:$4 sm:$0xff]  }
 0x423   : > { %8259 = vst.msk [vmem:[#allocation3 + $0x278] sm:$0xf] %vm1604_vm15, %v8195_v19  ;;  %8258 = vst.msk [vmem:[#allocation3 + $0x264] sm:$0xf] %vm1604_vm15, %v8193_v28  ;;  %v16653_v53 = vpop.f32.mrf.mxu0 }
 0x425   : > { %v16655_v58 = vpop.f32.mrf.mxu0 }
 0x426   : > { %v12637_v35 = vld [vmem:[#allocation3 + $0x260] ss:$20 sps:$4 sm:$0xff]  }
 0x427   : > { %v16657_v13 = vpop.f32.mrf.mxu0 }
 0x428   : > { %9669 = vmatmul.mubr.bf16.gmra.mxu0 %v12627_v34  ;;  %12353 = vmatmul.mubr.msk.bf16.gmra.mxu1 %vm4624_vm1, %v12630_v50 }
 0x429   : > { %12356 = vmatprep.mubr.msk.bf16.mxu1 %vm4624_vm1, %v12631_v60  ;;  %9676 = vmatprep.mubr.bf16.mxu0 %v12634_v46  ;;  %v16661_v56 = vpop.f32.mrf.mxu0  ;;  %v12644_v60 = vld [vmem:[%s17465_s5] sm:$0xff]  }
 0x42a   : > { %v12639_v15 = vld [vmem:[#allocation3 + $0x264] ss:$20 sps:$4 sm:$0xff]   ;;  %12371 = vmatpush3.bf16.msra.mxu0 %v12644_v60 }
 0x430   : > { %9677 = vmatmul.mubr.bf16.gmra.mxu0 %v12632_v62  ;;  %12357 = vmatmul.mubr.msk.bf16.gmra.mxu1 %vm4624_vm1, %v12635_v5 }
 0x431   : > { %12360 = vmatprep.mubr.msk.bf16.mxu1 %vm4624_vm1, %v12636_v45  ;;  %9684 = vmatprep.mubr.bf16.mxu0 %v12639_v15 }
 0x438   : > { %9685 = vmatmul.mubr.bf16.gmra.mxu0 %v12637_v35  ;;  %12361 = vmatmul.mubr.msk.bf16.gmra.mxu1 %vm4624_vm1, %v12640_v3 }
 0x439   : > { %12372 = vmatprep.mubr.msk.bf16.mxu0 %vm12694_vm0, %v12693_v18  ;;  %12378 = vmatprep.mubr.msk.bf16.mxu1 %vm12694_vm0, %v12693_v18 }
 0x43f   : > { %v12079_v24 = vpop.f32.mrf.mxu1 }
 0x441   : > { %v12080_v42 = vpop.f32.mrf.mxu1 }
 0x442   : > { %v16638_v7 = vadd.f32 %v12080_v42, %v12079_v24 }
 0x443   : > { %v12082_v16 = vpop.f32.mrf.mxu1 }
 0x445   : > { %v12083_v25 = vpop.f32.mrf.mxu1 }
 0x446   : > { %v16643_v11 = vadd.f32 %v12083_v25, %v12082_v16 }
 0x447   : > { %v12085_v54 = vpop.f32.mrf.mxu1  ;;  %v16663_v34 = vpop.f32.mrf.mxu0 }
 0x449   : > { %v12086_v21 = vpop.f32.mrf.mxu1  ;;  %v16670_v0 = vpop.f32.mrf.mxu0 }
 0x44a   : > { %v16647_v44 = vadd.f32 %v12086_v21, %v12085_v54  ;;  %v10004_v21 = vld [vmem:[%s17467_s7] sm:$0x3] }
 0x44b   : > { %v12088_v47 = vpop.f32.mrf.mxu1  ;;  %v16674_v46 = vpop.f32.mrf.mxu0 }
 0x44d   : > { %v12089_v55 = vpop.f32.mrf.mxu1  ;;  %v16678_v37 = vpop.f32.mrf.mxu0 }
 0x44e   : > { %v16651_v59 = vadd.f32 %v12089_v55, %v12088_v47  ;;  %v10012_v47 = vsel %vm10010_vm2, %v10004_v21, 0 }
 0x44f   : > { %v16680_v9 = vpop.f32.mrf.mxu0  ;;  %12377 = vmatpush3.bf16.msra.mxu1 %v10012_v47 }
 0x451   : > { %v16684_v6 = vpop.f32.mrf.mxu0 }
 0x453   : > { %v16688_v41 = vpop.f32.mrf.mxu0 }
 0x455   : > { %v16692_v12 = vpop.f32.mrf.mxu0 }
 0x463   : > { %v12091_v14 = vpop.f32.mrf.mxu1 }
 0x465   : > { %v12092_v51 = vpop.f32.mrf.mxu1 }
 0x466   : > { %v16659_v38 = vadd.f32 %v12092_v51, %v12091_v14 }
 0x467   : > { %v12094_v30 = vpop.f32.mrf.mxu1  ;;  %v16698_v25 = vpop.f32.mrf.mxu0 }
 0x469   : > { %v12095_v26 = vpop.f32.mrf.mxu1  ;;  %v16705_v51 = vpop.f32.mrf.mxu0 }
 0x46a   : > { %v16665_v40 = vadd.f32 %v12095_v26, %v12094_v30 }
 0x46b   : > { %v12097_v50 = vpop.f32.mrf.mxu1  ;;  %v16709_v18 = vpop.f32.mrf.mxu0 }
 0x46d   : > { %v12098_v19 = vpop.f32.mrf.mxu1 }
 0x46e   : > { %v16672_v28 = vadd.f32 %v12098_v19, %v12097_v50 }
 0x46f   : > { %v12100_v62 = vpop.f32.mrf.mxu1 }
 0x471   : > { %v12101_v5 = vpop.f32.mrf.mxu1 }
 0x472   : > { %v16676_v45 = vadd.f32 %v12101_v5, %v12100_v62  ;;  %v16713_v5 = vpop.f32.mrf.mxu0 }
 0x47c   : > { %v12103_v3 = vpop.f32.mrf.mxu1 }
 0x47e   : > { %v12104_v35 = vpop.f32.mrf.mxu1 }
 0x47f   : > { %v16682_v15 = vadd.f32 %v12104_v35, %v12103_v3 }
 0x480   : > { %v12106_v61 = vpop.f32.mrf.mxu1 }
 0x482   : > { %v12107_v32 = vpop.f32.mrf.mxu1 }
 0x483   : > { %v16686_v23 = vadd.f32 %v12107_v32, %v12106_v61 }
 0x484   : > { %v12109_v4 = vpop.f32.mrf.mxu1 }
 0x486   : > { %v12110_v63 = vpop.f32.mrf.mxu1 }
 0x487   : > { %v16690_v39 = vadd.f32 %v12110_v63, %v12109_v4 }
 0x488   : > { %v12112_v24 = vpop.f32.mrf.mxu1 }
 0x489   : > { %17485 = vst [vmem:[#allocation5_spill] sm:$0xff] %v16690_v39  ;;  %v12178_v39 = vadd.f32 %v16661_v56, %v16657_v13 }
 0x48a   : > { %v12113_v42 = vpop.f32.mrf.mxu1 }
 0x48b   : > { %v16694_v16 = vadd.f32 %v12113_v42, %v12112_v24 }
 0x48d   : > { %17486 = vst [vmem:[#allocation6_spill] sm:$0xff] %v16694_v16 }
 0x490   : > { %v12115_v54 = vpop.f32.mrf.mxu1 }
 0x492   : > { %v12116_v55 = vpop.f32.mrf.mxu1 }
 0x493   : > { %v16703_v14 = vadd.f32 %v12116_v55, %v12115_v54 }
 0x494   : > { %v12118_v30 = vpop.f32.mrf.mxu1 }
 0x495   : > { %17487 = vst [vmem:[#allocation7_spill] sm:$0xff] %v16703_v14  ;;  %v16715_v35 = vpop.f32.mrf.mxu0  ;;  %v12166_v14 = vadd.f32 %v16631_v43, %v16629_v29  ;;  %v9417_v43 = vadd.f32 %v16584_v49, %v16620_v33 }
 0x496   : > { %v12119_v26 = vpop.f32.mrf.mxu1 }
 0x497   : > { %v16707_v50 = vadd.f32 %v12119_v26, %v12118_v30  ;;  %v16719_v63 = vpop.f32.mrf.mxu0 }
 0x499   : > { %17488 = vst [vmem:[#allocation8_spill] sm:$0xff] %v16707_v50  ;;  %v12121_v60 = vpop.f32.mrf.mxu1  ;;  %v16723_v21 = vpop.f32.mrf.mxu0 }
 0x49b   : > { %v12122_v19 = vpop.f32.mrf.mxu1  ;;  %v16727_v26 = vpop.f32.mrf.mxu0 }
 0x49c   : > { %v16711_v62 = vadd.f32 %v12122_v19, %v12121_v60 }
 0x49d   : > { %v12124_v3 = vpop.f32.mrf.mxu1 }
 0x49e   : > { %17489 = vst [vmem:[#allocation9_spill] sm:$0xff] %v16711_v62 }
 0x49f   : > { %v12125_v61 = vpop.f32.mrf.mxu1 }
 0x4a0   : > { %v16717_v32 = vadd.f32 %v12125_v61, %v12124_v3 }
 0x4a2   : > { %17490 = vst [vmem:[#allocation10_spill] sm:$0xff] %v16717_v32 }
 0x4a5   : > { %v12127_v4 = vpop.f32.mrf.mxu1 }
 0x4a7   : > { %v12128_v24 = vpop.f32.mrf.mxu1 }
 0x4a8   : > { %v16721_v42 = vadd.f32 %v12128_v24, %v12127_v4 }
 0x4a9   : > { %v12130_v54 = vpop.f32.mrf.mxu1 }
 0x4aa   : > { %17491 = vst [vmem:[#allocation11_spill] sm:$0xff] %v16721_v42 }
 0x4ab   : > { %v12131_v47 = vpop.f32.mrf.mxu1 }
 0x4ac   : > { %v16725_v55 = vadd.f32 %v12131_v47, %v12130_v54 }
 0x4ae   : > { %17492 = vst [vmem:[#allocation12_spill] sm:$0xff] %v16725_v55  ;;  %v12133_v30 = vpop.f32.mrf.mxu1 }
 0x4b0   : > { %v12134_v60 = vpop.f32.mrf.mxu1 }
 0x4b1   : > { %v16729_v19 = vadd.f32 %v12134_v60, %v12133_v30 }
 0x4b2   : > { %v12136_v3 = vpop.f32.mrf.mxu1 }
 0x4b3   : > { %17493 = vst [vmem:[#allocation13_spill] sm:$0xff] %v16729_v19 }
 0x4b4   : > { %v16731_v61 = vpop.f32.mrf.mxu0  ;;  %v12137_v32 = vpop.f32.mrf.mxu1 }
 0x4b5   : > { %v16735_v4 = vadd.f32 %v12137_v32, %v12136_v3  ;;  %v12169_v32 = vadd.f32 %v16641_v31, %v16633_v52 }
 0x4b6   : > { %v16733_v62 = vpop.f32.mrf.mxu0 }
 0x4b7   : > { %17494 = vst [vmem:[#allocation14_spill] sm:$0xff] %v16735_v4 }
 0x4b8   : > { %v12139_v24 = vpop.f32.mrf.mxu1  ;;  %v16737_v42 = vpop.f32.mrf.mxu0 }
 0x4ba   : > { %v12140_v50 = vpop.f32.mrf.mxu1  ;;  %v16743_v55 = vpop.f32.mrf.mxu0 }
 0x4bb   : > { %v16739_v54 = vadd.f32 %v12140_v50, %v12139_v24  ;;  %v9409_v50 = vadd.f32 %v16507_v20, %v16620_v33  ;;  %v9414_v24 = vadd.f32 %v16573_v57, %v16620_v33  ;;  %v9422_v57 = vadd.f32 %v16589_v10, %v16620_v33 }
 0x4bc   : > { %v16741_v47 = vpop.f32.mrf.mxu1 }
 0x4bd   : > { %17495 = vst [vmem:[#allocation15_spill] sm:$0xff] %v16739_v54  ;;  %17496 = vst [vmem:[#allocation16_spill] sm:$0xff] %v16741_v47  ;;  %v12172_v54 = vadd.f32 %v16649_v2, %v16645_v36  ;;  %v9575_v52 = vadd.f32 %v12169_v32, %v9414_v24  ;;  %v9570_v20 = vadd.f32 %v12166_v14, %v9409_v50 }
 0x4be   : > { %v16745_v30 = vpop.f32.mrf.mxu1  ;;  %v12181_v14 = vadd.f32 %v16670_v0, %v16663_v34  ;;  %v12184_v34 = vadd.f32 %v16678_v37, %v16674_v46  ;;  %v9438_v37 = vadd.f32 %v16615_v8, %v16620_v33  ;;  %v12190_v8 = vadd.f32 %v16692_v12, %v16688_v41 }
 0x4bf   : > { %17497 = vst [vmem:[#allocation17_spill] sm:$0xff] %v16745_v30  ;;  %v12175_v30 = vadd.f32 %v16655_v58, %v16653_v53  ;;  %v9578_v53 = vadd.f32 %v12172_v54, %v9417_v43  ;;  %v9425_v54 = vadd.f32 %v16595_v48, %v16620_v33  ;;  %v12196_v41 = vadd.f32 %v16713_v5, %v16709_v18 }
 0x4c0   : > { %v16747_v60 = vpop.f32.mrf.mxu0  ;;  %v12334_v19 = vpop.f32.mrf.mxu1  ;;  %v9454_v5 = vadd.f32 %v16647_v44, %v16620_v33  ;;  %v12202_v44 = vadd.f32 %v16727_v26, %v16723_v21  ;;  %v12208_v21 = vadd.f32 %v16743_v55, %v16737_v42  ;;  %v9470_v42 = vadd.f32 %v16672_v28, %v16620_v33 }
 0x4c1   : > { %v16774_v2 = vadd.f32 %v12334_v19, %v9575_v52  ;;  %v9586_v46 = vadd.f32 %v12178_v39, %v9425_v54  ;;  %v12193_v54 = vadd.f32 %v16705_v51, %v16698_v25  ;;  %v12199_v51 = vadd.f32 %v16719_v63, %v16715_v35 }
 0x4c2   : > { %v16753_v3 = vpop.f32.mrf.mxu0  ;;  %v9727_v4 = vpop.f32.mrf.mxu1 }
 0x4c3   : > { %v16768_v31 = vadd.f32 %v9727_v4, %v16627_v27  ;;  %v9583_v27 = vadd.f32 %v12175_v30, %v9422_v57  ;;  %v9430_v30 = vadd.f32 %v16606_v22, %v16620_v33  ;;  %v9857_v0 = vsel %vm4624_vm1, %v16774_v2, 0.0 }
 0x4c4   : > { %v16763_v47 = vpop.f32.mrf.mxu0  ;;  %v12335_v29 = vpop.f32.mrf.mxu1 }
 0x4c5   : > { %v9854_v10 = vsel %vm4624_vm1, %v16768_v31, 0.0  ;;  %v16786_v4 = vadd.f32 %v12335_v29, %v9578_v53  ;;  %v12187_v29 = vadd.f32 %v16684_v6, %v16680_v9  ;;  %v9591_v57 = vadd.f32 %v12181_v14, %v9430_v30 }
 0x4c6   : > { %v16772_v16 = vpop.f32.mrf.mxu0  ;;  %v9730_v36 = vpop.f32.mrf.mxu1  ;;  %v9441_v30 = vadd.f32 %v16624_v17, %v16620_v33 }
 0x4c7   : > { %v16776_v58 = vadd.f32 %v9730_v36, %v9570_v20  ;;  %v9433_v20 = vadd.f32 %v16609_v1, %v16620_v33  ;;  %v9859_v22 = vsel %vm4624_vm1, %v16786_v4, 0.0  ;;  %v9599_v39 = vadd.f32 %v12187_v29, %v9438_v37 }
 0x4c8   : > { %v16780_v49 = vpop.f32.mrf.mxu0  ;;  %v12338_v32 = vpop.f32.mrf.mxu1  ;;  %v9446_v29 = vadd.f32 %v16638_v7, %v16620_v33  ;;  %v9602_v18 = vadd.f32 %v12190_v8, %v9441_v30  ;;  %v12205_v8 = vadd.f32 %v16733_v62, %v16731_v61  ;;  %v12211_v61 = vadd.f32 %v16753_v3, %v16747_v60 }
 0x4c9   : > { %v9855_v19 = vsel %vm4624_vm1, %v16776_v58, 0.0  ;;  %v16814_v9 = vadd.f32 %v12338_v32, %v9591_v57 }
 0x4ca   : > { %v9856_v50 = vadd.f32 %v9855_v19, %v9854_v10  ;;  %v16792_v13 = vpop.f32.mrf.mxu0  ;;  %v9743_v56 = vpop.f32.mrf.mxu1  ;;  %v9594_v10 = vadd.f32 %v12184_v34, %v9433_v20  ;;  %v9607_v57 = vadd.f32 %v12193_v54, %v9446_v29  ;;  %v9462_v29 = vadd.f32 %v16659_v38, %v16620_v33 }
 0x4cb   : > { %v16800_v24 = vadd.f32 %v9743_v56, %v9583_v27  ;;  %v9865_v12 = vsel %vm4624_vm1, %v16814_v9, 0.0  ;;  %v12217_v28 = vadd.f32 %v16792_v13, %v16780_v49 }
 0x4cc   : > { %v9858_v43 = vadd.f32 %v9857_v0, %v9856_v50  ;;  %v16804_v48 = vpop.f32.mrf.mxu0  ;;  %v12339_v52 = vpop.f32.mrf.mxu1 }
 0x4cd   : > { %v9861_v6 = vsel %vm4624_vm1, %v16800_v24, 0.0  ;;  %v16826_v56 = vadd.f32 %v12339_v52, %v9594_v10 }
 0x4ce   : > { %v9860_v36 = vadd.f32 %v9859_v22, %v9858_v43  ;;  %v16812_v53 = vpop.f32.mrf.mxu0  ;;  %v9746_v27 = vpop.f32.mrf.mxu1  ;;  %v9449_v22 = vadd.f32 %v16643_v11, %v16620_v33 }
 0x4cf   : > { %v16818_v19 = vadd.f32 %v9746_v27, %v9586_v46  ;;  %v9867_v7 = vsel %vm4624_vm1, %v16826_v56, 0.0 }
 0x4d0   : > { %v9862_v1 = vadd.f32 %v9861_v6, %v9860_v36  ;;  %v16820_v50 = vpop.f32.mrf.mxu0  ;;  %v12342_v14 = vpop.f32.mrf.mxu1  ;;  %v9610_v27 = vadd.f32 %v12196_v41, %v9449_v22 }
 0x4d1   : > { %v9863_v32 = vsel %vm4624_vm1, %v16818_v19, 0.0  ;;  %v16854_v35 = vadd.f32 %v12342_v14, %v9607_v57 }
 0x4d2   : > { %v9864_v34 = vadd.f32 %v9863_v32, %v9862_v1  ;;  %v16832_v0 = vpop.f32.mrf.mxu0  ;;  %v9759_v43 = vpop.f32.mrf.mxu1  ;;  %v9457_v32 = vadd.f32 %v16651_v59, %v16620_v33 }
 0x4d3   : > { %v16840_v25 = vadd.f32 %v9759_v43, %v9599_v39  ;;  %v9615_v39 = vadd.f32 %v12199_v51, %v9454_v5  ;;  %v9873_v62 = vsel %vm4624_vm1, %v16854_v35, 0.0  ;;  %v9465_v51 = vadd.f32 %v16665_v40, %v16620_v33 }
 0x4d4   : > { %v9866_v52 = vadd.f32 %v9865_v12, %v9864_v34  ;;  %v16844_v17 = vpop.f32.mrf.mxu0  ;;  %v12343_v20 = vpop.f32.mrf.mxu1  ;;  %v12223_v13 = vadd.f32 %v16832_v0, %v16820_v50 }
 0x4d5   : > { %v9869_v63 = vsel %vm4624_vm1, %v16840_v25, 0.0  ;;  %v16866_v54 = vadd.f32 %v12343_v20, %v9610_v27  ;;  %v9618_v20 = vadd.f32 %v12202_v44, %v9457_v32  ;;  %v9626_v3 = vadd.f32 %v12208_v21, %v9465_v51 }
 0x4d6   : > { %v9868_v46 = vadd.f32 %v9867_v7, %v9866_v52  ;;  %v16852_v37 = vpop.f32.mrf.mxu0  ;;  %v9762_v36 = vpop.f32.mrf.mxu1  ;;  %v9623_v52 = vadd.f32 %v12205_v8, %v9462_v29 }
 0x4d7   : > { %v16858_v6 = vadd.f32 %v9762_v36, %v9602_v18  ;;  %v9875_v38 = vsel %vm4624_vm1, %v16866_v54, 0.0  ;;  %v9631_v36 = vadd.f32 %v12211_v61, %v9470_v42  ;;  %v12226_v42 = vadd.f32 %v16852_v37, %v16844_v17 }
 0x4d8   : > { %v9870_v11 = vadd.f32 %v9869_v63, %v9868_v46  ;;  %v16860_v10 = vpop.f32.mrf.mxu0  ;;  %v12346_v1 = vpop.f32.mrf.mxu1  ;;  %v12214_v63 = vadd.f32 %v16772_v16, %v16763_v47  ;;  %v12220_v16 = vadd.f32 %v16812_v53, %v16804_v48  ;;  %v17498_v48 = vld [vmem:[#allocation5_spill] sm:$0xff] }
 0x4d9   : > { %v9871_v14 = vsel %vm4624_vm1, %v16858_v6, 0.0  ;;  %v16888_v57 = vadd.f32 %v12346_v1, %v9623_v52  ;;  %v9473_v1 = vadd.f32 %v16676_v45, %v16620_v33  ;;  %v9486_v53 = vadd.f32 %v17498_v48, %v16620_v33 }
 0x4da   : > { %v9872_v30 = vadd.f32 %v9871_v14, %v9870_v11  ;;  %v12228_v34 = vpop.f32.mrf.mxu0  ;;  %v9775_v43 = vpop.f32.mrf.mxu1  ;;  %v9478_v14 = vadd.f32 %v16682_v15, %v16620_v33 }
 0x4db   : > { %v16878_v26 = vadd.f32 %v9775_v43, %v9615_v39  ;;  %v9881_v47 = vsel %vm4624_vm1, %v16888_v57, 0.0  ;;  %v9481_v43 = vadd.f32 %v16686_v23, %v16620_v33  ;;  %v9634_v21 = vadd.f32 %v12214_v63, %v9473_v1 }
 0x4dc   : > { %v9874_v41 = vadd.f32 %v9873_v62, %v9872_v30  ;;  %v12230_v12 = vpop.f32.mrf.mxu0  ;;  %v12347_v59 = vpop.f32.mrf.mxu1  ;;  %v9639_v29 = vadd.f32 %v12217_v28, %v9478_v14  ;;  %v17500_v28 = vld [vmem:[#allocation7_spill] sm:$0xff]  ;;  %v17501_v14 = vld [vmem:[#allocation8_spill] sm:$0xff] }
 0x4dd   : > { %v9877_v60 = vsel %vm4624_vm1, %v16878_v26, 0.0  ;;  %v16898_v27 = vadd.f32 %v12347_v59, %v9626_v3  ;;  %v9642_v0 = vadd.f32 %v12220_v16, %v9481_v43  ;;  %v17499_v3 = vld [vmem:[#allocation6_spill] sm:$0xff]  ;;  %v9497_v16 = vadd.f32 %v17501_v14, %v16620_v33  ;;  %v17506_v14 = vld [vmem:[#allocation13_spill] sm:$0xff] }
 0x4de   : > { %v9876_v55 = vadd.f32 %v9875_v38, %v9874_v41  ;;  %v12231_v22 = vpop.f32.mrf.mxu0  ;;  %v9778_v7 = vpop.f32.mrf.mxu1 }
 0x4df   : > { %v16892_v18 = vadd.f32 %v9778_v7, %v9618_v20  ;;  %v9883_v15 = vsel %vm4624_vm1, %v16898_v27, 0.0  ;;  %v9647_v20 = vadd.f32 %v12223_v13, %v9486_v53  ;;  %v12232_v1 = vadd.f32 %v12231_v22, %v12230_v12 }
 0x4e0   : > { %v9878_v40 = vadd.f32 %v9877_v60, %v9876_v55  ;;  %v12233_v5 = vpop.f32.mrf.mxu0  ;;  %v12350_v46 = vpop.f32.mrf.mxu1  ;;  %v12229_v55 = vadd.f32 %v12228_v34, %v16860_v10 }
 0x4e1   : > { %v9879_v11 = vsel %vm4624_vm1, %v16892_v18, 0.0  ;;  %v16920_v59 = vadd.f32 %v12350_v46, %v9639_v29 }
 0x4e2   : > { %v9880_v39 = vadd.f32 %v9879_v11, %v9878_v40  ;;  %v12234_v44 = vpop.f32.mrf.mxu0  ;;  %v9791_v8 = vpop.f32.mrf.mxu1  ;;  %v9489_v40 = vadd.f32 %v17499_v3, %v16620_v33  ;;  %v9494_v11 = vadd.f32 %v17500_v28, %v16620_v33 }
 0x4e3   : > { %v16910_v49 = vadd.f32 %v9791_v8, %v9631_v36  ;;  %v9889_v17 = vsel %vm4624_vm1, %v16920_v59, 0.0  ;;  %v12235_v10 = vadd.f32 %v12234_v44, %v12233_v5  ;;  %v9658_v44 = vadd.f32 %v12232_v1, %v9497_v16 }
 0x4e4   : > { %v9882_v32 = vadd.f32 %v9881_v47, %v9880_v39  ;;  %v12236_v30 = vpop.f32.mrf.mxu0  ;;  %v12351_v45 = vpop.f32.mrf.mxu1  ;;  %v9655_v13 = vadd.f32 %v12229_v55, %v9494_v11  ;;  %v9518_v16 = vadd.f32 %v17506_v14, %v16620_v33 }
 0x4e5   : > { %v9885_v50 = vsel %vm4624_vm1, %v16910_v49, 0.0  ;;  %v16929_v7 = vadd.f32 %v12351_v45, %v9642_v0  ;;  %v17502_v45 = vld [vmem:[#allocation9_spill] sm:$0xff] }
 0x4e6   : > { %v9884_v62 = vadd.f32 %v9883_v15, %v9882_v32  ;;  %v12237_v61 = vpop.f32.mrf.mxu0  ;;  %v9794_v41 = vpop.f32.mrf.mxu1  ;;  %v9650_v32 = vadd.f32 %v12226_v42, %v9489_v40  ;;  %v9502_v12 = vadd.f32 %v17502_v45, %v16620_v33  ;;  %v17504_v40 = vld [vmem:[#allocation11_spill] sm:$0xff] }
 0x4e7   : > { %v16924_v51 = vadd.f32 %v9794_v41, %v9634_v21  ;;  %v9891_v47 = vsel %vm4624_vm1, %v16929_v7, 0.0 }
 0x4e8   : > { %v9886_v23 = vadd.f32 %v9885_v50, %v9884_v62  ;;  %v12239_v38 = vpop.f32.mrf.mxu0  ;;  %v12354_v52 = vpop.f32.mrf.mxu1  ;;  %v9663_v41 = vadd.f32 %v12235_v10, %v9502_v12  ;;  %v12238_v50 = vadd.f32 %v12237_v61, %v12236_v30  ;;  %v17505_v61 = vld [vmem:[#allocation12_spill] sm:$0xff] }
 0x4e9   : > { %v9887_v60 = vsel %vm4624_vm1, %v16924_v51, 0.0  ;;  %v16947_v29 = vadd.f32 %v12354_v52, %v9655_v13  ;;  %v17503_v52 = vld [vmem:[#allocation10_spill] sm:$0xff] }
 0x4ea   : > { %v9888_v46 = vadd.f32 %v9887_v60, %v9886_v23  ;;  %v12240_v36 = vpop.f32.mrf.mxu0  ;;  %v9807_v63 = vpop.f32.mrf.mxu1  ;;  %v9505_v42 = vadd.f32 %v17503_v52, %v16620_v33 }
 0x4eb   : > { %v16939_v37 = vadd.f32 %v9807_v63, %v9647_v20  ;;  %v12241_v0 = vadd.f32 %v12240_v36, %v12239_v38  ;;  %v9897_v63 = vsel %vm4624_vm1, %v16947_v29, 0.0  ;;  %v9513_v38 = vadd.f32 %v17505_v61, %v16620_v33 }
 0x4ec   : > { %v9890_v34 = vadd.f32 %v9889_v17, %v9888_v46  ;;  %v12242_v39 = vpop.f32.mrf.mxu0  ;;  %v12355_v8 = vpop.f32.mrf.mxu1  ;;  %v9510_v46 = vadd.f32 %v17504_v40, %v16620_v33 }
 0x4ed   : > { %v9893_v5 = vsel %vm4624_vm1, %v16939_v37, 0.0  ;;  %v16953_v23 = vadd.f32 %v12355_v8, %v9658_v44  ;;  %v9666_v8 = vadd.f32 %v12238_v50, %v9505_v42  ;;  %v17507_v50 = vld [vmem:[#allocation14_spill] sm:$0xff] }
 0x4ee   : > { %v9892_v22 = vadd.f32 %v9891_v47, %v9890_v34  ;;  %v12243_v43 = vpop.f32.mrf.mxu0  ;;  %v9810_v15 = vpop.f32.mrf.mxu1  ;;  %v9671_v10 = vadd.f32 %v12241_v0, %v9510_v46  ;;  %v17508_v0 = vld [vmem:[#allocation16_spill] sm:$0xff] }
 0x4ef   : > { %v16951_v21 = vadd.f32 %v9810_v15, %v9650_v32  ;;  %v12244_v28 = vadd.f32 %v12243_v43, %v12242_v39  ;;  %v9899_v17 = vsel %vm4624_vm1, %v16953_v23, 0.0 }
 0x4f0   : > { %v9894_v48 = vadd.f32 %v9893_v5, %v9892_v22  ;;  %v12245_v53 = vpop.f32.mrf.mxu0  ;;  %v12358_v62 = vpop.f32.mrf.mxu1 }
 0x4f1   : > { %v9895_v20 = vsel %vm4624_vm1, %v16951_v21, 0.0  ;;  %v16971_v32 = vadd.f32 %v12358_v62, %v9671_v10  ;;  %v9674_v12 = vadd.f32 %v12244_v28, %v9513_v38  ;;  %v9521_v62 = vadd.f32 %v17507_v50, %v16620_v33 }
 0x4f2   : > { %v9896_v55 = vadd.f32 %v9895_v20, %v9894_v48  ;;  %v12246_v60 = vpop.f32.mrf.mxu0  ;;  %v9823_v3 = vpop.f32.mrf.mxu1  ;;  %v17509_v20 = vld [vmem:[#allocation17_spill] sm:$0xff] }
 0x4f3   : > { %v16963_v30 = vadd.f32 %v9823_v3, %v9663_v41  ;;  %v12247_v34 = vadd.f32 %v12246_v60, %v12245_v53  ;;  %v12144_v52 = vadd.f32 %v17509_v20, %v17508_v0  ;;  %v17510_v3 = vld [vmem:[#allocation15_spill] sm:$0xff]  ;;  %v9905_v46 = vsel %vm4624_vm1, %v16971_v32, 0.0 }
 0x4f4   : > { %v9898_v36 = vadd.f32 %v9897_v63, %v9896_v55  ;;  %v12248_v11 = vpop.f32.mrf.mxu0  ;;  %v12359_v1 = vpop.f32.mrf.mxu1  ;;  %v9526_v40 = vadd.f32 %v17510_v3, %v16620_v33  ;;  %v9934_v3 = vld [vmem:[%s17466_s6] sm:$0x1] }
 0x4f5   : > { %v9901_v45 = vsel %vm4624_vm1, %v16963_v30, 0.0  ;;  %v16977_v44 = vadd.f32 %v12359_v1, %v9674_v12  ;;  %v9679_v41 = vadd.f32 %v12247_v34, %v9518_v16  ;;  %v9529_v10 = vadd.f32 %v12144_v52, %v16620_v33 }
 0x4f6   : > { %v9900_v47 = vadd.f32 %v9899_v17, %v9898_v36  ;;  %v12249_v13 = vpop.f32.mrf.mxu0  ;;  %v9826_v39 = vpop.f32.mrf.mxu1 }
 0x4f7   : > { %v16975_v22 = vadd.f32 %v9826_v39, %v9666_v8  ;;  %v12250_v48 = vadd.f32 %v12249_v13, %v12248_v11  ;;  %v9907_v11 = vsel %vm4624_vm1, %v16977_v44, 0.0 }
 0x4f8   : > { %v9902_v43 = vadd.f32 %v9901_v45, %v9900_v47  ;;  %v12251_v15 = vpop.f32.mrf.mxu0  ;;  %v12362_v5 = vpop.f32.mrf.mxu1 }
 0x4f9   : > { %v9903_v53 = vsel %vm4624_vm1, %v16975_v22, 0.0  ;;  %v9682_v17 = vadd.f32 %v12250_v48, %v9521_v62 }
 0x4fa   : > { %v9904_v42 = vadd.f32 %v9903_v53, %v9902_v43  ;;  %v12252_v55 = vpop.f32.mrf.mxu0  ;;  %v9839_v60 = vpop.f32.mrf.mxu1 }
 0x4fb   : > { %v12253_v63 = vadd.f32 %v12252_v55, %v12251_v15  ;;  %v16989_v28 = vadd.f32 %v9839_v60, %v9679_v41 }
 0x4fc   : > { %v9906_v61 = vadd.f32 %v9905_v46, %v9904_v42  ;;  %v12254_v38 = vpop.f32.mrf.mxu0  ;;  %v12363_v36 = vpop.f32.mrf.mxu1 }
 0x4fd   : > { %v9687_v1 = vadd.f32 %v12253_v63, %v9526_v40  ;;  %v9909_v47 = vsel %vm4624_vm1, %v16989_v28, 0.0 }
 0x4fe   : > { %v9908_v34 = vadd.f32 %v9907_v11, %v9906_v61  ;;  %v12255_v8 = vpop.f32.mrf.mxu0  ;;  %v9842_v14 = vpop.f32.mrf.mxu1 }
 0x4ff   : > { %v16994_v16 = vadd.f32 %v12362_v5, %v9687_v1  ;;  %v12256_v13 = vadd.f32 %v12255_v8, %v12254_v38  ;;  %v16998_v39 = vadd.f32 %v9842_v14, %v9682_v17  ;;  %v10005_v1 = vld [vmem:[%s17468_s8] sm:$0x1] }
 0x500   : > { %v9910_v45 = vadd.f32 %v9909_v47, %v9908_v34 }
 0x501   : > { %v9690_v12 = vadd.f32 %v12256_v13, %v9529_v10  ;;  %v9911_v43 = vsel %vm4624_vm1, %v16998_v39, 0.0  ;;  %v9913_v33 = vsel %vm4624_vm1, %v16994_v16, 0.0 }
 0x502   : > { %v9912_v15 = vadd.f32 %v9911_v43, %v9910_v45 }
 0x503   : > { %v17002_v48 = vadd.f32 %v12363_v36, %v9690_v12  ;;  %v10060_v12 = vlaneseq }
 0x504   : > { %v9914_v53 = vadd.f32 %v9913_v33, %v9912_v15 }
 0x505   : > { %v9915_v5 = vsel %vm4624_vm1, %v17002_v48, 0.0  ;;  %v10061_v43 = vshrl.u32 %v10060_v12, 7 }
 0x506   : > { %v9916_v41 = vadd.f32 %v9915_v5, %v9914_v53 }
 0x507   : > { %v10062_v15 = vsub.s32 0, %v10061_v43  ;;  %v12665_v43 = vld [vmem:[%s12790_s16 + $0x70] sm:$0xff] }
 0x508   : > { %v9917_v50 = vrot.slane %v9916_v41, 4 }
 0x50a   : > { %v9918_v62 = vadd.f32 %v9917_v50, %v9916_v41 }
 0x50c   : > { %v9919_v0 = vrot.slane %v9918_v62, 2 }
 0x50e   : > { %v9920_v20 = vadd.f32 %v9919_v0, %v9918_v62 }
 0x510   : > { %v9921_v52 = vrot.slane %v9920_v20, 1 }
 0x512   : > { %v9922_v42 = vadd.f32 %v9921_v52, %v9920_v20 }
 0x514   : > { %v9924_v55 = vmul.f32 0.00390625, %v9922_v42 }
 0x516   : > { %v9925_v60 = vpack.c.bf16 %v9924_v55, %v9924_v55 }
 0x518   : > { %12373 = vmatmul.mubr.msk.bf16.vlgmr.msra.gmra.mxu0 %vm4624_vm1, %v9925_v60 }
 0x5d8   : > { %v9996_v40 = vpop.f32.mrf.mxu0 }
 0x5d9   : > { %v9997_v46 = vadd.f32 %v9996_v40, %v9934_v3  ;;  %v12655_v3 = vld [vmem:[%s12790_s16 + $0x20] sm:$0xff] }
 0x5da   : > { %v12374_v63 = vpop.f32.mrf.mxu0 }
 0x5db   : > { %v10002_v61 = vmax.f32 %v9997_v46, 0.0  ;;  %v12657_v63 = vld [vmem:[%s12790_s16 + $0x30] sm:$0xff] }
 0x5dc   : > { %v9999_v38 = vpop.f32.mrf.mxu0 }
 0x5dd   : > { %v10003_v36 = vpack.c.bf16 %v10002_v61, %v10002_v61  ;;  %v12658_v61 = vld [vmem:[%s12790_s16 + $0x38] sm:$0xff] }
 0x5de   : > { %v12375_v11 = vpop.f32.mrf.mxu0 }
 0x5df   : > { %12379 = vmatmul.mubr.msk.bf16.vlgmr.msra.gmra.mxu1 %vm10006_vm3, %v10003_v36  ;;  %v12659_v36 = vld [vmem:[%s12790_s16 + $0x40] sm:$0xff] }
 0x69f   : > { %v10048_v17 = vpop.f32.mrf.mxu1 }
 0x6a0   : > { %v10049_v10 = vadd.f32 %v10048_v17, %v10005_v1  ;;  %v12660_v1 = vld [vmem:[%s12790_s16 + $0x48] sm:$0xff] }
 0x6a1   : > { %v12380_v34 = vpop.f32.mrf.mxu1 }
 0x6a2   : > { %v11720_v8 = vmul.f32 -1.442695, %v10049_v10  ;;  %v12661_v10 = vld [vmem:[%s12790_s16 + $0x50] sm:$0xff] }
 0x6a3   : > { %v10051_v14 = vpop.f32.mrf.mxu1 }
 0x6a4   : > { %12645 = vpow2.f32 %v11720_v8  ;;  %v12662_v8 = vld [vmem:[%s12790_s16 + $0x58] sm:$0xff] }
 0x6a5   : > { %v12381_v47 = vpop.f32.mrf.mxu1 }
 0x6a6   : > { %v12663_v47 = vld [vmem:[%s12790_s16 + $0x60] sm:$0xff] }
 0x6b1   : > { %v12646_v13 = vpop.eup %12645 }
 0x6b2   : > { %v10057_v45 = vadd.f32 1.0, %v12646_v13 }
 0x6b4   : > { %12647 = vrcp.f32 %v10057_v45  ;;  %v12664_v45 = vld [vmem:[%s12790_s16 + $0x68] sm:$0xff] }
 0x6c1   : > { %v12648_v33 = vpop.eup %12647 }
 0x6c2   : > { %v10063_v53 = vrot.slane %v12648_v33, %v10062_v15  ;;  %v12666_v33 = vld [vmem:[%s12790_s16 + $0x78] sm:$0xff] }
 0x6c4   : > { %v10064_v5 = vmul.f32 %v10063_v53, %v16768_v31  ;;  %v10065_v41 = vmul.f32 %v10063_v53, %v16776_v58  ;;  %v10066_v50 = vmul.f32 %v10063_v53, %v16774_v2  ;;  %v10067_v62 = vmul.f32 %v10063_v53, %v16786_v4 }
 0x6c5   : > { %v10068_v0 = vmul.f32 %v10063_v53, %v16800_v24  ;;  %v10069_v20 = vmul.f32 %v10063_v53, %v16818_v19  ;;  %v10070_v52 = vmul.f32 %v10063_v53, %v16814_v9  ;;  %v10071_v42 = vmul.f32 %v10063_v53, %v16826_v56 }
 0x6c6   : > { %v10072_v55 = vmul.f32 %v10063_v53, %v16840_v25  ;;  %v10073_v60 = vmul.f32 %v10063_v53, %v16858_v6  ;;  %v10074_v31 = vmul.f32 %v10063_v53, %v16854_v35  ;;  %v10075_v58 = vmul.f32 %v10063_v53, %v16866_v54 }
 0x6c7   : > { %v10076_v2 = vmul.f32 %v10063_v53, %v16878_v26  ;;  %v10077_v4 = vmul.f32 %v10063_v53, %v16892_v18  ;;  %v10078_v24 = vmul.f32 %v10063_v53, %v16888_v57  ;;  %v10079_v19 = vmul.f32 %v10063_v53, %v16898_v27 }
 0x6c8   : > { %v10080_v9 = vmul.f32 %v10063_v53, %v16910_v49  ;;  %v10081_v56 = vmul.f32 %v10063_v53, %v16924_v51  ;;  %v10082_v25 = vmul.f32 %v10063_v53, %v16920_v59  ;;  %v10083_v35 = vmul.f32 %v10063_v53, %v16929_v7 }
 0x6c9   : > { %v17036_v6 = vmul.f32 %v10063_v53, %v16939_v37  ;;  %v17039_v54 = vmul.f32 %v10063_v53, %v16951_v21  ;;  %v17042_v26 = vmul.f32 %v10063_v53, %v16947_v29  ;;  %v17045_v57 = vmul.f32 %v10063_v53, %v16953_v23  ;;  %v12651_v21 = vld [vmem:[%s12790_s16] sm:$0xff] }
 0x6ca   : > { %v17048_v18 = vmul.f32 %v10063_v53, %v16963_v30  ;;  %v17051_v27 = vmul.f32 %v10063_v53, %v16975_v22  ;;  %v17054_v49 = vmul.f32 %v10063_v53, %v16971_v32  ;;  %v17057_v59 = vmul.f32 %v10063_v53, %v16977_v44  ;;  %v12652_v30 = vld [vmem:[%s12790_s16 + $0x8] sm:$0xff]  ;;  %v12653_v22 = vld [vmem:[%s12790_s16 + $0x10] sm:$0xff] }
 0x6cb   : > { %v17060_v51 = vmul.f32 %v10063_v53, %v16989_v28  ;;  %v17063_v7 = vmul.f32 %v10063_v53, %v16998_v39  ;;  %v17066_v37 = vmul.f32 %v10063_v53, %v16994_v16  ;;  %v17069_v29 = vmul.f32 %v10063_v53, %v17002_v48  ;;  %v12654_v28 = vld [vmem:[%s12790_s16 + $0x18] sm:$0xff]  ;;  %v12656_v16 = vld [vmem:[%s12790_s16 + $0x28] sm:$0xff] }
 0x6cc   : > { %v10096_v23 = vadd.f32 %v12651_v21, %v10064_v5  ;;  %v10097_v32 = vadd.f32 %v12652_v30, %v10065_v41  ;;  %v10098_v44 = vadd.f32 %v12653_v22, %v10066_v50  ;;  %v10099_v39 = vadd.f32 %v12654_v28, %v10067_v62  ;;  %v12667_v5 = vld [vmem:[%s12790_s16 + $0x80] sm:$0xff]  ;;  %v12668_v50 = vld [vmem:[%s12790_s16 + $0x88] sm:$0xff]  ;;  %v12681_v30 = vld [vmem:[%s12790_s16 + $0xf0] sm:$0xff] }
 0x6cd   : > { %v10100_v40 = vadd.f32 %v12655_v3, %v10068_v0  ;;  %v10101_v46 = vadd.f32 %v12656_v16, %v10069_v20  ;;  %v10102_v48 = vadd.f32 %v12657_v63, %v10070_v52  ;;  %v10103_v38 = vadd.f32 %v12658_v61, %v10071_v42  ;;  %v12669_v0 = vld [vmem:[%s12790_s16 + $0x90] sm:$0xff]  ;;  %v12670_v52 = vld [vmem:[%s12790_s16 + $0x98] sm:$0xff]  ;;  %v12679_v21 = vld [vmem:[%s12790_s16 + $0xe0] sm:$0xff] }
 0x6ce   : > { %v10104_v11 = vadd.f32 %v12659_v36, %v10072_v55  ;;  %v10105_v17 = vadd.f32 %v12660_v1, %v10073_v60  ;;  %v10106_v34 = vadd.f32 %v12661_v10, %v10074_v31  ;;  %v10107_v14 = vadd.f32 %v12662_v8, %v10075_v58  ;;  %10128 = vst.msk [vmem:[#allocation4] sm:$0xff] %vm4624_vm1, %v10096_v23  ;;  %v12671_v55 = vld [vmem:[%s12790_s16 + $0xa0] sm:$0xff]  ;;  %v12672_v31 = vld [vmem:[%s12790_s16 + $0xa8] sm:$0xff] }
 0x6cf   : > { %10129 = vst.msk [vmem:[#allocation4 + $0x8] sm:$0xff] %vm4624_vm1, %v10097_v32  ;;  %10130 = vst.msk [vmem:[#allocation4 + $0x10] sm:$0xff] %vm4624_vm1, %v10098_v44  ;;  %v10108_v13 = vadd.f32 %v12663_v47, %v10076_v2  ;;  %v10109_v12 = vadd.f32 %v12664_v45, %v10077_v4  ;;  %v10110_v15 = vadd.f32 %v12665_v43, %v10078_v24  ;;  %v12673_v2 = vld [vmem:[%s12790_s16 + $0xb0] sm:$0xff]  ;;  %v12674_v24 = vld [vmem:[%s12790_s16 + $0xb8] sm:$0xff] }
 0x6d0   : > { %10131 = vst.msk [vmem:[#allocation4 + $0x18] sm:$0xff] %vm4624_vm1, %v10099_v39  ;;  %v10111_v53 = vadd.f32 %v12666_v33, %v10079_v19  ;;  %10132 = vst.msk [vmem:[#allocation4 + $0x20] sm:$0xff] %vm4624_vm1, %v10100_v40  ;;  %v10112_v41 = vadd.f32 %v12667_v5, %v10080_v9  ;;  %v10113_v62 = vadd.f32 %v12668_v50, %v10081_v56  ;;  %v12675_v9 = vld [vmem:[%s12790_s16 + $0xc0] sm:$0xff]  ;;  %v12680_v23 = vld [vmem:[%s12790_s16 + $0xe8] sm:$0xff] }
 0x6d1   : > { %10133 = vst.msk [vmem:[#allocation4 + $0x28] sm:$0xff] %vm4624_vm1, %v10101_v46  ;;  %10134 = vst.msk [vmem:[#allocation4 + $0x30] sm:$0xff] %vm4624_vm1, %v10102_v48  ;;  %v10114_v20 = vadd.f32 %v12669_v0, %v10082_v25  ;;  %v10115_v42 = vadd.f32 %v12670_v52, %v10083_v35  ;;  %v10116_v60 = vadd.f32 %v12671_v55, %v17036_v6  ;;  %v12676_v25 = vld [vmem:[%s12790_s16 + $0xc8] sm:$0xff]  ;;  %v12677_v6 = vld [vmem:[%s12790_s16 + $0xd0] sm:$0xff] }
 0x6d2   : > { %10135 = vst.msk [vmem:[#allocation4 + $0x38] sm:$0xff] %vm4624_vm1, %v10103_v38  ;;  %10136 = vst.msk [vmem:[#allocation4 + $0x40] sm:$0xff] %vm4624_vm1, %v10104_v11  ;;  %v10117_v58 = vadd.f32 %v12672_v31, %v17039_v54  ;;  %v10118_v4 = vadd.f32 %v12673_v2, %v17042_v26  ;;  %v10119_v19 = vadd.f32 %v12674_v24, %v17045_v57  ;;  %v12678_v26 = vld [vmem:[%s12790_s16 + $0xd8] sm:$0xff] }
 0x6d3   : > { %10137 = vst.msk [vmem:[#allocation4 + $0x48] sm:$0xff] %vm4624_vm1, %v10105_v17  ;;  %10138 = vst.msk [vmem:[#allocation4 + $0x50] sm:$0xff] %vm4624_vm1, %v10106_v34  ;;  %v10120_v56 = vadd.f32 %v12675_v9, %v17048_v18  ;;  %v10121_v35 = vadd.f32 %v12676_v25, %v17051_v27  ;;  %v10122_v54 = vadd.f32 %v12677_v6, %v17054_v49  ;;  %v12682_v32 = vld [vmem:[%s12790_s16 + $0xf8] sm:$0xff]  ;;  %s11724_s16 = sshll.u32 %s17512_s10, 7 }
 0x6d4   : > { %10139 = vst.msk [vmem:[#allocation4 + $0x58] sm:$0xff] %vm4624_vm1, %v10107_v14  ;;  %10140 = vst.msk [vmem:[#allocation4 + $0x60] sm:$0xff] %vm4624_vm1, %v10108_v13  ;;  %v10123_v57 = vadd.f32 %v12678_v26, %v17057_v59  ;;  %v10124_v18 = vadd.f32 %v12679_v21, %v17060_v51  ;;  %v10125_v27 = vadd.f32 %v12680_v23, %v17063_v7  ;;  %s17283_s11 = scalar_lea.vmem %s17469_s9, %s11724_s16 }
 0x6d5   : > { %10141 = vst.msk [vmem:[#allocation4 + $0x68] sm:$0xff] %vm4624_vm1, %v10109_v12  ;;  %10142 = vst.msk [vmem:[#allocation4 + $0x70] sm:$0xff] %vm4624_vm1, %v10110_v15  ;;  %v10126_v49 = vadd.f32 %v12681_v30, %v17066_v37  ;;  %v10127_v59 = vadd.f32 %v12682_v32, %v17069_v29  ;;  %v10231_v51 = vld [vmem:[#allocation4 + $0x1] sm:$0x1] }
 0x6d6   : > { %10143 = vst.msk [vmem:[#allocation4 + $0x78] sm:$0xff] %vm4624_vm1, %v10111_v53  ;;  %10144 = vst.msk [vmem:[#allocation4 + $0x80] sm:$0xff] %vm4624_vm1, %v10112_v41  ;;  %v10232_v7 = vld [vmem:[#allocation4 + $0x11] sm:$0x1] }
 0x6d7   : > { %10145 = vst.msk [vmem:[#allocation4 + $0x88] sm:$0xff] %vm4624_vm1, %v10113_v62  ;;  %10146 = vst.msk [vmem:[#allocation4 + $0x90] sm:$0xff] %vm4624_vm1, %v10114_v20  ;;  %v10233_v37 = vld [vmem:[#allocation4 + $0x21] sm:$0x1]  ;;  %v10263_v22 = vrot.slane %v10232_v7, 7 }
 0x6d8   : > { %10147 = vst.msk [vmem:[#allocation4 + $0x98] sm:$0xff] %vm4624_vm1, %v10115_v42  ;;  %10148 = vst.msk [vmem:[#allocation4 + $0xa0] sm:$0xff] %vm4624_vm1, %v10116_v60  ;;  %v10234_v29 = vld [vmem:[#allocation4 + $0x31] sm:$0x1]  ;;  %v10265_v39 = vrot.slane %v10233_v37, 6 }
 0x6d9   : > { %10149 = vst.msk [vmem:[#allocation4 + $0xa8] sm:$0xff] %vm4624_vm1, %v10117_v58  ;;  %10150 = vst.msk [vmem:[#allocation4 + $0xb0] sm:$0xff] %vm4624_vm1, %v10118_v4  ;;  %v10235_v44 = vld [vmem:[#allocation4 + $0x41] sm:$0x1]  ;;  %v10264_v16 = vsel %vm10193_vm4, %v10263_v22, %v10231_v51  ;;  %v10267_v46 = vrot.slane %v10234_v29, 5 }
 0x6da   : > { %10151 = vst.msk [vmem:[#allocation4 + $0xb8] sm:$0xff] %vm4624_vm1, %v10119_v19  ;;  %10152 = vst.msk [vmem:[#allocation4 + $0xc0] sm:$0xff] %vm4624_vm1, %v10120_v56  ;;  %v10236_v28 = vld [vmem:[#allocation4 + $0x51] sm:$0x1]  ;;  %v10266_v61 = vsel %vm10196_vm5, %v10265_v39, %v10264_v16  ;;  %v10269_v38 = vrot.slane %v10235_v44, 4 }
 0x6db   : > { %10153 = vst.msk [vmem:[#allocation4 + $0xc8] sm:$0xff] %vm4624_vm1, %v10121_v35  ;;  %10154 = vst.msk [vmem:[#allocation4 + $0xd0] sm:$0xff] %vm4624_vm1, %v10122_v54  ;;  %v10237_v3 = vld [vmem:[#allocation4 + $0x61] sm:$0x1]  ;;  %v10268_v17 = vsel %vm10199_vm6, %v10267_v46, %v10266_v61  ;;  %v10271_v10 = vrot.slane %v10236_v28, 3 }
 0x6dc   : > { %10155 = vst.msk [vmem:[#allocation4 + $0xd8] sm:$0xff] %vm4624_vm1, %v10123_v57  ;;  %10156 = vst.msk [vmem:[#allocation4 + $0xe0] sm:$0xff] %vm4624_vm1, %v10124_v18  ;;  %v10238_v40 = vld [vmem:[#allocation4 + $0x71] sm:$0x1]  ;;  %v10270_v47 = vsel %vm10202_vm7, %v10269_v38, %v10268_v17  ;;  %v10273_v13 = vrot.slane %v10237_v3, 2 }
 0x6dd   : > { %10157 = vst.msk [vmem:[#allocation4 + $0xe8] sm:$0xff] %vm4624_vm1, %v10125_v27  ;;  %10158 = vst.msk [vmem:[#allocation4 + $0xf0] sm:$0xff] %vm4624_vm1, %v10126_v49  ;;  %v10239_v63 = vld [vmem:[#allocation4 + $0x81] sm:$0x1]  ;;  %v10272_v33 = vsel %vm10205_vm8, %v10271_v10, %v10270_v47  ;;  %v10275_v53 = vrot.slane %v10238_v40, 1 }
 0x6de   : > { %10159 = vst.msk [vmem:[#allocation4 + $0xf8] sm:$0xff] %vm4624_vm1, %v10127_v59  ;;  %v10240_v48 = vld [vmem:[#allocation4 + $0x91] sm:$0x1]  ;;  %v10274_v50 = vsel %vm10208_vm9, %v10273_v13, %v10272_v33  ;;  %v10373_v62 = vld [vmem:[#allocation4 + $0x93] sm:$0x1] }
 0x6df   : > { %v10241_v36 = vld [vmem:[#allocation4 + $0xa1] sm:$0x1]  ;;  %v10277_v1 = vrot.slane %v10240_v48, 7  ;;  %v10276_v52 = vsel %vm10211_vm10, %v10275_v53, %v10274_v50  ;;  %v10374_v42 = vld [vmem:[#allocation4 + $0xa3] sm:$0x1]  ;;  %v10410_v19 = vrot.slane %v10373_v62, 7 }
 0x6e0   : > { %v10242_v11 = vld [vmem:[#allocation4 + $0xb1] sm:$0x1]  ;;  %v10279_v14 = vrot.slane %v10241_v36, 6  ;;  %10291 = vrot.lane.b32.xlu0 %v10276_v52, %s12692_s19  ;;  %v10375_v58 = vld [vmem:[#allocation4 + $0xb3] sm:$0x1]  ;;  %v10412_v9 = vrot.slane %v10374_v42, 6 }
 0x6e1   : > { %v10243_v34 = vld [vmem:[#allocation4 + $0xc1] sm:$0x1]  ;;  %v10278_v43 = vsel %vm10193_vm4, %v10277_v1, %v10239_v63  ;;  %v10281_v15 = vrot.slane %v10242_v11, 5  ;;  %v10376_v2 = vld [vmem:[#allocation4 + $0xc3] sm:$0x1]  ;;  %v10414_v23 = vrot.slane %v10375_v58, 5 }
 0x6e2   : > { %v10244_v8 = vld [vmem:[#allocation4 + $0xd1] sm:$0x1]  ;;  %v10280_v5 = vsel %vm10196_vm5, %v10279_v14, %v10278_v43  ;;  %v10283_v41 = vrot.slane %v10243_v34, 4  ;;  %v10377_v24 = vld [vmem:[#allocation4 + $0xd3] sm:$0x1]  ;;  %v10416_v32 = vrot.slane %v10376_v2, 4 }
 0x6e3   : > { %v10245_v45 = vld [vmem:[#allocation4 + $0xe1] sm:$0x1]  ;;  %v10282_v0 = vsel %vm10199_vm6, %v10281_v15, %v10280_v5  ;;  %v10285_v20 = vrot.slane %v10244_v8, 3  ;;  %v10365_v56 = vld [vmem:[#allocation4 + $0x13] sm:$0x1]  ;;  %v10418_v59 = vrot.slane %v10377_v24, 3 }
 0x6e4   : > { %v10246_v12 = vld [vmem:[#allocation4 + $0xf1] sm:$0x1]  ;;  %v10284_v55 = vsel %vm10202_vm7, %v10283_v41, %v10282_v0  ;;  %v10287_v60 = vrot.slane %v10245_v45, 2  ;;  %v10372_v35 = vld [vmem:[#allocation4 + $0x83] sm:$0x1]  ;;  %v10396_v30 = vrot.slane %v10365_v56, 7 }
 0x6e5   : > { %v10289_v31 = vrot.slane %v10246_v12, 1  ;;  %v10286_v4 = vsel %vm10205_vm8, %v10285_v20, %v10284_v55  ;;  %v10378_v6 = vld [vmem:[#allocation4 + $0xe3] sm:$0x1]  ;;  %v10379_v21 = vld [vmem:[#allocation4 + $0xf3] sm:$0x1]  ;;  %v10411_v18 = vsel %vm10193_vm4, %v10410_v19, %v10372_v35 }
 0x6e6   : > { %v10288_v25 = vsel %vm10208_vm9, %v10287_v60, %v10286_v4  ;;  %v10364_v54 = vld [vmem:[#allocation4 + $0x3] sm:$0x1]  ;;  %v10367_v27 = vld [vmem:[#allocation4 + $0x33] sm:$0x1]  ;;  %v10413_v49 = vsel %vm10196_vm5, %v10412_v9, %v10411_v18  ;;  %v10420_v29 = vrot.slane %v10378_v6, 2  ;;  %v10422_v40 = vrot.slane %v10379_v21, 1 }
 0x6e7   : > { %v10366_v26 = vld [vmem:[#allocation4 + $0x23] sm:$0x1]  ;;  %v10290_v57 = vsel %vm10211_vm10, %v10289_v31, %v10288_v25  ;;  %v10369_v7 = vld [vmem:[#allocation4 + $0x53] sm:$0x1]  ;;  %v10415_v37 = vsel %vm10199_vm6, %v10414_v23, %v10413_v49  ;;  %v10397_v44 = vsel %vm10193_vm4, %v10396_v30, %v10364_v54  ;;  %v10505_v39 = vld [vmem:[#allocation4 + $0x95] sm:$0x1] }
 0x6e8   : > { %10293 = vrot.lane.b32.xlu1 %v10290_v57, %s12692_s19  ;;  %v10368_v51 = vld [vmem:[#allocation4 + $0x43] sm:$0x1]  ;;  %v10398_v28 = vrot.slane %v10366_v26, 6  ;;  %v10417_v3 = vsel %vm10202_vm7, %v10416_v32, %v10415_v37  ;;  %v10371_v16 = vld [vmem:[#allocation4 + $0x73] sm:$0x1]  ;;  %v10400_v46 = vrot.slane %v10367_v27, 5 }
 0x6e9   : > { %v10370_v22 = vld [vmem:[#allocation4 + $0x63] sm:$0x1]  ;;  %v10506_v63 = vld [vmem:[#allocation4 + $0xa5] sm:$0x1]  ;;  %v10419_v48 = vsel %vm10205_vm8, %v10418_v59, %v10417_v3  ;;  %v10402_v38 = vrot.slane %v10368_v51, 4  ;;  %v10542_v1 = vrot.slane %v10505_v39, 7 }
 0x6ea   : > { %v10399_v61 = vsel %vm10196_vm5, %v10398_v28, %v10397_v44  ;;  %v10504_v36 = vld [vmem:[#allocation4 + $0x85] sm:$0x1]  ;;  %v10507_v11 = vld [vmem:[#allocation4 + $0xb5] sm:$0x1]  ;;  %v10421_v17 = vsel %vm10208_vm9, %v10420_v29, %v10419_v48  ;;  %v10404_v34 = vrot.slane %v10369_v7, 3  ;;  %v10406_v8 = vrot.slane %v10370_v22, 2 }
 0x6eb   : > { %v10401_v10 = vsel %vm10199_vm6, %v10400_v46, %v10399_v61  ;;  %v10508_v14 = vld [vmem:[#allocation4 + $0xc5] sm:$0x1]  ;;  %v10509_v47 = vld [vmem:[#allocation4 + $0xd5] sm:$0x1]  ;;  %v10423_v13 = vsel %vm10211_vm10, %v10422_v40, %v10421_v17  ;;  %v10543_v15 = vsel %vm10193_vm4, %v10542_v1, %v10504_v36  ;;  %v10544_v33 = vrot.slane %v10506_v63, 6 }
 0x6ec   : > { %v10403_v45 = vsel %vm10202_vm7, %v10402_v38, %v10401_v10  ;;  %v10510_v12 = vld [vmem:[#allocation4 + $0xe5] sm:$0x1]  ;;  %v10511_v43 = vld [vmem:[#allocation4 + $0xf5] sm:$0x1]  ;;  %10426 = vrot.lane.b32.xlu1 %v10423_v13, %s12692_s19  ;;  %v10408_v5 = vrot.slane %v10371_v16, 1  ;;  %v10546_v41 = vrot.slane %v10507_v11, 5 }
 0x6ed   : > { %v10405_v53 = vsel %vm10205_vm8, %v10404_v34, %v10403_v45  ;;  %v10497_v50 = vld [vmem:[#allocation4 + $0x15] sm:$0x1]  ;;  %v10498_v62 = vld [vmem:[#allocation4 + $0x25] sm:$0x1]  ;;  %v10545_v20 = vsel %vm10196_vm5, %v10544_v33, %v10543_v15  ;;  %v10548_v52 = vrot.slane %v10508_v14, 4  ;;  %v10550_v42 = vrot.slane %v10509_v47, 3 }
 0x6ee   : > { %v10407_v0 = vsel %vm10208_vm9, %v10406_v8, %v10405_v53  ;;  %v10547_v60 = vsel %vm10199_vm6, %v10546_v41, %v10545_v20  ;;  %v10552_v31 = vrot.slane %v10510_v12, 2  ;;  %v10554_v58 = vrot.slane %v10511_v43, 1  ;;  %v10496_v2 = vld [vmem:[#allocation4 + $0x5] sm:$0x1]  ;;  %v10499_v4 = vld [vmem:[#allocation4 + $0x35] sm:$0x1] }
 0x6ef   : > { %v10409_v55 = vsel %vm10211_vm10, %v10408_v5, %v10407_v0  ;;  %v10549_v24 = vsel %vm10202_vm7, %v10548_v52, %v10547_v60  ;;  %v10500_v19 = vld [vmem:[#allocation4 + $0x45] sm:$0x1]  ;;  %v10501_v9 = vld [vmem:[#allocation4 + $0x55] sm:$0x1]  ;;  %v10528_v56 = vrot.slane %v10497_v50, 7  ;;  %v10530_v25 = vrot.slane %v10498_v62, 6 }
 0x6f0   : > { %10424 = vrot.lane.b32.xlu0 %v10409_v55, %s12692_s19  ;;  %v10551_v35 = vsel %vm10205_vm8, %v10550_v42, %v10549_v24  ;;  %v10502_v6 = vld [vmem:[#allocation4 + $0x65] sm:$0x1]  ;;  %v10503_v54 = vld [vmem:[#allocation4 + $0x75] sm:$0x1]  ;;  %v10637_v26 = vld [vmem:[#allocation4 + $0x97] sm:$0x1] }
 0x6f1   : > { %v10553_v57 = vsel %vm10208_vm9, %v10552_v31, %v10551_v35  ;;  %v10529_v21 = vsel %vm10193_vm4, %v10528_v56, %v10496_v2  ;;  %v10532_v18 = vrot.slane %v10499_v4, 5  ;;  %v10638_v23 = vld [vmem:[#allocation4 + $0xa7] sm:$0x1]  ;;  %v10639_v27 = vld [vmem:[#allocation4 + $0xb7] sm:$0x1]  ;;  %v10674_v30 = vrot.slane %v10637_v26, 7 }
 0x6f2   : > { %v10555_v49 = vsel %vm10211_vm10, %v10554_v58, %v10553_v57  ;;  %v10531_v32 = vsel %vm10196_vm5, %v10530_v25, %v10529_v21  ;;  %v10534_v59 = vrot.slane %v10500_v19, 4  ;;  %v10536_v51 = vrot.slane %v10501_v9, 3  ;;  %v10636_v7 = vld [vmem:[#allocation4 + $0x87] sm:$0x1]  ;;  %v10641_v44 = vld [vmem:[#allocation4 + $0xd7] sm:$0x1] }
 0x6f3   : > { %v10640_v37 = vld [vmem:[#allocation4 + $0xc7] sm:$0x1]  ;;  %10558 = vrot.lane.b32.xlu1 %v10555_v49, %s12692_s19  ;;  %v10533_v29 = vsel %vm10199_vm6, %v10532_v18, %v10531_v32  ;;  %v10538_v22 = vrot.slane %v10502_v6, 2  ;;  %v10675_v39 = vsel %vm10193_vm4, %v10674_v30, %v10636_v7  ;;  %v10676_v3 = vrot.slane %v10638_v23, 6  ;;  %v10643_v46 = vld [vmem:[#allocation4 + $0xf7] sm:$0x1] }
 0x6f4   : > { %v10642_v28 = vld [vmem:[#allocation4 + $0xe7] sm:$0x1]  ;;  %v10535_v40 = vsel %vm10202_vm7, %v10534_v59, %v10533_v29  ;;  %v10540_v16 = vrot.slane %v10503_v54, 1  ;;  %v10678_v63 = vrot.slane %v10639_v27, 5  ;;  %v10629_v48 = vld [vmem:[#allocation4 + $0x17] sm:$0x1] }
 0x6f5   : > { %v10537_v61 = vsel %vm10205_vm8, %v10536_v51, %v10535_v40  ;;  %v10677_v38 = vsel %vm10196_vm5, %v10676_v3, %v10675_v39  ;;  %v10680_v36 = vrot.slane %v10640_v37, 4  ;;  %v10630_v11 = vld [vmem:[#allocation4 + $0x27] sm:$0x1]  ;;  %v10631_v1 = vld [vmem:[#allocation4 + $0x37] sm:$0x1]  ;;  %v10660_v17 = vrot.slane %v10629_v48, 7 }
 0x6f6   : > { %v10539_v10 = vsel %vm10208_vm9, %v10538_v22, %v10537_v61  ;;  %v10679_v34 = vsel %vm10199_vm6, %v10678_v63, %v10677_v38  ;;  %v10682_v8 = vrot.slane %v10641_v44, 3  ;;  %v10684_v14 = vrot.slane %v10642_v28, 2  ;;  %v10628_v47 = vld [vmem:[#allocation4 + $0x7] sm:$0x1]  ;;  %v10633_v43 = vld [vmem:[#allocation4 + $0x57] sm:$0x1] }
 0x6f7   : > { %v10632_v13 = vld [vmem:[#allocation4 + $0x47] sm:$0x1]  ;;  %v10541_v45 = vsel %vm10211_vm10, %v10540_v16, %v10539_v10  ;;  %v10681_v12 = vsel %vm10202_vm7, %v10680_v36, %v10679_v34  ;;  %v10661_v33 = vsel %vm10193_vm4, %v10660_v17, %v10628_v47  ;;  %v10662_v53 = vrot.slane %v10630_v11, 6  ;;  %v10769_v62 = vld [vmem:[#allocation4 + $0x99] sm:$0x1] }
 0x6f8   : > { %v10634_v15 = vld [vmem:[#allocation4 + $0x67] sm:$0x1]  ;;  %10556 = vrot.lane.b32.xlu0 %v10541_v45, %s12692_s19  ;;  %v10683_v5 = vsel %vm10205_vm8, %v10682_v8, %v10681_v12  ;;  %v10686_v41 = vrot.slane %v10643_v46, 1  ;;  %v10664_v50 = vrot.slane %v10631_v1, 5  ;;  %v10635_v20 = vld [vmem:[#allocation4 + $0x77] sm:$0x1] }
 0x6f9   : > { %v10685_v0 = vsel %vm10208_vm9, %v10684_v14, %v10683_v5  ;;  %v10663_v52 = vsel %vm10196_vm5, %v10662_v53, %v10661_v33  ;;  %v10666_v42 = vrot.slane %v10632_v13, 4  ;;  %v10770_v55 = vld [vmem:[#allocation4 + $0xa9] sm:$0x1]  ;;  %v10668_v58 = vrot.slane %v10633_v43, 3  ;;  %v10771_v4 = vld [vmem:[#allocation4 + $0xb9] sm:$0x1] }
 0x6fa   : > { %v10687_v60 = vsel %vm10211_vm10, %v10686_v41, %v10685_v0  ;;  %v10665_v31 = vsel %vm10199_vm6, %v10664_v50, %v10663_v52  ;;  %v10670_v2 = vrot.slane %v10634_v15, 2  ;;  %v10772_v19 = vld [vmem:[#allocation4 + $0xc9] sm:$0x1]  ;;  %v10773_v9 = vld [vmem:[#allocation4 + $0xd9] sm:$0x1]  ;;  %v10806_v56 = vrot.slane %v10769_v62, 7 }
 0x6fb   : > { %10690 = vrot.lane.b32.xlu1 %v10687_v60, %s12692_s19  ;;  %v10667_v24 = vsel %vm10202_vm7, %v10666_v42, %v10665_v31  ;;  %v10808_v25 = vrot.slane %v10770_v55, 6  ;;  %v10672_v6 = vrot.slane %v10635_v20, 1  ;;  %v10768_v54 = vld [vmem:[#allocation4 + $0x89] sm:$0x1]  ;;  %v10810_v18 = vrot.slane %v10771_v4, 5 }
 0x6fc   : > { %v10669_v35 = vsel %vm10205_vm8, %v10668_v58, %v10667_v24  ;;  %v10774_v26 = vld [vmem:[#allocation4 + $0xe9] sm:$0x1]  ;;  %v10807_v21 = vsel %vm10193_vm4, %v10806_v56, %v10768_v54  ;;  %v10761_v23 = vld [vmem:[#allocation4 + $0x19] sm:$0x1]  ;;  %v10812_v59 = vrot.slane %v10772_v19, 4  ;;  %v10814_v51 = vrot.slane %v10773_v9, 3 }
 0x6fd   : > { %v10671_v57 = vsel %vm10208_vm9, %v10670_v2, %v10669_v35  ;;  %v10762_v27 = vld [vmem:[#allocation4 + $0x29] sm:$0x1]  ;;  %v10775_v49 = vld [vmem:[#allocation4 + $0xf9] sm:$0x1]  ;;  %v10809_v32 = vsel %vm10196_vm5, %v10808_v25, %v10807_v21  ;;  %v10792_v44 = vrot.slane %v10761_v23, 7  ;;  %v10816_v3 = vrot.slane %v10774_v26, 2 }
 0x6fe   : > { %v10673_v30 = vsel %vm10211_vm10, %v10672_v6, %v10671_v57  ;;  %v10763_v7 = vld [vmem:[#allocation4 + $0x39] sm:$0x1]  ;;  %v10811_v37 = vsel %vm10199_vm6, %v10810_v18, %v10809_v32  ;;  %v10764_v29 = vld [vmem:[#allocation4 + $0x49] sm:$0x1]  ;;  %v10794_v28 = vrot.slane %v10762_v27, 6  ;;  %v10818_v63 = vrot.slane %v10775_v49, 1 }
 0x6ff   : > { %10688 = vrot.lane.b32.xlu0 %v10673_v30, %s12692_s19  ;;  %v10765_v22 = vld [vmem:[#allocation4 + $0x59] sm:$0x1]  ;;  %v10813_v39 = vsel %vm10202_vm7, %v10812_v59, %v10811_v37  ;;  %v10760_v40 = vld [vmem:[#allocation4 + $0x9] sm:$0x1]  ;;  %v10796_v61 = vrot.slane %v10763_v7, 5  ;;  %v10798_v10 = vrot.slane %v10764_v29, 4 }
 0x700   : > { %v10766_v16 = vld [vmem:[#allocation4 + $0x69] sm:$0x1]  ;;  %v10815_v46 = vsel %vm10205_vm8, %v10814_v51, %v10813_v39  ;;  %v10793_v48 = vsel %vm10193_vm4, %v10792_v44, %v10760_v40  ;;  %v10901_v38 = vld [vmem:[#allocation4 + $0x9b] sm:$0x1]  ;;  %v10902_v36 = vld [vmem:[#allocation4 + $0xab] sm:$0x1] }
 0x701   : > { %v10817_v11 = vsel %vm10208_vm9, %v10816_v3, %v10815_v46  ;;  %v10767_v1 = vld [vmem:[#allocation4 + $0x79] sm:$0x1]  ;;  %v10795_v17 = vsel %vm10196_vm5, %v10794_v28, %v10793_v48  ;;  %v10800_v34 = vrot.slane %v10765_v22, 3  ;;  %v10903_v8 = vld [vmem:[#allocation4 + $0xbb] sm:$0x1]  ;;  %v10938_v12 = vrot.slane %v10901_v38, 7 }
 0x702   : > { %v10819_v14 = vsel %vm10211_vm10, %v10818_v63, %v10817_v11  ;;  %v10797_v47 = vsel %vm10199_vm6, %v10796_v61, %v10795_v17  ;;  %v10904_v13 = vld [vmem:[#allocation4 + $0xcb] sm:$0x1]  ;;  %v10905_v45 = vld [vmem:[#allocation4 + $0xdb] sm:$0x1]  ;;  %v10940_v43 = vrot.slane %v10902_v36, 6  ;;  %v10802_v33 = vrot.slane %v10766_v16, 2 }
 0x703   : > { %10822 = vrot.lane.b32.xlu1 %v10819_v14, %s12692_s19  ;;  %v10799_v15 = vsel %vm10202_vm7, %v10798_v10, %v10797_v47  ;;  %v10900_v53 = vld [vmem:[#allocation4 + $0x8b] sm:$0x1]  ;;  %v10804_v50 = vrot.slane %v10767_v1, 1  ;;  %v10942_v0 = vrot.slane %v10903_v8, 5  ;;  %v10893_v20 = vld [vmem:[#allocation4 + $0x1b] sm:$0x1] }
 0x704   : > { %v10906_v5 = vld [vmem:[#allocation4 + $0xeb] sm:$0x1]  ;;  %v10801_v41 = vsel %vm10205_vm8, %v10800_v34, %v10799_v15  ;;  %v10939_v62 = vsel %vm10193_vm4, %v10938_v12, %v10900_v53  ;;  %v10907_v55 = vld [vmem:[#allocation4 + $0xfb] sm:$0x1]  ;;  %v10944_v31 = vrot.slane %v10904_v13, 4  ;;  %v10946_v58 = vrot.slane %v10905_v45, 3 }
 0x705   : > { %v10894_v52 = vld [vmem:[#allocation4 + $0x2b] sm:$0x1]  ;;  %v10803_v42 = vsel %vm10208_vm9, %v10802_v33, %v10801_v41  ;;  %v10941_v60 = vsel %vm10196_vm5, %v10940_v43, %v10939_v62  ;;  %v10895_v2 = vld [vmem:[#allocation4 + $0x3b] sm:$0x1]  ;;  %v10924_v56 = vrot.slane %v10893_v20, 7  ;;  %v10948_v6 = vrot.slane %v10906_v5, 2 }
 0x706   : > { %v10805_v4 = vsel %vm10211_vm10, %v10804_v50, %v10803_v42  ;;  %v10943_v24 = vsel %vm10199_vm6, %v10942_v0, %v10941_v60  ;;  %v10896_v19 = vld [vmem:[#allocation4 + $0x4b] sm:$0x1]  ;;  %v10897_v9 = vld [vmem:[#allocation4 + $0x5b] sm:$0x1]  ;;  %v10926_v25 = vrot.slane %v10894_v52, 6  ;;  %v10950_v21 = vrot.slane %v10907_v55, 1 }
 0x707   : > { %10820 = vrot.lane.b32.xlu0 %v10805_v4, %s12692_s19  ;;  %v10945_v35 = vsel %vm10202_vm7, %v10944_v31, %v10943_v24  ;;  %v10892_v54 = vld [vmem:[#allocation4 + $0xb] sm:$0x1]  ;;  %v10928_v23 = vrot.slane %v10895_v2, 5  ;;  %v11033_v27 = vld [vmem:[#allocation4 + $0x9d] sm:$0x1]  ;;  %v10930_v51 = vrot.slane %v10896_v19, 4 }
 0x708   : > { %v10898_v26 = vld [vmem:[#allocation4 + $0x6b] sm:$0x1]  ;;  %v10947_v57 = vsel %vm10205_vm8, %v10946_v58, %v10945_v35  ;;  %v10925_v18 = vsel %vm10193_vm4, %v10924_v56, %v10892_v54  ;;  %v11034_v30 = vld [vmem:[#allocation4 + $0xad] sm:$0x1]  ;;  %v10899_v32 = vld [vmem:[#allocation4 + $0x7b] sm:$0x1] }
 0x709   : > { %v10949_v49 = vsel %vm10208_vm9, %v10948_v6, %v10947_v57  ;;  %v10927_v59 = vsel %vm10196_vm5, %v10926_v25, %v10925_v18  ;;  %v10932_v7 = vrot.slane %v10897_v9, 3  ;;  %v11035_v37 = vld [vmem:[#allocation4 + $0xbd] sm:$0x1]  ;;  %v11036_v44 = vld [vmem:[#allocation4 + $0xcd] sm:$0x1]  ;;  %v11070_v39 = vrot.slane %v11033_v27, 7 }
 0x70a   : > { %v10951_v29 = vsel %vm10211_vm10, %v10950_v21, %v10949_v49  ;;  %v10929_v22 = vsel %vm10199_vm6, %v10928_v23, %v10927_v59  ;;  %v11037_v28 = vld [vmem:[#allocation4 + $0xdd] sm:$0x1]  ;;  %v11072_v3 = vrot.slane %v11034_v30, 6  ;;  %v10934_v16 = vrot.slane %v10898_v26, 2  ;;  %v11032_v46 = vld [vmem:[#allocation4 + $0x8d] sm:$0x1] }
 0x70b   : > { %10954 = vrot.lane.b32.xlu1 %v10951_v29, %s12692_s19  ;;  %v10931_v40 = vsel %vm10202_vm7, %v10930_v51, %v10929_v22  ;;  %v11038_v63 = vld [vmem:[#allocation4 + $0xed] sm:$0x1]  ;;  %v10936_v61 = vrot.slane %v10899_v32, 1  ;;  %v11071_v38 = vsel %vm10193_vm4, %v11070_v39, %v11032_v46  ;;  %v11074_v36 = vrot.slane %v11035_v37, 5  ;;  %v11025_v11 = vld [vmem:[#allocation4 + $0x1d] sm:$0x1] }
 0x70c   : > { %v10933_v48 = vsel %vm10205_vm8, %v10932_v7, %v10931_v40  ;;  %v11026_v1 = vld [vmem:[#allocation4 + $0x2d] sm:$0x1]  ;;  %v11039_v10 = vld [vmem:[#allocation4 + $0xfd] sm:$0x1]  ;;  %v11073_v34 = vsel %vm10196_vm5, %v11072_v3, %v11071_v38  ;;  %v11076_v8 = vrot.slane %v11036_v44, 4  ;;  %v11078_v14 = vrot.slane %v11037_v28, 3 }
 0x70d   : > { %v10935_v17 = vsel %vm10208_vm9, %v10934_v16, %v10933_v48  ;;  %v11027_v47 = vld [vmem:[#allocation4 + $0x3d] sm:$0x1]  ;;  %v11075_v45 = vsel %vm10199_vm6, %v11074_v36, %v11073_v34  ;;  %v11028_v12 = vld [vmem:[#allocation4 + $0x4d] sm:$0x1]  ;;  %v11056_v15 = vrot.slane %v11025_v11, 7  ;;  %v11058_v33 = vrot.slane %v11026_v1, 6 }
 0x70e   : > { %v10937_v13 = vsel %vm10211_vm10, %v10936_v61, %v10935_v17  ;;  %v11029_v43 = vld [vmem:[#allocation4 + $0x5d] sm:$0x1]  ;;  %v11077_v53 = vsel %vm10202_vm7, %v11076_v8, %v11075_v45  ;;  %v11080_v5 = vrot.slane %v11038_v63, 2  ;;  %v11024_v41 = vld [vmem:[#allocation4 + $0xd] sm:$0x1]  ;;  %v11082_v0 = vrot.slane %v11039_v10, 1 }
 0x70f   : > { %10952 = vrot.lane.b32.xlu0 %v10937_v13, %s12692_s19  ;;  %v11030_v50 = vld [vmem:[#allocation4 + $0x6d] sm:$0x1]  ;;  %v11079_v62 = vsel %vm10205_vm8, %v11078_v14, %v11077_v53  ;;  %v11057_v20 = vsel %vm10193_vm4, %v11056_v15, %v11024_v41  ;;  %v11060_v52 = vrot.slane %v11027_v47, 5  ;;  %v11165_v42 = vld [vmem:[#allocation4 + $0x9f] sm:$0x1]  ;;  %v11062_v2 = vrot.slane %v11028_v12, 4 }
 0x710   : > { %v11166_v55 = vld [vmem:[#allocation4 + $0xaf] sm:$0x1]  ;;  %v11081_v60 = vsel %vm10208_vm9, %v11080_v5, %v11079_v62  ;;  %v11031_v31 = vld [vmem:[#allocation4 + $0x7d] sm:$0x1]  ;;  %v11059_v58 = vsel %vm10196_vm5, %v11058_v33, %v11057_v20  ;;  %v11064_v4 = vrot.slane %v11029_v43, 3  ;;  %v11202_v35 = vrot.slane %v11165_v42, 7 }
 0x711   : > { %v11167_v24 = vld [vmem:[#allocation4 + $0xbf] sm:$0x1]  ;;  %v11083_v19 = vsel %vm10211_vm10, %v11082_v0, %v11081_v60  ;;  %v11061_v9 = vsel %vm10199_vm6, %v11060_v52, %v11059_v58  ;;  %v11168_v56 = vld [vmem:[#allocation4 + $0xcf] sm:$0x1]  ;;  %v11204_v6 = vrot.slane %v11166_v55, 6  ;;  %v11066_v26 = vrot.slane %v11030_v50, 2 }
 0x712   : > { %v11169_v25 = vld [vmem:[#allocation4 + $0xdf] sm:$0x1]  ;;  %11086 = vrot.lane.b32.xlu1 %v11083_v19, %s12692_s19  ;;  %v11063_v54 = vsel %vm10202_vm7, %v11062_v2, %v11061_v9  ;;  %v11164_v57 = vld [vmem:[#allocation4 + $0x8f] sm:$0x1]  ;;  %v11068_v23 = vrot.slane %v11031_v31, 1  ;;  %v11206_v30 = vrot.slane %v11167_v24, 5 }
 0x713   : > { %v11170_v21 = vld [vmem:[#allocation4 + $0xef] sm:$0x1]  ;;  %v11065_v18 = vsel %vm10205_vm8, %v11064_v4, %v11063_v54  ;;  %v11203_v27 = vsel %vm10193_vm4, %v11202_v35, %v11164_v57  ;;  %v11157_v49 = vld [vmem:[#allocation4 + $0x1f] sm:$0x1]  ;;  %v11208_v37 = vrot.slane %v11168_v56, 4  ;;  %v11210_v29 = vrot.slane %v11169_v25, 3 }
 0x714   : > { %v11158_v32 = vld [vmem:[#allocation4 + $0x2f] sm:$0x1]  ;;  %v11067_v59 = vsel %vm10208_vm9, %v11066_v26, %v11065_v18  ;;  %v11171_v51 = vld [vmem:[#allocation4 + $0xff] sm:$0x1]  ;;  %v11205_v7 = vsel %vm10196_vm5, %v11204_v6, %v11203_v27  ;;  %v11188_v40 = vrot.slane %v11157_v49, 7  ;;  %v11212_v63 = vrot.slane %v11170_v21, 2 }
 0x715   : > { %v11159_v22 = vld [vmem:[#allocation4 + $0x3f] sm:$0x1]  ;;  %v11069_v44 = vsel %vm10211_vm10, %v11068_v23, %v11067_v59  ;;  %v11207_v28 = vsel %vm10199_vm6, %v11206_v30, %v11205_v7  ;;  %v11160_v39 = vld [vmem:[#allocation4 + $0x4f] sm:$0x1]  ;;  %v11190_v16 = vrot.slane %v11158_v32, 6  ;;  %v11214_v36 = vrot.slane %v11171_v51, 1 }
 0x716   : > { %v11161_v3 = vld [vmem:[#allocation4 + $0x5f] sm:$0x1]  ;;  %11084 = vrot.lane.b32.xlu0 %v11069_v44, %s12692_s19  ;;  %v11209_v46 = vsel %vm10202_vm7, %v11208_v37, %v11207_v28  ;;  %v11156_v48 = vld [vmem:[#allocation4 + $0xf] sm:$0x1]  ;;  %v10169_v61 = vld [vmem:[#allocation4 + $0x90] sm:$0x1] }
 0x717   : > { %v11211_v38 = vsel %vm10205_vm8, %v11210_v29, %v11209_v46  ;;  %v11162_v11 = vld [vmem:[#allocation4 + $0x6f] sm:$0x1]  ;;  %v11189_v1 = vsel %vm10193_vm4, %v11188_v40, %v11156_v48  ;;  %v11192_v17 = vrot.slane %v11159_v22, 5  ;;  %v10170_v10 = vld [vmem:[#allocation4 + $0xa0] sm:$0x1]  ;;  %v11194_v47 = vrot.slane %v11160_v39, 4 }
 0x718   : > { %v11213_v34 = vsel %vm10208_vm9, %v11212_v63, %v11211_v38  ;;  %v11163_v8 = vld [vmem:[#allocation4 + $0x7f] sm:$0x1]  ;;  %v11191_v14 = vsel %vm10196_vm5, %v11190_v16, %v11189_v1  ;;  %v11196_v13 = vrot.slane %v11161_v3, 3  ;;  %v10171_v45 = vld [vmem:[#allocation4 + $0xb0] sm:$0x1]  ;;  %v10213_v53 = vrot.slane %v10169_v61, 7 }
 0x719   : > { %v11215_v12 = vsel %vm10211_vm10, %v11214_v36, %v11213_v34  ;;  %v11193_v43 = vsel %vm10199_vm6, %v11192_v17, %v11191_v14  ;;  %v10172_v15 = vld [vmem:[#allocation4 + $0xc0] sm:$0x1]  ;;  %v10173_v33 = vld [vmem:[#allocation4 + $0xd0] sm:$0x1]  ;;  %v10215_v5 = vrot.slane %v10170_v10, 6  ;;  %v11198_v50 = vrot.slane %v11162_v11, 2 }
 0x71a   : > { %11218 = vrot.lane.b32.xlu1 %v11215_v12, %s12692_s19  ;;  %v11195_v41 = vsel %vm10202_vm7, %v11194_v47, %v11193_v43  ;;  %v10168_v62 = vld [vmem:[#allocation4 + $0x80] sm:$0x1]  ;;  %v10161_v0 = vld [vmem:[#allocation4 + $0x10] sm:$0x1]  ;;  %v11200_v52 = vrot.slane %v11163_v8, 1  ;;  %v10217_v55 = vrot.slane %v10171_v45, 5 }
 0x71b   : > { %v11197_v20 = vsel %vm10205_vm8, %v11196_v13, %v11195_v41  ;;  %v10174_v42 = vld [vmem:[#allocation4 + $0xe0] sm:$0x1]  ;;  %v10214_v60 = vsel %vm10193_vm4, %v10213_v53, %v10168_v62  ;;  %v10175_v2 = vld [vmem:[#allocation4 + $0xf0] sm:$0x1]  ;;  %v10219_v4 = vrot.slane %v10172_v15, 4  ;;  %v10221_v24 = vrot.slane %v10173_v33, 3 }
 0x71c   : > { %v10162_v31 = vld [vmem:[#allocation4 + $0x20] sm:$0x1]  ;;  %v11199_v58 = vsel %vm10208_vm9, %v11198_v50, %v11197_v20  ;;  %v10216_v19 = vsel %vm10196_vm5, %v10215_v5, %v10214_v60  ;;  %v10163_v9 = vld [vmem:[#allocation4 + $0x30] sm:$0x1]  ;;  %v10192_v54 = vrot.slane %v10161_v0, 7  ;;  %v10223_v57 = vrot.slane %v10174_v42, 2 }
 0x71d   : > { %v11201_v56 = vsel %vm10211_vm10, %v11200_v52, %v11199_v58  ;;  %v10218_v25 = vsel %vm10199_vm6, %v10217_v55, %v10216_v19  ;;  %v10164_v35 = vld [vmem:[#allocation4 + $0x40] sm:$0x1]  ;;  %v10165_v6 = vld [vmem:[#allocation4 + $0x50] sm:$0x1]  ;;  %v10195_v26 = vrot.slane %v10162_v31, 6  ;;  %v10225_v27 = vrot.slane %v10175_v2, 1 }
 0x71e   : > { %11216 = vrot.lane.b32.xlu0 %v11201_v56, %s12692_s19  ;;  %v10220_v21 = vsel %vm10202_vm7, %v10219_v4, %v10218_v25  ;;  %v10166_v18 = vld [vmem:[#allocation4 + $0x60] sm:$0x1]  ;;  %v10198_v49 = vrot.slane %v10163_v9, 5  ;;  %v10309_v59 = vld [vmem:[#allocation4 + $0x92] sm:$0x1]  ;;  %v10201_v29 = vrot.slane %v10164_v35, 4 }
 0x71f   : > { %v10160_v23 = vld [vmem:[#allocation4] sm:$0x1]  ;;  %v10222_v30 = vsel %vm10205_vm8, %v10221_v24, %v10220_v21  ;;  %v10310_v51 = vld [vmem:[#allocation4 + $0xa2] sm:$0x1]  ;;  %v10167_v37 = vld [vmem:[#allocation4 + $0x70] sm:$0x1] }
 0x720   : > { %v10194_v32 = vsel %vm10193_vm4, %v10192_v54, %v10160_v23  ;;  %v10224_v7 = vsel %vm10208_vm9, %v10223_v57, %v10222_v30  ;;  %v10204_v22 = vrot.slane %v10165_v6, 3  ;;  %v10311_v28 = vld [vmem:[#allocation4 + $0xb2] sm:$0x1]  ;;  %v10312_v40 = vld [vmem:[#allocation4 + $0xc2] sm:$0x1]  ;;  %v10346_v46 = vrot.slane %v10309_v59, 7 }
 0x721   : > { %v10197_v44 = vsel %vm10196_vm5, %v10195_v26, %v10194_v32  ;;  %v10226_v39 = vsel %vm10211_vm10, %v10225_v27, %v10224_v7  ;;  %v10313_v16 = vld [vmem:[#allocation4 + $0xd2] sm:$0x1]  ;;  %v10348_v63 = vrot.slane %v10310_v51, 6  ;;  %v10207_v48 = vrot.slane %v10166_v18, 2  ;;  %v10308_v38 = vld [vmem:[#allocation4 + $0x82] sm:$0x1] }
 0x722   : > { %v10200_v3 = vsel %vm10199_vm6, %v10198_v49, %v10197_v44  ;;  %10230 = vst.msk [vmem:[%s17283_s11 + $0x40] sm:$0xff] %vm4624_vm1, %v10226_v39  ;;  %v10314_v36 = vld [vmem:[#allocation4 + $0xe2] sm:$0x1]  ;;  %v10210_v11 = vrot.slane %v10167_v37, 1  ;;  %v10347_v17 = vsel %vm10193_vm4, %v10346_v46, %v10308_v38  ;;  %v10350_v10 = vrot.slane %v10311_v28, 5 }
 0x723   : > { %v10203_v61 = vsel %vm10202_vm7, %v10201_v29, %v10200_v3  ;;  %v10301_v34 = vld [vmem:[#allocation4 + $0x12] sm:$0x1]  ;;  %v10302_v8 = vld [vmem:[#allocation4 + $0x22] sm:$0x1]  ;;  %v10349_v13 = vsel %vm10196_vm5, %v10348_v63, %v10347_v17  ;;  %v10352_v45 = vrot.slane %v10312_v40, 4  ;;  %v10354_v12 = vrot.slane %v10313_v16, 3 }
 0x724   : > { %v10206_v1 = vsel %vm10205_vm8, %v10204_v22, %v10203_v61  ;;  %v10315_v47 = vld [vmem:[#allocation4 + $0xf2] sm:$0x1]  ;;  %v10351_v33 = vsel %vm10199_vm6, %v10350_v10, %v10349_v13  ;;  %v10304_v53 = vld [vmem:[#allocation4 + $0x42] sm:$0x1]  ;;  %v10332_v41 = vrot.slane %v10301_v34, 7  ;;  %v10334_v50 = vrot.slane %v10302_v8, 6 }
 0x725   : > { %v10209_v14 = vsel %vm10208_vm9, %v10207_v48, %v10206_v1  ;;  %v10303_v43 = vld [vmem:[#allocation4 + $0x32] sm:$0x1]  ;;  %v10353_v62 = vsel %vm10202_vm7, %v10352_v45, %v10351_v33  ;;  %v10356_v0 = vrot.slane %v10314_v36, 2  ;;  %v10300_v20 = vld [vmem:[#allocation4 + $0x2] sm:$0x1]  ;;  %v10358_v55 = vrot.slane %v10315_v47, 1 }
 0x726   : > { %v10212_v15 = vsel %vm10211_vm10, %v10210_v11, %v10209_v14  ;;  %v10305_v5 = vld [vmem:[#allocation4 + $0x52] sm:$0x1]  ;;  %v10306_v52 = vld [vmem:[#allocation4 + $0x62] sm:$0x1]  ;;  %v10355_v42 = vsel %vm10205_vm8, %v10354_v12, %v10353_v62  ;;  %v10333_v60 = vsel %vm10193_vm4, %v10332_v41, %v10300_v20  ;;  %v10336_v31 = vrot.slane %v10303_v43, 5 }
 0x727   : > { %10229 = vst.msk [vmem:[%s17283_s11] sm:$0xff] %vm4624_vm1, %v10212_v15  ;;  %v10441_v58 = vld [vmem:[#allocation4 + $0x94] sm:$0x1]  ;;  %v10442_v2 = vld [vmem:[#allocation4 + $0xa4] sm:$0x1]  ;;  %v10357_v4 = vsel %vm10208_vm9, %v10356_v0, %v10355_v42  ;;  %v10335_v19 = vsel %vm10196_vm5, %v10334_v50, %v10333_v60  ;;  %v10338_v9 = vrot.slane %v10304_v53, 4 }
 0x728   : > { %v10307_v24 = vld [vmem:[#allocation4 + $0x72] sm:$0x1]  ;;  %v10340_v56 = vrot.slane %v10305_v5, 3  ;;  %v10443_v25 = vld [vmem:[#allocation4 + $0xb4] sm:$0x1]  ;;  %v10359_v35 = vsel %vm10211_vm10, %v10358_v55, %v10357_v4  ;;  %v10337_v6 = vsel %vm10199_vm6, %v10336_v31, %v10335_v19  ;;  %v10478_v57 = vrot.slane %v10441_v58, 7 }
 0x729   : > { %v10444_v54 = vld [vmem:[#allocation4 + $0xc4] sm:$0x1]  ;;  %v10445_v26 = vld [vmem:[#allocation4 + $0xd4] sm:$0x1]  ;;  %v10480_v21 = vrot.slane %v10442_v2, 6  ;;  %10363 = vst.msk [vmem:[%s17283_s11 + $0x48] sm:$0xff] %vm4624_vm1, %v10359_v35  ;;  %v10339_v18 = vsel %vm10202_vm7, %v10338_v9, %v10337_v6 }
 0x72a   : > { %v10342_v23 = vrot.slane %v10306_v52, 2  ;;  %v10440_v27 = vld [vmem:[#allocation4 + $0x84] sm:$0x1]  ;;  %v10341_v49 = vsel %vm10205_vm8, %v10340_v56, %v10339_v18  ;;  %v10344_v32 = vrot.slane %v10307_v24, 1  ;;  %v10482_v51 = vrot.slane %v10443_v25, 5 }
 0x72b   : > { %v10446_v30 = vld [vmem:[#allocation4 + $0xe4] sm:$0x1]  ;;  %v10479_v59 = vsel %vm10193_vm4, %v10478_v57, %v10440_v27  ;;  %v10433_v7 = vld [vmem:[#allocation4 + $0x14] sm:$0x1]  ;;  %v10484_v28 = vrot.slane %v10444_v54, 4  ;;  %v10486_v39 = vrot.slane %v10445_v26, 3 }
 0x72c   : > { %v10434_v37 = vld [vmem:[#allocation4 + $0x24] sm:$0x1]  ;;  %v10343_v29 = vsel %vm10208_vm9, %v10342_v23, %v10341_v49  ;;  %v10447_v22 = vld [vmem:[#allocation4 + $0xf4] sm:$0x1]  ;;  %v10481_v44 = vsel %vm10196_vm5, %v10480_v21, %v10479_v59  ;;  %v10464_v48 = vrot.slane %v10433_v7, 7  ;;  %v10488_v36 = vrot.slane %v10446_v30, 2 }
 0x72d   : > { %v10435_v3 = vld [vmem:[#allocation4 + $0x34] sm:$0x1]  ;;  %v10345_v40 = vsel %vm10211_vm10, %v10344_v32, %v10343_v29  ;;  %v10483_v16 = vsel %vm10199_vm6, %v10482_v51, %v10481_v44  ;;  %v10436_v46 = vld [vmem:[#allocation4 + $0x44] sm:$0x1]  ;;  %v10466_v61 = vrot.slane %v10434_v37, 6  ;;  %v10490_v10 = vrot.slane %v10447_v22, 1 }
 0x72e   : > { %v10437_v63 = vld [vmem:[#allocation4 + $0x54] sm:$0x1]  ;;  %10362 = vst.msk [vmem:[%s17283_s11 + $0x8] sm:$0xff] %vm4624_vm1, %v10345_v40  ;;  %v10485_v38 = vsel %vm10202_vm7, %v10484_v28, %v10483_v16  ;;  %v10432_v11 = vld [vmem:[#allocation4 + $0x4] sm:$0x1]  ;;  %v10468_v8 = vrot.slane %v10435_v3, 5 }
 0x72f   : > { %v10438_v1 = vld [vmem:[#allocation4 + $0x64] sm:$0x1]  ;;  %v10487_v17 = vsel %vm10205_vm8, %v10486_v39, %v10485_v38  ;;  %v10465_v34 = vsel %vm10193_vm4, %v10464_v48, %v10432_v11  ;;  %v10573_v14 = vld [vmem:[#allocation4 + $0x96] sm:$0x1]  ;;  %v10574_v47 = vld [vmem:[#allocation4 + $0xa6] sm:$0x1] }
 0x730   : > { %v10489_v13 = vsel %vm10208_vm9, %v10488_v36, %v10487_v17  ;;  %v10439_v45 = vld [vmem:[#allocation4 + $0x74] sm:$0x1]  ;;  %v10467_v12 = vsel %vm10196_vm5, %v10466_v61, %v10465_v34  ;;  %v10470_v43 = vrot.slane %v10436_v46, 4  ;;  %v10472_v15 = vrot.slane %v10437_v63, 3  ;;  %v10575_v33 = vld [vmem:[#allocation4 + $0xb6] sm:$0x1] }
 0x731   : > { %v10491_v53 = vsel %vm10211_vm10, %v10490_v10, %v10489_v13  ;;  %v10469_v5 = vsel %vm10199_vm6, %v10468_v8, %v10467_v12  ;;  %v10576_v41 = vld [vmem:[#allocation4 + $0xc6] sm:$0x1]  ;;  %v10577_v50 = vld [vmem:[#allocation4 + $0xd6] sm:$0x1]  ;;  %v10610_v62 = vrot.slane %v10573_v14, 7  ;;  %v10612_v0 = vrot.slane %v10574_v47, 6 }
 0x732   : > { %10495 = vst.msk [vmem:[%s17283_s11 + $0x50] sm:$0xff] %vm4624_vm1, %v10491_v53  ;;  %v10471_v20 = vsel %vm10202_vm7, %v10470_v43, %v10469_v5  ;;  %v10474_v52 = vrot.slane %v10438_v1, 2  ;;  %v10572_v42 = vld [vmem:[#allocation4 + $0x86] sm:$0x1]  ;;  %v10476_v31 = vrot.slane %v10439_v45, 1  ;;  %v10614_v2 = vrot.slane %v10575_v33, 5 }
 0x733   : > { %v10578_v55 = vld [vmem:[#allocation4 + $0xe6] sm:$0x1]  ;;  %v10473_v60 = vsel %vm10205_vm8, %v10472_v15, %v10471_v20  ;;  %v10611_v58 = vsel %vm10193_vm4, %v10610_v62, %v10572_v42  ;;  %v10565_v4 = vld [vmem:[#allocation4 + $0x16] sm:$0x1]  ;;  %v10616_v25 = vrot.slane %v10576_v41, 4  ;;  %v10618_v35 = vrot.slane %v10577_v50, 3 }
 0x734   : > { %v10566_v24 = vld [vmem:[#allocation4 + $0x26] sm:$0x1]  ;;  %v10475_v19 = vsel %vm10208_vm9, %v10474_v52, %v10473_v60  ;;  %v10579_v9 = vld [vmem:[#allocation4 + $0xf6] sm:$0x1]  ;;  %v10613_v56 = vsel %vm10196_vm5, %v10612_v0, %v10611_v58  ;;  %v10596_v18 = vrot.slane %v10565_v4, 7  ;;  %v10620_v30 = vrot.slane %v10578_v55, 2 }
 0x735   : > { %v10567_v6 = vld [vmem:[#allocation4 + $0x36] sm:$0x1]  ;;  %v10477_v54 = vsel %vm10211_vm10, %v10476_v31, %v10475_v19  ;;  %v10615_v26 = vsel %vm10199_vm6, %v10614_v2, %v10613_v56  ;;  %v10568_v57 = vld [vmem:[#allocation4 + $0x46] sm:$0x1]  ;;  %v10598_v23 = vrot.slane %v10566_v24, 6  ;;  %v10622_v51 = vrot.slane %v10579_v9, 1 }
 0x736   : > { %v10569_v21 = vld [vmem:[#allocation4 + $0x56] sm:$0x1]  ;;  %10494 = vst.msk [vmem:[%s17283_s11 + $0x10] sm:$0xff] %vm4624_vm1, %v10477_v54  ;;  %v10617_v27 = vsel %vm10202_vm7, %v10616_v25, %v10615_v26  ;;  %v10564_v49 = vld [vmem:[#allocation4 + $0x6] sm:$0x1]  ;;  %v10600_v37 = vrot.slane %v10567_v6, 5 }
 0x737   : > { %v10570_v32 = vld [vmem:[#allocation4 + $0x66] sm:$0x1]  ;;  %v10619_v59 = vsel %vm10205_vm8, %v10618_v35, %v10617_v27  ;;  %v10597_v7 = vsel %vm10193_vm4, %v10596_v18, %v10564_v49  ;;  %v10705_v29 = vld [vmem:[#allocation4 + $0x98] sm:$0x1]  ;;  %v10706_v22 = vld [vmem:[#allocation4 + $0xa8] sm:$0x1] }
 0x738   : > { %v10621_v44 = vsel %vm10208_vm9, %v10620_v30, %v10619_v59  ;;  %v10571_v28 = vld [vmem:[#allocation4 + $0x76] sm:$0x1]  ;;  %v10599_v39 = vsel %vm10196_vm5, %v10598_v23, %v10597_v7  ;;  %v10602_v3 = vrot.slane %v10568_v57, 4  ;;  %v10604_v40 = vrot.slane %v10569_v21, 3  ;;  %v10707_v16 = vld [vmem:[#allocation4 + $0xb8] sm:$0x1] }
 0x739   : > { %v10623_v46 = vsel %vm10211_vm10, %v10622_v51, %v10621_v44  ;;  %v10601_v63 = vsel %vm10199_vm6, %v10600_v37, %v10599_v39  ;;  %v10708_v48 = vld [vmem:[#allocation4 + $0xc8] sm:$0x1]  ;;  %v10709_v61 = vld [vmem:[#allocation4 + $0xd8] sm:$0x1]  ;;  %v10742_v38 = vrot.slane %v10705_v29, 7  ;;  %v10744_v36 = vrot.slane %v10706_v22, 6 }
 0x73a   : > { %10627 = vst.msk [vmem:[%s17283_s11 + $0x58] sm:$0xff] %vm4624_vm1, %v10623_v46  ;;  %v10603_v11 = vsel %vm10202_vm7, %v10602_v3, %v10601_v63  ;;  %v10606_v1 = vrot.slane %v10570_v32, 2  ;;  %v10704_v17 = vld [vmem:[#allocation4 + $0x88] sm:$0x1]  ;;  %v10608_v8 = vrot.slane %v10571_v28, 1  ;;  %v10746_v47 = vrot.slane %v10707_v16, 5 }
 0x73b   : > { %v10710_v10 = vld [vmem:[#allocation4 + $0xe8] sm:$0x1]  ;;  %v10605_v34 = vsel %vm10205_vm8, %v10604_v40, %v10603_v11  ;;  %v10743_v14 = vsel %vm10193_vm4, %v10742_v38, %v10704_v17  ;;  %v10697_v13 = vld [vmem:[#allocation4 + $0x18] sm:$0x1]  ;;  %v10748_v33 = vrot.slane %v10708_v48, 4  ;;  %v10750_v53 = vrot.slane %v10709_v61, 3 }
 0x73c   : > { %v10698_v45 = vld [vmem:[#allocation4 + $0x28] sm:$0x1]  ;;  %v10607_v12 = vsel %vm10208_vm9, %v10606_v1, %v10605_v34  ;;  %v10711_v43 = vld [vmem:[#allocation4 + $0xf8] sm:$0x1]  ;;  %v10745_v15 = vsel %vm10196_vm5, %v10744_v36, %v10743_v14  ;;  %v10728_v20 = vrot.slane %v10697_v13, 7  ;;  %v10752_v55 = vrot.slane %v10710_v10, 2 }
 0x73d   : > { %v10699_v5 = vld [vmem:[#allocation4 + $0x38] sm:$0x1]  ;;  %v10609_v41 = vsel %vm10211_vm10, %v10608_v8, %v10607_v12  ;;  %v10747_v50 = vsel %vm10199_vm6, %v10746_v47, %v10745_v15  ;;  %v10700_v62 = vld [vmem:[#allocation4 + $0x48] sm:$0x1]  ;;  %v10730_v52 = vrot.slane %v10698_v45, 6  ;;  %v10754_v2 = vrot.slane %v10711_v43, 1 }
 0x73e   : > { %v10701_v0 = vld [vmem:[#allocation4 + $0x58] sm:$0x1]  ;;  %10626 = vst.msk [vmem:[%s17283_s11 + $0x18] sm:$0xff] %vm4624_vm1, %v10609_v41  ;;  %v10749_v42 = vsel %vm10202_vm7, %v10748_v33, %v10747_v50  ;;  %v10696_v60 = vld [vmem:[#allocation4 + $0x8] sm:$0x1]  ;;  %v10732_v24 = vrot.slane %v10699_v5, 5 }
 0x73f   : > { %v10702_v31 = vld [vmem:[#allocation4 + $0x68] sm:$0x1]  ;;  %v10751_v58 = vsel %vm10205_vm8, %v10750_v53, %v10749_v42  ;;  %v10729_v4 = vsel %vm10193_vm4, %v10728_v20, %v10696_v60  ;;  %v10837_v19 = vld [vmem:[#allocation4 + $0x9a] sm:$0x1]  ;;  %v10838_v9 = vld [vmem:[#allocation4 + $0xaa] sm:$0x1] }
 0x740   : > { %v10753_v56 = vsel %vm10208_vm9, %v10752_v55, %v10751_v58  ;;  %v10703_v25 = vld [vmem:[#allocation4 + $0x78] sm:$0x1]  ;;  %v10731_v35 = vsel %vm10196_vm5, %v10730_v52, %v10729_v4  ;;  %v10734_v6 = vrot.slane %v10700_v62, 4  ;;  %v10736_v54 = vrot.slane %v10701_v0, 3  ;;  %v10839_v26 = vld [vmem:[#allocation4 + $0xba] sm:$0x1] }
 0x741   : > { %v10755_v57 = vsel %vm10211_vm10, %v10754_v2, %v10753_v56  ;;  %v10733_v21 = vsel %vm10199_vm6, %v10732_v24, %v10731_v35  ;;  %v10840_v18 = vld [vmem:[#allocation4 + $0xca] sm:$0x1]  ;;  %v10841_v23 = vld [vmem:[#allocation4 + $0xda] sm:$0x1]  ;;  %v10874_v27 = vrot.slane %v10837_v19, 7  ;;  %v10876_v30 = vrot.slane %v10838_v9, 6 }
 0x742   : > { %10759 = vst.msk [vmem:[%s17283_s11 + $0x60] sm:$0xff] %vm4624_vm1, %v10755_v57  ;;  %v10735_v49 = vsel %vm10202_vm7, %v10734_v6, %v10733_v21  ;;  %v10738_v32 = vrot.slane %v10702_v31, 2  ;;  %v10836_v59 = vld [vmem:[#allocation4 + $0x8a] sm:$0x1]  ;;  %v10740_v37 = vrot.slane %v10703_v25, 1  ;;  %v10878_v22 = vrot.slane %v10839_v26, 5 }
 0x743   : > { %v10842_v51 = vld [vmem:[#allocation4 + $0xea] sm:$0x1]  ;;  %v10737_v7 = vsel %vm10205_vm8, %v10736_v54, %v10735_v49  ;;  %v10875_v29 = vsel %vm10193_vm4, %v10874_v27, %v10836_v59  ;;  %v10829_v44 = vld [vmem:[#allocation4 + $0x1a] sm:$0x1]  ;;  %v10880_v16 = vrot.slane %v10840_v18, 4  ;;  %v10882_v46 = vrot.slane %v10841_v23, 3 }
 0x744   : > { %v10830_v28 = vld [vmem:[#allocation4 + $0x2a] sm:$0x1]  ;;  %v10739_v39 = vsel %vm10208_vm9, %v10738_v32, %v10737_v7  ;;  %v10843_v3 = vld [vmem:[#allocation4 + $0xfa] sm:$0x1]  ;;  %v10877_v40 = vsel %vm10196_vm5, %v10876_v30, %v10875_v29  ;;  %v10860_v11 = vrot.slane %v10829_v44, 7  ;;  %v10884_v10 = vrot.slane %v10842_v51, 2 }
 0x745   : > { %v10831_v63 = vld [vmem:[#allocation4 + $0x3a] sm:$0x1]  ;;  %v10741_v48 = vsel %vm10211_vm10, %v10740_v37, %v10739_v39  ;;  %v10879_v61 = vsel %vm10199_vm6, %v10878_v22, %v10877_v40  ;;  %v10832_v38 = vld [vmem:[#allocation4 + $0x4a] sm:$0x1]  ;;  %v10862_v1 = vrot.slane %v10830_v28, 6  ;;  %v10886_v47 = vrot.slane %v10843_v3, 1 }
 0x746   : > { %v10833_v36 = vld [vmem:[#allocation4 + $0x5a] sm:$0x1]  ;;  %10758 = vst.msk [vmem:[%s17283_s11 + $0x20] sm:$0xff] %vm4624_vm1, %v10741_v48  ;;  %v10881_v17 = vsel %vm10202_vm7, %v10880_v16, %v10879_v61  ;;  %v10828_v34 = vld [vmem:[#allocation4 + $0xa] sm:$0x1]  ;;  %v10864_v45 = vrot.slane %v10831_v63, 5 }
 0x747   : > { %v10834_v8 = vld [vmem:[#allocation4 + $0x6a] sm:$0x1]  ;;  %v10883_v14 = vsel %vm10205_vm8, %v10882_v46, %v10881_v17  ;;  %v10861_v13 = vsel %vm10193_vm4, %v10860_v11, %v10828_v34  ;;  %v10969_v12 = vld [vmem:[#allocation4 + $0x9c] sm:$0x1]  ;;  %v10970_v43 = vld [vmem:[#allocation4 + $0xac] sm:$0x1] }
 0x748   : > { %v10885_v15 = vsel %vm10208_vm9, %v10884_v10, %v10883_v14  ;;  %v10835_v33 = vld [vmem:[#allocation4 + $0x7a] sm:$0x1]  ;;  %v10863_v53 = vsel %vm10196_vm5, %v10862_v1, %v10861_v13  ;;  %v10866_v5 = vrot.slane %v10832_v38, 4  ;;  %v10868_v41 = vrot.slane %v10833_v36, 3  ;;  %v10971_v50 = vld [vmem:[#allocation4 + $0xbc] sm:$0x1] }
 0x749   : > { %v10887_v62 = vsel %vm10211_vm10, %v10886_v47, %v10885_v15  ;;  %v10865_v0 = vsel %vm10199_vm6, %v10864_v45, %v10863_v53  ;;  %v10972_v20 = vld [vmem:[#allocation4 + $0xcc] sm:$0x1]  ;;  %v10973_v52 = vld [vmem:[#allocation4 + $0xdc] sm:$0x1]  ;;  %v11006_v42 = vrot.slane %v10969_v12, 7  ;;  %v11008_v55 = vrot.slane %v10970_v43, 6 }
 0x74a   : > { %10891 = vst.msk [vmem:[%s17283_s11 + $0x68] sm:$0xff] %vm4624_vm1, %v10887_v62  ;;  %v10867_v60 = vsel %vm10202_vm7, %v10866_v5, %v10865_v0  ;;  %v10870_v31 = vrot.slane %v10834_v8, 2  ;;  %v10968_v58 = vld [vmem:[#allocation4 + $0x8c] sm:$0x1]  ;;  %v10872_v24 = vrot.slane %v10835_v33, 1  ;;  %v11010_v9 = vrot.slane %v10971_v50, 5 }
 0x74b   : > { %v10974_v2 = vld [vmem:[#allocation4 + $0xec] sm:$0x1]  ;;  %v10869_v4 = vsel %vm10205_vm8, %v10868_v41, %v10867_v60  ;;  %v11007_v19 = vsel %vm10193_vm4, %v11006_v42, %v10968_v58  ;;  %v10961_v56 = vld [vmem:[#allocation4 + $0x1c] sm:$0x1]  ;;  %v11012_v26 = vrot.slane %v10972_v20, 4  ;;  %v11014_v57 = vrot.slane %v10973_v52, 3 }
 0x74c   : > { %v10962_v25 = vld [vmem:[#allocation4 + $0x2c] sm:$0x1]  ;;  %v10871_v35 = vsel %vm10208_vm9, %v10870_v31, %v10869_v4  ;;  %v10975_v6 = vld [vmem:[#allocation4 + $0xfc] sm:$0x1]  ;;  %v11009_v54 = vsel %vm10196_vm5, %v11008_v55, %v11007_v19  ;;  %v10992_v49 = vrot.slane %v10961_v56, 7  ;;  %v11016_v51 = vrot.slane %v10974_v2, 2 }
 0x74d   : > { %v10963_v21 = vld [vmem:[#allocation4 + $0x3c] sm:$0x1]  ;;  %v10873_v18 = vsel %vm10211_vm10, %v10872_v24, %v10871_v35  ;;  %v11011_v23 = vsel %vm10199_vm6, %v11010_v9, %v11009_v54  ;;  %v10964_v27 = vld [vmem:[#allocation4 + $0x4c] sm:$0x1]  ;;  %v10994_v32 = vrot.slane %v10962_v25, 6  ;;  %v11018_v22 = vrot.slane %v10975_v6, 1 }
 0x74e   : > { %v10965_v30 = vld [vmem:[#allocation4 + $0x5c] sm:$0x1]  ;;  %10890 = vst.msk [vmem:[%s17283_s11 + $0x28] sm:$0xff] %vm4624_vm1, %v10873_v18  ;;  %v11013_v59 = vsel %vm10202_vm7, %v11012_v26, %v11011_v23  ;;  %v10960_v7 = vld [vmem:[#allocation4 + $0xc] sm:$0x1]  ;;  %v10996_v28 = vrot.slane %v10963_v21, 5 }
 0x74f   : > { %v10966_v37 = vld [vmem:[#allocation4 + $0x6c] sm:$0x1]  ;;  %v11015_v29 = vsel %vm10205_vm8, %v11014_v57, %v11013_v59  ;;  %v10993_v44 = vsel %vm10193_vm4, %v10992_v49, %v10960_v7  ;;  %v11101_v39 = vld [vmem:[#allocation4 + $0x9e] sm:$0x1]  ;;  %v11102_v3 = vld [vmem:[#allocation4 + $0xae] sm:$0x1] }
 0x750   : > { %v11017_v40 = vsel %vm10208_vm9, %v11016_v51, %v11015_v29  ;;  %v10967_v16 = vld [vmem:[#allocation4 + $0x7c] sm:$0x1]  ;;  %v10995_v46 = vsel %vm10196_vm5, %v10994_v32, %v10993_v44  ;;  %v10998_v63 = vrot.slane %v10964_v27, 4  ;;  %v11000_v48 = vrot.slane %v10965_v30, 3  ;;  %v11103_v61 = vld [vmem:[#allocation4 + $0xbe] sm:$0x1] }
 0x751   : > { %v11019_v38 = vsel %vm10211_vm10, %v11018_v22, %v11017_v40  ;;  %v10997_v36 = vsel %vm10199_vm6, %v10996_v28, %v10995_v46  ;;  %v11104_v11 = vld [vmem:[#allocation4 + $0xce] sm:$0x1]  ;;  %v11105_v1 = vld [vmem:[#allocation4 + $0xde] sm:$0x1]  ;;  %v11138_v17 = vrot.slane %v11101_v39, 7  ;;  %v11140_v10 = vrot.slane %v11102_v3, 6 }
 0x752   : > { %v10292_v34 = vpop.permute.xlu0 %10291  ;;  %11023 = vst.msk [vmem:[%s17283_s11 + $0x70] sm:$0xff] %vm4624_vm1, %v11019_v38  ;;  %v10999_v8 = vsel %vm10202_vm7, %v10998_v63, %v10997_v36  ;;  %v11002_v14 = vrot.slane %v10966_v37, 2  ;;  %v11100_v47 = vld [vmem:[#allocation4 + $0x8e] sm:$0x1]  ;;  %v11004_v12 = vrot.slane %v10967_v16, 1  ;;  %v11142_v15 = vrot.slane %v11103_v61, 5 }
 0x753   : > { %v11106_v13 = vld [vmem:[#allocation4 + $0xee] sm:$0x1]  ;;  %10298 = vst.msk [vmem:[%s17283_s11] sm:$0xff] %vm10297_vm11, %v10292_v34  ;;  %v11001_v45 = vsel %vm10205_vm8, %v11000_v48, %v10999_v8  ;;  %v11139_v43 = vsel %vm10193_vm4, %v11138_v17, %v11100_v47  ;;  %v11093_v33 = vld [vmem:[#allocation4 + $0x1e] sm:$0x1]  ;;  %v11144_v62 = vrot.slane %v11104_v11, 4 }
 0x754   : > { %v11094_v53 = vld [vmem:[#allocation4 + $0x2e] sm:$0x1]  ;;  %v11003_v5 = vsel %vm10208_vm9, %v11002_v14, %v11001_v45  ;;  %v11107_v41 = vld [vmem:[#allocation4 + $0xfe] sm:$0x1]  ;;  %v11141_v50 = vsel %vm10196_vm5, %v11140_v10, %v11139_v43  ;;  %v11146_v0 = vrot.slane %v11105_v1, 3  ;;  %v11124_v60 = vrot.slane %v11093_v33, 7 }
 0x755   : > { %v11095_v20 = vld [vmem:[#allocation4 + $0x3e] sm:$0x1]  ;;  %v11005_v52 = vsel %vm10211_vm10, %v11004_v12, %v11003_v5  ;;  %v11143_v42 = vsel %vm10199_vm6, %v11142_v15, %v11141_v50  ;;  %v11096_v55 = vld [vmem:[#allocation4 + $0x4e] sm:$0x1]  ;;  %v11126_v31 = vrot.slane %v11094_v53, 6  ;;  %v11148_v4 = vrot.slane %v11106_v13, 2 }
 0x756   : > { %11022 = vst.msk [vmem:[%s17283_s11 + $0x30] sm:$0xff] %vm4624_vm1, %v11005_v52  ;;  %v11145_v2 = vsel %vm10202_vm7, %v11144_v62, %v11143_v42  ;;  %v11092_v24 = vld [vmem:[#allocation4 + $0xe] sm:$0x1]  ;;  %v11097_v19 = vld [vmem:[#allocation4 + $0x5e] sm:$0x1]  ;;  %v11150_v56 = vrot.slane %v11107_v41, 1 }
 0x757   : > { %v11147_v9 = vsel %vm10205_vm8, %v11146_v0, %v11145_v2  ;;  %v11098_v25 = vld [vmem:[#allocation4 + $0x6e] sm:$0x1]  ;;  %v11125_v35 = vsel %vm10193_vm4, %v11124_v60, %v11092_v24  ;;  %v11128_v6 = vrot.slane %v11095_v20, 5  ;;  %v11099_v26 = vld [vmem:[#allocation4 + $0x7e] sm:$0x1]  ;;  %v11130_v21 = vrot.slane %v11096_v55, 4 }
 0x758   : > { %v11149_v54 = vsel %vm10208_vm9, %v11148_v4, %v11147_v9  ;;  %v11127_v57 = vsel %vm10196_vm5, %v11126_v31, %v11125_v35  ;;  %v11132_v27 = vrot.slane %v11097_v19, 3  ;;  %v11134_v49 = vrot.slane %v11098_v25, 2 }
 0x759   : > { %v11151_v18 = vsel %vm10211_vm10, %v11150_v56, %v11149_v54  ;;  %v11129_v23 = vsel %vm10199_vm6, %v11128_v6, %v11127_v57  ;;  %v11136_v59 = vrot.slane %v11099_v26, 1 }
 0x75a   : > { %v10294_v58 = vpop.permute.xlu1 %10293  ;;  %11155 = vst.msk [vmem:[%s17283_s11 + $0x78] sm:$0xff] %vm4624_vm1, %v11151_v18  ;;  %v11131_v30 = vsel %vm10202_vm7, %v11130_v21, %v11129_v23 }
 0x75b   : > { %10299 = vst.msk [vmem:[%s17283_s11 + $0x40] sm:$0xff] %vm10297_vm11, %v10294_v58  ;;  %v11133_v32 = vsel %vm10205_vm8, %v11132_v27, %v11131_v30 }
 0x75c   : > { %v11135_v7 = vsel %vm10208_vm9, %v11134_v49, %v11133_v32 }
 0x75d   : > { %v11137_v37 = vsel %vm10211_vm10, %v11136_v59, %v11135_v7 }
 0x75e   : > { %v10427_v51 = vpop.permute.xlu1 %10426  ;;  %11154 = vst.msk [vmem:[%s17283_s11 + $0x38] sm:$0xff] %vm4624_vm1, %v11137_v37 }
 0x75f   : > { %10431 = vst.msk [vmem:[%s17283_s11 + $0x48] sm:$0xff] %vm10297_vm11, %v10427_v51 }
 0x762   : > { %v10425_v29 = vpop.permute.xlu0 %10424 }
 0x763   : > { %10430 = vst.msk [vmem:[%s17283_s11 + $0x8] sm:$0xff] %vm10297_vm11, %v10425_v29 }
 0x765   : > { %v10559_v22 = vpop.permute.xlu1 %10558 }
 0x766   : > { %10563 = vst.msk [vmem:[%s17283_s11 + $0x50] sm:$0xff] %vm10297_vm11, %v10559_v22 }
 0x76a   : > { %v10557_v44 = vpop.permute.xlu0 %10556 }
 0x76b   : > { %10562 = vst.msk [vmem:[%s17283_s11 + $0x10] sm:$0xff] %vm10297_vm11, %v10557_v44 }
 0x76d   : > { %v10691_v28 = vpop.permute.xlu1 %10690 }
 0x76e   : > { %10695 = vst.msk [vmem:[%s17283_s11 + $0x58] sm:$0xff] %vm10297_vm11, %v10691_v28 }
 0x771   : > { %v10689_v39 = vpop.permute.xlu0 %10688 }
 0x772   : > { %10694 = vst.msk [vmem:[%s17283_s11 + $0x18] sm:$0xff] %vm10297_vm11, %v10689_v39 }
 0x775   : > { %v10823_v3 = vpop.permute.xlu1 %10822 }
 0x776   : > { %10827 = vst.msk [vmem:[%s17283_s11 + $0x60] sm:$0xff] %vm10297_vm11, %v10823_v3 }
 0x779   : > { %v10821_v40 = vpop.permute.xlu0 %10820 }
 0x77a   : > { %10826 = vst.msk [vmem:[%s17283_s11 + $0x20] sm:$0xff] %vm10297_vm11, %v10821_v40 }
 0x77d   : > { %v10955_v16 = vpop.permute.xlu1 %10954 }
 0x77e   : > { %10959 = vst.msk [vmem:[%s17283_s11 + $0x68] sm:$0xff] %vm10297_vm11, %v10955_v16 }
 0x781   : > { %v10953_v46 = vpop.permute.xlu0 %10952 }
 0x782   : > { %10958 = vst.msk [vmem:[%s17283_s11 + $0x28] sm:$0xff] %vm10297_vm11, %v10953_v46 }
 0x784   : > { %v11087_v63 = vpop.permute.xlu1 %11086 }
 0x785   : > { %11091 = vst.msk [vmem:[%s17283_s11 + $0x70] sm:$0xff] %vm10297_vm11, %v11087_v63 }
 0x788   : > { %v11085_v48 = vpop.permute.xlu0 %11084 }
 0x789   : > { %11090 = vst.msk [vmem:[%s17283_s11 + $0x30] sm:$0xff] %vm10297_vm11, %v11085_v48 }
 0x78c   : > { %v11219_v61 = vpop.permute.xlu1 %11218 }
 0x78d   : > { %11223 = vst.msk [vmem:[%s17283_s11 + $0x78] sm:$0xff] %vm10297_vm11, %v11219_v61 }
 0x790   : > { %v11217_v38 = vpop.permute.xlu0 %11216 }
 0x791   : > { %11222 = vst.msk [vmem:[%s17283_s11 + $0x38] sm:$0xff] %vm10297_vm11, %v11217_v38 }
 0x792 PF: > { %s19_s30 = sadd.s32 1, %s12689_s30  }
 0x793   : > { %p16_p4 = scmp.ge.s32.totalorder %s19_s30, 4  }
 0x795   :  { %18 = sbr.rel (!%p16_p4) target bundleno = 1 (0x1), region = 89 }

</bundles_post_ra>
